<compile_context>
chip_gen: v5e
topology: v5e:2x2
jax: 0.10.0
libtpu: 0.0.40
codegen_flags: <defaults>
</compile_context>

<pallas_src>
import jax
import jax.numpy as jnp
from jax.experimental import pallas as pl
from jax.experimental.pallas import tpu as pltpu


# ----------------------------- fused Pallas kernel -------------------------- #

def rsam1_kernel(x_ref, res_ref, w_pre_ref, w_post_ref, b_post_ref,
                 w_pa_ref, b_pa_ref, w_ca1_ref, w_ca2_ref,
                 w_dw_ref, b_dw_ref, w_pwsc_ref, b_sc_ref,
                 out_ref, pad_ref):
    # One grid step == one batch element; everything below stays in VMEM.
    _, Hs, Ws, C = x_ref.shape
    _, H, W, Cin = res_ref.shape
    HW = H * W

    # ---- zero only the 1-px border of the shared pad scratch ------------------
    # The interior is fully overwritten by every stage; the border never gets
    # dirtied.  Done per step (tiny: O((H+W)C)) so it is safe when the batch
    # axis is split across TensorCores (scratch is per-core).
    zrow = jnp.zeros((1, W + 2, C), jnp.float32)
    zcol = jnp.zeros((H + 2, 1, C), jnp.float32)
    pad_ref[0:1, :, :] = zrow
    pad_ref[H + 1:H + 2, :, :] = zrow
    pad_ref[:, 0:1, :] = zcol
    pad_ref[:, W + 1:W + 2, :] = zcol

    # ---- bilinear 2x upsample of (fw1-pre-scaled) x, align_corners=False ------
    #   out[2i]   = 0.75*in[i] + 0.25*in[max(i-1, 0)]
    #   out[2i+1] = 0.75*in[i] + 0.25*in[min(i+1, n-1)]
    xh = x_ref[0].astype(jnp.float32)                               # (Hs, Ws, C)
    up = jnp.concatenate([xh[:1], xh[:-1]], axis=0)
    dn = jnp.concatenate([xh[1:], xh[-1:]], axis=0)
    ev = 0.75 * xh + 0.25 * up
    od = 0.75 * xh + 0.25 * dn
    x1 = jnp.concatenate([ev[:, None], od[:, None]], axis=1).reshape(H, Ws, C)

    lf = jnp.concatenate([x1[:, :1, :], x1[:, :-1, :]], axis=1)
    rt = jnp.concatenate([x1[:, 1:, :], x1[:, -1:, :]], axis=1)
    ev = (0.75 * x1 + 0.25 * lf).reshape(H * Ws, C)
    od = (0.75 * x1 + 0.25 * rt).reshape(H * Ws, C)
    x_up = jnp.concatenate([ev[:, None, :], od[:, None, :]], axis=1).reshape(H, W, C)

    # ---- fuse: fw0 * pre_conv(res) + fw1 * upsample(x) -------------------------
    # (fw0 folded into w_pre, fw1 folded into x — both exact, linear; bf16 MXU)
    resb = res_ref[0].reshape(HW, Cin)                              # bf16
    pre = jnp.dot(resb, w_pre_ref[...], preferred_element_type=jnp.float32)
    y = pre.reshape(H, W, C) + x_up                                 # (H, W, C) f32

    # ---- post_conv: 3x3 conv as ONE K=9*C bf16 im2col matmul + folded BN + ReLU6
    pad_ref[1:H + 1, 1:W + 1, :] = y
    # 3 dx-shifted planes (one sublane relayout each, cast to bf16 once);
    # dy taps are cheap outer-dim row slices of the planes.
    planes = [pad_ref[:, dx:dx + W, :].astype(jnp.bfloat16) for dx in range(3)]
    patch = jnp.concatenate(
        [planes[dx][dy:dy + H].reshape(HW, C)
         for dy in range(3) for dx in range(3)], axis=-1)           # (HW, 9C) bf16
    z = jnp.dot(patch, w_post_ref[...], preferred_element_type=jnp.float32)
    z = jnp.clip(z + b_post_ref[...], 0.0, 6.0)                     # (HW, C) f32
    z3 = z.reshape(H, W, C)
    zb = z.astype(jnp.bfloat16)                                     # reused MXU operand

    # ---- channel attention on the VPU/XLU: GAP -> 1x1 -> ReLU6 -> 1x1 -> sigmoid
    # (M=1 / N=C//16 dots would leave the MXU idle; weights are stored (Cr, C).)
    m = jnp.sum(z, axis=0, keepdims=True) * (1.0 / HW)              # (1, C)
    h1 = jnp.clip(jnp.sum(m * w_ca1_ref[...], axis=1, keepdims=True),
                  0.0, 6.0)                                         # (Cr, 1)
    ca = jax.nn.sigmoid(jnp.sum(h1 * w_ca2_ref[...], axis=0, keepdims=True))  # (1, C)

    # ---- pixel attention: depthwise 3x3 + bias + sigmoid; u = (pa + ca) * z ----
    # (matches PyTorch: pa(x)*x + ca(x)*x with x = post_conv output)
    pad_ref[1:H + 1, 1:W + 1, :] = z3            # border still zero (reused scratch)
    wpa = w_pa_ref[...]                          # (9, C), read once
    acc = None
    for dx in range(3):
        plane = pad_ref[:, dx:dx + W, :]         # (H+2, W, C) f32, one relayout
        for dy in range(3):
            term = plane[dy:dy + H] * wpa[dy * 3 + dx]
            acc = term if acc is None else acc + term
    pa = jax.nn.sigmoid(acc + b_pa_ref[...])
    u = (pa + ca) * z3                           # (H, W, C) f32

    # ---- proj depthwise 3x3 + folded BN ----------------------------------------
    pad_ref[1:H + 1, 1:W + 1, :] = u
    wdw = w_dw_ref[...]                          # (9, C)
    acc = None
    for dx in range(3):
        plane = pad_ref[:, dx:dx + W, :]
        for dy in range(3):
            term = plane[dy:dy + H] * wdw[dy * 3 + dx]
            acc = term if acc is None else acc + term
    vb = (acc + b_dw_ref[...]).reshape(HW, C).astype(jnp.bfloat16)

    # ---- fused pointwise-proj + shortcut: ONE K=2C bf16 matmul; + bias; ReLU6 --
    # out = v @ w_pw + z @ w_sc + b_sc  ==  concat([v, z]) @ [w_pw ; w_sc] + b_sc
    vz = jnp.concatenate([vb, zb], axis=-1)                          # (HW, 2C) bf16
    out = jnp.dot(vz, w_pwsc_ref[...], preferred_element_type=jnp.float32)
    out_ref[0] = jnp.clip(out + b_sc_ref[...], 0.0, 6.0).astype(out_ref.dtype)


# ----------------------------- wrappers -------------------------------------- #

def _full_spec(arr):
    nd = arr.ndim
    return pl.BlockSpec(arr.shape, lambda b, _nd=nd: (0,) * _nd)


def rsam1_forward_nhwc(x, res, p):
    """x: (B, H/2, W/2, C) half-res, res: (B, H, W, C_in) — NHWC in, NHWC out."""
    B, Hs, Ws, C = x.shape
    H, W = 2 * Hs, 2 * Ws
    Bn, Hr, Wr, Cin = res.shape
    assert (Bn, Hr, Wr) == (B, H, W)
    HW = H * W

    # learnable fusion weights: ReLU + normalize (two scalars, XLA glue);
    # fold fw0 into w_pre and fw1 into x (both exact, linear).
    wr = jnp.maximum(p['fuse_w'], 0.0)
    fw = wr / (jnp.sum(wr) + 1e-8)
    x_bf = (x.astype(jnp.float32) * fw[1]).astype(jnp.bfloat16)   # halves HBM traffic
    res_bf = res.astype(jnp.bfloat16)

    # bf16 MXU operands; VPU-side weights/biases stay f32.
    w_pre_bf = (p['w_pre'] * fw[0]).astype(jnp.bfloat16)
    w_post_bf = p['w_post'].astype(jnp.bfloat16)
    w_pwsc_bf = jnp.concatenate([p['w_pw'], p['w_sc']], axis=0).astype(jnp.bfloat16)

    weights = (w_pre_bf, w_post_bf, p['b_post'], p['w_pa'], p['b_pa'],
               p['w_ca1'], p['w_ca2'], p['w_dw'], p['b_dw'],
               w_pwsc_bf, p['b_sc'])

    # advisory cost estimate so XLA schedules neighbours around the custom call
    flops = 2 * B * HW * C * (Cin + 9 * C + 2 * C) + 60 * B * HW * C
    transcendentals = B * HW * C + B * C            # pa sigmoid + ca sigmoid
    bytes_accessed = (x_bf.size * 2 + res_bf.size * 2 + B * HW * C * 4
                      + sum(int(w.size) * w.dtype.itemsize for w in weights))

    out_flat = pl.pallas_call(
        rsam1_kernel,
        out_shape=jax.ShapeDtypeStruct((B, HW, C), jnp.float32),
        grid=(B,),
        in_specs=[
            pl.BlockSpec((1, Hs, Ws, C), lambda b: (b, 0, 0, 0)),
            pl.BlockSpec((1, H, W, Cin), lambda b: (b, 0, 0, 0)),
        ] + [_full_spec(w) for w in weights],
        out_specs=pl.BlockSpec((1, HW, C), lambda b: (b, 0, 0)),
        scratch_shapes=[pltpu.VMEM((H + 2, W + 2, C), jnp.float32)],
        compiler_params=pltpu.CompilerParams(
            dimension_semantics=("parallel",),
            vmem_limit_bytes=64 * 1024 * 1024),
        cost_estimate=pl.CostEstimate(flops=int(flops),
                                      transcendentals=int(transcendentals),
                                      bytes_accessed=int(bytes_accessed)),
    )(x_bf, res_bf, *weights)

    return out_flat.reshape(B, H, W, C)


def rsam1_forward(x_nchw, res_nchw, p):
    """NCHW convenience wrapper (API parity with the PyTorch module).
    Prefer rsam1_forward_nhwc to avoid the extra HBM transpose passes."""
    x = jnp.transpose(x_nchw, (0, 2, 3, 1))
    res = jnp.transpose(res_nchw, (0, 2, 3, 1))
    out = rsam1_forward_nhwc(x, res, p)
    return jnp.transpose(out, (0, 3, 1, 2))


# ----------------------------- parameter setup (XLA glue) ------------------- #

def fold_bn(gamma, beta, mean, var, eps=1e-5):
    scale = gamma / jnp.sqrt(var + eps)
    shift = beta - mean * scale
    return scale, shift


def make_params(key, in_channels, decode_channels):
    C_in, C = in_channels, decode_channels
    Cr = C // 16
    ks = jax.random.split(key, 24)
    n = lambda k, shape, s=0.1: s * jax.random.normal(k, shape, dtype=jnp.float32)

    # pre_conv: Conv2d(C_in, C, 1, bias=False)
    w_pre = jnp.transpose(n(ks[0], (C, C_in)), (1, 0))                # (C_in, C)

    # learnable fusion weights (init ones in PyTorch)
    fuse_w = jnp.ones((2,), jnp.float32)

    # post_conv: Conv2d(C, C, 3, bias=False) + BN + ReLU6 -> im2col (9*C, C)
    w_post = jnp.transpose(n(ks[1], (C, C, 3, 3)), (2, 3, 1, 0)).reshape(9, C, C)
    s, t = fold_bn(1.0 + n(ks[2], (C,), 0.05), n(ks[3], (C,), 0.05),
                   n(ks[4], (C,), 0.05), 1.0 + 0.05 * jax.random.uniform(ks[5], (C,)))
    w_post_f = (w_post * s).reshape(9 * C, C)
    b_post_f = t.reshape(1, C)

    # pa: depthwise Conv2d(C, C, 3, groups=C, bias=True) + Sigmoid
    w_pa = jnp.transpose(n(ks[6], (C, 3, 3)), (1, 2, 0)).reshape(9, C)
    b_pa = n(ks[7], (1, C), 0.05)

    # ca: AvgPool -> Conv(C, C//16, 1, no bias) -> ReLU6 -> Conv(C//16, C, 1, no bias) -> Sigmoid
    # stored as (Cr, C) each so the kernel can do VPU broadcast-mul + reductions.
    w_ca1 = n(ks[8], (Cr, C))                                         # conv1 [out, in]
    w_ca2 = jnp.transpose(n(ks[9], (C, Cr)), (1, 0))                  # conv2^T (Cr, C)

    # shortcut: Conv2d(C, C, 1, bias=False) + BN
    w_sc = jnp.transpose(n(ks[10], (C, C)), (1, 0))
    s, t = fold_bn(1.0 + n(ks[11], (C,), 0.05), n(ks[12], (C,), 0.05),
                   n(ks[13], (C,), 0.05), 1.0 + 0.05 * jax.random.uniform(ks[14], (C,)))
    w_sc_f, b_sc_f = w_sc * s, t.reshape(1, C)

    # proj: depthwise 3x3 (no bias) -> BN -> pointwise 1x1 (no bias)
    w_dw = jnp.transpose(n(ks[15], (C, 3, 3)), (1, 2, 0)).reshape(9, C)
    s, t = fold_bn(1.0 + n(ks[16], (C,), 0.05), n(ks[17], (C,), 0.05),
                   n(ks[18], (C,), 0.05), 1.0 + 0.05 * jax.random.uniform(ks[19], (C,)))
    w_dw_f, b_dw_f = w_dw * s, t.reshape(1, C)
    w_pw = jnp.transpose(n(ks[20], (C, C)), (1, 0))

    return dict(w_pre=w_pre, fuse_w=fuse_w, w_post=w_post_f, b_post=b_post_f,
                w_pa=w_pa, b_pa=b_pa, w_ca1=w_ca1, w_ca2=w_ca2,
                w_sc=w_sc_f, b_sc=b_sc_f, w_dw=w_dw_f, b_dw=b_dw_f, w_pw=w_pw)


# ----------------------------- demo ----------------------------------------- #

if __name__ == "__main__":
    B, C_in, C = 2, 64, 64          # module defaults: in_channels=64, decode_channels=64
    Hs = Ws = 8                     # x is half-resolution; res is full resolution
    key = jax.random.PRNGKey(0)
    kx, kr, kp = jax.random.split(key, 3)

    # NHWC inputs (primary path; avoids the NCHW<->NHWC HBM transpose passes)
    x = jax.random.normal(kx, (B, Hs, Ws, C), dtype=jnp.float32)
    res = jax.random.normal(kr, (B, 2 * Hs, 2 * Ws, C_in), dtype=jnp.float32)
    params = make_params(kp, C_in, C)

    out = jax.jit(rsam1_forward_nhwc)(x, res, params)
    out = jax.block_until_ready(out)

    assert out.shape == (B, 2 * Hs, 2 * Ws, C)
    assert bool(jnp.all(jnp.isfinite(out)))
    print("KERNEL_OK")
</pallas_src>

<mosaic_0001>
module attributes {stable_mosaic.version = 11 : i64} {
  func.func @rsam1_kernel(%arg0: i32, %arg1: memref<1x8x8x64xbf16, #tpu.memory_space<vmem>>, %arg2: memref<1x16x16x64xbf16, #tpu.memory_space<vmem>>, %arg3: memref<64x64xbf16, #tpu.memory_space<vmem>>, %arg4: memref<576x64xbf16, #tpu.memory_space<vmem>>, %arg5: memref<1x64xf32, #tpu.memory_space<vmem>>, %arg6: memref<9x64xf32, #tpu.memory_space<vmem>>, %arg7: memref<1x64xf32, #tpu.memory_space<vmem>>, %arg8: memref<4x64xf32, #tpu.memory_space<vmem>>, %arg9: memref<4x64xf32, #tpu.memory_space<vmem>>, %arg10: memref<9x64xf32, #tpu.memory_space<vmem>>, %arg11: memref<1x64xf32, #tpu.memory_space<vmem>>, %arg12: memref<128x64xbf16, #tpu.memory_space<vmem>>, %arg13: memref<1x64xf32, #tpu.memory_space<vmem>>, %arg14: memref<1x256x64xf32, #tpu.memory_space<vmem>>, %arg15: memref<18x18x64xf32, #tpu.memory_space<vmem>>) attributes {dimension_semantics = [#tpu.dimension_semantics<parallel>], iteration_bounds = array<i64: 2>, scalar_prefetch = 0 : i64, scratch_operands = 1 : i64, tpu.core_type = #tpu.core_type<tc>, window_params = [{transform_indices = @transform_0, window_bounds = array<i64: 1, 8, 8, 64>}, {transform_indices = @transform_1, window_bounds = array<i64: 1, 16, 16, 64>}, {pipeline_mode = #tpu.pipeline_mode<synchronous>, transform_indices = @transform_2, window_bounds = array<i64: 64, 64>}, {pipeline_mode = #tpu.pipeline_mode<synchronous>, transform_indices = @transform_3, window_bounds = array<i64: 576, 64>}, {pipeline_mode = #tpu.pipeline_mode<synchronous>, transform_indices = @transform_4, window_bounds = array<i64: 1, 64>}, {pipeline_mode = #tpu.pipeline_mode<synchronous>, transform_indices = @transform_5, window_bounds = array<i64: 9, 64>}, {pipeline_mode = #tpu.pipeline_mode<synchronous>, transform_indices = @transform_6, window_bounds = array<i64: 1, 64>}, {pipeline_mode = #tpu.pipeline_mode<synchronous>, transform_indices = @transform_7, window_bounds = array<i64: 4, 64>}, {pipeline_mode = #tpu.pipeline_mode<synchronous>, transform_indices = @transform_8, window_bounds = array<i64: 4, 64>}, {pipeline_mode = #tpu.pipeline_mode<synchronous>, transform_indices = @transform_9, window_bounds = array<i64: 9, 64>}, {pipeline_mode = #tpu.pipeline_mode<synchronous>, transform_indices = @transform_10, window_bounds = array<i64: 1, 64>}, {pipeline_mode = #tpu.pipeline_mode<synchronous>, transform_indices = @transform_11, window_bounds = array<i64: 128, 64>}, {pipeline_mode = #tpu.pipeline_mode<synchronous>, transform_indices = @transform_12, window_bounds = array<i64: 1, 64>}, {transform_indices = @transform_13, window_bounds = array<i64: 1, 256, 64>}]} {
    %cst = arith.constant 0.000000e+00 : f32
    %0 = vector.broadcast %cst : f32 to vector<1x18x64xf32>
    %cst_0 = arith.constant 0.000000e+00 : f32
    %1 = vector.broadcast %cst_0 : f32 to vector<18x1x64xf32>
    %c0 = arith.constant 0 : index
    %c0_1 = arith.constant 0 : index
    %c0_2 = arith.constant 0 : index
    %2 = vector.load %arg15[%c0, %c0_1, %c0_2] : memref<18x18x64xf32, #tpu.memory_space<vmem>>, vector<1x18x64xf32>
    tpu.vector_store %arg15[%c0, %c0_1, %c0_2], %0 {strides = array<i32>} : memref<18x18x64xf32, #tpu.memory_space<vmem>>, vector<1x18x64xf32>,
    %c17 = arith.constant 17 : index
    %c0_3 = arith.constant 0 : index
    %c0_4 = arith.constant 0 : index
    %3 = vector.load %arg15[%c17, %c0_3, %c0_4] : memref<18x18x64xf32, #tpu.memory_space<vmem>>, vector<1x18x64xf32>
    tpu.vector_store %arg15[%c17, %c0_3, %c0_4], %0 {strides = array<i32>} : memref<18x18x64xf32, #tpu.memory_space<vmem>>, vector<1x18x64xf32>,
    %c0_5 = arith.constant 0 : index
    %c0_6 = arith.constant 0 : index
    %c0_7 = arith.constant 0 : index
    %4 = vector.load %arg15[%c0_5, %c0_6, %c0_7] : memref<18x18x64xf32, #tpu.memory_space<vmem>>, vector<18x1x64xf32>
    tpu.vector_store %arg15[%c0_5, %c0_6, %c0_7], %1 {strides = array<i32>} : memref<18x18x64xf32, #tpu.memory_space<vmem>>, vector<18x1x64xf32>,
    %c0_8 = arith.constant 0 : index
    %c17_9 = arith.constant 17 : index
    %c0_10 = arith.constant 0 : index
    %5 = vector.load %arg15[%c0_8, %c17_9, %c0_10] : memref<18x18x64xf32, #tpu.memory_space<vmem>>, vector<18x1x64xf32>
    tpu.vector_store %arg15[%c0_8, %c17_9, %c0_10], %1 {strides = array<i32>} : memref<18x18x64xf32, #tpu.memory_space<vmem>>, vector<18x1x64xf32>,
    %c0_11 = arith.constant 0 : index
    %c0_12 = arith.constant 0 : index
    %c0_13 = arith.constant 0 : index
    %c0_14 = arith.constant 0 : index
    %6 = vector.load %arg1[%c0_11, %c0_12, %c0_13, %c0_14] : memref<1x8x8x64xbf16, #tpu.memory_space<vmem>>, vector<1x8x8x64xbf16>
    %7 = vector.shape_cast %6 : vector<1x8x8x64xbf16> to vector<8x8x64xbf16>
    %8 = arith.extf %7 : vector<8x8x64xbf16> to vector<8x8x64xf32>
    %9 = vector.extract_strided_slice %8 {offsets = [0, 0, 0], sizes = [1, 8, 64], strides = [1, 1, 1]} : vector<8x8x64xf32> to vector<1x8x64xf32>
    %10 = vector.extract_strided_slice %8 {offsets = [0, 0, 0], sizes = [7, 8, 64], strides = [1, 1, 1]} : vector<8x8x64xf32> to vector<7x8x64xf32>
    %11 = tpu.concatenate %9, %10 in 0 : vector<1x8x64xf32>, vector<7x8x64xf32> -> vector<8x8x64xf32>
    %12 = vector.extract_strided_slice %8 {offsets = [1, 0, 0], sizes = [7, 8, 64], strides = [1, 1, 1]} : vector<8x8x64xf32> to vector<7x8x64xf32>
    %13 = vector.extract_strided_slice %8 {offsets = [7, 0, 0], sizes = [1, 8, 64], strides = [1, 1, 1]} : vector<8x8x64xf32> to vector<1x8x64xf32>
    %14 = tpu.concatenate %12, %13 in 0 : vector<7x8x64xf32>, vector<1x8x64xf32> -> vector<8x8x64xf32>
    %cst_15 = arith.constant 7.500000e-01 : f32
    %15 = vector.broadcast %cst_15 : f32 to vector<8x8x64xf32>
    %16 = arith.mulf %15, %8 : vector<8x8x64xf32>
    %cst_16 = arith.constant 2.500000e-01 : f32
    %17 = vector.broadcast %cst_16 : f32 to vector<8x8x64xf32>
    %18 = arith.mulf %17, %11 : vector<8x8x64xf32>
    %19 = arith.addf %16, %18 : vector<8x8x64xf32>
    %cst_17 = arith.constant 7.500000e-01 : f32
    %20 = vector.broadcast %cst_17 : f32 to vector<8x8x64xf32>
    %21 = arith.mulf %20, %8 : vector<8x8x64xf32>
    %cst_18 = arith.constant 2.500000e-01 : f32
    %22 = vector.broadcast %cst_18 : f32 to vector<8x8x64xf32>
    %23 = arith.mulf %22, %14 : vector<8x8x64xf32>
    %24 = arith.addf %21, %23 : vector<8x8x64xf32>
    %25 = vector.shape_cast %19 : vector<8x8x64xf32> to vector<8x1x8x64xf32>
    %26 = vector.shape_cast %24 : vector<8x8x64xf32> to vector<8x1x8x64xf32>
    %27 = tpu.concatenate %25, %26 in 1 : vector<8x1x8x64xf32>, vector<8x1x8x64xf32> -> vector<8x2x8x64xf32>
    %28 = vector.shape_cast %27 : vector<8x2x8x64xf32> to vector<16x8x64xf32>
    %29 = vector.extract_strided_slice %28 {offsets = [0, 0, 0], sizes = [16, 1, 64], strides = [1, 1, 1]} : vector<16x8x64xf32> to vector<16x1x64xf32>
    %30 = vector.extract_strided_slice %28 {offsets = [0, 0, 0], sizes = [16, 7, 64], strides = [1, 1, 1]} : vector<16x8x64xf32> to vector<16x7x64xf32>
    %31 = tpu.concatenate %29, %30 in 1 : vector<16x1x64xf32>, vector<16x7x64xf32> -> vector<16x8x64xf32>
    %32 = vector.extract_strided_slice %28 {offsets = [0, 1, 0], sizes = [16, 7, 64], strides = [1, 1, 1]} : vector<16x8x64xf32> to vector<16x7x64xf32>
    %33 = vector.extract_strided_slice %28 {offsets = [0, 7, 0], sizes = [16, 1, 64], strides = [1, 1, 1]} : vector<16x8x64xf32> to vector<16x1x64xf32>
    %34 = tpu.concatenate %32, %33 in 1 : vector<16x7x64xf32>, vector<16x1x64xf32> -> vector<16x8x64xf32>
    %cst_19 = arith.constant 7.500000e-01 : f32
    %35 = vector.broadcast %cst_19 : f32 to vector<16x8x64xf32>
    %36 = arith.mulf %35, %28 : vector<16x8x64xf32>
    %cst_20 = arith.constant 2.500000e-01 : f32
    %37 = vector.broadcast %cst_20 : f32 to vector<16x8x64xf32>
    %38 = arith.mulf %37, %31 : vector<16x8x64xf32>
    %39 = arith.addf %36, %38 : vector<16x8x64xf32>
    %40 = vector.shape_cast %39 : vector<16x8x64xf32> to vector<128x64xf32>
    %cst_21 = arith.constant 7.500000e-01 : f32
    %41 = vector.broadcast %cst_21 : f32 to vector<16x8x64xf32>
    %42 = arith.mulf %41, %28 : vector<16x8x64xf32>
    %cst_22 = arith.constant 2.500000e-01 : f32
    %43 = vector.broadcast %cst_22 : f32 to vector<16x8x64xf32>
    %44 = arith.mulf %43, %34 : vector<16x8x64xf32>
    %45 = arith.addf %42, %44 : vector<16x8x64xf32>
    %46 = vector.shape_cast %45 : vector<16x8x64xf32> to vector<128x64xf32>
    %47 = vector.shape_cast %40 : vector<128x64xf32> to vector<128x1x64xf32>
    %48 = vector.shape_cast %46 : vector<128x64xf32> to vector<128x1x64xf32>
    %49 = tpu.concatenate %47, %48 in 1 : vector<128x1x64xf32>, vector<128x1x64xf32> -> vector<128x2x64xf32>
    %50 = vector.shape_cast %49 : vector<128x2x64xf32> to vector<16x16x64xf32>
    %c0_23 = arith.constant 0 : index
    %c0_24 = arith.constant 0 : index
    %c0_25 = arith.constant 0 : index
    %c0_26 = arith.constant 0 : index
    %51 = vector.load %arg2[%c0_23, %c0_24, %c0_25, %c0_26] : memref<1x16x16x64xbf16, #tpu.memory_space<vmem>>, vector<1x16x16x64xbf16>
    %52 = vector.shape_cast %51 : vector<1x16x16x64xbf16> to vector<16x16x64xbf16>
    %53 = vector.shape_cast %52 : vector<16x16x64xbf16> to vector<256x64xbf16>
    %c0_27 = arith.constant 0 : index
    %c0_28 = arith.constant 0 : index
    %54 = vector.load %arg3[%c0_27, %c0_28] : memref<64x64xbf16, #tpu.memory_space<vmem>>, vector<64x64xbf16>
    %cst_29 = arith.constant dense<0.000000e+00> : vector<256x64xf32>
    %55 = tpu.matmul %53, %54, %cst_29 {dimension_numbers = #tpu.dot_dimension_numbers<[1], [0], [0], [1], [0, 0, 1, 1], [], []>} : vector<256x64xbf16>, vector<64x64xbf16>, vector<256x64xf32> -> vector<256x64xf32>
    %56 = vector.shape_cast %55 : vector<256x64xf32> to vector<16x16x64xf32>
    %57 = arith.addf %56, %50 : vector<16x16x64xf32>
    %c1 = arith.constant 1 : index
    %c1_30 = arith.constant 1 : index
    %c0_31 = arith.constant 0 : index
    %58 = vector.load %arg15[%c1, %c1_30, %c0_31] : memref<18x18x64xf32, #tpu.memory_space<vmem>>, vector<16x16x64xf32>
    tpu.vector_store %arg15[%c1, %c1_30, %c0_31], %57 {strides = array<i32>} : memref<18x18x64xf32, #tpu.memory_space<vmem>>, vector<16x16x64xf32>,
    %c0_32 = arith.constant 0 : index
    %c0_33 = arith.constant 0 : index
    %c0_34 = arith.constant 0 : index
    %59 = vector.load %arg15[%c0_32, %c0_33, %c0_34] : memref<18x18x64xf32, #tpu.memory_space<vmem>>, vector<18x16x64xf32>
    %60 = arith.truncf %59 : vector<18x16x64xf32> to vector<18x16x64xbf16>
    %c0_35 = arith.constant 0 : index
    %c1_36 = arith.constant 1 : index
    %c0_37 = arith.constant 0 : index
    %61 = vector.load %arg15[%c0_35, %c1_36, %c0_37] : memref<18x18x64xf32, #tpu.memory_space<vmem>>, vector<18x16x64xf32>
    %62 = arith.truncf %61 : vector<18x16x64xf32> to vector<18x16x64xbf16>
    %c0_38 = arith.constant 0 : index
    %c2 = arith.constant 2 : index
    %c0_39 = arith.constant 0 : index
    %63 = vector.load %arg15[%c0_38, %c2, %c0_39] : memref<18x18x64xf32, #tpu.memory_space<vmem>>, vector<18x16x64xf32>
    %64 = arith.truncf %63 : vector<18x16x64xf32> to vector<18x16x64xbf16>
    %65 = vector.extract_strided_slice %60 {offsets = [0, 0, 0], sizes = [16, 16, 64], strides = [1, 1, 1]} : vector<18x16x64xbf16> to vector<16x16x64xbf16>
    %66 = vector.shape_cast %65 : vector<16x16x64xbf16> to vector<256x64xbf16>
    %67 = vector.extract_strided_slice %62 {offsets = [0, 0, 0], sizes = [16, 16, 64], strides = [1, 1, 1]} : vector<18x16x64xbf16> to vector<16x16x64xbf16>
    %68 = vector.shape_cast %67 : vector<16x16x64xbf16> to vector<256x64xbf16>
    %69 = vector.extract_strided_slice %64 {offsets = [0, 0, 0], sizes = [16, 16, 64], strides = [1, 1, 1]} : vector<18x16x64xbf16> to vector<16x16x64xbf16>
    %70 = vector.shape_cast %69 : vector<16x16x64xbf16> to vector<256x64xbf16>
    %71 = vector.extract_strided_slice %60 {offsets = [1, 0, 0], sizes = [16, 16, 64], strides = [1, 1, 1]} : vector<18x16x64xbf16> to vector<16x16x64xbf16>
    %72 = vector.shape_cast %71 : vector<16x16x64xbf16> to vector<256x64xbf16>
    %73 = vector.extract_strided_slice %62 {offsets = [1, 0, 0], sizes = [16, 16, 64], strides = [1, 1, 1]} : vector<18x16x64xbf16> to vector<16x16x64xbf16>
    %74 = vector.shape_cast %73 : vector<16x16x64xbf16> to vector<256x64xbf16>
    %75 = vector.extract_strided_slice %64 {offsets = [1, 0, 0], sizes = [16, 16, 64], strides = [1, 1, 1]} : vector<18x16x64xbf16> to vector<16x16x64xbf16>
    %76 = vector.shape_cast %75 : vector<16x16x64xbf16> to vector<256x64xbf16>
    %77 = vector.extract_strided_slice %60 {offsets = [2, 0, 0], sizes = [16, 16, 64], strides = [1, 1, 1]} : vector<18x16x64xbf16> to vector<16x16x64xbf16>
    %78 = vector.shape_cast %77 : vector<16x16x64xbf16> to vector<256x64xbf16>
    %79 = vector.extract_strided_slice %62 {offsets = [2, 0, 0], sizes = [16, 16, 64], strides = [1, 1, 1]} : vector<18x16x64xbf16> to vector<16x16x64xbf16>
    %80 = vector.shape_cast %79 : vector<16x16x64xbf16> to vector<256x64xbf16>
    %81 = vector.extract_strided_slice %64 {offsets = [2, 0, 0], sizes = [16, 16, 64], strides = [1, 1, 1]} : vector<18x16x64xbf16> to vector<16x16x64xbf16>
    %82 = vector.shape_cast %81 : vector<16x16x64xbf16> to vector<256x64xbf16>
    %83 = tpu.concatenate %66, %68, %70, %72, %74, %76, %78, %80, %82 in 1 : vector<256x64xbf16>, vector<256x64xbf16>, vector<256x64xbf16>, vector<256x64xbf16>, vector<256x64xbf16>, vector<256x64xbf16>, vector<256x64xbf16>, vector<256x64xbf16>, vector<256x64xbf16> -> vector<256x576xbf16>
    %c0_40 = arith.constant 0 : index
    %c0_41 = arith.constant 0 : index
    %84 = vector.load %arg4[%c0_40, %c0_41] : memref<576x64xbf16, #tpu.memory_space<vmem>>, vector<576x64xbf16>
    %cst_42 = arith.constant dense<0.000000e+00> : vector<256x64xf32>
    %85 = tpu.matmul %83, %84, %cst_42 {dimension_numbers = #tpu.dot_dimension_numbers<[1], [0], [0], [1], [0, 0, 1, 1], [], []>} : vector<256x576xbf16>, vector<576x64xbf16>, vector<256x64xf32> -> vector<256x64xf32>
    %c0_43 = arith.constant 0 : index
    %c0_44 = arith.constant 0 : index
    %86 = vector.load %arg5[%c0_43, %c0_44] : memref<1x64xf32, #tpu.memory_space<vmem>>, vector<1x64xf32>
    %87 = vector.broadcast %86 : vector<1x64xf32> to vector<256x64xf32>
    %88 = arith.addf %85, %87 : vector<256x64xf32>
    %cst_45 = arith.constant 0.000000e+00 : f32
    %cst_46 = arith.constant 6.000000e+00 : f32
    %89 = vector.broadcast %cst_45 : f32 to vector<256x64xf32>
    %90 = arith.maximumf %89, %88 : vector<256x64xf32>
    %91 = vector.broadcast %cst_46 : f32 to vector<256x64xf32>
    %92 = arith.minimumf %91, %90 : vector<256x64xf32>
    %93 = vector.shape_cast %92 : vector<256x64xf32> to vector<16x16x64xf32>
    %94 = arith.truncf %92 : vector<256x64xf32> to vector<256x64xbf16>
    %cst_47 = arith.constant dense<0.000000e+00> : vector<64xf32>
    %95 = vector.multi_reduction <add>, %92, %cst_47 [0] : vector<256x64xf32> to vector<64xf32>
    %96 = vector.shape_cast %95 : vector<64xf32> to vector<1x64xf32>
    %cst_48 = arith.constant 3.906250e-03 : f32
    %97 = vector.broadcast %cst_48 : f32 to vector<1x64xf32>
    %98 = arith.mulf %96, %97 : vector<1x64xf32>
    %c0_49 = arith.constant 0 : index
    %c0_50 = arith.constant 0 : index
    %99 = vector.load %arg8[%c0_49, %c0_50] : memref<4x64xf32, #tpu.memory_space<vmem>>, vector<4x64xf32>
    %100 = vector.broadcast %98 : vector<1x64xf32> to vector<4x64xf32>
    %101 = arith.mulf %100, %99 : vector<4x64xf32>
    %cst_51 = arith.constant dense<0.000000e+00> : vector<4xf32>
    %102 = vector.multi_reduction <add>, %101, %cst_51 [1] : vector<4x64xf32> to vector<4xf32>
    %103 = vector.shape_cast %102 : vector<4xf32> to vector<4x1xf32>
    %cst_52 = arith.constant 0.000000e+00 : f32
    %cst_53 = arith.constant 6.000000e+00 : f32
    %104 = vector.broadcast %cst_52 : f32 to vector<4x1xf32>
    %105 = arith.maximumf %104, %103 : vector<4x1xf32>
    %106 = vector.broadcast %cst_53 : f32 to vector<4x1xf32>
    %107 = arith.minimumf %106, %105 : vector<4x1xf32>
    %c0_54 = arith.constant 0 : index
    %c0_55 = arith.constant 0 : index
    %108 = vector.load %arg9[%c0_54, %c0_55] : memref<4x64xf32, #tpu.memory_space<vmem>>, vector<4x64xf32>
    %109 = vector.broadcast %107 : vector<4x1xf32> to vector<4x64xf32>
    %110 = arith.mulf %109, %108 : vector<4x64xf32>
    %cst_56 = arith.constant dense<0.000000e+00> : vector<64xf32>
    %111 = vector.multi_reduction <add>, %110, %cst_56 [0] : vector<4x64xf32> to vector<64xf32>
    %112 = vector.shape_cast %111 : vector<64xf32> to vector<1x64xf32>
    %113 = arith.negf %112 : vector<1x64xf32>
    %114 = math.exp %113 : vector<1x64xf32>
    %cst_57 = arith.constant 1.000000e+00 : f32
    %115 = vector.broadcast %cst_57 : f32 to vector<1x64xf32>
    %116 = arith.addf %115, %114 : vector<1x64xf32>
    %117 = arith.divf %115, %116 : vector<1x64xf32>
    %c1_58 = arith.constant 1 : index
    %c1_59 = arith.constant 1 : index
    %c0_60 = arith.constant 0 : index
    %118 = vector.load %arg15[%c1_58, %c1_59, %c0_60] : memref<18x18x64xf32, #tpu.memory_space<vmem>>, vector<16x16x64xf32>
    tpu.vector_store %arg15[%c1_58, %c1_59, %c0_60], %93 {strides = array<i32>} : memref<18x18x64xf32, #tpu.memory_space<vmem>>, vector<16x16x64xf32>,
    %c0_61 = arith.constant 0 : index
    %c0_62 = arith.constant 0 : index
    %119 = vector.load %arg6[%c0_61, %c0_62] : memref<9x64xf32, #tpu.memory_space<vmem>>, vector<9x64xf32>
    %c0_63 = arith.constant 0 : index
    %c0_64 = arith.constant 0 : index
    %c0_65 = arith.constant 0 : index
    %120 = vector.load %arg15[%c0_63, %c0_64, %c0_65] : memref<18x18x64xf32, #tpu.memory_space<vmem>>, vector<18x16x64xf32>
    %121 = vector.extract_strided_slice %120 {offsets = [0, 0, 0], sizes = [16, 16, 64], strides = [1, 1, 1]} : vector<18x16x64xf32> to vector<16x16x64xf32>
    %122 = vector.extract_strided_slice %119 {offsets = [0, 0], sizes = [1, 64], strides = [1, 1]} : vector<9x64xf32> to vector<1x64xf32>
    %123 = vector.shape_cast %122 : vector<1x64xf32> to vector<64xf32>
    %124 = vector.shape_cast %123 : vector<64xf32> to vector<1x1x64xf32>
    %125 = vector.broadcast %124 : vector<1x1x64xf32> to vector<16x16x64xf32>
    %126 = arith.mulf %121, %125 : vector<16x16x64xf32>
    %127 = vector.extract_strided_slice %120 {offsets = [1, 0, 0], sizes = [16, 16, 64], strides = [1, 1, 1]} : vector<18x16x64xf32> to vector<16x16x64xf32>
    %128 = vector.extract_strided_slice %119 {offsets = [3, 0], sizes = [1, 64], strides = [1, 1]} : vector<9x64xf32> to vector<1x64xf32>
    %129 = vector.shape_cast %128 : vector<1x64xf32> to vector<64xf32>
    %130 = vector.shape_cast %129 : vector<64xf32> to vector<1x1x64xf32>
    %131 = vector.broadcast %130 : vector<1x1x64xf32> to vector<16x16x64xf32>
    %132 = arith.mulf %127, %131 : vector<16x16x64xf32>
    %133 = arith.addf %126, %132 : vector<16x16x64xf32>
    %134 = vector.extract_strided_slice %120 {offsets = [2, 0, 0], sizes = [16, 16, 64], strides = [1, 1, 1]} : vector<18x16x64xf32> to vector<16x16x64xf32>
    %135 = vector.extract_strided_slice %119 {offsets = [6, 0], sizes = [1, 64], strides = [1, 1]} : vector<9x64xf32> to vector<1x64xf32>
    %136 = vector.shape_cast %135 : vector<1x64xf32> to vector<64xf32>
    %137 = vector.shape_cast %136 : vector<64xf32> to vector<1x1x64xf32>
    %138 = vector.broadcast %137 : vector<1x1x64xf32> to vector<16x16x64xf32>
    %139 = arith.mulf %134, %138 : vector<16x16x64xf32>
    %140 = arith.addf %133, %139 : vector<16x16x64xf32>
    %c0_66 = arith.constant 0 : index
    %c1_67 = arith.constant 1 : index
    %c0_68 = arith.constant 0 : index
    %141 = vector.load %arg15[%c0_66, %c1_67, %c0_68] : memref<18x18x64xf32, #tpu.memory_space<vmem>>, vector<18x16x64xf32>
    %142 = vector.extract_strided_slice %141 {offsets = [0, 0, 0], sizes = [16, 16, 64], strides = [1, 1, 1]} : vector<18x16x64xf32> to vector<16x16x64xf32>
    %143 = vector.extract_strided_slice %119 {offsets = [1, 0], sizes = [1, 64], strides = [1, 1]} : vector<9x64xf32> to vector<1x64xf32>
    %144 = vector.shape_cast %143 : vector<1x64xf32> to vector<64xf32>
    %145 = vector.shape_cast %144 : vector<64xf32> to vector<1x1x64xf32>
    %146 = vector.broadcast %145 : vector<1x1x64xf32> to vector<16x16x64xf32>
    %147 = arith.mulf %142, %146 : vector<16x16x64xf32>
    %148 = arith.addf %140, %147 : vector<16x16x64xf32>
    %149 = vector.extract_strided_slice %141 {offsets = [1, 0, 0], sizes = [16, 16, 64], strides = [1, 1, 1]} : vector<18x16x64xf32> to vector<16x16x64xf32>
    %150 = vector.extract_strided_slice %119 {offsets = [4, 0], sizes = [1, 64], strides = [1, 1]} : vector<9x64xf32> to vector<1x64xf32>
    %151 = vector.shape_cast %150 : vector<1x64xf32> to vector<64xf32>
    %152 = vector.shape_cast %151 : vector<64xf32> to vector<1x1x64xf32>
    %153 = vector.broadcast %152 : vector<1x1x64xf32> to vector<16x16x64xf32>
    %154 = arith.mulf %149, %153 : vector<16x16x64xf32>
    %155 = arith.addf %148, %154 : vector<16x16x64xf32>
    %156 = vector.extract_strided_slice %141 {offsets = [2, 0, 0], sizes = [16, 16, 64], strides = [1, 1, 1]} : vector<18x16x64xf32> to vector<16x16x64xf32>
    %157 = vector.extract_strided_slice %119 {offsets = [7, 0], sizes = [1, 64], strides = [1, 1]} : vector<9x64xf32> to vector<1x64xf32>
    %158 = vector.shape_cast %157 : vector<1x64xf32> to vector<64xf32>
    %159 = vector.shape_cast %158 : vector<64xf32> to vector<1x1x64xf32>
    %160 = vector.broadcast %159 : vector<1x1x64xf32> to vector<16x16x64xf32>
    %161 = arith.mulf %156, %160 : vector<16x16x64xf32>
    %162 = arith.addf %155, %161 : vector<16x16x64xf32>
    %c0_69 = arith.constant 0 : index
    %c2_70 = arith.constant 2 : index
    %c0_71 = arith.constant 0 : index
    %163 = vector.load %arg15[%c0_69, %c2_70, %c0_71] : memref<18x18x64xf32, #tpu.memory_space<vmem>>, vector<18x16x64xf32>
    %164 = vector.extract_strided_slice %163 {offsets = [0, 0, 0], sizes = [16, 16, 64], strides = [1, 1, 1]} : vector<18x16x64xf32> to vector<16x16x64xf32>
    %165 = vector.extract_strided_slice %119 {offsets = [2, 0], sizes = [1, 64], strides = [1, 1]} : vector<9x64xf32> to vector<1x64xf32>
    %166 = vector.shape_cast %165 : vector<1x64xf32> to vector<64xf32>
    %167 = vector.shape_cast %166 : vector<64xf32> to vector<1x1x64xf32>
    %168 = vector.broadcast %167 : vector<1x1x64xf32> to vector<16x16x64xf32>
    %169 = arith.mulf %164, %168 : vector<16x16x64xf32>
    %170 = arith.addf %162, %169 : vector<16x16x64xf32>
    %171 = vector.extract_strided_slice %163 {offsets = [1, 0, 0], sizes = [16, 16, 64], strides = [1, 1, 1]} : vector<18x16x64xf32> to vector<16x16x64xf32>
    %172 = vector.extract_strided_slice %119 {offsets = [5, 0], sizes = [1, 64], strides = [1, 1]} : vector<9x64xf32> to vector<1x64xf32>
    %173 = vector.shape_cast %172 : vector<1x64xf32> to vector<64xf32>
    %174 = vector.shape_cast %173 : vector<64xf32> to vector<1x1x64xf32>
    %175 = vector.broadcast %174 : vector<1x1x64xf32> to vector<16x16x64xf32>
    %176 = arith.mulf %171, %175 : vector<16x16x64xf32>
    %177 = arith.addf %170, %176 : vector<16x16x64xf32>
    %178 = vector.extract_strided_slice %163 {offsets = [2, 0, 0], sizes = [16, 16, 64], strides = [1, 1, 1]} : vector<18x16x64xf32> to vector<16x16x64xf32>
    %179 = vector.extract_strided_slice %119 {offsets = [8, 0], sizes = [1, 64], strides = [1, 1]} : vector<9x64xf32> to vector<1x64xf32>
    %180 = vector.shape_cast %179 : vector<1x64xf32> to vector<64xf32>
    %181 = vector.shape_cast %180 : vector<64xf32> to vector<1x1x64xf32>
    %182 = vector.broadcast %181 : vector<1x1x64xf32> to vector<16x16x64xf32>
    %183 = arith.mulf %178, %182 : vector<16x16x64xf32>
    %184 = arith.addf %177, %183 : vector<16x16x64xf32>
    %c0_72 = arith.constant 0 : index
    %c0_73 = arith.constant 0 : index
    %185 = vector.load %arg7[%c0_72, %c0_73] : memref<1x64xf32, #tpu.memory_space<vmem>>, vector<1x64xf32>
    %186 = vector.shape_cast %185 : vector<1x64xf32> to vector<1x1x64xf32>
    %187 = vector.broadcast %186 : vector<1x1x64xf32> to vector<16x16x64xf32>
    %188 = arith.addf %184, %187 : vector<16x16x64xf32>
    %189 = arith.negf %188 : vector<16x16x64xf32>
    %190 = math.exp %189 : vector<16x16x64xf32>
    %cst_74 = arith.constant 1.000000e+00 : f32
    %191 = vector.broadcast %cst_74 : f32 to vector<16x16x64xf32>
    %192 = arith.addf %191, %190 : vector<16x16x64xf32>
    %193 = arith.divf %191, %192 : vector<16x16x64xf32>
    %194 = vector.shape_cast %117 : vector<1x64xf32> to vector<1x1x64xf32>
    %195 = vector.broadcast %194 : vector<1x1x64xf32> to vector<16x16x64xf32>
    %196 = arith.addf %193, %195 : vector<16x16x64xf32>
    %197 = arith.mulf %196, %93 : vector<16x16x64xf32>
    %c1_75 = arith.constant 1 : index
    %c1_76 = arith.constant 1 : index
    %c0_77 = arith.constant 0 : index
    %198 = vector.load %arg15[%c1_75, %c1_76, %c0_77] : memref<18x18x64xf32, #tpu.memory_space<vmem>>, vector<16x16x64xf32>
    tpu.vector_store %arg15[%c1_75, %c1_76, %c0_77], %197 {strides = array<i32>} : memref<18x18x64xf32, #tpu.memory_space<vmem>>, vector<16x16x64xf32>,
    %c0_78 = arith.constant 0 : index
    %c0_79 = arith.constant 0 : index
    %199 = vector.load %arg10[%c0_78, %c0_79] : memref<9x64xf32, #tpu.memory_space<vmem>>, vector<9x64xf32>
    %c0_80 = arith.constant 0 : index
    %c0_81 = arith.constant 0 : index
    %c0_82 = arith.constant 0 : index
    %200 = vector.load %arg15[%c0_80, %c0_81, %c0_82] : memref<18x18x64xf32, #tpu.memory_space<vmem>>, vector<18x16x64xf32>
    %201 = vector.extract_strided_slice %200 {offsets = [0, 0, 0], sizes = [16, 16, 64], strides = [1, 1, 1]} : vector<18x16x64xf32> to vector<16x16x64xf32>
    %202 = vector.extract_strided_slice %199 {offsets = [0, 0], sizes = [1, 64], strides = [1, 1]} : vector<9x64xf32> to vector<1x64xf32>
    %203 = vector.shape_cast %202 : vector<1x64xf32> to vector<64xf32>
    %204 = vector.shape_cast %203 : vector<64xf32> to vector<1x1x64xf32>
    %205 = vector.broadcast %204 : vector<1x1x64xf32> to vector<16x16x64xf32>
    %206 = arith.mulf %201, %205 : vector<16x16x64xf32>
    %207 = vector.extract_strided_slice %200 {offsets = [1, 0, 0], sizes = [16, 16, 64], strides = [1, 1, 1]} : vector<18x16x64xf32> to vector<16x16x64xf32>
    %208 = vector.extract_strided_slice %199 {offsets = [3, 0], sizes = [1, 64], strides = [1, 1]} : vector<9x64xf32> to vector<1x64xf32>
    %209 = vector.shape_cast %208 : vector<1x64xf32> to vector<64xf32>
    %210 = vector.shape_cast %209 : vector<64xf32> to vector<1x1x64xf32>
    %211 = vector.broadcast %210 : vector<1x1x64xf32> to vector<16x16x64xf32>
    %212 = arith.mulf %207, %211 : vector<16x16x64xf32>
    %213 = arith.addf %206, %212 : vector<16x16x64xf32>
    %214 = vector.extract_strided_slice %200 {offsets = [2, 0, 0], sizes = [16, 16, 64], strides = [1, 1, 1]} : vector<18x16x64xf32> to vector<16x16x64xf32>
    %215 = vector.extract_strided_slice %199 {offsets = [6, 0], sizes = [1, 64], strides = [1, 1]} : vector<9x64xf32> to vector<1x64xf32>
    %216 = vector.shape_cast %215 : vector<1x64xf32> to vector<64xf32>
    %217 = vector.shape_cast %216 : vector<64xf32> to vector<1x1x64xf32>
    %218 = vector.broadcast %217 : vector<1x1x64xf32> to vector<16x16x64xf32>
    %219 = arith.mulf %214, %218 : vector<16x16x64xf32>
    %220 = arith.addf %213, %219 : vector<16x16x64xf32>
    %c0_83 = arith.constant 0 : index
    %c1_84 = arith.constant 1 : index
    %c0_85 = arith.constant 0 : index
    %221 = vector.load %arg15[%c0_83, %c1_84, %c0_85] : memref<18x18x64xf32, #tpu.memory_space<vmem>>, vector<18x16x64xf32>
    %222 = vector.extract_strided_slice %221 {offsets = [0, 0, 0], sizes = [16, 16, 64], strides = [1, 1, 1]} : vector<18x16x64xf32> to vector<16x16x64xf32>
    %223 = vector.extract_strided_slice %199 {offsets = [1, 0], sizes = [1, 64], strides = [1, 1]} : vector<9x64xf32> to vector<1x64xf32>
    %224 = vector.shape_cast %223 : vector<1x64xf32> to vector<64xf32>
    %225 = vector.shape_cast %224 : vector<64xf32> to vector<1x1x64xf32>
    %226 = vector.broadcast %225 : vector<1x1x64xf32> to vector<16x16x64xf32>
    %227 = arith.mulf %222, %226 : vector<16x16x64xf32>
    %228 = arith.addf %220, %227 : vector<16x16x64xf32>
    %229 = vector.extract_strided_slice %221 {offsets = [1, 0, 0], sizes = [16, 16, 64], strides = [1, 1, 1]} : vector<18x16x64xf32> to vector<16x16x64xf32>
    %230 = vector.extract_strided_slice %199 {offsets = [4, 0], sizes = [1, 64], strides = [1, 1]} : vector<9x64xf32> to vector<1x64xf32>
    %231 = vector.shape_cast %230 : vector<1x64xf32> to vector<64xf32>
    %232 = vector.shape_cast %231 : vector<64xf32> to vector<1x1x64xf32>
    %233 = vector.broadcast %232 : vector<1x1x64xf32> to vector<16x16x64xf32>
    %234 = arith.mulf %229, %233 : vector<16x16x64xf32>
    %235 = arith.addf %228, %234 : vector<16x16x64xf32>
    %236 = vector.extract_strided_slice %221 {offsets = [2, 0, 0], sizes = [16, 16, 64], strides = [1, 1, 1]} : vector<18x16x64xf32> to vector<16x16x64xf32>
    %237 = vector.extract_strided_slice %199 {offsets = [7, 0], sizes = [1, 64], strides = [1, 1]} : vector<9x64xf32> to vector<1x64xf32>
    %238 = vector.shape_cast %237 : vector<1x64xf32> to vector<64xf32>
    %239 = vector.shape_cast %238 : vector<64xf32> to vector<1x1x64xf32>
    %240 = vector.broadcast %239 : vector<1x1x64xf32> to vector<16x16x64xf32>
    %241 = arith.mulf %236, %240 : vector<16x16x64xf32>
    %242 = arith.addf %235, %241 : vector<16x16x64xf32>
    %c0_86 = arith.constant 0 : index
    %c2_87 = arith.constant 2 : index
    %c0_88 = arith.constant 0 : index
    %243 = vector.load %arg15[%c0_86, %c2_87, %c0_88] : memref<18x18x64xf32, #tpu.memory_space<vmem>>, vector<18x16x64xf32>
    %244 = vector.extract_strided_slice %243 {offsets = [0, 0, 0], sizes = [16, 16, 64], strides = [1, 1, 1]} : vector<18x16x64xf32> to vector<16x16x64xf32>
    %245 = vector.extract_strided_slice %199 {offsets = [2, 0], sizes = [1, 64], strides = [1, 1]} : vector<9x64xf32> to vector<1x64xf32>
    %246 = vector.shape_cast %245 : vector<1x64xf32> to vector<64xf32>
    %247 = vector.shape_cast %246 : vector<64xf32> to vector<1x1x64xf32>
    %248 = vector.broadcast %247 : vector<1x1x64xf32> to vector<16x16x64xf32>
    %249 = arith.mulf %244, %248 : vector<16x16x64xf32>
    %250 = arith.addf %242, %249 : vector<16x16x64xf32>
    %251 = vector.extract_strided_slice %243 {offsets = [1, 0, 0], sizes = [16, 16, 64], strides = [1, 1, 1]} : vector<18x16x64xf32> to vector<16x16x64xf32>
    %252 = vector.extract_strided_slice %199 {offsets = [5, 0], sizes = [1, 64], strides = [1, 1]} : vector<9x64xf32> to vector<1x64xf32>
    %253 = vector.shape_cast %252 : vector<1x64xf32> to vector<64xf32>
    %254 = vector.shape_cast %253 : vector<64xf32> to vector<1x1x64xf32>
    %255 = vector.broadcast %254 : vector<1x1x64xf32> to vector<16x16x64xf32>
    %256 = arith.mulf %251, %255 : vector<16x16x64xf32>
    %257 = arith.addf %250, %256 : vector<16x16x64xf32>
    %258 = vector.extract_strided_slice %243 {offsets = [2, 0, 0], sizes = [16, 16, 64], strides = [1, 1, 1]} : vector<18x16x64xf32> to vector<16x16x64xf32>
    %259 = vector.extract_strided_slice %199 {offsets = [8, 0], sizes = [1, 64], strides = [1, 1]} : vector<9x64xf32> to vector<1x64xf32>
    %260 = vector.shape_cast %259 : vector<1x64xf32> to vector<64xf32>
    %261 = vector.shape_cast %260 : vector<64xf32> to vector<1x1x64xf32>
    %262 = vector.broadcast %261 : vector<1x1x64xf32> to vector<16x16x64xf32>
    %263 = arith.mulf %258, %262 : vector<16x16x64xf32>
    %264 = arith.addf %257, %263 : vector<16x16x64xf32>
    %c0_89 = arith.constant 0 : index
    %c0_90 = arith.constant 0 : index
    %265 = vector.load %arg11[%c0_89, %c0_90] : memref<1x64xf32, #tpu.memory_space<vmem>>, vector<1x64xf32>
    %266 = vector.shape_cast %265 : vector<1x64xf32> to vector<1x1x64xf32>
    %267 = vector.broadcast %266 : vector<1x1x64xf32> to vector<16x16x64xf32>
    %268 = arith.addf %264, %267 : vector<16x16x64xf32>
    %269 = vector.shape_cast %268 : vector<16x16x64xf32> to vector<256x64xf32>
    %270 = arith.truncf %269 : vector<256x64xf32> to vector<256x64xbf16>
    %271 = tpu.concatenate %270, %94 in 1 : vector<256x64xbf16>, vector<256x64xbf16> -> vector<256x128xbf16>
    %c0_91 = arith.constant 0 : index
    %c0_92 = arith.constant 0 : index
    %272 = vector.load %arg12[%c0_91, %c0_92] : memref<128x64xbf16, #tpu.memory_space<vmem>>, vector<128x64xbf16>
    %cst_93 = arith.constant dense<0.000000e+00> : vector<256x64xf32>
    %273 = tpu.matmul %271, %272, %cst_93 {dimension_numbers = #tpu.dot_dimension_numbers<[1], [0], [0], [1], [0, 0, 1, 1], [], []>} : vector<256x128xbf16>, vector<128x64xbf16>, vector<256x64xf32> -> vector<256x64xf32>
    %c0_94 = arith.constant 0 : index
    %c0_95 = arith.constant 0 : index
    %274 = vector.load %arg13[%c0_94, %c0_95] : memref<1x64xf32, #tpu.memory_space<vmem>>, vector<1x64xf32>
    %275 = vector.broadcast %274 : vector<1x64xf32> to vector<256x64xf32>
    %276 = arith.addf %273, %275 : vector<256x64xf32>
    %cst_96 = arith.constant 0.000000e+00 : f32
    %cst_97 = arith.constant 6.000000e+00 : f32
    %277 = vector.broadcast %cst_96 : f32 to vector<256x64xf32>
    %278 = arith.maximumf %277, %276 : vector<256x64xf32>
    %279 = vector.broadcast %cst_97 : f32 to vector<256x64xf32>
    %280 = arith.minimumf %279, %278 : vector<256x64xf32>
    %c0_98 = arith.constant 0 : index
    %c0_99 = arith.constant 0 : index
    %c0_100 = arith.constant 0 : index
    %281 = vector.load %arg14[%c0_98, %c0_99, %c0_100] : memref<1x256x64xf32, #tpu.memory_space<vmem>>, vector<1x256x64xf32>
    %282 = vector.shape_cast %281 : vector<1x256x64xf32> to vector<256x64xf32>
    %283 = vector.shape_cast %280 : vector<256x64xf32> to vector<1x256x64xf32>
    tpu.vector_store %arg14[%c0_98, %c0_99, %c0_100], %283 {strides = array<i32>} : memref<1x256x64xf32, #tpu.memory_space<vmem>>, vector<1x256x64xf32>,
    return
  }
  func.func @transform_0(%arg0: i32) -> (i32, i32, i32, i32) {
    %c0_i32 = arith.constant 0 : i32
    %c0_i32_0 = arith.constant 0 : i32
    %c0_i32_1 = arith.constant 0 : i32
    %c0_i32_2 = arith.constant 0 : i32
    return %arg0, %c0_i32, %c0_i32_0, %c0_i32_1 : i32, i32, i32, i32
  }
  func.func @transform_1(%arg0: i32) -> (i32, i32, i32, i32) {
    %c0_i32 = arith.constant 0 : i32
    %c0_i32_0 = arith.constant 0 : i32
    %c0_i32_1 = arith.constant 0 : i32
    %c0_i32_2 = arith.constant 0 : i32
    return %arg0, %c0_i32, %c0_i32_0, %c0_i32_1 : i32, i32, i32, i32
  }
  func.func @transform_2(%arg0: i32) -> (i32, i32) {
    %c0_i32 = arith.constant 0 : i32
    %c0_i32_0 = arith.constant 0 : i32
    %c0_i32_1 = arith.constant 0 : i32
    return %c0_i32, %c0_i32_0 : i32, i32
  }
  func.func @transform_3(%arg0: i32) -> (i32, i32) {
    %c0_i32 = arith.constant 0 : i32
    %c0_i32_0 = arith.constant 0 : i32
    %c0_i32_1 = arith.constant 0 : i32
    return %c0_i32, %c0_i32_0 : i32, i32
  }
  func.func @transform_4(%arg0: i32) -> (i32, i32) {
    %c0_i32 = arith.constant 0 : i32
    %c0_i32_0 = arith.constant 0 : i32
    %c0_i32_1 = arith.constant 0 : i32
    return %c0_i32, %c0_i32_0 : i32, i32
  }
  func.func @transform_5(%arg0: i32) -> (i32, i32) {
    %c0_i32 = arith.constant 0 : i32
    %c0_i32_0 = arith.constant 0 : i32
    %c0_i32_1 = arith.constant 0 : i32
    return %c0_i32, %c0_i32_0 : i32, i32
  }
  func.func @transform_6(%arg0: i32) -> (i32, i32) {
    %c0_i32 = arith.constant 0 : i32
    %c0_i32_0 = arith.constant 0 : i32
    %c0_i32_1 = arith.constant 0 : i32
    return %c0_i32, %c0_i32_0 : i32, i32
  }
  func.func @transform_7(%arg0: i32) -> (i32, i32) {
    %c0_i32 = arith.constant 0 : i32
    %c0_i32_0 = arith.constant 0 : i32
    %c0_i32_1 = arith.constant 0 : i32
    return %c0_i32, %c0_i32_0 : i32, i32
  }
  func.func @transform_8(%arg0: i32) -> (i32, i32) {
    %c0_i32 = arith.constant 0 : i32
    %c0_i32_0 = arith.constant 0 : i32
    %c0_i32_1 = arith.constant 0 : i32
    return %c0_i32, %c0_i32_0 : i32, i32
  }
  func.func @transform_9(%arg0: i32) -> (i32, i32) {
    %c0_i32 = arith.constant 0 : i32
    %c0_i32_0 = arith.constant 0 : i32
    %c0_i32_1 = arith.constant 0 : i32
    return %c0_i32, %c0_i32_0 : i32, i32
  }
  func.func @transform_10(%arg0: i32) -> (i32, i32) {
    %c0_i32 = arith.constant 0 : i32
    %c0_i32_0 = arith.constant 0 : i32
    %c0_i32_1 = arith.constant 0 : i32
    return %c0_i32, %c0_i32_0 : i32, i32
  }
  func.func @transform_11(%arg0: i32) -> (i32, i32) {
    %c0_i32 = arith.constant 0 : i32
    %c0_i32_0 = arith.constant 0 : i32
    %c0_i32_1 = arith.constant 0 : i32
    return %c0_i32, %c0_i32_0 : i32, i32
  }
  func.func @transform_12(%arg0: i32) -> (i32, i32) {
    %c0_i32 = arith.constant 0 : i32
    %c0_i32_0 = arith.constant 0 : i32
    %c0_i32_1 = arith.constant 0 : i32
    return %c0_i32, %c0_i32_0 : i32, i32
  }
  func.func @transform_13(%arg0: i32) -> (i32, i32, i32) {
    %c0_i32 = arith.constant 0 : i32
    %c0_i32_0 = arith.constant 0 : i32
    %c0_i32_1 = arith.constant 0 : i32
    return %arg0, %c0_i32, %c0_i32_0 : i32, i32, i32
  }
}

</mosaic_0001>

<bundles_post_ra>
// kernel: rsam1_forward_nhwc.1
= control target key start
LH: loop header
LB: loop body
LE: loop exit
PB: predicated region body
PF: predicated region fallthrough
CT: control target
= control target key end

     0   :  { %s12159_s0 = inlined_call_operand.vmem [shape: bf16[2,8,8,64], index: 0, kind: input, shape index: {}]   ;;  %s12160_s1 = inlined_call_operand.vmem [shape: bf16[2,16,16,64], index: 1, kind: input, shape index: {}]   ;;  %s12161_s2 = inlined_call_operand.vmem [shape: bf16[64,64], index: 2, kind: input, shape index: {}]   ;;  %s12162_s3 = inlined_call_operand.vmem [shape: bf16[576,64], index: 3, kind: input, shape index: {}]   ;;  %s12163_s4 = inlined_call_operand.vmem [shape: f32[1,64], index: 4, kind: input, shape index: {}]   ;;  %s12164_s5 = inlined_call_operand.vmem [shape: f32[9,64], index: 5, kind: input, shape index: {}]   ;;  %s12165_s6 = inlined_call_operand.vmem [shape: f32[1,64], index: 6, kind: input, shape index: {}]   ;;  %s12166_s7 = inlined_call_operand.vmem [shape: f32[4,64], index: 7, kind: input, shape index: {}]   ;;  %s12167_s8 = inlined_call_operand.vmem [shape: f32[4,64], index: 8, kind: input, shape index: {}]   ;;  %s12168_s9 = inlined_call_operand.vmem [shape: f32[9,64], index: 9, kind: input, shape index: {}]   ;;  %s12169_s10 = inlined_call_operand.vmem [shape: f32[1,64], index: 10, kind: input, shape index: {}]   ;;  %s12170_s11 = inlined_call_operand.vmem [shape: bf16[128,64], index: 11, kind: input, shape index: {}]   ;;  %s12171_s12 = inlined_call_operand.vmem [shape: f32[1,64], index: 12, kind: input, shape index: {}]   ;;  %s12172_s13 = inlined_call_operand.hbm [shape: f32[2,256,64], index: 13, kind: output, shape index: {}]  }
   0x1   :  { %12238 = sst [smem:[#allocation73_spill]] %s12159_s0 }
   0x2   :  { %18 = vsyncpa [#allocation4], 0 }
   0x3   :  { %20 = vsyncpa [#allocation4 + $0x1], 0  ;;  %s7466_s25 = smov 0   ;;  %s7468_s26 = smov 0  }
   0x4   :  { %s7470_s27 = smov 0   ;;  %s7472_s28 = smov 0  }
   0x5 LB: > { %12239 = sst [smem:[#allocation6_spill]] %s7386_s27  ;;  %s7487_s29 = sadd.s32 4294967295, %s7390_s28   ;;  %s7390_s28 = sphi %s7472_s28, %s12549_s28   ;;  %s7386_s27 = sphi %s7470_s27, %s12546_s27   ;;  %s7382_s26 = sphi %s7468_s26, %s12548_s26   ;;  %s7378_s25 = sphi %s7466_s25, %s12547_s25  }
   0x6   : > { %s6697_s30 = sadd.s32 4294967294, %s7390_s28   ;;  %s7491_s14 = sadd.s32 1, %s7390_s28  }
   0x7   : > { %s316_s15 = sadd.s32 1, %s7386_s27  ;;  %s313_s16 = ssub.s32 %s7390_s28, %s7491_s14 }
   0x8   : > { %p326_p0 = scmp.ne.s32.totalorder %s7386_s27, %s7382_s26  ;;  %p314_p1 = scmp.eq.s32.totalorder %s313_s16, 0 }
   0x9   : > { %p327_p2 = scmp.eq.s32.totalorder %s7487_s29, 1  ;;  %p332_p3 = scmp.ne.s32.totalorder %s7382_s26, %s7378_s25 }
   0xa   : > { %p333_p4 = scmp.eq.s32.totalorder %s6697_s30, 1  ;;  %p6700_p7 = scmp.ge.s32.totalorder %s7390_s28, 1 }
   0xb   : > { %s7502_s17 = scalar_select %p314_p1, %s7386_s27, %s316_s15  }
   0xc   : > { %p7504_p5 = por %p327_p2, %p326_p0  ;;  %p7508_p6 = por %p333_p4, %p332_p3 }
   0xd   : > { %12240 = sst [smem:[#allocation7_spill]] %s7502_s17  ;;  %p400_p8 = scmp.lt.s32.totalorder %s7390_s28, 3 }
   0xf   : > { %p401_p9 = pnand %p6700_p7, %p400_p8 }
  0x11   : > { %404 = sbr.rel (%p401_p9) target bundleno = 1751 (0x6d7), region = 72 }
  0x16   : > { %v7053_v0 = vld [vmem:[%s12161_s2 + $0x18] sm:$0xff]  ;;  %p449_p10 = scmp.lt.s32.totalorder %s7487_s29, 1  ;;  %v7052_v1 = vld [vmem:[%s12161_s2 + $0x10] sm:$0xff]  ;;  %s12243_s0 = sld [smem:[#allocation73_spill]]  ;;  %v7051_v2 = vld [vmem:[%s12161_s2 + $0x8] sm:$0xff]  ;;  %vm460_vm0 = vcmask 523264  }
  0x17   : > { %1696 = vmatpush.bf16.msra.mxu0 %v7053_v0  ;;  %7118 = vmatpush.bf16.msra.mxu3 %v7053_v0  ;;  %v7050_v7 = vld [vmem:[%s12161_s2] sm:$0xff]  ;;  %vm651_vm1 = vcmask 1046528   ;;  %vm602_vm2 = vcmask 1040384   ;;  %vm463_vm3 = vcmask 517120   ;;  %vm469_vm4 = vcmask 516096   ;;  %s7098_s21 = sshll.u32 %s7487_s29, 8 }
  0x18   : > { %s450_s24 = scalar_select %p449_p10, %s7487_s29, 1 }
  0x19   : > { %s7348_s23 = scalar_lea.hbm %s12172_s13, 512 }
  0x1a   : > { %s7032_s30 = sshll.u32 %s450_s24, 5  ;;  %s7033_s27 = sshll.u32 %s450_s24, 7 }
  0x1b   : > { %1697 = vmatpush.bf16.msra.mxu0 %v7052_v1  ;;  %7119 = vmatpush.bf16.msra.mxu3 %v7052_v1  ;;  %s7537_s16 = scalar_lea.vmem %s12160_s1, %s7033_s27  ;;  %s7393_s27 = smov 64  }
  0x1c   : > { %s7525_s17 = scalar_lea.vmem %s12243_s0, %s7032_s30  ;;  %v7034_v10 = vld [vmem:[%s7537_s16] sm:$0xff]  ;;  %v7035_v30 = vld [vmem:[%s7537_s16 + $0x8] sm:$0xff]  ;;  %s446_s30 = sand.u32 1, %s7382_s26  }
  0x1d   : > { %v7100_v3 = vld [vmem:[%s7525_s17] sm:$0xff]   ;;  %s6608_s29 = scalar_lea.sflag [#allocation4], %s446_s30 }
  0x1e   : > { %v7101_v4 = vunpack.c.l.bf16 %v7100_v3  ;;  %v7102_v8 = vunpack.c.h.bf16 %v7100_v3 }
  0x1f   : > { %1698 = vmatpush.bf16.msra.mxu0 %v7051_v2  ;;  %7120 = vmatpush.bf16.msra.mxu3 %v7051_v2 }
  0x20   : > { %v522_v5 = vmul.f32 0.75, %v7101_v4  ;;  %v530_v6 = vmul.f32 0.25, %v7101_v4  ;;  %v7540_v12 = vmul.f32 0.25, %v7102_v8  ;;  %v7546_v19 = vmul.f32 0.75, %v7102_v8 }
  0x22   : > { %v537_v9 = vadd.f32 %v530_v6, %v522_v5  ;;  %v546_v15 = vadd.f32 %v7540_v12, %v522_v5  ;;  %v538_v23 = vadd.f32 %v530_v6, %v7546_v19 }
  0x23   : > { %1699 = vmatpush.bf16.msra.mxu0 %v7050_v7  ;;  %7121 = vmatpush.bf16.msra.mxu3 %v7050_v7 }
  0x24   : > { %v619_v11 = vrot.slane %v537_v9, 1  ;;  %v570_v13 = vrot.slane %v537_v9, 7  ;;  %v668_v17 = vmul.f32 0.75, %v537_v9  ;;  %v620_v20 = vrot.slane %v546_v15, 1 }
  0x25   : > { %v571_v24 = vrot.slane %v546_v15, 7  ;;  %v669_v31 = vmul.f32 0.75, %v546_v15  ;;  %v621_v35 = vrot.slane %v538_v23, 1  ;;  %v572_v50 = vrot.slane %v538_v23, 7 }
  0x26   : > { %6786 = vmatmul.msk.bf16.vlgmr.msra.gmra.mxu0 %vm460_vm0, %v7034_v10  ;;  %v652_v14 = vsel %vm651_vm1, %v619_v11, %v537_v9  ;;  %v603_v16 = vsel %vm602_vm2, %v537_v9, %v570_v13  ;;  %v653_v25 = vsel %vm651_vm1, %v620_v20, %v546_v15  ;;  %v670_v4 = vmul.f32 0.75, %v538_v23 }
  0x27   : > { %v716_v18 = vmul.f32 0.25, %v652_v14  ;;  %v684_v21 = vmul.f32 0.25, %v603_v16  ;;  %v717_v32 = vmul.f32 0.25, %v653_v25  ;;  %v604_v34 = vsel %vm602_vm2, %v546_v15, %v571_v24 }
  0x28   : > { %v685_v46 = vmul.f32 0.25, %v604_v34  ;;  %v654_v61 = vsel %vm651_vm1, %v621_v35, %v538_v23  ;;  %v605_v3 = vsel %vm602_vm2, %v538_v23, %v572_v50 }
  0x29   : > { %v732_v22 = vadd.f32 %v716_v18, %v668_v17  ;;  %v700_v26 = vadd.f32 %v684_v21, %v668_v17  ;;  %v733_v47 = vadd.f32 %v717_v32, %v669_v31  ;;  %v718_v7 = vmul.f32 0.25, %v654_v61 }
  0x2a   : > { %v7558_v62 = vadd.f32 %v685_v46, %v669_v31  ;;  %v686_v18 = vmul.f32 0.25, %v605_v3 }
  0x2b   : > { %v1004_v27 = vrot.slane %v732_v22, 1  ;;  %v1005_v28 = vrot.slane %v732_v22, 2  ;;  %v1006_v29 = vrot.slane %v732_v22, 3  ;;  %v1007_v33 = vrot.slane %v732_v22, 4 }
  0x2c   : > { %v764_v36 = vrot.slane %v700_v26, 1  ;;  %v1008_v37 = vrot.slane %v732_v22, 5  ;;  %v765_v38 = vrot.slane %v700_v26, 2  ;;  %v766_v39 = vrot.slane %v700_v26, 3 }
  0x2d   : > { %v1009_v40 = vrot.slane %v732_v22, 6  ;;  %v1116_v41 = vperm.slane %v732_v22, 0  ;;  %v1010_v42 = vrot.slane %v732_v22, 7  ;;  %v1117_v43 = vperm.slane %v1004_v27, 0  ;;  %v7036_v27 = vld [vmem:[%s7537_s16 + $0x10] sm:$0xff] }
  0x2e   : > { %v1118_v44 = vperm.slane %v1005_v28, 0  ;;  %v1119_v45 = vperm.slane %v1006_v29, 0  ;;  %v767_v48 = vrot.slane %v700_v26, 4  ;;  %v1120_v49 = vperm.slane %v1007_v33, 0 }
  0x2f   : > { %v768_v51 = vrot.slane %v700_v26, 5  ;;  %v1121_v52 = vperm.slane %v1008_v37, 0  ;;  %v769_v53 = vrot.slane %v700_v26, 6  ;;  %v770_v54 = vrot.slane %v700_v26, 7 }
  0x30   : > { %v1122_v55 = vperm.slane %v1009_v40, 0  ;;  %v1372_v56 = vsel %vm602_vm2, %v700_v26, %v1116_v41  ;;  %v1123_v57 = vperm.slane %v1010_v42, 0  ;;  %v1373_v58 = vsel %vm602_vm2, %v764_v36, %v1117_v43  ;;  %v7047_v41 = vld [vmem:[%s7537_s16 + $0x68] sm:$0xff] }
  0x31   : > { %v1374_v59 = vsel %vm602_vm2, %v765_v38, %v1118_v44  ;;  %v1375_v60 = vsel %vm602_vm2, %v766_v39, %v1119_v45  ;;  %1909 = vst [vmem:[#allocation1] ss:$4 sm:$0xff] %v1372_v56  ;;  %v1011_v63 = vrot.slane %v733_v47, 1  ;;  %v1376_v0 = vsel %vm602_vm2, %v767_v48, %v1120_v49  ;;  %6799 = vmatmul.msk.bf16.vlgmr.msra.gmra.mxu3 %vm460_vm0, %v7047_v41 }
  0x32   : > { %1911 = vst [vmem:[#allocation1 + $0x1] ss:$4 sm:$0xff] %v1373_v58  ;;  %v1012_v1 = vrot.slane %v733_v47, 2  ;;  %v1377_v2 = vsel %vm602_vm2, %v768_v51, %v1121_v52  ;;  %v1013_v5 = vrot.slane %v733_v47, 3  ;;  %v1378_v6 = vsel %vm602_vm2, %v769_v53, %v1122_v55 }
  0x33   : > { %1913 = vst [vmem:[#allocation1 + $0x2] ss:$4 sm:$0xff] %v1374_v59  ;;  %v1014_v8 = vrot.slane %v733_v47, 4  ;;  %v1124_v9 = vperm.slane %v733_v47, 0  ;;  %v1379_v10 = vsel %vm602_vm2, %v770_v54, %v1123_v57  ;;  %v771_v11 = vrot.slane %v7558_v62, 1 }
  0x34   : > { %1915 = vst [vmem:[#allocation1 + $0x3] ss:$4 sm:$0xff] %v1375_v60  ;;  %v1015_v13 = vrot.slane %v733_v47, 5  ;;  %v1125_v14 = vperm.slane %v1011_v63, 0  ;;  %v772_v15 = vrot.slane %v7558_v62, 2  ;;  %v1016_v16 = vrot.slane %v733_v47, 6 }
  0x35   : > { %1917 = vst [vmem:[#allocation1 + $0x20] ss:$4 sm:$0xff] %v1376_v0  ;;  %v1126_v17 = vperm.slane %v1012_v1, 0  ;;  %v773_v20 = vrot.slane %v7558_v62, 3  ;;  %v1017_v21 = vrot.slane %v733_v47, 7  ;;  %v1127_v22 = vperm.slane %v1013_v5, 0 }
  0x36   : > { %6787 = vmatmul.msk.bf16.gmra.mxu0 %vm460_vm0, %v7035_v30  ;;  %1919 = vst [vmem:[#allocation1 + $0x21] ss:$4 sm:$0xff] %v1377_v2  ;;  %v734_v23 = vadd.f32 %v718_v7, %v670_v4  ;;  %v774_v24 = vrot.slane %v7558_v62, 4  ;;  %v1128_v25 = vperm.slane %v1014_v8, 0  ;;  %v1380_v26 = vsel %vm602_vm2, %v7558_v62, %v1124_v9 }
  0x37   : > { %1921 = vst [vmem:[#allocation1 + $0x22] ss:$4 sm:$0xff] %v1378_v6  ;;  %v775_v28 = vrot.slane %v7558_v62, 5  ;;  %v1129_v29 = vperm.slane %v1015_v13, 0  ;;  %v1381_v30 = vsel %vm602_vm2, %v771_v11, %v1125_v14  ;;  %v776_v31 = vrot.slane %v7558_v62, 6 }
  0x38   : > { %1923 = vst [vmem:[#allocation1 + $0x23] ss:$4 sm:$0xff] %v1379_v10  ;;  %v1130_v32 = vperm.slane %v1016_v16, 0  ;;  %v1382_v33 = vsel %vm602_vm2, %v772_v15, %v1126_v17  ;;  %v777_v35 = vrot.slane %v7558_v62, 7  ;;  %v1131_v36 = vperm.slane %v1017_v21, 0  ;;  %v7037_v10 = vld [vmem:[%s7537_s16 + $0x18] sm:$0xff] }
  0x39   : > { %v1383_v37 = vsel %vm602_vm2, %v773_v20, %v1127_v22  ;;  %v702_v38 = vadd.f32 %v686_v18, %v670_v4  ;;  %v1018_v39 = vrot.slane %v734_v23, 1  ;;  %v1384_v40 = vsel %vm602_vm2, %v774_v24, %v1128_v25  ;;  %v7048_v15 = vld [vmem:[%s7537_s16 + $0x70] sm:$0xff]  ;;  %v7038_v16 = vld [vmem:[%s7537_s16 + $0x20] sm:$0xff]  ;;  %v7039_v17 = vld [vmem:[%s7537_s16 + $0x28] sm:$0xff] }
  0x3a   : > { %v1019_v42 = vrot.slane %v734_v23, 2  ;;  %v1385_v43 = vsel %vm602_vm2, %v775_v28, %v1129_v29  ;;  %v1020_v44 = vrot.slane %v734_v23, 3  ;;  %v1386_v45 = vsel %vm602_vm2, %v776_v31, %v1130_v32  ;;  %v7612_v20 = vld [vmem:[%s7525_s17 + $0x8] sm:$0xff]  }
  0x3b   : > { %v7576_v34 = vld.sshfl [vmem:[#allocation1] sm:$0xff pattern:$0x73625140]  ;;  %v1021_v47 = vrot.slane %v734_v23, 4  ;;  %v1132_v48 = vperm.slane %v734_v23, 0  ;;  %v1387_v49 = vsel %vm602_vm2, %v777_v35, %v1131_v36  ;;  %v778_v50 = vrot.slane %v702_v38, 1 }
  0x3c   : > { %1926 = vst [vmem:[#allocation1] ss:$4 sm:$0xff] %v1380_v26  ;;  %v1022_v51 = vrot.slane %v734_v23, 5  ;;  %v1133_v52 = vperm.slane %v1018_v39, 0  ;;  %v779_v53 = vrot.slane %v702_v38, 2  ;;  %v1023_v54 = vrot.slane %v734_v23, 6 }
  0x3d   : > { %1927 = vst [vmem:[#allocation1 + $0x1] ss:$4 sm:$0xff] %v1381_v30  ;;  %v1134_v55 = vperm.slane %v1019_v42, 0  ;;  %v780_v56 = vrot.slane %v702_v38, 3  ;;  %v1024_v57 = vrot.slane %v734_v23, 7  ;;  %v1135_v58 = vperm.slane %v1020_v44, 0 }
  0x3e   : > { %1928 = vst [vmem:[#allocation1 + $0x2] ss:$4 sm:$0xff] %v1382_v33  ;;  %v781_v59 = vrot.slane %v702_v38, 4  ;;  %v1136_v60 = vperm.slane %v1021_v47, 0  ;;  %v1388_v61 = vsel %vm602_vm2, %v702_v38, %v1132_v48  ;;  %v782_v62 = vrot.slane %v702_v38, 5  ;;  %v7040_v23 = vld [vmem:[%s7537_s16 + $0x30] sm:$0xff] }
  0x3f   : > { %v7585_v46 = vld.sshfl [vmem:[#allocation1 + $0x20] sm:$0xff pattern:$0x73625140]  ;;  %1929 = vst [vmem:[#allocation1 + $0x3] ss:$4 sm:$0xff] %v1383_v37  ;;  %v1137_v63 = vperm.slane %v1022_v51, 0  ;;  %v1389_v0 = vsel %vm602_vm2, %v778_v50, %v1133_v52  ;;  %v1390_v3 = vsel %vm602_vm2, %v779_v53, %v1134_v55  ;;  %v1391_v7 = vsel %vm602_vm2, %v780_v56, %v1135_v58 }
  0x40   : > { %1930 = vst [vmem:[#allocation1 + $0x20] ss:$4 sm:$0xff] %v1384_v40  ;;  %v783_v1 = vrot.slane %v702_v38, 6  ;;  %v1138_v2 = vperm.slane %v1023_v54, 0  ;;  %v784_v5 = vrot.slane %v702_v38, 7  ;;  %v1139_v6 = vperm.slane %v1024_v57, 0 }
  0x41   : > { %1931 = vst [vmem:[#allocation1 + $0x21] ss:$4 sm:$0xff] %v1385_v43  ;;  %v1392_v8 = vsel %vm602_vm2, %v781_v59, %v1136_v60  ;;  %v1393_v9 = vsel %vm602_vm2, %v782_v62, %v1137_v63  ;;  %6800 = vmatmul.msk.bf16.gmra.mxu3 %vm460_vm0, %v7048_v15  ;;  %v7392_v18 = vmov 0.0   ;;  %v7105_v21 = vunpack.c.l.bf16 %v7612_v20  ;;  %v7041_v60 = vld [vmem:[%s7537_s16 + $0x38] sm:$0xff] }
  0x42   : > { %1932 = vst [vmem:[#allocation1 + $0x22] ss:$4 sm:$0xff] %v1386_v45  ;;  %v1394_v11 = vsel %vm602_vm2, %v783_v1, %v1138_v2  ;;  %v1395_v14 = vsel %vm602_vm2, %v784_v5, %v1139_v6 }
  0x43   : > { %1933 = vst [vmem:[#allocation1 + $0x23] ss:$4 sm:$0xff] %v1387_v49  ;;  %v7619_v22 = vmul.f32 0.25, %v7105_v21  ;;  %v524_v44 = vmul.f32 0.75, %v7105_v21 }
  0x44   : > { %461 = vst.msk [vmem:[#allocation2] sm:$0xff] %vm460_vm0, %v7392_v18 }
  0x45   : > { %462 = vst.msk [vmem:[#allocation2 + $0x8] sm:$0xff] %vm460_vm0, %v7392_v18  ;;  %v547_v24 = vadd.f32 %v7619_v22, %v7546_v19  ;;  %v539_v58 = vadd.f32 %v7540_v12, %v524_v44 }
  0x46   : > { %6788 = vmatmul.msk.bf16.gmra.mxu0 %vm460_vm0, %v7036_v27  ;;  %v7592_v4 = vld.sshfl [vmem:[#allocation1] sm:$0xff pattern:$0x73625140]  ;;  %464 = vst.msk [vmem:[#allocation2 + $0x10] sm:$0x3] %vm463_vm3, %v7392_v18 }
  0x47   : > { %1936 = vst [vmem:[#allocation1] ss:$4 sm:$0xff] %v1388_v61  ;;  %v622_v25 = vrot.slane %v547_v24, 1  ;;  %v573_v29 = vrot.slane %v547_v24, 7  ;;  %v671_v32 = vmul.f32 0.75, %v547_v24 }
  0x48   : > { %1937 = vst [vmem:[#allocation1 + $0x1] ss:$4 sm:$0xff] %v1389_v0 }
  0x49   : > { %1938 = vst [vmem:[#allocation1 + $0x2] ss:$4 sm:$0xff] %v1390_v3  ;;  %v655_v30 = vsel %vm651_vm1, %v622_v25, %v547_v24  ;;  %v606_v36 = vsel %vm602_vm2, %v547_v24, %v573_v29 }
  0x4a   : > { %v7599_v13 = vld.sshfl [vmem:[#allocation1 + $0x20] sm:$0xff pattern:$0x73625140]  ;;  %1939 = vst [vmem:[#allocation1 + $0x3] ss:$4 sm:$0xff] %v1391_v7  ;;  %v719_v33 = vmul.f32 0.25, %v655_v30 }
  0x4b   : > { %1940 = vst [vmem:[#allocation1 + $0x20] ss:$4 sm:$0xff] %v1392_v8  ;;  %v687_v38 = vmul.f32 0.25, %v606_v36  ;;  %v7106_v8 = vunpack.c.h.bf16 %v7612_v20 }
  0x4c   : > { %1941 = vst [vmem:[#allocation1 + $0x21] ss:$4 sm:$0xff] %v1393_v9  ;;  %v2245_v26 = vld [vmem:[#allocation2 + $0x1] sm:$0xff]  ;;  %v735_v39 = vadd.f32 %v719_v33, %v671_v32 }
  0x4d   : > { %1942 = vst [vmem:[#allocation1 + $0x22] ss:$4 sm:$0xff] %v1394_v11  ;;  %v2246_v27 = vld [vmem:[#allocation2 + $0x9] sm:$0xff]  ;;  %v2281_v28 = vpack.c.bf16 %v2245_v26, %v2245_v26  ;;  %v703_v19 = vadd.f32 %v687_v38, %v671_v32  ;;  %v623_v11 = vrot.slane %v539_v58, 1  ;;  %v7647_v21 = vmul.f32 0.25, %v7106_v8 }
  0x4e   : > { %1943 = vst [vmem:[#allocation1 + $0x23] ss:$4 sm:$0xff] %v1395_v14  ;;  %v2282_v31 = vpack.c.bf16 %v2246_v27, %v2246_v27  ;;  %v1025_v41 = vrot.slane %v735_v39, 1  ;;  %v1026_v42 = vrot.slane %v735_v39, 2  ;;  %v1027_v43 = vrot.slane %v735_v39, 3 }
  0x4f   : > { %468 = vst.msk [vmem:[#allocation2 + $0x1a8] sm:$0x3] %vm463_vm3, %v7392_v18  ;;  %v2501_v35 = vunpack.c.l.b16 %v2281_v28  ;;  %v785_v45 = vrot.slane %v703_v19, 1  ;;  %v786_v47 = vrot.slane %v703_v19, 2  ;;  %v787_v48 = vrot.slane %v703_v19, 3 }
  0x50   : > { %466 = vst.msk [vmem:[#allocation2 + $0x198] sm:$0xff] %vm460_vm0, %v7392_v18  ;;  %v2502_v37 = vunpack.c.l.b16 %v2282_v31  ;;  %v1140_v50 = vperm.slane %v735_v39, 0  ;;  %v1028_v51 = vrot.slane %v735_v39, 4  ;;  %v1029_v52 = vrot.slane %v735_v39, 5 }
  0x51   : > { %467 = vst.msk [vmem:[#allocation2 + $0x1a0] sm:$0xff] %vm460_vm0, %v7392_v18  ;;  %v7632_v49 = vld.sshfl [vmem:[#allocation1] sm:$0xff pattern:$0x73625140]  ;;  %v1141_v53 = vperm.slane %v1025_v41, 0  ;;  %v1142_v54 = vperm.slane %v1026_v42, 0  ;;  %v656_v24 = vsel %vm651_vm1, %v623_v11, %v539_v58  ;;  %v548_v27 = vadd.f32 %v7647_v21, %v524_v44 }
  0x52   : > { %v2533_v40 = vpack.c.b16 %v2502_v37, %v2501_v35  ;;  %v1143_v55 = vperm.slane %v1027_v43, 0  ;;  %v1030_v56 = vrot.slane %v735_v39, 6  ;;  %v788_v57 = vrot.slane %v703_v19, 4  ;;  %470 = vst.msk [vmem:[#allocation2] sm:$0x1] %vm469_vm4, %v7392_v18 }
  0x53   : > { %v1396_v61 = vsel %vm602_vm2, %v703_v19, %v1140_v50  ;;  %v1397_v62 = vsel %vm602_vm2, %v785_v45, %v1141_v53  ;;  %v1398_v63 = vsel %vm602_vm2, %v786_v47, %v1142_v54  ;;  %v789_v1 = vrot.slane %v703_v19, 5  ;;  %v7042_v53 = vld [vmem:[%s7537_s16 + $0x40] sm:$0xff]  ;;  %471 = vst.msk [vmem:[#allocation2 + $0x18] sm:$0x1] %vm469_vm4, %v7392_v18 }
  0x54   : > { %2549 = vrot.lane.b32.xlu0 %v2533_v40, %s7393_s27  ;;  %v1399_v0 = vsel %vm602_vm2, %v787_v48, %v1143_v55  ;;  %1946 = vst [vmem:[#allocation1] ss:$4 sm:$0xff] %v1396_v61  ;;  %v790_v2 = vrot.slane %v703_v19, 6  ;;  %v791_v3 = vrot.slane %v703_v19, 7  ;;  %v1031_v5 = vrot.slane %v735_v39, 7 }
  0x55   : > { %v7635_v59 = vld.sshfl [vmem:[#allocation1 + $0x20] sm:$0xff pattern:$0x73625140]  ;;  %1947 = vst [vmem:[#allocation1 + $0x1] ss:$4 sm:$0xff] %v1397_v62  ;;  %v1144_v6 = vperm.slane %v1028_v51, 0 }
  0x56   : > { %6789 = vmatmul.msk.bf16.gmra.mxu0 %vm460_vm0, %v7037_v10  ;;  %v1145_v7 = vperm.slane %v1029_v52, 0  ;;  %v1146_v12 = vperm.slane %v1030_v56, 0  ;;  %1948 = vst [vmem:[#allocation1 + $0x2] ss:$4 sm:$0xff] %v1398_v63  ;;  %v1147_v9 = vperm.slane %v1031_v5, 0  ;;  %v574_v10 = vrot.slane %v539_v58, 7 }
  0x57   : > { %v672_v14 = vmul.f32 0.75, %v539_v58  ;;  %1949 = vst [vmem:[#allocation1 + $0x3] ss:$4 sm:$0xff] %v1399_v0  ;;  %v1400_v15 = vsel %vm602_vm2, %v788_v57, %v1144_v6  ;;  %v720_v26 = vmul.f32 0.25, %v656_v24  ;;  %v7653_v28 = vmul.f32 0.75, %v7106_v8 }
  0x58   : > { %1950 = vst [vmem:[#allocation1 + $0x20] ss:$4 sm:$0xff] %v1400_v15  ;;  %v607_v20 = vsel %vm602_vm2, %v539_v58, %v574_v10  ;;  %v575_v31 = vrot.slane %v548_v27, 7  ;;  %v624_v32 = vrot.slane %v548_v27, 1  ;;  %v673_v33 = vmul.f32 0.75, %v548_v27 }
  0x59   : > { %v688_v25 = vmul.f32 0.25, %v607_v20  ;;  %v736_v30 = vadd.f32 %v720_v26, %v672_v14  ;;  %v7657_v35 = vadd.f32 %v7619_v22, %v7653_v28  ;;  %472 = vst.msk [vmem:[#allocation2 + $0x30] sm:$0x1] %vm469_vm4, %v7392_v18 }
  0x5a   : > { %v608_v43 = vsel %vm602_vm2, %v548_v27, %v575_v31  ;;  %v657_v63 = vsel %vm651_vm1, %v624_v32, %v548_v27  ;;  %473 = vst.msk [vmem:[#allocation2 + $0x48] sm:$0x1] %vm469_vm4, %v7392_v18 }
  0x5b   : > { %v704_v29 = vadd.f32 %v688_v25, %v672_v14  ;;  %v1032_v39 = vrot.slane %v736_v30, 1  ;;  %v1033_v19 = vrot.slane %v736_v30, 2  ;;  %v1034_v41 = vrot.slane %v736_v30, 3  ;;  %474 = vst.msk [vmem:[#allocation2 + $0x60] sm:$0x1] %vm469_vm4, %v7392_v18 }
  0x5c   : > { %v1148_v42 = vperm.slane %v736_v30, 0  ;;  %v1035_v55 = vrot.slane %v736_v30, 4  ;;  %v1036_v56 = vrot.slane %v736_v30, 5  ;;  %v1037_v57 = vrot.slane %v736_v30, 6  ;;  %475 = vst.msk [vmem:[#allocation2 + $0x78] sm:$0x1] %vm469_vm4, %v7392_v18 }
  0x5d   : > { %v792_v36 = vrot.slane %v704_v29, 1  ;;  %v793_v37 = vrot.slane %v704_v29, 2  ;;  %v794_v38 = vrot.slane %v704_v29, 3  ;;  %v1149_v44 = vperm.slane %v1032_v39, 0  ;;  %476 = vst.msk [vmem:[#allocation2 + $0x90] sm:$0x1] %vm469_vm4, %v7392_v18 }
  0x5e   : > { %v7659_v40 = vld.sshfl [vmem:[#allocation1] sm:$0xff pattern:$0x73625140]  ;;  %v795_v45 = vrot.slane %v704_v29, 4  ;;  %v796_v47 = vrot.slane %v704_v29, 5  ;;  %v797_v48 = vrot.slane %v704_v29, 6  ;;  %v1404_v22 = vsel %vm602_vm2, %v704_v29, %v1148_v42 }
  0x5f   : > { %v1150_v50 = vperm.slane %v1033_v19, 0  ;;  %v1151_v51 = vperm.slane %v1034_v41, 0  ;;  %v798_v52 = vrot.slane %v704_v29, 7  ;;  %v1405_v54 = vsel %vm602_vm2, %v792_v36, %v1149_v44  ;;  %1956 = vst [vmem:[#allocation1] ss:$4 sm:$0xff] %v1404_v22  ;;  %v7043_v19 = vld [vmem:[%s7537_s16 + $0x48] sm:$0xff] }
  0x60   : > { %1957 = vst [vmem:[#allocation1 + $0x1] ss:$4 sm:$0xff] %v1405_v54  ;;  %v1038_v62 = vrot.slane %v736_v30, 7  ;;  %v1152_v0 = vperm.slane %v1035_v55, 0  ;;  %v7044_v22 = vld [vmem:[%s7537_s16 + $0x50] sm:$0xff] }
  0x61   : > { %v1407_v61 = vsel %vm602_vm2, %v794_v38, %v1151_v51  ;;  %477 = vst.msk [vmem:[#allocation2 + $0xa8] sm:$0x1] %vm469_vm4, %v7392_v18 }
  0x62   : > { %1959 = vst [vmem:[#allocation1 + $0x3] ss:$4 sm:$0xff] %v1407_v61  ;;  %v1155_v6 = vperm.slane %v1038_v62, 0  ;;  %v1408_v8 = vsel %vm602_vm2, %v795_v45, %v1152_v0  ;;  %v7045_v0 = vld [vmem:[%s7537_s16 + $0x58] sm:$0xff] }
  0x63   : > { %478 = vst.msk [vmem:[#allocation2 + $0xc0] sm:$0x1] %vm469_vm4, %v7392_v18 }
  0x64   : > { %v1411_v15 = vsel %vm602_vm2, %v798_v52, %v1155_v6  ;;  %479 = vst.msk [vmem:[#allocation2 + $0xd8] sm:$0x1] %vm469_vm4, %v7392_v18 }
  0x65   : > { %480 = vst.msk [vmem:[#allocation2 + $0xf0] sm:$0x1] %vm469_vm4, %v7392_v18 }
  0x66   : > { %6790 = vmatmul.msk.bf16.gmra.mxu0 %vm460_vm0, %v7038_v16  ;;  %v1401_v16 = vsel %vm602_vm2, %v789_v1, %v1145_v7  ;;  %v1153_v1 = vperm.slane %v1036_v56, 0  ;;  %v721_v7 = vmul.f32 0.25, %v657_v63  ;;  %v7718_v63 = vld [vmem:[%s7525_s17 + $0x10] sm:$0xff]   ;;  %481 = vst.msk [vmem:[#allocation2 + $0x108] sm:$0x1] %vm469_vm4, %v7392_v18 }
  0x67   : > { %1951 = vst [vmem:[#allocation1 + $0x21] ss:$4 sm:$0xff] %v1401_v16 }
  0x68   : > { %v7676_v14 = vadd.f32 %v721_v7, %v673_v33  ;;  %482 = vst.msk [vmem:[#allocation2 + $0x120] sm:$0x1] %vm469_vm4, %v7392_v18 }
  0x69   : > { %483 = vst.msk [vmem:[#allocation2 + $0x138] sm:$0x1] %vm469_vm4, %v7392_v18 }
  0x6a   : > { %v1040_v20 = vrot.slane %v7676_v14, 2  ;;  %v1041_v24 = vrot.slane %v7676_v14, 3  ;;  %v1156_v25 = vperm.slane %v7676_v14, 0  ;;  %484 = vst.msk [vmem:[#allocation2 + $0x150] sm:$0x1] %vm469_vm4, %v7392_v18 }
  0x6b   : > { %485 = vst.msk [vmem:[#allocation2 + $0x168] sm:$0x1] %vm469_vm4, %v7392_v18 }
  0x6c   : > { %v1158_v29 = vperm.slane %v1040_v20, 0  ;;  %v1159_v30 = vperm.slane %v1041_v24, 0  ;;  %486 = vst.msk [vmem:[#allocation2 + $0x180] sm:$0x1] %vm469_vm4, %v7392_v18 }
  0x6d   : > { %487 = vst.msk [vmem:[#allocation2 + $0x198] sm:$0x1] %vm469_vm4, %v7392_v18 }
  0x6e   : > { %488 = vst.msk [vmem:[#allocation2 + $0x11] sm:$0x1] %vm469_vm4, %v7392_v18 }
  0x6f   : > { %489 = vst.msk [vmem:[#allocation2 + $0x29] sm:$0x1] %vm469_vm4, %v7392_v18 }
  0x70   : > { %490 = vst.msk [vmem:[#allocation2 + $0x41] sm:$0x1] %vm469_vm4, %v7392_v18 }
  0x71   : > { %491 = vst.msk [vmem:[#allocation2 + $0x59] sm:$0x1] %vm469_vm4, %v7392_v18 }
  0x72   : > { %492 = vst.msk [vmem:[#allocation2 + $0x71] sm:$0x1] %vm469_vm4, %v7392_v18 }
  0x73   : > { %493 = vst.msk [vmem:[#allocation2 + $0x89] sm:$0x1] %vm469_vm4, %v7392_v18 }
  0x74   : > { %494 = vst.msk [vmem:[#allocation2 + $0xa1] sm:$0x1] %vm469_vm4, %v7392_v18 }
  0x75   : > { %495 = vst.msk [vmem:[#allocation2 + $0xb9] sm:$0x1] %vm469_vm4, %v7392_v18 }
  0x76   : > { %6791 = vmatmul.msk.bf16.gmra.mxu0 %vm460_vm0, %v7039_v17  ;;  %v1402_v17 = vsel %vm602_vm2, %v790_v2, %v1146_v12  ;;  %v1154_v2 = vperm.slane %v1037_v57, 0  ;;  %496 = vst.msk [vmem:[#allocation2 + $0xd1] sm:$0x1] %vm469_vm4, %v7392_v18 }
  0x77   : > { %1952 = vst [vmem:[#allocation1 + $0x22] ss:$4 sm:$0xff] %v1402_v17  ;;  %v1039_v17 = vrot.slane %v7676_v14, 1 }
  0x78   : > { %v1410_v10 = vsel %vm602_vm2, %v797_v48, %v1154_v2  ;;  %497 = vst.msk [vmem:[#allocation2 + $0xe9] sm:$0x1] %vm469_vm4, %v7392_v18 }
  0x79   : > { %v1157_v26 = vperm.slane %v1039_v17, 0  ;;  %498 = vst.msk [vmem:[#allocation2 + $0x101] sm:$0x1] %vm469_vm4, %v7392_v18 }
  0x7a   : > { %499 = vst.msk [vmem:[#allocation2 + $0x119] sm:$0x1] %vm469_vm4, %v7392_v18 }
  0x7b   : > { %500 = vst.msk [vmem:[#allocation2 + $0x131] sm:$0x1] %vm469_vm4, %v7392_v18 }
  0x7c   : > { %501 = vst.msk [vmem:[#allocation2 + $0x149] sm:$0x1] %vm469_vm4, %v7392_v18 }
  0x7d   : > { %502 = vst.msk [vmem:[#allocation2 + $0x161] sm:$0x1] %vm469_vm4, %v7392_v18 }
  0x7e   : > { %503 = vst.msk [vmem:[#allocation2 + $0x179] sm:$0x1] %vm469_vm4, %v7392_v18 }
  0x7f   : > { %504 = vst.msk [vmem:[#allocation2 + $0x191] sm:$0x1] %vm469_vm4, %v7392_v18 }
  0x80   : > { %505 = vst.msk [vmem:[#allocation2 + $0x1a9] sm:$0x1] %vm469_vm4, %v7392_v18 }
  0x86   : > { %6792 = vmatmul.msk.bf16.gmra.mxu0 %vm460_vm0, %v7040_v23  ;;  %v1403_v23 = vsel %vm602_vm2, %v791_v3, %v1147_v9  ;;  %v689_v3 = vmul.f32 0.25, %v608_v43  ;;  %v1409_v9 = vsel %vm602_vm2, %v796_v47, %v1153_v1 }
  0x87   : > { %1953 = vst [vmem:[#allocation1 + $0x23] ss:$4 sm:$0xff] %v1403_v23 }
  0x88   : > { %v7674_v11 = vadd.f32 %v689_v3, %v673_v33 }
  0x8a   : > { %v800_v16 = vrot.slane %v7674_v11, 2  ;;  %v801_v23 = vrot.slane %v7674_v11, 3  ;;  %v1412_v31 = vsel %vm602_vm2, %v7674_v11, %v1156_v25  ;;  %v674_v25 = vmul.f32 0.75, %v7657_v35 }
  0x8c   : > { %v1415_v38 = vsel %vm602_vm2, %v801_v23, %v1159_v30  ;;  %v7046_v30 = vld [vmem:[%s7537_s16 + $0x60] sm:$0xff] }
  0x8e   : > { %v7665_v58 = vld.sshfl [vmem:[#allocation1 + $0x20] sm:$0xff pattern:$0x73625140] }
  0x8f   : > { %1960 = vst [vmem:[#allocation1 + $0x20] ss:$4 sm:$0xff] %v1408_v8 }
  0x90   : > { %1961 = vst [vmem:[#allocation1 + $0x21] ss:$4 sm:$0xff] %v1409_v9  ;;  %v625_v9 = vrot.slane %v7657_v35, 1 }
  0x91   : > { %1962 = vst [vmem:[#allocation1 + $0x22] ss:$4 sm:$0xff] %v1410_v10 }
  0x92   : > { %1963 = vst [vmem:[#allocation1 + $0x23] ss:$4 sm:$0xff] %v1411_v15  ;;  %v658_v17 = vsel %vm651_vm1, %v625_v9, %v7657_v35 }
  0x96   : > { %6793 = vmatmul.msk.bf16.gmra.mxu0 %vm460_vm0, %v7041_v60  ;;  %v1406_v60 = vsel %vm602_vm2, %v793_v37, %v1150_v50  ;;  %v1414_v37 = vsel %vm602_vm2, %v800_v16, %v1158_v29 }
  0x97   : > { %1958 = vst [vmem:[#allocation1 + $0x2] ss:$4 sm:$0xff] %v1406_v60 }
  0x9e   : > { %v7688_v27 = vld.sshfl [vmem:[#allocation1] sm:$0xff pattern:$0x73625140] }
  0x9f   : > { %1966 = vst [vmem:[#allocation1] ss:$4 sm:$0xff] %v1412_v31 }
  0xa0   : > { %1968 = vst [vmem:[#allocation1 + $0x2] ss:$4 sm:$0xff] %v1414_v37  ;;  %v1043_v37 = vrot.slane %v7676_v14, 5 }
  0xa1   : > { %1969 = vst [vmem:[#allocation1 + $0x3] ss:$4 sm:$0xff] %v1415_v38 }
  0xa3   : > { %v1701_v5 = vpop.f32.mrf.mxu0 }
  0xa4   : > { %v2108_v12 = vadd.f32 %v7576_v34, %v1701_v5  ;;  %v799_v34 = vrot.slane %v7674_v11, 1  ;;  %v7109_v5 = vunpack.c.l.bf16 %v7718_v63 }
  0xa6   : > { %2141 = vst.msk [vmem:[#allocation2 + $0x19] sm:$0xff] %vm460_vm0, %v2108_v12  ;;  %6794 = vmatmul.msk.bf16.gmra.mxu0 %vm460_vm0, %v7042_v53  ;;  %v1413_v33 = vsel %vm602_vm2, %v799_v34, %v1157_v26  ;;  %v7725_v8 = vmul.f32 0.25, %v7109_v5  ;;  %v7738_v23 = vmul.f32 0.75, %v7109_v5 }
  0xa7   : > { %1967 = vst [vmem:[#allocation1 + $0x1] ss:$4 sm:$0xff] %v1413_v33 }
  0xa8   : > { %v549_v16 = vadd.f32 %v7725_v8, %v7653_v28  ;;  %v541_v26 = vadd.f32 %v7647_v21, %v7738_v23 }
  0xaa   : > { %v577_v20 = vrot.slane %v549_v16, 7  ;;  %v626_v29 = vrot.slane %v549_v16, 1 }
  0xab   : > { %v1703_v32 = vpop.f32.mrf.mxu0 }
  0xac   : > { %v2109_v36 = vadd.f32 %v7585_v46, %v1703_v32  ;;  %v610_v28 = vsel %vm602_vm2, %v549_v16, %v577_v20  ;;  %v659_v21 = vsel %vm651_vm1, %v626_v29, %v549_v16 }
  0xad   : > { %v2247_v39 = vld [vmem:[#allocation2 + $0x19] sm:$0xff] }
  0xae   : > { %2142 = vst.msk [vmem:[#allocation2 + $0x21] sm:$0xff] %vm460_vm0, %v2109_v36  ;;  %v2283_v43 = vpack.c.bf16 %v2247_v39, %v2247_v39  ;;  %v1042_v36 = vrot.slane %v7676_v14, 4  ;;  %v1045_v39 = vrot.slane %v7676_v14, 7 }
  0xb0   : > { %v2503_v45 = vunpack.c.l.b16 %v2283_v43  ;;  %v7110_v43 = vunpack.c.h.bf16 %v7718_v63 }
  0xb3   : > { %v1706_v41 = vpop.f32.mrf.mxu0 }
  0xb4   : > { %v2110_v42 = vadd.f32 %v7592_v4, %v1706_v41  ;;  %v675_v41 = vmul.f32 0.75, %v549_v16 }
  0xb5   : > { %v2248_v44 = vld [vmem:[#allocation2 + $0x21] sm:$0xff] }
  0xb6   : > { %2143 = vst.msk [vmem:[#allocation2 + $0x31] sm:$0xff] %vm460_vm0, %v2110_v42  ;;  %6795 = vmatmul.msk.bf16.gmra.mxu0 %vm460_vm0, %v7043_v19  ;;  %v2284_v46 = vpack.c.bf16 %v2248_v44, %v2248_v44  ;;  %v627_v19 = vrot.slane %v541_v26, 1  ;;  %v691_v42 = vmul.f32 0.25, %v610_v28 }
  0xb8   : > { %v2504_v47 = vunpack.c.l.b16 %v2284_v46  ;;  %v802_v46 = vrot.slane %v7674_v11, 4 }
  0xba   : > { %v7701_v48 = vpack.c.b16 %v2504_v47, %v2503_v45  ;;  %v804_v45 = vrot.slane %v7674_v11, 6  ;;  %v1160_v47 = vperm.slane %v1042_v36, 0 }
  0xbb   : > { %v1708_v50 = vpop.f32.mrf.mxu0 }
  0xbc   : > { %v2111_v51 = vadd.f32 %v7599_v13, %v1708_v50  ;;  %2551 = vrot.lane.b32.xlu0 %v7701_v48, %s7393_s27  ;;  %v1161_v50 = vperm.slane %v1043_v37, 0 }
  0xbd   : > { %v2249_v4 = vld [vmem:[#allocation2 + $0x31] sm:$0xff] }
  0xbe   : > { %2144 = vst.msk [vmem:[#allocation2 + $0x39] sm:$0xff] %vm460_vm0, %v2111_v51  ;;  %v2285_v54 = vpack.c.bf16 %v2249_v4, %v2249_v4  ;;  %v805_v51 = vrot.slane %v7674_v11, 7 }
  0xc0   : > { %v2505_v13 = vunpack.c.l.b16 %v2285_v54  ;;  %v578_v54 = vrot.slane %v541_v26, 7 }
  0xc2   : > { %v611_v16 = vsel %vm602_vm2, %v541_v26, %v578_v54 }
  0xc3   : > { %v1711_v52 = vpop.f32.mrf.mxu0 }
  0xc4   : > { %v2112_v53 = vadd.f32 %v7632_v49, %v1711_v52  ;;  %v1163_v52 = vperm.slane %v1045_v39, 0 }
  0xc5   : > { %v2250_v55 = vld [vmem:[#allocation2 + $0x39] sm:$0xff] }
  0xc6   : > { %2145 = vst.msk [vmem:[#allocation2 + $0x49] sm:$0xff] %vm460_vm0, %v2112_v53  ;;  %6796 = vmatmul.msk.bf16.gmra.mxu0 %vm460_vm0, %v7044_v22  ;;  %v2286_v56 = vpack.c.bf16 %v2250_v55, %v2250_v55  ;;  %v1965_v53 = vld.sshfl [vmem:[#allocation1 + $0x20] sm:$0xff pattern:$0x73625140]  ;;  %v660_v55 = vsel %vm651_vm1, %v627_v19, %v541_v26 }
  0xc8   : > { %v2506_v57 = vunpack.c.l.b16 %v2286_v56  ;;  %v723_v56 = vmul.f32 0.25, %v659_v21 }
  0xca   : > { %v7711_v60 = vpack.c.b16 %v2506_v57, %v2505_v13  ;;  %v7771_v57 = vmul.f32 0.25, %v7110_v43 }
  0xcb   : > { %v1713_v61 = vpop.f32.mrf.mxu0 }
  0xcc   : > { %v2113_v62 = vadd.f32 %v7635_v59, %v1713_v61  ;;  %2553 = vrot.lane.b32.xlu1 %v7711_v60, %s7393_s27  ;;  %v676_v61 = vmul.f32 0.75, %v541_v26 }
  0xcd   : > { %v2251_v49 = vld [vmem:[#allocation2 + $0x49] sm:$0xff] }
  0xce   : > { %2146 = vst.msk [vmem:[#allocation2 + $0x51] sm:$0xff] %vm460_vm0, %v2113_v62  ;;  %v2287_v3 = vpack.c.bf16 %v2251_v49, %v2251_v49 }
  0xd0   : > { %v2507_v7 = vunpack.c.l.b16 %v2287_v3 }
  0xd3   : > { %v1716_v1 = vpop.f32.mrf.mxu0 }
  0xd4   : > { %v2114_v2 = vadd.f32 %v7659_v40, %v1716_v1  ;;  %v576_v40 = vrot.slane %v7657_v35, 7 }
  0xd5   : > { %v2252_v6 = vld [vmem:[#allocation2 + $0x51] sm:$0xff] }
  0xd6   : > { %2147 = vst.msk [vmem:[#allocation2 + $0x61] sm:$0xff] %vm460_vm0, %v2114_v2  ;;  %6797 = vmatmul.msk.bf16.gmra.mxu0 %vm460_vm0, %v7045_v0  ;;  %v2288_v59 = vpack.c.bf16 %v2252_v6, %v2252_v6  ;;  %v609_v24 = vsel %vm602_vm2, %v7657_v35, %v576_v40  ;;  %v1044_v35 = vrot.slane %v7676_v14, 6  ;;  %v1416_v2 = vsel %vm602_vm2, %v802_v46, %v1160_v47 }
  0xd7   : > { %v690_v31 = vmul.f32 0.25, %v609_v24  ;;  %1970 = vst [vmem:[#allocation1 + $0x20] ss:$4 sm:$0xff] %v1416_v2 }
  0xd8   : > { %v2508_v12 = vunpack.c.l.b16 %v2288_v59  ;;  %v1162_v22 = vperm.slane %v1044_v35, 0 }
  0xd9   : > { %v7759_v44 = vadd.f32 %v690_v31, %v674_v25  ;;  %v692_v31 = vmul.f32 0.25, %v611_v16 }
  0xda   : > { %v7728_v10 = vpack.c.b16 %v2508_v12, %v2507_v7  ;;  %v1418_v59 = vsel %vm602_vm2, %v804_v45, %v1162_v22  ;;  %v1419_v7 = vsel %vm602_vm2, %v805_v51, %v1163_v52  ;;  %v724_v12 = vmul.f32 0.25, %v660_v55 }
  0xdb   : > { %v1718_v15 = vpop.f32.mrf.mxu0  ;;  %v806_v62 = vrot.slane %v7759_v44, 1  ;;  %v807_v0 = vrot.slane %v7759_v44, 2  ;;  %v808_v9 = vrot.slane %v7759_v44, 3  ;;  %1972 = vst [vmem:[#allocation1 + $0x22] ss:$4 sm:$0xff] %v1418_v59  ;;  %v811_v21 = vrot.slane %v7759_v44, 6 }
  0xdc   : > { %v2115_v34 = vadd.f32 %v7665_v58, %v1718_v15  ;;  %2555 = vrot.lane.b32.xlu1 %v7728_v10, %s7393_s27  ;;  %v722_v58 = vmul.f32 0.25, %v658_v17  ;;  %v7784_v17 = vadd.f32 %v723_v56, %v675_v41  ;;  %1973 = vst [vmem:[#allocation1 + $0x23] ss:$4 sm:$0xff] %v1419_v7  ;;  %v7807_v47 = vadd.f32 %v692_v31, %v676_v61 }
  0xde   : > { %2148 = vst.msk [vmem:[#allocation2 + $0x69] sm:$0xff] %vm460_vm0, %v2115_v34  ;;  %v7748_v33 = vadd.f32 %v722_v58, %v674_v25  ;;  %v1974_v34 = vld.sshfl [vmem:[#allocation1] sm:$0xff pattern:$0x73625140]  ;;  %v550_v25 = vadd.f32 %v7771_v57, %v7738_v23  ;;  %v7799_v23 = vadd.f32 %v724_v12, %v676_v61  ;;  %v1053_v35 = vrot.slane %v7784_v17, 1 }
  0xdf   : > { %v1055_v45 = vrot.slane %v7784_v17, 3  ;;  %v1172_v51 = vperm.slane %v7784_v17, 0  ;;  %v1058_v7 = vrot.slane %v7784_v17, 6  ;;  %v821_v31 = vrot.slane %v7807_v47, 2 }
  0xe0   : > { %v1046_v14 = vrot.slane %v7748_v33, 1  ;;  %v1047_v4 = vrot.slane %v7748_v33, 2  ;;  %v1048_v13 = vrot.slane %v7748_v33, 3  ;;  %v1049_v15 = vrot.slane %v7748_v33, 4 }
  0xe1   : > { %v1050_v20 = vrot.slane %v7748_v33, 5  ;;  %v1051_v58 = vrot.slane %v7748_v33, 6  ;;  %v1052_v28 = vrot.slane %v7748_v33, 7  ;;  %v579_v54 = vrot.slane %v550_v25, 7 }
  0xe2   : > { %v1165_v1 = vperm.slane %v1046_v14, 0  ;;  %v1166_v6 = vperm.slane %v1047_v4, 0  ;;  %v1167_v40 = vperm.slane %v1048_v13, 0  ;;  %v1168_v36 = vperm.slane %v1049_v15, 0 }
  0xe3   : > { %v1721_v32 = vpop.f32.mrf.mxu0  ;;  %v1169_v39 = vperm.slane %v1050_v20, 0  ;;  %v1171_v14 = vperm.slane %v1052_v28, 0  ;;  %v1059_v15 = vrot.slane %v7784_v17, 7  ;;  %v1061_v28 = vrot.slane %v7799_v23, 2 }
  0xe4   : > { %v2116_v38 = vadd.f32 %v7688_v27, %v1721_v32  ;;  %v803_v27 = vrot.slane %v7674_v11, 5  ;;  %v1164_v11 = vperm.slane %v7748_v33, 0  ;;  %v1421_v29 = vsel %vm602_vm2, %v806_v62, %v1165_v1 }
  0xe5   : > { %v1422_v26 = vsel %vm602_vm2, %v807_v0, %v1166_v6  ;;  %v809_v32 = vrot.slane %v7759_v44, 4  ;;  %v1423_v37 = vsel %vm602_vm2, %v808_v9, %v1167_v40  ;;  %1977 = vst [vmem:[#allocation1 + $0x1] ss:$4 sm:$0xff] %v1421_v29  ;;  %v628_v33 = vrot.slane %v550_v25, 1 }
  0xe6   : > { %2149 = vst.msk [vmem:[#allocation2 + $0x79] sm:$0xff] %vm460_vm0, %v2116_v38  ;;  %6798 = vmatmul.msk.bf16.gmra.mxu0 %vm460_vm0, %v7046_v30  ;;  %v1417_v3 = vsel %vm602_vm2, %v803_v27, %v1161_v50  ;;  %v1420_v24 = vsel %vm602_vm2, %v7759_v44, %v1164_v11  ;;  %v7793_v30 = vadd.f32 %v691_v42, %v675_v41  ;;  %v810_v38 = vrot.slane %v7759_v44, 5 }
  0xe7   : > { %1971 = vst [vmem:[#allocation1 + $0x21] ss:$4 sm:$0xff] %v1417_v3  ;;  %v1054_v41 = vrot.slane %v7784_v17, 2  ;;  %v1170_v42 = vperm.slane %v1051_v58, 0  ;;  %v812_v27 = vrot.slane %v7759_v44, 7  ;;  %v1424_v4 = vsel %vm602_vm2, %v809_v32, %v1168_v36 }
  0xe8   : > { %1976 = vst [vmem:[#allocation1] ss:$4 sm:$0xff] %v1420_v24  ;;  %v813_v50 = vrot.slane %v7793_v30, 1  ;;  %v814_v22 = vrot.slane %v7793_v30, 2  ;;  %v815_v52 = vrot.slane %v7793_v30, 3  ;;  %v1425_v44 = vsel %vm602_vm2, %v810_v38, %v1169_v39  ;;  %v7842_v24 = vld [vmem:[%s7525_s17 + $0x18] sm:$0xff]  }
  0xe9   : > { %1978 = vst [vmem:[#allocation1 + $0x2] ss:$4 sm:$0xff] %v1422_v26  ;;  %v661_v55 = vsel %vm651_vm1, %v628_v33, %v550_v25  ;;  %v1174_v56 = vperm.slane %v1054_v41, 0  ;;  %v1426_v13 = vsel %vm602_vm2, %v811_v21, %v1170_v42  ;;  %v816_v62 = vrot.slane %v7793_v30, 4 }
  0xea   : > { %1979 = vst [vmem:[#allocation1 + $0x3] ss:$4 sm:$0xff] %v1423_v37  ;;  %v1056_v11 = vrot.slane %v7784_v17, 4  ;;  %v1427_v0 = vsel %vm602_vm2, %v812_v27, %v1171_v14  ;;  %v677_v1 = vmul.f32 0.75, %v550_v25  ;;  %v817_v2 = vrot.slane %v7793_v30, 5 }
  0xeb   : > { %v1723_v49 = vpop.f32.mrf.mxu0  ;;  %v1057_v3 = vrot.slane %v7784_v17, 5  ;;  %v7829_v6 = vmul.f32 0.75, %v7110_v43  ;;  %v725_v59 = vmul.f32 0.25, %v661_v55  ;;  %v612_v9 = vsel %vm602_vm2, %v550_v25, %v579_v54 }
  0xec   : > { %v2117_v5 = vadd.f32 %v1965_v53, %v1723_v49  ;;  %v1173_v53 = vperm.slane %v1053_v35, 0  ;;  %v1175_v49 = vperm.slane %v1055_v45, 0  ;;  %v1430_v40 = vsel %vm602_vm2, %v814_v22, %v1174_v56 }
  0xed   : > { %v818_v63 = vrot.slane %v7793_v30, 6  ;;  %v819_v43 = vrot.slane %v7793_v30, 7  ;;  %v1176_v16 = vperm.slane %v1056_v11, 0  ;;  %v820_v58 = vrot.slane %v7807_v47, 1 }
  0xee   : > { %2150 = vst.msk [vmem:[#allocation2 + $0x81] sm:$0xff] %vm460_vm0, %v2117_v5  ;;  %v7818_v61 = vld.sshfl [vmem:[#allocation1 + $0x20] sm:$0xff pattern:$0x73625140]  ;;  %v1428_v5 = vsel %vm602_vm2, %v7793_v30, %v1172_v51  ;;  %v1429_v12 = vsel %vm602_vm2, %v813_v50, %v1173_v53  ;;  %v1431_v20 = vsel %vm602_vm2, %v815_v52, %v1175_v49  ;;  %v1060_v25 = vrot.slane %v7799_v23, 1 }
  0xef   : > { %1980 = vst [vmem:[#allocation1 + $0x20] ss:$4 sm:$0xff] %v1424_v4  ;;  %v1177_v17 = vperm.slane %v1057_v3, 0  ;;  %v693_v29 = vmul.f32 0.25, %v612_v9  ;;  %v1178_v26 = vperm.slane %v1058_v7, 0  ;;  %v542_v30 = vadd.f32 %v7725_v8, %v7829_v6 }
  0xf0   : > { %1981 = vst [vmem:[#allocation1 + $0x21] ss:$4 sm:$0xff] %v1425_v44  ;;  %v1062_v32 = vrot.slane %v7799_v23, 3  ;;  %v1179_v36 = vperm.slane %v1059_v15, 0  ;;  %v7113_v37 = vunpack.c.l.bf16 %v7842_v24  ;;  %v822_v38 = vrot.slane %v7807_v47, 3 }
  0xf1   : > { %1982 = vst [vmem:[#allocation1 + $0x22] ss:$4 sm:$0xff] %v1426_v13  ;;  %v1180_v35 = vperm.slane %v7799_v23, 0  ;;  %v1432_v39 = vsel %vm602_vm2, %v816_v62, %v1176_v16  ;;  %v824_v8 = vrot.slane %v7807_v47, 5  ;;  %v1181_v33 = vperm.slane %v1060_v25, 0 }
  0xf2   : > { %1983 = vst [vmem:[#allocation1 + $0x23] ss:$4 sm:$0xff] %v1427_v0  ;;  %v1433_v21 = vsel %vm602_vm2, %v817_v2, %v1177_v17  ;;  %v7862_v41 = vadd.f32 %v725_v59, %v677_v1  ;;  %v1182_v42 = vperm.slane %v1061_v28, 0  ;;  %v629_v45 = vrot.slane %v542_v30, 1 }
  0xf3   : > { %v1726_v19 = vpop.f32.mrf.mxu0  ;;  %v1063_v14 = vrot.slane %v7799_v23, 4  ;;  %v1183_v50 = vperm.slane %v1062_v32, 0  ;;  %v1435_v51 = vsel %vm602_vm2, %v819_v43, %v1179_v36  ;;  %v7873_v4 = vmul.f32 0.25, %v7113_v37 }
  0xf4   : > { %v2118_v46 = vadd.f32 %v1974_v34, %v1726_v19  ;;  %v7836_v34 = vld.sshfl [vmem:[#allocation1] sm:$0xff pattern:$0x73625140]  ;;  %v823_v19 = vrot.slane %v7807_v47, 4  ;;  %v580_v22 = vrot.slane %v542_v30, 7  ;;  %v1064_v52 = vrot.slane %v7799_v23, 5 }
  0xf5   : > { %1986 = vst [vmem:[#allocation1] ss:$4 sm:$0xff] %v1428_v5  ;;  %v1436_v53 = vsel %vm602_vm2, %v7807_v47, %v1180_v35  ;;  %v7878_v44 = vadd.f32 %v693_v29, %v677_v1  ;;  %v825_v54 = vrot.slane %v7807_v47, 6  ;;  %v1065_v55 = vrot.slane %v7799_v23, 6 }
  0xf6   : > { %2151 = vst.msk [vmem:[#allocation2 + $0x91] sm:$0xff] %vm460_vm0, %v2118_v46  ;;  %v1434_v46 = vsel %vm602_vm2, %v818_v63, %v1178_v26  ;;  %v1437_v56 = vsel %vm602_vm2, %v820_v58, %v1181_v33  ;;  %v1066_v13 = vrot.slane %v7799_v23, 7  ;;  %v1438_v62 = vsel %vm602_vm2, %v821_v31, %v1182_v42 }
  0xf7   : > { %1987 = vst [vmem:[#allocation1 + $0x1] ss:$4 sm:$0xff] %v1429_v12  ;;  %v662_v49 = vsel %vm651_vm1, %v629_v45, %v542_v30  ;;  %v826_v0 = vrot.slane %v7807_v47, 7  ;;  %v1184_v1 = vperm.slane %v1063_v14, 0  ;;  %v1439_v2 = vsel %vm602_vm2, %v822_v38, %v1183_v50  ;;  %v2255_v50 = vld [vmem:[#allocation2 + $0x79] sm:$0xff] }
  0xf8   : > { %1988 = vst [vmem:[#allocation1 + $0x2] ss:$4 sm:$0xff] %v1430_v40  ;;  %v7892_v3 = vadd.f32 %v7873_v4, %v7829_v6  ;;  %v613_v5 = vsel %vm602_vm2, %v542_v30, %v580_v22  ;;  %v1067_v23 = vrot.slane %v7862_v41, 1  ;;  %v1185_v59 = vperm.slane %v1064_v52, 0 }
  0xf9   : > { %1989 = vst [vmem:[#allocation1 + $0x3] ss:$4 sm:$0xff] %v1431_v20  ;;  %v7865_v27 = vld.sshfl [vmem:[#allocation1 + $0x20] sm:$0xff pattern:$0x73625140]  ;;  %v827_v7 = vrot.slane %v7878_v44, 1  ;;  %v1440_v58 = vsel %vm602_vm2, %v823_v19, %v1184_v1 }
  0xfa   : > { %1990 = vst [vmem:[#allocation1 + $0x20] ss:$4 sm:$0xff] %v1432_v39  ;;  %v828_v12 = vrot.slane %v7878_v44, 2  ;;  %v1068_v47 = vrot.slane %v7862_v41, 2  ;;  %v1186_v9 = vperm.slane %v1065_v55, 0  ;;  %v678_v15 = vmul.f32 0.75, %v542_v30 }
  0xfb   : > { %1991 = vst [vmem:[#allocation1 + $0x21] ss:$4 sm:$0xff] %v1433_v21  ;;  %v829_v40 = vrot.slane %v7878_v44, 3  ;;  %v1069_v6 = vrot.slane %v7862_v41, 3  ;;  %v1187_v63 = vperm.slane %v1066_v13, 0  ;;  %v694_v43 = vmul.f32 0.25, %v613_v5 }
  0xfc   : > { %1992 = vst [vmem:[#allocation1 + $0x22] ss:$4 sm:$0xff] %v1434_v46  ;;  %v726_v16 = vmul.f32 0.25, %v662_v49  ;;  %v1188_v20 = vperm.slane %v7862_v41, 0  ;;  %v630_v25 = vrot.slane %v7892_v3, 1  ;;  %v830_v17 = vrot.slane %v7878_v44, 4 }
  0xfd   : > { %1993 = vst [vmem:[#allocation1 + $0x23] ss:$4 sm:$0xff] %v1435_v51  ;;  %v1189_v29 = vperm.slane %v1067_v23, 0  ;;  %v1441_v28 = vsel %vm602_vm2, %v824_v8, %v1185_v59  ;;  %v1190_v26 = vperm.slane %v1068_v47, 0  ;;  %v1442_v30 = vsel %vm602_vm2, %v825_v54, %v1186_v9  ;;  %v2256_v59 = vld [vmem:[#allocation2 + $0x81] sm:$0xff] }
  0xfe   : > { %v7917_v32 = vmul.f32 0.75, %v7113_v37  ;;  %v1070_v36 = vrot.slane %v7862_v41, 4  ;;  %v1191_v38 = vperm.slane %v1069_v6, 0  ;;  %v1443_v35 = vsel %vm602_vm2, %v826_v0, %v1187_v63 }
  0xff   : > { %v7921_v39 = vadd.f32 %v694_v43, %v678_v15  ;;  %v7923_v19 = vadd.f32 %v726_v16, %v678_v15  ;;  %v1071_v8 = vrot.slane %v7862_v41, 5  ;;  %v1444_v33 = vsel %vm602_vm2, %v7878_v44, %v1188_v20 }
 0x100   : > { %v7885_v11 = vld.sshfl [vmem:[#allocation1] sm:$0xff pattern:$0x73625140]  ;;  %v581_v21 = vrot.slane %v7892_v3, 7  ;;  %v831_v37 = vrot.slane %v7878_v44, 5  ;;  %v1072_v42 = vrot.slane %v7862_v41, 6  ;;  %v1445_v46 = vsel %vm602_vm2, %v827_v7, %v1189_v29 }
 0x101   : > { %1996 = vst [vmem:[#allocation1] ss:$4 sm:$0xff] %v1436_v53  ;;  %v1446_v45 = vsel %vm602_vm2, %v828_v12, %v1190_v26  ;;  %v543_v51 = vadd.f32 %v7771_v57, %v7917_v32  ;;  %v663_v22 = vsel %vm651_vm1, %v630_v25, %v7892_v3  ;;  %v1192_v52 = vperm.slane %v1070_v36, 0 }
 0x102   : > { %1997 = vst [vmem:[#allocation1 + $0x1] ss:$4 sm:$0xff] %v1437_v56  ;;  %v1447_v53 = vsel %vm602_vm2, %v829_v40, %v1191_v38  ;;  %v832_v54 = vrot.slane %v7878_v44, 6  ;;  %v834_v55 = vrot.slane %v7921_v39, 1  ;;  %v1074_v56 = vrot.slane %v7923_v19, 1 }
 0x103   : > { %1998 = vst [vmem:[#allocation1 + $0x2] ss:$4 sm:$0xff] %v1438_v62  ;;  %v1193_v13 = vperm.slane %v1071_v8, 0  ;;  %v835_v62 = vrot.slane %v7921_v39, 2  ;;  %v1075_v49 = vrot.slane %v7923_v19, 2  ;;  %v1194_v57 = vperm.slane %v1072_v42, 0 }
 0x104   : > { %1999 = vst [vmem:[#allocation1 + $0x3] ss:$4 sm:$0xff] %v1439_v2  ;;  %v7911_v31 = vld.sshfl [vmem:[#allocation1 + $0x20] sm:$0xff pattern:$0x73625140]  ;;  %v2291_v0 = vpack.c.bf16 %v2255_v50, %v2255_v50  ;;  %v614_v1 = vsel %vm602_vm2, %v7892_v3, %v581_v21  ;;  %v679_v2 = vmul.f32 0.75, %v7892_v3  ;;  %v1448_v47 = vsel %vm602_vm2, %v830_v17, %v1192_v52 }
 0x105   : > { %2000 = vst [vmem:[#allocation1 + $0x20] ss:$4 sm:$0xff] %v1440_v58  ;;  %v727_v5 = vmul.f32 0.25, %v663_v22  ;;  %v1076_v23 = vrot.slane %v7923_v19, 3  ;;  %v631_v7 = vrot.slane %v543_v51, 1  ;;  %v1196_v12 = vperm.slane %v7923_v19, 0 }
 0x106   : > { %2001 = vst [vmem:[#allocation1 + $0x21] ss:$4 sm:$0xff] %v1441_v28  ;;  %v2292_v9 = vpack.c.bf16 %v2256_v59, %v2256_v59  ;;  %v7114_v15 = vunpack.c.h.bf16 %v7842_v24  ;;  %v1073_v40 = vrot.slane %v7862_v41, 7  ;;  %v1197_v6 = vperm.slane %v1074_v56, 0 }
 0x107   : > { %2002 = vst [vmem:[#allocation1 + $0x22] ss:$4 sm:$0xff] %v1442_v30  ;;  %v1449_v3 = vsel %vm602_vm2, %v831_v37, %v1193_v13  ;;  %v1198_v63 = vperm.slane %v1075_v49, 0  ;;  %v1450_v43 = vsel %vm602_vm2, %v832_v54, %v1194_v57  ;;  %v2511_v16 = vunpack.c.l.b16 %v2291_v0 }
 0x108   : > { %2003 = vst [vmem:[#allocation1 + $0x23] ss:$4 sm:$0xff] %v1443_v35  ;;  %v2512_v20 = vunpack.c.l.b16 %v2292_v9  ;;  %v695_v25 = vmul.f32 0.25, %v614_v1  ;;  %v833_v17 = vrot.slane %v7878_v44, 7  ;;  %v836_v41 = vrot.slane %v7921_v39, 3 }
 0x109   : > { %v1199_v29 = vperm.slane %v1076_v23, 0  ;;  %v582_v28 = vrot.slane %v543_v51, 7  ;;  %v7965_v26 = vadd.f32 %v727_v5, %v679_v2  ;;  %v1452_v30 = vsel %vm602_vm2, %v7921_v39, %v1196_v12 }
 0x10a   : > { %v7969_v36 = vpack.c.b16 %v2512_v20, %v2511_v16  ;;  %v7973_v38 = vmul.f32 0.25, %v7114_v15  ;;  %v664_v35 = vsel %vm651_vm1, %v631_v7, %v543_v51  ;;  %v1195_v44 = vperm.slane %v1073_v40, 0 }
 0x10b   : > { %v7933_v14 = vld.sshfl [vmem:[#allocation1] sm:$0xff pattern:$0x73625140]  ;;  %v1453_v8 = vsel %vm602_vm2, %v834_v55, %v1197_v6  ;;  %v1454_v21 = vsel %vm602_vm2, %v835_v62, %v1198_v63  ;;  %v7982_v42 = vadd.f32 %v695_v25, %v679_v2  ;;  %v615_v50 = vsel %vm602_vm2, %v543_v51, %v582_v28 }
 0x10c   : > { %2006 = vst [vmem:[#allocation1] ss:$4 sm:$0xff] %v1444_v33  ;;  %v1728_v33 = vpop.f32.mrf.mxu0  ;;  %2559 = vrot.lane.b32.xlu1 %v7969_v36, %s7393_s27  ;;  %v680_v22 = vmul.f32 0.75, %v543_v51  ;;  %v728_v52 = vmul.f32 0.25, %v664_v35  ;;  %v552_v54 = vadd.f32 %v7973_v38, %v7917_v32  ;;  %v1082_v55 = vrot.slane %v7965_v26, 2 }
 0x10d   : > { %2007 = vst [vmem:[#allocation1 + $0x1] ss:$4 sm:$0xff] %v1445_v46  ;;  %v1455_v46 = vsel %vm602_vm2, %v836_v41, %v1199_v29  ;;  %v1451_v56 = vsel %vm602_vm2, %v833_v17, %v1195_v44  ;;  %v837_v13 = vrot.slane %v7921_v39, 4  ;;  %v1083_v62 = vrot.slane %v7965_v26, 3 }
 0x10e   : > { %2008 = vst [vmem:[#allocation1 + $0x2] ss:$4 sm:$0xff] %v1446_v45  ;;  %v2119_v45 = vadd.f32 %v7818_v61, %v1728_v33  ;;  %v696_v61 = vmul.f32 0.25, %v615_v50  ;;  %v838_v51 = vrot.slane %v7921_v39, 5  ;;  %v1077_v49 = vrot.slane %v7923_v19, 4 }
 0x10f   : > { %2009 = vst [vmem:[#allocation1 + $0x3] ss:$4 sm:$0xff] %v1447_v53  ;;  %v7959_v58 = vld.sshfl [vmem:[#allocation1 + $0x20] sm:$0xff pattern:$0x73625140]  ;;  %v1081_v53 = vrot.slane %v7965_v26, 1  ;;  %v7998_v32 = vadd.f32 %v728_v52, %v680_v22 }
 0x110   : > { %2010 = vst [vmem:[#allocation1 + $0x20] ss:$4 sm:$0xff] %v1448_v47  ;;  %v1204_v57 = vperm.slane %v7965_v26, 0  ;;  %v841_v0 = vrot.slane %v7982_v42, 1  ;;  %v1078_v1 = vrot.slane %v7923_v19, 5  ;;  %v632_v5 = vrot.slane %v552_v54, 1 }
 0x111   : > { %2011 = vst [vmem:[#allocation1 + $0x21] ss:$4 sm:$0xff] %v1449_v3  ;;  %v1205_v2 = vperm.slane %v1081_v53, 0  ;;  %v842_v23 = vrot.slane %v7982_v42, 2  ;;  %v1079_v59 = vrot.slane %v7923_v19, 6  ;;  %v1206_v7 = vperm.slane %v1082_v55, 0 }
 0x112   : > { %2012 = vst [vmem:[#allocation1 + $0x22] ss:$4 sm:$0xff] %v1450_v43  ;;  %v839_v12 = vrot.slane %v7921_v39, 6  ;;  %v843_v47 = vrot.slane %v7982_v42, 3  ;;  %v1080_v9 = vrot.slane %v7923_v19, 7  ;;  %v1207_v40 = vperm.slane %v1083_v62, 0 }
 0x113   : > { %2152 = vst.msk [vmem:[#allocation2 + $0x99] sm:$0xff] %vm460_vm0, %v2119_v45  ;;  %v8011_v6 = vadd.f32 %v696_v61, %v680_v22  ;;  %v840_v3 = vrot.slane %v7921_v39, 7  ;;  %v1200_v63 = vperm.slane %v1077_v49, 0  ;;  %v1460_v43 = vsel %vm602_vm2, %v7982_v42, %v1204_v57  ;;  %v7049_v49 = vld [vmem:[%s7537_s16 + $0x78] sm:$0xff]  ;;  %s6701_s16 = sshll.u32 %s446_s30, 8 }
 0x114   : > { %2013 = vst [vmem:[#allocation1 + $0x23] ss:$4 sm:$0xff] %v1451_v56  ;;  %v583_v16 = vrot.slane %v552_v54, 7  ;;  %v1088_v20 = vrot.slane %v7998_v32, 1  ;;  %v1201_v25 = vperm.slane %v1078_v1, 0  ;;  %v1461_v19 = vsel %vm602_vm2, %v841_v0, %v1205_v2  ;;  %6801 = vmatmul.msk.bf16.gmra.mxu3 %vm460_vm0, %v7049_v49  ;;  %s11838_s17 = scalar_lea.vmem [#allocation3], %s6701_s16 }
 0x115   : > { %v665_v17 = vsel %vm651_vm1, %v632_v5, %v552_v54  ;;  %v1202_v41 = vperm.slane %v1079_v59, 0  ;;  %v1462_v39 = vsel %vm602_vm2, %v842_v23, %v1206_v7  ;;  %v681_v28 = vmul.f32 0.75, %v552_v54  ;;  %s6620_s15 = sshll.u32 %s11838_s17, 4  ;;  %s6621_s15 = int_to_ptr.vmem [resolvable:$true] %s6620_s15 }
 0x116   : > { %v7978_v37 = vld.sshfl [vmem:[#allocation1] sm:$0xff pattern:$0x73625140]  ;;  %v1463_v35 = vsel %vm602_vm2, %v843_v47, %v1207_v40  ;;  %v8031_v44 = vmul.f32 0.75, %v7114_v15  ;;  %v1456_v33 = vsel %vm602_vm2, %v837_v13, %v1200_v63  ;;  %v729_v45 = vmul.f32 0.25, %v665_v17 }
 0x117   : > { %2016 = vst [vmem:[#allocation1] ss:$4 sm:$0xff] %v1452_v30  ;;  %v1203_v30 = vperm.slane %v1080_v9, 0  ;;  %v1089_v50 = vrot.slane %v7998_v32, 2  ;;  %v1457_v22 = vsel %vm602_vm2, %v838_v51, %v1201_v25  ;;  %v1090_v24 = vrot.slane %v7998_v32, 3  ;;  %v1731_v25 = vpop.f32.mrf.mxu0 }
 0x118   : > { %2017 = vst [vmem:[#allocation1 + $0x1] ss:$4 sm:$0xff] %v1453_v8  ;;  %v848_v8 = vrot.slane %v8011_v6, 1  ;;  %v1212_v15 = vperm.slane %v7998_v32, 0  ;;  %v1213_v52 = vperm.slane %v1088_v20, 0  ;;  %v1458_v53 = vsel %vm602_vm2, %v839_v12, %v1202_v41 }
 0x119   : > { %2018 = vst [vmem:[#allocation1 + $0x2] ss:$4 sm:$0xff] %v1454_v21  ;;  %v849_v55 = vrot.slane %v8011_v6, 2  ;;  %v1459_v56 = vsel %vm602_vm2, %v840_v3, %v1203_v30  ;;  %v8048_v13 = vadd.f32 %v7873_v4, %v8031_v44  ;;  %v1085_v62 = vrot.slane %v7965_v26, 5  ;;  %v7061_v4 = vld [vmem:[%s12162_s3 + $0x38] sm:$0xff] }
 0x11a   : > { %2019 = vst [vmem:[#allocation1 + $0x3] ss:$4 sm:$0xff] %v1455_v46  ;;  %v616_v46 = vsel %vm602_vm2, %v552_v54, %v583_v16  ;;  %v1084_v54 = vrot.slane %v7965_v26, 4  ;;  %v1086_v61 = vrot.slane %v7965_v26, 6  ;;  %v1087_v51 = vrot.slane %v7965_v26, 7  ;;  %3285 = vmatpush.bf16.msra.mxu1 %v7061_v4  ;;  %7122 = vmatpush.bf16.msrb.mxu3 %v7061_v4 }
 0x11b   : > { %v8035_v21 = vld.sshfl [vmem:[#allocation1 + $0x20] sm:$0xff pattern:$0x73625140]  ;;  %v697_v57 = vmul.f32 0.25, %v616_v46  ;;  %v8054_v0 = vadd.f32 %v729_v45, %v681_v28  ;;  %v850_v1 = vrot.slane %v8011_v6, 3  ;;  %v1214_v2 = vperm.slane %v1089_v50, 0 }
 0x11c   : > { %2020 = vst [vmem:[#allocation1 + $0x20] ss:$4 sm:$0xff] %v1456_v33  ;;  %v1215_v5 = vperm.slane %v1090_v24, 0  ;;  %v1468_v23 = vsel %vm602_vm2, %v8011_v6, %v1212_v15  ;;  %v1469_v59 = vsel %vm602_vm2, %v848_v8, %v1213_v52  ;;  %v844_v26 = vrot.slane %v7982_v42, 4 }
 0x11d   : > { %2021 = vst [vmem:[#allocation1 + $0x21] ss:$4 sm:$0xff] %v1457_v22  ;;  %v845_v7 = vrot.slane %v7982_v42, 5  ;;  %v846_v12 = vrot.slane %v7982_v42, 6  ;;  %v1208_v47 = vperm.slane %v1084_v54, 0  ;;  %v633_v9 = vrot.slane %v8048_v13, 1 }
 0x11e   : > { %2022 = vst [vmem:[#allocation1 + $0x22] ss:$4 sm:$0xff] %v1458_v53  ;;  %v847_v40 = vrot.slane %v7982_v42, 7  ;;  %v1209_v3 = vperm.slane %v1085_v62, 0  ;;  %v1210_v63 = vperm.slane %v1086_v61, 0  ;;  %v1470_v16 = vsel %vm602_vm2, %v849_v55, %v1214_v2  ;;  %v7059_v55 = vld [vmem:[%s12162_s3 + $0x28] sm:$0xff] }
 0x11f   : > { %2023 = vst [vmem:[#allocation1 + $0x23] ss:$4 sm:$0xff] %v1459_v56  ;;  %v8081_v17 = vadd.f32 %v697_v57, %v681_v28  ;;  %v1471_v42 = vsel %vm602_vm2, %v850_v1, %v1215_v5  ;;  %v1095_v41 = vrot.slane %v8054_v0, 1  ;;  %v584_v30 = vrot.slane %v8048_v13, 7 }
 0x120   : > { %v1096_v8 = vrot.slane %v8054_v0, 2  ;;  %v1097_v28 = vrot.slane %v8054_v0, 3  ;;  %v1465_v33 = vsel %vm602_vm2, %v845_v7, %v1209_v3  ;;  %v1220_v46 = vperm.slane %v8054_v0, 0 }
 0x121   : > { %v8024_v29 = vld.sshfl [vmem:[#allocation1] sm:$0xff pattern:$0x73625140]  ;;  %v1466_v45 = vsel %vm602_vm2, %v846_v12, %v1210_v63  ;;  %v1091_v24 = vrot.slane %v7998_v32, 4  ;;  %v2120_v15 = vadd.f32 %v7836_v34, %v1731_v25  ;;  %v682_v52 = vmul.f32 0.75, %v8048_v13 }
 0x122   : > { %2026 = vst [vmem:[#allocation1] ss:$4 sm:$0xff] %v1460_v43  ;;  %v1211_v43 = vperm.slane %v1087_v51, 0  ;;  %v855_v56 = vrot.slane %v8081_v17, 1  ;;  %v1221_v54 = vperm.slane %v1095_v41, 0  ;;  %v1092_v62 = vrot.slane %v7998_v32, 5 }
 0x123   : > { %2027 = vst [vmem:[#allocation1 + $0x1] ss:$4 sm:$0xff] %v1461_v19  ;;  %v7060_v19 = vld [vmem:[%s12162_s3 + $0x30] sm:$0xff]  ;;  %v617_v61 = vsel %vm602_vm2, %v8048_v13, %v584_v30  ;;  %v856_v51 = vrot.slane %v8081_v17, 2  ;;  %v857_v34 = vrot.slane %v8081_v17, 3  ;;  %v1222_v49 = vperm.slane %v1096_v8, 0 }
 0x124   : > { %2028 = vst [vmem:[#allocation1 + $0x2] ss:$4 sm:$0xff] %v1462_v39  ;;  %v1464_v39 = vsel %vm602_vm2, %v844_v26, %v1208_v47  ;;  %3286 = vmatpush.bf16.msra.mxu1 %v7060_v19  ;;  %7123 = vmatpush.bf16.msrb.mxu3 %v7060_v19  ;;  %v1467_v50 = vsel %vm602_vm2, %v847_v40, %v1211_v43  ;;  %v1093_v57 = vrot.slane %v7998_v32, 6  ;;  %v1223_v1 = vperm.slane %v1097_v28, 0 }
 0x125   : > { %2029 = vst [vmem:[#allocation1 + $0x3] ss:$4 sm:$0xff] %v1463_v35  ;;  %v666_v35 = vsel %vm651_vm1, %v633_v9, %v8048_v13  ;;  %v1476_v2 = vsel %vm602_vm2, %v8081_v17, %v1220_v46  ;;  %v851_v4 = vrot.slane %v8011_v6, 4  ;;  %v1094_v5 = vrot.slane %v7998_v32, 7  ;;  %v1733_v13 = vpop.f32.mrf.mxu0 }
 0x126   : > { %v8095_v22 = vld.sshfl [vmem:[#allocation1 + $0x20] sm:$0xff pattern:$0x73625140]  ;;  %v730_v53 = vmul.f32 0.25, %v666_v35  ;;  %2153 = vst.msk [vmem:[#allocation2 + $0xa9] sm:$0xff] %vm460_vm0, %v2120_v15  ;;  %v698_v26 = vmul.f32 0.25, %v617_v61  ;;  %v2121_v12 = vadd.f32 %v7865_v27, %v1733_v13  ;;  %v1477_v47 = vsel %vm602_vm2, %v855_v56, %v1221_v54  ;;  %v1766_v15 = vpop.f32.mrf.mxu3 }
 0x127   : > { %2030 = vst [vmem:[#allocation1 + $0x20] ss:$4 sm:$0xff] %v1464_v39  ;;  %v852_v9 = vrot.slane %v8011_v6, 5  ;;  %v1217_v40 = vperm.slane %v1092_v62, 0  ;;  %v1478_v32 = vsel %vm602_vm2, %v856_v51, %v1222_v49  ;;  %v853_v63 = vrot.slane %v8011_v6, 6 }
 0x128   : > { %2031 = vst [vmem:[#allocation1 + $0x21] ss:$4 sm:$0xff] %v1465_v33  ;;  %3287 = vmatpush.bf16.msra.mxu1 %v7059_v55  ;;  %7124 = vmatpush.bf16.msrb.mxu3 %v7059_v55  ;;  %v8118_v7 = vadd.f32 %v730_v53, %v682_v52  ;;  %v1218_v43 = vperm.slane %v1093_v57, 0  ;;  %v1479_v27 = vsel %vm602_vm2, %v857_v34, %v1223_v1  ;;  %v1219_v25 = vperm.slane %v1094_v5, 0 }
 0x129   : > { %2032 = vst [vmem:[#allocation1 + $0x22] ss:$4 sm:$0xff] %v1466_v45  ;;  %v1473_v39 = vsel %vm602_vm2, %v852_v9, %v1217_v40  ;;  %v1099_v46 = vrot.slane %v8054_v0, 5  ;;  %v858_v56 = vrot.slane %v8081_v17, 4  ;;  %v1101_v54 = vrot.slane %v8054_v0, 7 }
 0x12a   : > { %2033 = vst [vmem:[#allocation1 + $0x23] ss:$4 sm:$0xff] %v1467_v50  ;;  %v1102_v41 = vrot.slane %v8118_v7, 1  ;;  %v1103_v30 = vrot.slane %v8118_v7, 2  ;;  %v1474_v35 = vsel %vm602_vm2, %v853_v63, %v1218_v43  ;;  %v1228_v33 = vperm.slane %v8118_v7, 0 }
 0x12b   : > { %2154 = vst.msk [vmem:[#allocation2 + $0xb1] sm:$0xff] %vm460_vm0, %v2121_v12  ;;  %v859_v62 = vrot.slane %v8081_v17, 5  ;;  %v1104_v51 = vrot.slane %v8118_v7, 3  ;;  %v860_v49 = vrot.slane %v8081_v17, 6  ;;  %v861_v57 = vrot.slane %v8081_v17, 7  ;;  %v7055_v17 = vld [vmem:[%s12162_s3 + $0x8] sm:$0xff] }
 0x12c   : > { %v8074_v20 = vld.sshfl [vmem:[#allocation1] sm:$0xff pattern:$0x73625140]  ;;  %v1229_v50 = vperm.slane %v1102_v41, 0  ;;  %v1230_v55 = vperm.slane %v1103_v30, 0  ;;  %v1225_v1 = vperm.slane %v1099_v46, 0 }
 0x12d   : > { %2036 = vst [vmem:[#allocation1] ss:$4 sm:$0xff] %v1468_v23  ;;  %v7058_v23 = vld [vmem:[%s12162_s3 + $0x20] sm:$0xff]  ;;  %v1231_v43 = vperm.slane %v1104_v51, 0 }
 0x12e   : > { %2037 = vst [vmem:[#allocation1 + $0x1] ss:$4 sm:$0xff] %v1469_v59  ;;  %v1216_v59 = vperm.slane %v1091_v24, 0  ;;  %3288 = vmatpush.bf16.msra.mxu1 %v7058_v23  ;;  %7125 = vmatpush.bf16.msrb.mxu3 %v7058_v23  ;;  %v7057_v24 = vld [vmem:[%s12162_s3 + $0x18] sm:$0xff] }
 0x12f   : > { %2038 = vst [vmem:[#allocation1 + $0x2] ss:$4 sm:$0xff] %v1470_v16  ;;  %v854_v16 = vrot.slane %v8011_v6, 7  ;;  %v1098_v6 = vrot.slane %v8054_v0, 4 }
 0x130   : > { %2039 = vst [vmem:[#allocation1 + $0x3] ss:$4 sm:$0xff] %v1471_v42  ;;  %v1472_v19 = vsel %vm602_vm2, %v851_v4, %v1216_v59  ;;  %v8133_v42 = vadd.f32 %v698_v26, %v682_v52  ;;  %v1100_v52 = vrot.slane %v8054_v0, 6  ;;  %v7056_v4 = vld [vmem:[%s12162_s3 + $0x10] sm:$0xff]  ;;  %v2173_v59 = vld [vmem:[#allocation2] sm:$0xff] }
 0x131   : > { %v8139_v8 = vld.sshfl [vmem:[#allocation1 + $0x20] sm:$0xff pattern:$0x73625140]  ;;  %v1475_v28 = vsel %vm602_vm2, %v854_v16, %v1219_v25  ;;  %v1224_v61 = vperm.slane %v1098_v6, 0  ;;  %v2174_v26 = vld [vmem:[#allocation2 + $0x8] sm:$0xff]  ;;  %v2209_v9 = vpack.c.bf16 %v2173_v59, %v2173_v59  ;;  %v1481_v16 = vsel %vm602_vm2, %v859_v62, %v1225_v1 }
 0x132   : > { %2040 = vst [vmem:[#allocation1 + $0x20] ss:$4 sm:$0xff] %v1472_v19  ;;  %v862_v45 = vrot.slane %v8133_v42, 1  ;;  %v863_v53 = vrot.slane %v8133_v42, 2  ;;  %3289 = vmatpush.bf16.msra.mxu1 %v7057_v24  ;;  %7126 = vmatpush.bf16.msrb.mxu3 %v7057_v24  ;;  %v1484_v34 = vsel %vm602_vm2, %v8133_v42, %v1228_v33  ;;  %v1226_v13 = vperm.slane %v1100_v52, 0  ;;  %v7054_v6 = vld [vmem:[%s12162_s3] sm:$0xff]  ;;  %v1768_v33 = vpop.f32.mrf.mxu3  ;;  %v2550_v24 = vpop.permute.xlu0 %2549 }
 0x133   : > { %2041 = vst [vmem:[#allocation1 + $0x21] ss:$4 sm:$0xff] %v1473_v39  ;;  %v2210_v40 = vpack.c.bf16 %v2174_v26, %v2174_v26  ;;  %v864_v63 = vrot.slane %v8133_v42, 3  ;;  %v2421_v25 = vunpack.c.l.b16 %v2209_v9  ;;  %v866_v62 = vrot.slane %v8133_v42, 5 }
 0x134   : > { %2042 = vst [vmem:[#allocation1 + $0x22] ss:$4 sm:$0xff] %v1474_v35  ;;  %v1485_v0 = vsel %vm602_vm2, %v862_v45, %v1229_v50  ;;  %v1486_v23 = vsel %vm602_vm2, %v863_v53, %v1230_v55  ;;  %v1482_v41 = vsel %vm602_vm2, %v860_v49, %v1226_v13  ;;  %v1105_v35 = vrot.slane %v8118_v7, 4  ;;  %v7083_v13 = vld [vmem:[%s12162_s3 + $0xe8] sm:$0xff] }
 0x135   : > { %2043 = vst [vmem:[#allocation1 + $0x23] ss:$4 sm:$0xff] %v1475_v28  ;;  %v2422_v19 = vunpack.c.l.b16 %v2210_v40  ;;  %v1487_v46 = vsel %vm602_vm2, %v864_v63, %v1231_v43  ;;  %v1106_v45 = vrot.slane %v8118_v7, 5  ;;  %v865_v53 = vrot.slane %v8133_v42, 4 }
 0x136   : > { %3290 = vmatpush.bf16.msra.mxu1 %v7056_v4  ;;  %7127 = vmatpush.bf16.msrb.mxu3 %v7056_v4  ;;  %v1107_v55 = vrot.slane %v8118_v7, 6  ;;  %v867_v51 = vrot.slane %v8133_v42, 6 }
 0x137   : > { %v8126_v3 = vld.sshfl [vmem:[#allocation1] sm:$0xff pattern:$0x73625140]  ;;  %v2453_v28 = vpack.c.b16 %v2422_v19, %v2421_v25  ;;  %v7081_v25 = vld [vmem:[%s12162_s3 + $0xd8] sm:$0xff] }
 0x138   : > { %2046 = vst [vmem:[#allocation1] ss:$4 sm:$0xff] %v1476_v2  ;;  %v1736_v2 = vpop.f32.mrf.mxu0 }
 0x139   : > { %2047 = vst [vmem:[#allocation1 + $0x1] ss:$4 sm:$0xff] %v1477_v47  ;;  %v1227_v47 = vperm.slane %v1101_v54, 0  ;;  %v2122_v50 = vadd.f32 %v7885_v11, %v1736_v2  ;;  %v2761_v54 = vsel %vm460_vm0, %v2453_v28, %v2550_v24  ;;  %v1108_v11 = vrot.slane %v8118_v7, 7  ;;  %v7084_v7 = vld [vmem:[%s12162_s3 + $0xf0] sm:$0xff]  ;;  %v2175_v2 = vld [vmem:[#allocation2 + $0x18] sm:$0xff] }
 0x13a   : > { %2048 = vst [vmem:[#allocation1 + $0x2] ss:$4 sm:$0xff] %v1478_v32  ;;  %v1480_v32 = vsel %vm602_vm2, %v858_v56, %v1224_v61  ;;  %3291 = vmatpush.bf16.msra.mxu1 %v7055_v17  ;;  %7128 = vmatpush.bf16.msrb.mxu3 %v7055_v17  ;;  %v1232_v56 = vperm.slane %v1105_v35, 0  ;;  %v1233_v61 = vperm.slane %v1106_v45, 0  ;;  %v2211_v17 = vpack.c.bf16 %v2175_v2, %v2175_v2  ;;  %v2552_v43 = vpop.permute.xlu0 %2551  ;;  %v7079_v24 = vld [vmem:[%s12162_s3 + $0xc8] sm:$0xff] }
 0x13b   : > { %2049 = vst [vmem:[#allocation1 + $0x3] ss:$4 sm:$0xff] %v1479_v27  ;;  %v7085_v27 = vld [vmem:[%s12162_s3 + $0xf8] sm:$0xff]  ;;  %v1483_v30 = vsel %vm602_vm2, %v861_v57, %v1227_v47  ;;  %v868_v57 = vrot.slane %v8133_v42, 7  ;;  %v1235_v1 = vperm.slane %v1108_v11, 0  ;;  %v1771_v42 = vpop.f32.mrf.mxu3 }
 0x13c   : > { %v8179_v39 = vld.sshfl [vmem:[#allocation1 + $0x20] sm:$0xff pattern:$0x73625140]  ;;  %3552 = vmatpush.bf16.msrb.mxu0 %v7085_v27  ;;  %2155 = vst.msk [vmem:[#allocation2 + $0xc1] sm:$0xff] %vm460_vm0, %v2122_v50  ;;  %v1488_v49 = vsel %vm602_vm2, %v865_v53, %v1232_v56  ;;  %v2423_v63 = vunpack.c.l.b16 %v2211_v17 }
 0x13d   : > { %2050 = vst [vmem:[#allocation1 + $0x20] ss:$4 sm:$0xff] %v1480_v32  ;;  %v1491_v9 = vsel %vm602_vm2, %v868_v57, %v1235_v1  ;;  %v7082_v32 = vld [vmem:[%s12162_s3 + $0xe0] sm:$0xff] }
 0x13e   : > { %2051 = vst [vmem:[#allocation1 + $0x21] ss:$4 sm:$0xff] %v1481_v16  ;;  %3292 = vmatpush.bf16.msra.mxu1 %v7054_v6  ;;  %7129 = vmatpush.bf16.msrb.mxu3 %v7054_v6  ;;  %v2177_v6 = vld [vmem:[#allocation2 + $0x30] sm:$0xff] }
 0x13f   : > { %2052 = vst [vmem:[#allocation1 + $0x22] ss:$4 sm:$0xff] %v1482_v41 }
 0x140   : > { %2053 = vst [vmem:[#allocation1 + $0x23] ss:$4 sm:$0xff] %v1483_v30  ;;  %3553 = vmatpush.bf16.msrb.mxu0 %v7084_v7  ;;  %v2178_v30 = vld [vmem:[#allocation2 + $0x38] sm:$0xff] }
 0x141   : > { %3293 = vmatmul.bf16.vlgmr.msra.gmra.mxu1 %v2761_v54  ;;  %v7078_v54 = vld [vmem:[%s12162_s3 + $0xc0] sm:$0xff] }
 0x142   : > { %v2054_v5 = vld.sshfl [vmem:[#allocation1] sm:$0xff pattern:$0x73625140] }
 0x143   : > { %v2134_v12 = vadd.f32 %v2054_v5, %v1766_v15  ;;  %2056 = vst [vmem:[#allocation1] ss:$4 sm:$0xff] %v1484_v34  ;;  %v1738_v15 = vpop.f32.mrf.mxu0  ;;  %v1234_v34 = vperm.slane %v1107_v55, 0  ;;  %v1773_v41 = vpop.f32.mrf.mxu3 }
 0x144   : > { %2057 = vst [vmem:[#allocation1 + $0x1] ss:$4 sm:$0xff] %v1485_v0  ;;  %v2123_v52 = vadd.f32 %v7911_v31, %v1738_v15  ;;  %v2176_v31 = vld [vmem:[#allocation2 + $0x20] sm:$0xff]  ;;  %v1489_v0 = vsel %vm602_vm2, %v866_v62, %v1233_v61  ;;  %3554 = vmatpush.bf16.msrb.mxu0 %v7083_v13  ;;  %v2213_v15 = vpack.c.bf16 %v2177_v6, %v2177_v6 }
 0x145   : > { %2167 = vst.msk [vmem:[#allocation2 + $0x151] sm:$0xff] %vm460_vm0, %v2134_v12  ;;  %v1490_v47 = vsel %vm602_vm2, %v867_v51, %v1234_v34 }
 0x146   : > { %2058 = vst [vmem:[#allocation1 + $0x2] ss:$4 sm:$0xff] %v1486_v23  ;;  %v2212_v23 = vpack.c.bf16 %v2176_v31, %v2176_v31  ;;  %v2425_v62 = vunpack.c.l.b16 %v2213_v15 }
 0x147   : > { %2059 = vst [vmem:[#allocation1 + $0x3] ss:$4 sm:$0xff] %v1487_v46  ;;  %v2055_v4 = vld.sshfl [vmem:[#allocation1 + $0x20] sm:$0xff pattern:$0x73625140]  ;;  %v2214_v46 = vpack.c.bf16 %v2178_v30, %v2178_v30 }
 0x148   : > { %2156 = vst.msk [vmem:[#allocation2 + $0xc9] sm:$0xff] %vm460_vm0, %v2123_v52  ;;  %v2135_v59 = vadd.f32 %v2055_v4, %v1768_v33  ;;  %v2424_v40 = vunpack.c.l.b16 %v2212_v23  ;;  %3555 = vmatpush.bf16.msrb.mxu0 %v7082_v32  ;;  %v7080_v33 = vld [vmem:[%s12162_s3 + $0xd0] sm:$0xff] }
 0x149   : > { %2060 = vst [vmem:[#allocation1 + $0x20] ss:$4 sm:$0xff] %v1488_v49  ;;  %v2426_v56 = vunpack.c.l.b16 %v2214_v46  ;;  %v2261_v49 = vld [vmem:[#allocation2 + $0xc1] sm:$0xff] }
 0x14a   : > { %2061 = vst [vmem:[#allocation1 + $0x21] ss:$4 sm:$0xff] %v1489_v0  ;;  %v8226_v16 = vpack.c.b16 %v2424_v40, %v2423_v63  ;;  %v2180_v0 = vld [vmem:[#allocation2 + $0x50] sm:$0xff]  ;;  %v2297_v4 = vpack.c.bf16 %v2261_v49, %v2261_v49 }
 0x14b   : > { %v1741_v5 = vpop.f32.mrf.mxu0  ;;  %2168 = vst.msk [vmem:[#allocation2 + $0x159] sm:$0xff] %vm460_vm0, %v2135_v59  ;;  %v8269_v11 = vpack.c.b16 %v2426_v56, %v2425_v62  ;;  %v2216_v23 = vpack.c.bf16 %v2180_v0, %v2180_v0 }
 0x14c   : > { %2062 = vst [vmem:[#allocation1 + $0x22] ss:$4 sm:$0xff] %v1490_v47  ;;  %v2765_v19 = vsel %vm460_vm0, %v8226_v16, %v2552_v43  ;;  %3556 = vmatpush.bf16.msrb.mxu0 %v7081_v25  ;;  %v2124_v45 = vadd.f32 %v7933_v14, %v1741_v5  ;;  %v2179_v5 = vld [vmem:[#allocation2 + $0x48] sm:$0xff] }
 0x14d   : > { %2063 = vst [vmem:[#allocation1 + $0x23] ss:$4 sm:$0xff] %v1491_v9  ;;  %v2428_v32 = vunpack.c.l.b16 %v2216_v23 }
 0x14e   : > { %v2064_v26 = vld.sshfl [vmem:[#allocation1] sm:$0xff pattern:$0x73625140]  ;;  %2157 = vst.msk [vmem:[#allocation2 + $0xd9] sm:$0xff] %vm460_vm0, %v2124_v45 }
 0x14f   : > { %v2136_v12 = vadd.f32 %v2064_v26, %v1771_v42  ;;  %v2262_v61 = vld [vmem:[#allocation2 + $0xc9] sm:$0xff]  ;;  %v2517_v26 = vunpack.c.l.b16 %v2297_v4 }
 0x150   : > { %3557 = vmatpush.bf16.msrb.mxu0 %v7080_v33  ;;  %v2298_v1 = vpack.c.bf16 %v2262_v61, %v2262_v61 }
 0x151   : > { %2169 = vst.msk [vmem:[#allocation2 + $0x169] sm:$0xff] %vm460_vm0, %v2136_v12  ;;  %3298 = vmatmul.bf16.gmra.mxu1 %v2765_v19  ;;  %v2215_v12 = vpack.c.bf16 %v2179_v5, %v2179_v5 }
 0x152   : > { %v2518_v13 = vunpack.c.l.b16 %v2298_v1 }
 0x153   : > { %v1743_v27 = vpop.f32.mrf.mxu0  ;;  %v2427_v63 = vunpack.c.l.b16 %v2215_v12  ;;  %v2330_v12 = vld [vmem:[#allocation2 + $0x9a] sm:$0xff] }
 0x154   : > { %v2065_v35 = vld.sshfl [vmem:[#allocation1 + $0x20] sm:$0xff pattern:$0x73625140]  ;;  %v2125_v53 = vadd.f32 %v7959_v58, %v1743_v27  ;;  %3558 = vmatpush.bf16.msrb.mxu0 %v7079_v24  ;;  %v2554_v58 = vpop.permute.xlu1 %2553  ;;  %v8280_v17 = vpack.c.b16 %v2518_v13, %v2517_v26  ;;  %v2323_v24 = vld [vmem:[#allocation2 + $0x4a] sm:$0xff] }
 0x155   : > { %v2137_v28 = vadd.f32 %v2065_v35, %v1773_v41  ;;  %v2769_v34 = vsel %vm460_vm0, %v8269_v11, %v2554_v58  ;;  %v8285_v19 = vpack.c.b16 %v2428_v32, %v2427_v63  ;;  %v2254_v13 = vld [vmem:[#allocation2 + $0x69] sm:$0xff] }
 0x156   : > { %2158 = vst.msk [vmem:[#allocation2 + $0xe1] sm:$0xff] %vm460_vm0, %v2125_v53 }
 0x157   : > { %2170 = vst.msk [vmem:[#allocation2 + $0x171] sm:$0xff] %vm460_vm0, %v2137_v28 }
 0x158   : > { %v2275_v52 = vld [vmem:[#allocation2 + $0x169] sm:$0xff]  ;;  %3559 = vmatpush.bf16.msrb.mxu0 %v7078_v54 }
 0x159   : > { %v2311_v14 = vpack.c.bf16 %v2275_v52, %v2275_v52  ;;  %v2203_v59 = vld [vmem:[#allocation2 + $0x168] sm:$0xff] }
 0x15a   : > { %v2239_v9 = vpack.c.bf16 %v2203_v59, %v2203_v59  ;;  %v2329_v59 = vld [vmem:[#allocation2 + $0x92] sm:$0xff] }
 0x15b   : > { %v1746_v50 = vpop.f32.mrf.mxu0  ;;  %v2531_v18 = vunpack.c.l.b16 %v2311_v14  ;;  %3560 = vmatmul.bf16.vlgmr.msrb.gmra.mxu0 %v2769_v34 }
 0x15c   : > { %v2126_v55 = vadd.f32 %v7978_v37, %v1746_v50  ;;  %v2556_v43 = vpop.permute.xlu1 %2555  ;;  %v2451_v27 = vunpack.c.l.b16 %v2239_v9 }
 0x15e   : > { %2159 = vst.msk [vmem:[#allocation2 + $0xf1] sm:$0xff] %vm460_vm0, %v2126_v55  ;;  %v2276_v37 = vld [vmem:[#allocation2 + $0x171] sm:$0xff]  ;;  %v2359_v55 = vpack.c.bf16 %v2323_v24, %v2323_v24 }
 0x15f   : > { %v2312_v31 = vpack.c.bf16 %v2276_v37, %v2276_v37  ;;  %v2204_v42 = vld [vmem:[#allocation2 + $0x170] sm:$0xff] }
 0x160   : > { %v2240_v40 = vpack.c.bf16 %v2204_v42, %v2204_v42  ;;  %v2619_v62 = vunpack.c.l.b16 %v2359_v55 }
 0x161   : > { %v2532_v57 = vunpack.c.l.b16 %v2312_v31  ;;  %3303 = vmatmul.bf16.gmra.mxu1 %v2769_v34 }
 0x162   : > { %v2452_v25 = vunpack.c.l.b16 %v2240_v40 }
 0x163   : > { %v1748_v51 = vpop.f32.mrf.mxu0  ;;  %v8275_v2 = vpack.c.b16 %v2532_v57, %v2531_v18 }
 0x164   : > { %v2127_v7 = vadd.f32 %v8035_v21, %v1748_v51  ;;  %v8290_v35 = vpack.c.b16 %v2452_v25, %v2451_v27  ;;  %v2290_v27 = vpack.c.bf16 %v2254_v13, %v2254_v13  ;;  %v2365_v25 = vpack.c.bf16 %v2329_v59, %v2329_v59 }
 0x165   : > { %2579 = vrot.lane.b32.xlu1 %v8275_v2, %s7393_s27 }
 0x166   : > { %2160 = vst.msk [vmem:[#allocation2 + $0xf9] sm:$0xff] %vm460_vm0, %v2127_v7 }
 0x16b   : > { %v1751_v21 = vpop.f32.mrf.mxu0 }
 0x16c   : > { %v2128_v47 = vadd.f32 %v8024_v29, %v1751_v21  ;;  %v2773_v29 = vsel %vm460_vm0, %v8285_v19, %v2556_v43 }
 0x16d   : > { %2565 = vrot.lane.b32.xlu1 %v8280_v17, %s7393_s27  ;;  %3565 = vmatmul.bf16.gmra.mxu0 %v2773_v29 }
 0x16e   : > { %2161 = vst.msk [vmem:[#allocation2 + $0x109] sm:$0xff] %vm460_vm0, %v2128_v47 }
 0x171   : > { %3308 = vmatmul.bf16.gmra.mxu1 %v2773_v29 }
 0x173   : > { %v1753_v41 = vpop.f32.mrf.mxu0 }
 0x174   : > { %v2129_v30 = vadd.f32 %v8095_v22, %v1753_v41  ;;  %v2324_v22 = vld [vmem:[#allocation2 + $0x52] sm:$0xff] }
 0x175   : > { %2694 = vrot.lane.b32.xlu1 %v8290_v35, %s7393_s27  ;;  %v2267_v6 = vld [vmem:[#allocation2 + $0x109] sm:$0xff]  ;;  %v2360_v56 = vpack.c.bf16 %v2324_v22, %v2324_v22 }
 0x176   : > { %2162 = vst.msk [vmem:[#allocation2 + $0x111] sm:$0xff] %vm460_vm0, %v2129_v30  ;;  %v2303_v46 = vpack.c.bf16 %v2267_v6, %v2267_v6 }
 0x177   : > { %v2620_v58 = vunpack.c.l.b16 %v2360_v56  ;;  %v2273_v56 = vld [vmem:[#allocation2 + $0x151] sm:$0xff] }
 0x178   : > { %v2523_v15 = vunpack.c.l.b16 %v2303_v46 }
 0x179   : > { %v8307_v49 = vpack.c.b16 %v2620_v58, %v2619_v62  ;;  %v2510_v62 = vunpack.c.l.b16 %v2290_v27  ;;  %v2625_v58 = vunpack.c.l.b16 %v2365_v25 }
 0x17b   : > { %v1756_v28 = vpop.f32.mrf.mxu0 }
 0x17c   : > { %v2130_v33 = vadd.f32 %v8074_v20, %v1756_v28  ;;  %v553_v20 = vadd.f32 %v7973_v38, %v8031_v44 }
 0x17d   : > { %v2268_v45 = vld [vmem:[#allocation2 + $0x111] sm:$0xff] }
 0x17e   : > { %2163 = vst.msk [vmem:[#allocation2 + $0x121] sm:$0xff] %vm460_vm0, %v2130_v33  ;;  %v2304_v50 = vpack.c.bf16 %v2268_v45, %v2268_v45  ;;  %v585_v37 = vrot.slane %v553_v20, 7  ;;  %v634_v61 = vrot.slane %v553_v20, 1  ;;  %v683_v31 = vmul.f32 0.75, %v553_v20 }
 0x17f   : > { %v2366_v33 = vpack.c.bf16 %v2330_v12, %v2330_v12 }
 0x180   : > { %v2524_v52 = vunpack.c.l.b16 %v2304_v50  ;;  %v618_v51 = vsel %vm602_vm2, %v553_v20, %v585_v37  ;;  %v667_v34 = vsel %vm651_vm1, %v634_v61, %v553_v20  ;;  %v2274_v37 = vld [vmem:[#allocation2 + $0x159] sm:$0xff] }
 0x181   : > { %v699_v7 = vmul.f32 0.25, %v618_v51  ;;  %v731_v57 = vmul.f32 0.25, %v667_v34 }
 0x182   : > { %v8297_v53 = vpack.c.b16 %v2524_v52, %v2523_v15 }
 0x183   : > { %v1758_v14 = vpop.f32.mrf.mxu0  ;;  %v8312_v0 = vadd.f32 %v699_v7, %v683_v31  ;;  %v747_v4 = vadd.f32 %v731_v57, %v683_v31  ;;  %v2310_v57 = vpack.c.bf16 %v2274_v37, %v2274_v37 }
 0x184   : > { %v2131_v54 = vadd.f32 %v8139_v8, %v1758_v14  ;;  %2571 = vrot.lane.b32.xlu1 %v8297_v53, %s7393_s27  ;;  %v2253_v8 = vld [vmem:[#allocation2 + $0x61] sm:$0xff] }
 0x185   : > { %v2269_v18 = vld [vmem:[#allocation2 + $0x121] sm:$0xff]  ;;  %v2289_v23 = vpack.c.bf16 %v2253_v8, %v2253_v8  ;;  %v869_v26 = vrot.slane %v8312_v0, 1  ;;  %v870_v21 = vrot.slane %v8312_v0, 2  ;;  %v1109_v47 = vrot.slane %v747_v4, 1 }
 0x186   : > { %2164 = vst.msk [vmem:[#allocation2 + $0x129] sm:$0xff] %vm460_vm0, %v2131_v54  ;;  %v2305_v44 = vpack.c.bf16 %v2269_v18, %v2269_v18  ;;  %v1110_v9 = vrot.slane %v747_v4, 2  ;;  %v1111_v40 = vrot.slane %v747_v4, 3  ;;  %v1236_v32 = vperm.slane %v747_v4, 0 }
 0x187   : > { %v1237_v41 = vperm.slane %v1109_v47, 0  ;;  %v872_v46 = vrot.slane %v8312_v0, 4  ;;  %v873_v45 = vrot.slane %v8312_v0, 5  ;;  %v874_v52 = vrot.slane %v8312_v0, 6 }
 0x188   : > { %v2525_v63 = vunpack.c.l.b16 %v2305_v44  ;;  %v1238_v29 = vperm.slane %v1110_v9, 0  ;;  %v1239_v30 = vperm.slane %v1111_v40, 0  ;;  %v1492_v6 = vsel %vm602_vm2, %v8312_v0, %v1236_v32  ;;  %v2258_v40 = vld [vmem:[#allocation2 + $0x99] sm:$0xff] }
 0x189   : > { %2066 = vst [vmem:[#allocation1] ss:$4 sm:$0xff] %v1492_v6  ;;  %v1493_v24 = vsel %vm602_vm2, %v869_v26, %v1237_v41  ;;  %v1112_v14 = vrot.slane %v747_v4, 4  ;;  %v1113_v54 = vrot.slane %v747_v4, 5  ;;  %v1114_v20 = vrot.slane %v747_v4, 6  ;;  %v2257_v41 = vld [vmem:[#allocation2 + $0x91] sm:$0xff] }
 0x18a   : > { %v1494_v22 = vsel %vm602_vm2, %v870_v21, %v1238_v29  ;;  %2067 = vst [vmem:[#allocation1 + $0x1] ss:$4 sm:$0xff] %v1493_v24  ;;  %v875_v61 = vrot.slane %v8312_v0, 7  ;;  %v1115_v31 = vrot.slane %v747_v4, 7  ;;  %v2509_v8 = vunpack.c.l.b16 %v2289_v23  ;;  %v2183_v23 = vld [vmem:[#allocation2 + $0x78] sm:$0xff] }
 0x18b   : > { %v1761_v1 = vpop.f32.mrf.mxu0  ;;  %2068 = vst [vmem:[#allocation1 + $0x2] ss:$4 sm:$0xff] %v1494_v22  ;;  %v1240_v18 = vperm.slane %v1112_v14, 0  ;;  %v1241_v51 = vperm.slane %v1113_v54, 0  ;;  %v1242_v34 = vperm.slane %v1114_v20, 0  ;;  %v2219_v47 = vpack.c.bf16 %v2183_v23, %v2183_v23  ;;  %v2335_v29 = vld [vmem:[#allocation2 + $0xda] sm:$0xff] }
 0x18c   : > { %v2132_v38 = vadd.f32 %v8126_v3, %v1761_v1  ;;  %2712 = vrot.lane.b32.xlu1 %v8307_v49, %s7393_s27  ;;  %v871_v3 = vrot.slane %v8312_v0, 3  ;;  %v1243_v7 = vperm.slane %v1115_v31, 0  ;;  %v2184_v1 = vld [vmem:[#allocation2 + $0x80] sm:$0xff]  ;;  %v8339_v13 = vpack.c.b16 %v2510_v62, %v2509_v8 }
 0x18d   : > { %v2270_v5 = vld [vmem:[#allocation2 + $0x129] sm:$0xff]  ;;  %v1497_v44 = vsel %vm602_vm2, %v873_v45, %v1241_v51  ;;  %v2431_v6 = vunpack.c.l.b16 %v2219_v47  ;;  %v2293_v22 = vpack.c.bf16 %v2257_v41, %v2257_v41 }
 0x18e   : > { %2165 = vst.msk [vmem:[#allocation2 + $0x139] sm:$0xff] %vm460_vm0, %v2132_v38  ;;  %v2306_v42 = vpack.c.bf16 %v2270_v5, %v2270_v5  ;;  %v1495_v15 = vsel %vm602_vm2, %v871_v3, %v1239_v30  ;;  %v1496_v38 = vsel %vm602_vm2, %v872_v46, %v1240_v18  ;;  %v1498_v5 = vsel %vm602_vm2, %v874_v52, %v1242_v34  ;;  %v2336_v30 = vld [vmem:[#allocation2 + $0xe2] sm:$0xff]  ;;  %v2202_v18 = vld [vmem:[#allocation2 + $0x158] sm:$0xff] }
 0x18f   : > { %2069 = vst [vmem:[#allocation1 + $0x3] ss:$4 sm:$0xff] %v1495_v15  ;;  %v1499_v4 = vsel %vm602_vm2, %v875_v61, %v1243_v7  ;;  %v2530_v3 = vunpack.c.l.b16 %v2310_v57  ;;  %v2259_v46 = vld [vmem:[#allocation2 + $0xa9] sm:$0xff]  ;;  %v2371_v15 = vpack.c.bf16 %v2335_v29, %v2335_v29  ;;  %v2372_v52 = vpack.c.bf16 %v2336_v30, %v2336_v30 }
 0x190   : > { %v2526_v43 = vunpack.c.l.b16 %v2306_v42  ;;  %2070 = vst [vmem:[#allocation1 + $0x20] ss:$4 sm:$0xff] %v1496_v38  ;;  %v2220_v42 = vpack.c.bf16 %v2184_v1, %v2184_v1  ;;  %v2190_v34 = vld [vmem:[#allocation2 + $0xc8] sm:$0xff]  ;;  %v2238_v38 = vpack.c.bf16 %v2202_v18, %v2202_v18 }
 0x191   : > { %2071 = vst [vmem:[#allocation1 + $0x21] ss:$4 sm:$0xff] %v1497_v44  ;;  %v2631_v37 = vunpack.c.l.b16 %v2371_v15  ;;  %v2632_v61 = vunpack.c.l.b16 %v2372_v52  ;;  %v2189_v44 = vld [vmem:[#allocation2 + $0xc0] sm:$0xff] }
 0x192   : > { %v8320_v28 = vpack.c.b16 %v2526_v43, %v2525_v63  ;;  %2072 = vst [vmem:[#allocation1 + $0x22] ss:$4 sm:$0xff] %v1498_v5  ;;  %v2432_v32 = vunpack.c.l.b16 %v2220_v42  ;;  %v2260_v63 = vld [vmem:[#allocation2 + $0xb1] sm:$0xff]  ;;  %v2225_v42 = vpack.c.bf16 %v2189_v44, %v2189_v44 }
 0x193   : > { %v1763_v50 = vpop.f32.mrf.mxu0  ;;  %2073 = vst [vmem:[#allocation1 + $0x23] ss:$4 sm:$0xff] %v1499_v4  ;;  %v8364_v5 = vpack.c.b16 %v2632_v61, %v2631_v37  ;;  %v2341_v61 = vld [vmem:[#allocation2 + $0x122] sm:$0xff] }
 0x194   : > { %v2133_v55 = vadd.f32 %v8179_v39, %v1763_v50  ;;  %2573 = vrot.lane.b32.xlu2 %v8320_v28, %s7393_s27  ;;  %2668 = vrot.lane.b32.xlu1 %v8269_v11, %s7393_s27  ;;  %v2626_v39 = vunpack.c.l.b16 %v2366_v33  ;;  %v2309_v11 = vpack.c.bf16 %v2273_v56, %v2273_v56  ;;  %v2294_v33 = vpack.c.bf16 %v2258_v40, %v2258_v40  ;;  %v2264_v40 = vld [vmem:[#allocation2 + $0xe1] sm:$0xff] }
 0x195   : > { %v2271_v0 = vld [vmem:[#allocation2 + $0x139] sm:$0xff]  ;;  %v2296_v50 = vpack.c.bf16 %v2260_v63, %v2260_v63  ;;  %v8351_v24 = vpack.c.b16 %v2432_v32, %v2431_v6  ;;  %v2295_v56 = vpack.c.bf16 %v2259_v46, %v2259_v46  ;;  %v2437_v63 = vunpack.c.l.b16 %v2225_v42 }
 0x196   : > { %2166 = vst.msk [vmem:[#allocation2 + $0x141] sm:$0xff] %vm460_vm0, %v2133_v55  ;;  %v8341_v59 = vpack.c.b16 %v2626_v39, %v2625_v58  ;;  %v2307_v26 = vpack.c.bf16 %v2271_v0, %v2271_v0  ;;  %v2529_v21 = vunpack.c.l.b16 %v2309_v11  ;;  %v2074_v55 = vld.sshfl [vmem:[#allocation1] sm:$0xff pattern:$0x73625140]  ;;  %v2514_v14 = vunpack.c.l.b16 %v2294_v33  ;;  %v2201_v39 = vld [vmem:[#allocation2 + $0x150] sm:$0xff] }
 0x197   : > { %v1776_v54 = vpop.f32.mrf.mxu3  ;;  %v2516_v20 = vunpack.c.l.b16 %v2296_v50  ;;  %v2513_v58 = vunpack.c.l.b16 %v2293_v22  ;;  %v2515_v51 = vunpack.c.l.b16 %v2295_v56  ;;  %v2199_v11 = vld [vmem:[#allocation2 + $0x138] sm:$0xff]  ;;  %v2237_v1 = vpack.c.bf16 %v2201_v39, %v2201_v39  ;;  %v2320_v56 = vld [vmem:[#allocation2 + $0x22] sm:$0xff] }
 0x198   : > { %v2527_v43 = vunpack.c.l.b16 %v2307_v26  ;;  %v8347_v25 = vpack.c.b16 %v2530_v3, %v2529_v21  ;;  %v2138_v62 = vadd.f32 %v2074_v55, %v1776_v54  ;;  %v2226_v0 = vpack.c.bf16 %v2190_v34, %v2190_v34  ;;  %v2266_v6 = vld [vmem:[#allocation2 + $0xf9] sm:$0xff] }
 0x199   : > { %v8360_v8 = vpack.c.b16 %v2514_v14, %v2513_v58  ;;  %v8362_v7 = vpack.c.b16 %v2516_v20, %v2515_v51  ;;  %v2235_v23 = vpack.c.bf16 %v2199_v11, %v2199_v11  ;;  %v2449_v3 = vunpack.c.l.b16 %v2237_v1  ;;  %v2319_v55 = vld [vmem:[#allocation2 + $0x1a] sm:$0xff]  ;;  %v2196_v11 = vld [vmem:[#allocation2 + $0x110] sm:$0xff] }
 0x19a   : > { %2171 = vst.msk [vmem:[#allocation2 + $0x181] sm:$0xff] %vm460_vm0, %v2138_v62  ;;  %v2075_v4 = vld.sshfl [vmem:[#allocation1 + $0x20] sm:$0xff pattern:$0x73625140]  ;;  %v2300_v30 = vpack.c.bf16 %v2264_v40, %v2264_v40  ;;  %v2302_v46 = vpack.c.bf16 %v2266_v6, %v2266_v6  ;;  %v2355_v58 = vpack.c.bf16 %v2319_v55, %v2319_v55  ;;  %v2356_v37 = vpack.c.bf16 %v2320_v56, %v2320_v56  ;;  %v2328_v55 = vld [vmem:[#allocation2 + $0x82] sm:$0xff]  ;;  %v2326_v56 = vld [vmem:[#allocation2 + $0x6a] sm:$0xff] }
 0x19b   : > { %v2447_v32 = vunpack.c.l.b16 %v2235_v23  ;;  %v2377_v39 = vpack.c.bf16 %v2341_v61, %v2341_v61  ;;  %v2195_v23 = vld [vmem:[#allocation2 + $0x108] sm:$0xff]  ;;  %v2348_v6 = vld [vmem:[#allocation2 + $0x172] sm:$0xff] }
 0x19c   : > { %2557 = vrot.lane.b32.xlu2 %v8339_v13, %s7393_s27  ;;  %2718 = vrot.lane.b32.xlu1 %v8341_v59, %s7393_s27  ;;  %v2520_v15 = vunpack.c.l.b16 %v2300_v30  ;;  %v2522_v52 = vunpack.c.l.b16 %v2302_v46  ;;  %v2347_v30 = vld [vmem:[#allocation2 + $0x16a] sm:$0xff] }
 0x19d   : > { %v2272_v12 = vld [vmem:[#allocation2 + $0x141] sm:$0xff] }
 0x19e   : > { %v2308_v9 = vpack.c.bf16 %v2272_v12, %v2272_v12  ;;  %v2200_v31 = vld [vmem:[#allocation2 + $0x140] sm:$0xff]  ;;  %v2450_v12 = vunpack.c.l.b16 %v2238_v38  ;;  %v2637_v38 = vunpack.c.l.b16 %v2377_v39  ;;  %v2364_v39 = vpack.c.bf16 %v2328_v55, %v2328_v55 }
 0x19f   : > { %v2236_v57 = vpack.c.bf16 %v2200_v31, %v2200_v31  ;;  %v1778_v26 = vpop.f32.mrf.mxu3  ;;  %v2342_v31 = vld [vmem:[#allocation2 + $0x12a] sm:$0xff] }
 0x1a0   : > { %v2528_v27 = vunpack.c.l.b16 %v2308_v9  ;;  %v2139_v47 = vadd.f32 %v2075_v4, %v1778_v26  ;;  %v2438_v9 = vunpack.c.l.b16 %v2226_v0  ;;  %v8375_v29 = vpack.c.b16 %v2450_v12, %v2449_v3  ;;  %v2322_v3 = vld [vmem:[#allocation2 + $0x3a] sm:$0xff] }
 0x1a1   : > { %v2448_v21 = vunpack.c.l.b16 %v2236_v57  ;;  %v2378_v18 = vpack.c.bf16 %v2342_v31, %v2342_v31  ;;  %v2205_v51 = vld [vmem:[#allocation2 + $0x180] sm:$0xff]  ;;  %v2615_v0 = vunpack.c.l.b16 %v2355_v58  ;;  %v2616_v4 = vunpack.c.l.b16 %v2356_v37 }
 0x1a2   : > { %v8349_v45 = vpack.c.b16 %v2528_v27, %v2527_v43  ;;  %2172 = vst.msk [vmem:[#allocation2 + $0x189] sm:$0xff] %vm460_vm0, %v2139_v47  ;;  %v2263_v43 = vld [vmem:[#allocation2 + $0xd9] sm:$0xff]  ;;  %v2265_v27 = vld [vmem:[#allocation2 + $0xf1] sm:$0xff]  ;;  %v8377_v33 = vpack.c.b16 %v2438_v9, %v2437_v63  ;;  %v2241_v57 = vpack.c.bf16 %v2205_v51, %v2205_v51  ;;  %v2232_v47 = vpack.c.bf16 %v2196_v11, %v2196_v11 }
 0x1a3   : > { %v8373_v41 = vpack.c.b16 %v2448_v21, %v2447_v32  ;;  %v2299_v50 = vpack.c.bf16 %v2263_v43, %v2263_v43  ;;  %v2301_v22 = vpack.c.bf16 %v2265_v27, %v2265_v27  ;;  %v2638_v44 = vunpack.c.l.b16 %v2378_v18  ;;  %v2321_v21 = vld [vmem:[#allocation2 + $0x32] sm:$0xff] }
 0x1a4   : > { %2575 = vrot.lane.b32.xlu0 %v8349_v45, %s7393_s27  ;;  %2577 = vrot.lane.b32.xlu2 %v8347_v25, %s7393_s27  ;;  %v2663_v42 = vunpack.c.l.b16 %v2241_v57  ;;  %v8399_v40 = vpack.c.b16 %v2616_v4, %v2615_v0  ;;  %v2231_v32 = vpack.c.bf16 %v2195_v23, %v2195_v23  ;;  %v2357_v63 = vpack.c.bf16 %v2321_v21, %v2321_v21  ;;  %v7089_v51 = vld [vmem:[%s12162_s3 + $0x118] sm:$0xff]  ;;  %v2182_v0 = vld [vmem:[#allocation2 + $0x68] sm:$0xff]  ;;  %v2181_v23 = vld [vmem:[#allocation2 + $0x60] sm:$0xff] }
 0x1a5   : > { %2674 = vrot.lane.b32.xlu1 %v8351_v24, %s7393_s27  ;;  %v2519_v14 = vunpack.c.l.b16 %v2299_v50  ;;  %v2521_v54 = vunpack.c.l.b16 %v2301_v22  ;;  %v8393_v12 = vpack.c.b16 %v2638_v44, %v2637_v38  ;;  %v2358_v43 = vpack.c.bf16 %v2322_v3, %v2322_v3  ;;  %3645 = vmatpush.bf16.msrb.mxu1 %v7089_v51 }
 0x1a6   : > { %v2444_v27 = vunpack.c.l.b16 %v2232_v47  ;;  %v2443_v46 = vunpack.c.l.b16 %v2231_v32  ;;  %v2617_v50 = vunpack.c.l.b16 %v2357_v63  ;;  %v2384_v58 = vpack.c.bf16 %v2348_v6, %v2348_v6  ;;  %v2331_v47 = vld [vmem:[#allocation2 + $0xaa] sm:$0xff]  ;;  %v2333_v63 = vld [vmem:[#allocation2 + $0xc2] sm:$0xff] }
 0x1a7   : > { %v8385_v20 = vpack.c.b16 %v2520_v15, %v2519_v14  ;;  %v8387_v62 = vpack.c.b16 %v2522_v52, %v2521_v54  ;;  %v2618_v22 = vunpack.c.l.b16 %v2358_v43  ;;  %v2325_v15 = vld [vmem:[#allocation2 + $0x62] sm:$0xff]  ;;  %v2327_v52 = vld [vmem:[#allocation2 + $0x7a] sm:$0xff]  ;;  %v2383_v54 = vpack.c.bf16 %v2347_v30, %v2347_v30  ;;  %v2334_v43 = vld [vmem:[#allocation2 + $0xca] sm:$0xff] }
 0x1a8   : > { %v8405_v14 = vpack.c.b16 %v2444_v27, %v2443_v46  ;;  %v2361_v37 = vpack.c.bf16 %v2325_v15, %v2325_v15  ;;  %v2363_v31 = vpack.c.bf16 %v2327_v52, %v2327_v52  ;;  %v2362_v18 = vpack.c.bf16 %v2326_v56, %v2326_v56  ;;  %v2332_v27 = vld [vmem:[#allocation2 + $0xb2] sm:$0xff] }
 0x1a9   : > { %v2206_v34 = vld [vmem:[#allocation2 + $0x188] sm:$0xff]  ;;  %v8409_v61 = vpack.c.b16 %v2618_v22, %v2617_v50  ;;  %v2644_v11 = vunpack.c.l.b16 %v2384_v58  ;;  %v2217_v21 = vpack.c.bf16 %v2181_v23, %v2181_v23  ;;  %v2369_v6 = vpack.c.bf16 %v2333_v63, %v2333_v63  ;;  %v2186_v58 = vld [vmem:[#allocation2 + $0x98] sm:$0xff] }
 0x1aa   : > { %v2242_v1 = vpack.c.bf16 %v2206_v34, %v2206_v34  ;;  %v2643_v34 = vunpack.c.l.b16 %v2383_v54  ;;  %v2623_v57 = vunpack.c.l.b16 %v2363_v31  ;;  %v2621_v38 = vunpack.c.l.b16 %v2361_v37  ;;  %v2188_v54 = vld [vmem:[#allocation2 + $0xb0] sm:$0xff]  ;;  %v7088_v37 = vld [vmem:[%s12162_s3 + $0x110] sm:$0xff] }
 0x1ab   : > { %v2622_v44 = vunpack.c.l.b16 %v2362_v18  ;;  %v2429_v32 = vunpack.c.l.b16 %v2217_v21  ;;  %v2370_v46 = vpack.c.bf16 %v2334_v43, %v2334_v43  ;;  %v2367_v50 = vpack.c.bf16 %v2331_v47, %v2331_v47  ;;  %v2187_v31 = vld [vmem:[#allocation2 + $0xa8] sm:$0xff]  ;;  %3646 = vmatpush.bf16.msrb.mxu1 %v7088_v37  ;;  %v2340_v63 = vld [vmem:[#allocation2 + $0x112] sm:$0xff]  ;;  %v2338_v43 = vld [vmem:[#allocation2 + $0xfa] sm:$0xff] }
 0x1ac   : > { %2561 = vrot.lane.b32.xlu0 %v8360_v8, %s7393_s27  ;;  %2563 = vrot.lane.b32.xlu2 %v8362_v7, %s7393_s27  ;;  %v2664_v26 = vunpack.c.l.b16 %v2242_v1  ;;  %v2624_v1 = vunpack.c.l.b16 %v2364_v39  ;;  %v8418_v4 = vpack.c.b16 %v2644_v11, %v2643_v34  ;;  %v2368_v22 = vpack.c.bf16 %v2332_v27, %v2332_v27  ;;  %v2185_v39 = vld [vmem:[#allocation2 + $0x90] sm:$0xff] }
 0x1ad   : > { %2724 = vrot.lane.b32.xlu1 %v8364_v5, %s7393_s27  ;;  %v2629_v15 = vunpack.c.l.b16 %v2369_v6  ;;  %v2630_v52 = vunpack.c.l.b16 %v2370_v46  ;;  %v2627_v55 = vunpack.c.l.b16 %v2367_v50  ;;  %v2224_v18 = vpack.c.bf16 %v2188_v54, %v2188_v54  ;;  %v7069_v27 = vld [vmem:[%s12162_s3 + $0x78] sm:$0xff]  ;;  %v7068_v54 = vld [vmem:[%s12162_s3 + $0x70] sm:$0xff] }
 0x1ae   : > { %v8395_v9 = vpack.c.b16 %v2664_v26, %v2663_v42  ;;  %v2218_v42 = vpack.c.bf16 %v2182_v0, %v2182_v0  ;;  %v8422_v26 = vpack.c.b16 %v2624_v1, %v2623_v57  ;;  %v2628_v56 = vunpack.c.l.b16 %v2368_v22  ;;  %7130 = vmatpush.bf16.msra.mxu3 %v7069_v27  ;;  %3374 = vmatpush.bf16.msra.mxu2 %v7069_v27 }
 0x1af   : > { %v2222_v51 = vpack.c.bf16 %v2186_v58, %v2186_v58  ;;  %v8439_v34 = vpack.c.b16 %v2630_v52, %v2629_v15  ;;  %v2223_v57 = vpack.c.bf16 %v2187_v31, %v2187_v31  ;;  %v2221_v1 = vpack.c.bf16 %v2185_v39, %v2185_v39 }
 0x1b0   : > { %v2430_v3 = vunpack.c.l.b16 %v2218_v42  ;;  %v8441_v11 = vpack.c.b16 %v2628_v56, %v2627_v55  ;;  %v2337_v42 = vld [vmem:[#allocation2 + $0xf2] sm:$0xff]  ;;  %v2376_v52 = vpack.c.bf16 %v2340_v63, %v2340_v63  ;;  %v2374_v55 = vpack.c.bf16 %v2338_v43, %v2338_v43 }
 0x1b1   : > { %v2434_v0 = vunpack.c.l.b16 %v2222_v51  ;;  %v2435_v21 = vunpack.c.l.b16 %v2223_v57  ;;  %v2373_v22 = vpack.c.bf16 %v2337_v42, %v2337_v42  ;;  %v7067_v57 = vld [vmem:[%s12162_s3 + $0x68] sm:$0xff]  ;;  %v7066_v63 = vld [vmem:[%s12162_s3 + $0x60] sm:$0xff] }
 0x1b2   : > { %v8430_v30 = vpack.c.b16 %v2430_v3, %v2429_v32  ;;  %v2433_v3 = vunpack.c.l.b16 %v2221_v1  ;;  %v2339_v32 = vld [vmem:[#allocation2 + $0x10a] sm:$0xff]  ;;  %v2636_v39 = vunpack.c.l.b16 %v2376_v52  ;;  %v2634_v51 = vunpack.c.l.b16 %v2374_v55  ;;  %3375 = vmatpush.bf16.msra.mxu2 %v7068_v54  ;;  %7131 = vmatpush.bf16.msra.mxu3 %v7068_v54  ;;  %v2344_v54 = vld [vmem:[#allocation2 + $0x142] sm:$0xff] }
 0x1b3   : > { %v2375_v15 = vpack.c.bf16 %v2339_v32, %v2339_v32 }
 0x1b4   : > { %2690 = vrot.lane.b32.xlu0 %v8373_v41, %s7393_s27  ;;  %2692 = vrot.lane.b32.xlu2 %v8375_v29, %s7393_s27  ;;  %v8452_v46 = vpack.c.b16 %v2434_v0, %v2433_v3  ;;  %v2193_v0 = vld [vmem:[#allocation2 + $0xf0] sm:$0xff] }
 0x1b5   : > { %2680 = vrot.lane.b32.xlu1 %v8377_v33, %s7393_s27  ;;  %v2635_v31 = vunpack.c.l.b16 %v2375_v15  ;;  %v2229_v32 = vpack.c.bf16 %v2193_v0, %v2193_v0  ;;  %v2346_v15 = vld [vmem:[#allocation2 + $0x15a] sm:$0xff] }
 0x1b6   : > { %3376 = vmatpush.bf16.msra.mxu2 %v7067_v57  ;;  %7132 = vmatpush.bf16.msra.mxu3 %v7067_v57 }
 0x1b7   : > { %v8471_v42 = vpack.c.b16 %v2636_v39, %v2635_v31  ;;  %v7065_v31 = vld [vmem:[%s12162_s3 + $0x58] sm:$0xff] }
 0x1ba   : > { %3377 = vmatpush.bf16.msra.mxu2 %v7066_v63  ;;  %7133 = vmatpush.bf16.msra.mxu3 %v7066_v63  ;;  %v2277_v63 = vld [vmem:[#allocation2 + $0x181] sm:$0xff] }
 0x1bc   : > { %2567 = vrot.lane.b32.xlu0 %v8385_v20, %s7393_s27  ;;  %2569 = vrot.lane.b32.xlu2 %v8387_v62, %s7393_s27 }
 0x1bd   : > { %2730 = vrot.lane.b32.xlu1 %v8393_v12, %s7393_s27 }
 0x1be   : > { %3378 = vmatpush.bf16.msra.mxu2 %v7065_v31  ;;  %7134 = vmatpush.bf16.msra.mxu3 %v7065_v31 }
 0x1c4   : > { %2708 = vrot.lane.b32.xlu2 %v8399_v40, %s7393_s27  ;;  %2696 = vrot.lane.b32.xlu0 %v8395_v9, %s7393_s27 }
 0x1c5   : > { %2686 = vrot.lane.b32.xlu1 %v8405_v14, %s7393_s27 }
 0x1cc   : > { %2666 = vrot.lane.b32.xlu2 %v8226_v16, %s7393_s27  ;;  %2710 = vrot.lane.b32.xlu0 %v8409_v61, %s7393_s27  ;;  %v8424_v16 = vpack.c.b16 %v2622_v44, %v2621_v38  ;;  %v2197_v38 = vld [vmem:[#allocation2 + $0x120] sm:$0xff]  ;;  %v2436_v44 = vunpack.c.l.b16 %v2224_v18  ;;  %v2633_v18 = vunpack.c.l.b16 %v2373_v22  ;;  %v2345_v22 = vld [vmem:[#allocation2 + $0x152] sm:$0xff] }
 0x1cd   : > { %2736 = vrot.lane.b32.xlu1 %v8418_v4, %s7393_s27  ;;  %v2233_v47 = vpack.c.bf16 %v2197_v38, %v2197_v38  ;;  %v2194_v38 = vld [vmem:[#allocation2 + $0xf8] sm:$0xff] }
 0x1ce   : > { %v8450_v6 = vpack.c.b16 %v2436_v44, %v2435_v21  ;;  %v2191_v44 = vld [vmem:[#allocation2 + $0xd8] sm:$0xff]  ;;  %v8473_v21 = vpack.c.b16 %v2634_v51, %v2633_v18  ;;  %v2230_v3 = vpack.c.bf16 %v2194_v38, %v2194_v38  ;;  %v2381_v18 = vpack.c.bf16 %v2345_v22, %v2345_v22 }
 0x1cf   : > { %v2445_v56 = vunpack.c.l.b16 %v2233_v47  ;;  %v2227_v47 = vpack.c.bf16 %v2191_v44, %v2191_v44  ;;  %v2382_v51 = vpack.c.bf16 %v2346_v15, %v2346_v15  ;;  %v2380_v38 = vpack.c.bf16 %v2344_v54, %v2344_v54 }
 0x1d0   : > { %v2641_v44 = vunpack.c.l.b16 %v2381_v18  ;;  %v2313_v15 = vpack.c.bf16 %v2277_v63, %v2277_v63 }
 0x1d1   : > { %v2439_v55 = vunpack.c.l.b16 %v2227_v47  ;;  %v2642_v0 = vunpack.c.l.b16 %v2382_v51  ;;  %v2349_v51 = vld [vmem:[#allocation2 + $0x182] sm:$0xff] }
 0x1d4   : > { %2716 = vrot.lane.b32.xlu2 %v8422_v26, %s7393_s27  ;;  %2714 = vrot.lane.b32.xlu0 %v8424_v16, %s7393_s27 }
 0x1dc   : > { %2672 = vrot.lane.b32.xlu2 %v8430_v30, %s7393_s27  ;;  %2670 = vrot.lane.b32.xlu0 %v8285_v19, %s7393_s27  ;;  %v2198_v19 = vld [vmem:[#allocation2 + $0x128] sm:$0xff] }
 0x1dd   : > { %v2234_v23 = vpack.c.bf16 %v2198_v19, %v2198_v19  ;;  %v2192_v19 = vld [vmem:[#allocation2 + $0xe0] sm:$0xff] }
 0x1df   : > { %v2446_v50 = vunpack.c.l.b16 %v2234_v23  ;;  %v2228_v23 = vpack.c.bf16 %v2192_v19, %v2192_v19 }
 0x1e1   : > { %v8461_v58 = vpack.c.b16 %v2446_v50, %v2445_v56  ;;  %v2440_v43 = vunpack.c.l.b16 %v2228_v23  ;;  %v2442_v50 = vunpack.c.l.b16 %v2230_v3  ;;  %v2343_v56 = vld [vmem:[#allocation2 + $0x13a] sm:$0xff]  ;;  %v2560_v23 = vpop.permute.xlu1 %2559 }
 0x1e2   : > { %v2379_v57 = vpack.c.bf16 %v2343_v56, %v2343_v56  ;;  %v2781_v18 = vsel %vm460_vm0, %v8351_v24, %v2560_v23  ;;  %v7087_v23 = vld [vmem:[%s12162_s3 + $0x108] sm:$0xff] }
 0x1e3   : > { %v8487_v39 = vpack.c.b16 %v2440_v43, %v2439_v55  ;;  %v2278_v43 = vld [vmem:[#allocation2 + $0x189] sm:$0xff]  ;;  %v7062_v55 = vld [vmem:[%s12162_s3 + $0x40] sm:$0xff]  ;;  %3647 = vmatpush.bf16.msrb.mxu1 %v7087_v23 }
 0x1e4   : > { %2722 = vrot.lane.b32.xlu2 %v8439_v34, %s7393_s27  ;;  %2720 = vrot.lane.b32.xlu0 %v8441_v11, %s7393_s27  ;;  %v2639_v47 = vunpack.c.l.b16 %v2379_v57  ;;  %v2350_v57 = vld [vmem:[#allocation2 + $0x18a] sm:$0xff] }
 0x1e9   : > { %v2580_v56 = vpop.permute.xlu1 %2579 }
 0x1ec   : > { %2678 = vrot.lane.b32.xlu2 %v8450_v6, %s7393_s27  ;;  %2676 = vrot.lane.b32.xlu0 %v8452_v46, %s7393_s27 }
 0x1ee   : > { %v2574_v37 = vpop.permute.xlu2 %2573 }
 0x1ef   : > { %v8468_v1 = vsel %vm460_vm0, %v8461_v58, %v2574_v37  ;;  %v2441_v37 = vunpack.c.l.b16 %v2229_v32  ;;  %v2640_v32 = vunpack.c.l.b16 %v2380_v38 }
 0x1f0   : > { %3353 = vmatmul.bf16.vlgmr.msrb.gmra.mxu3 %v8468_v1 }
 0x1f1   : > { %v8489_v19 = vpack.c.b16 %v2442_v50, %v2441_v37  ;;  %v8501_v50 = vpack.c.b16 %v2642_v0, %v2641_v44  ;;  %v8503_v22 = vpack.c.b16 %v2640_v32, %v2639_v47  ;;  %v2700_v37 = vunpack.c.l.b16 %v2313_v15  ;;  %v2566_v0 = vpop.permute.xlu1 %2565 }
 0x1f2   : > { %v2386_v44 = vpack.c.bf16 %v2350_v57, %v2350_v57 }
 0x1f4   : > { %2728 = vrot.lane.b32.xlu2 %v8471_v42, %s7393_s27  ;;  %2726 = vrot.lane.b32.xlu0 %v8473_v21, %s7393_s27  ;;  %v2706_v63 = vunpack.c.l.b16 %v2386_v44 }
 0x1f6   : > { %v2558_v27 = vpop.permute.xlu2 %2557 }
 0x1f7   : > { %v2777_v52 = vsel %vm460_vm0, %v8430_v30, %v2558_v27  ;;  %v7064_v30 = vld [vmem:[%s12162_s3 + $0x50] sm:$0xff]  ;;  %v7063_v27 = vld [vmem:[%s12162_s3 + $0x48] sm:$0xff] }
 0x1f8   : > { %3313 = vmatmul.bf16.gmra.mxu1 %v2777_v52  ;;  %3570 = vmatmul.bf16.gmra.mxu0 %v2777_v52  ;;  %v2314_v52 = vpack.c.bf16 %v2278_v43, %v2278_v43 }
 0x1f9   : > { %3379 = vmatpush.bf16.msra.mxu2 %v7064_v30  ;;  %7135 = vmatpush.bf16.msra.mxu3 %v7064_v30  ;;  %v2385_v30 = vpack.c.bf16 %v2349_v51, %v2349_v51  ;;  %v8535_v15 = vpop.permute.xlu1 %2694 }
 0x1fa   : > { %v2701_v31 = vunpack.c.l.b16 %v2314_v52  ;;  %v2317_v52 = vld [vmem:[#allocation2 + $0x2] sm:$0xff] }
 0x1fb   : > { %v2705_v32 = vunpack.c.l.b16 %v2385_v30 }
 0x1fc   : > { %2684 = vrot.lane.b32.xlu2 %v8489_v19, %s7393_s27  ;;  %2682 = vrot.lane.b32.xlu0 %v8487_v39, %s7393_s27  ;;  %v8514_v38 = vpack.c.b16 %v2701_v31, %v2700_v37  ;;  %v2353_v37 = vpack.c.bf16 %v2317_v52, %v2317_v52 }
 0x1fd   : > { %3380 = vmatpush.bf16.msra.mxu2 %v7063_v27  ;;  %7136 = vmatpush.bf16.msra.mxu3 %v7063_v27  ;;  %v8522_v24 = vpack.c.b16 %v2706_v63, %v2705_v32 }
 0x1fe   : > { %v2578_v3 = vpop.permute.xlu2 %2577  ;;  %v2613_v30 = vunpack.c.l.b16 %v2353_v37  ;;  %v8557_v37 = vpop.f32.mrf.mxu1 }
 0x201   : > { %3381 = vmatpush.bf16.msra.mxu2 %v7062_v55  ;;  %7137 = vmatpush.bf16.msra.mxu3 %v7062_v55  ;;  %v8538_v55 = vld [vmem:[#allocation2 + $0xa] sm:$0xff]  ;;  %v8546_v44 = vpop.permute.xlu1 %2571 }
 0x202   : > { %v2354_v31 = vpack.c.bf16 %v8538_v55, %v8538_v55 }
 0x204   : > { %2734 = vrot.lane.b32.xlu2 %v8501_v50, %s7393_s27  ;;  %2732 = vrot.lane.b32.xlu0 %v8503_v22, %s7393_s27 }
 0x206   : > { %v2564_v54 = vpop.permute.xlu2 %2563 }
 0x208   : > { %3318 = vmatmul.bf16.gmra.mxu1 %v2781_v18  ;;  %3575 = vmatmul.bf16.gmra.mxu0 %v2781_v18 }
 0x20c   : > { %2750 = vrot.lane.b32.xlu2 %v8514_v38, %s7393_s27  ;;  %2688 = vrot.lane.b32.xlu0 %v8461_v58, %s7393_s27 }
 0x20e   : > { %v8520_v47 = vpop.permute.xlu2 %2692 }
 0x214   : > { %2738 = vrot.lane.b32.xlu0 %v8522_v24, %s7393_s27 }
 0x216   : > { %v2576_v43 = vpop.permute.xlu0 %2575  ;;  %v8529_v27 = vpop.permute.xlu2 %2569 }
 0x217   : > { %v8533_v58 = vsel %vm460_vm0, %v8373_v41, %v2576_v43  ;;  %v2614_v41 = vunpack.c.l.b16 %v2354_v31  ;;  %v8550_v43 = vsel %vm460_vm0, %v8375_v29, %v2578_v3  ;;  %v8559_v31 = vpop.permute.xlu1 %2712  ;;  %v7076_v29 = vld [vmem:[%s12162_s3 + $0xb0] sm:$0xff]  ;;  %v8566_v3 = vpop.f32.mrf.mxu1 }
 0x218   : > { %3358 = vmatmul.bf16.gmra.mxu3 %v8533_v58 }
 0x219   : > { %v2645_v32 = vpack.c.b16 %v2614_v41, %v2613_v30 }
 0x21e   : > { %v2562_v18 = vpop.permute.xlu0 %2561  ;;  %v8542_v51 = vpop.permute.xlu2 %2708 }
 0x21f   : > { %v2785_v57 = vsel %vm460_vm0, %v8452_v46, %v2562_v18  ;;  %v7077_v46 = vld [vmem:[%s12162_s3 + $0xb8] sm:$0xff]  ;;  %v2669_v30 = vpop.permute.xlu1 %2668 }
 0x220   : > { %3323 = vmatmul.bf16.gmra.mxu1 %v2785_v57  ;;  %3580 = vmatmul.bf16.gmra.mxu0 %v2785_v57  ;;  %v2789_v57 = vsel %vm460_vm0, %v8450_v6, %v2564_v54  ;;  %v7075_v6 = vld [vmem:[%s12162_s3 + $0xa8] sm:$0xff]  ;;  %v8578_v54 = vpop.f32.mrf.mxu1 }
 0x221   : > { %3463 = vmatpush.bf16.msrb.mxu3 %v7077_v46  ;;  %v2793_v46 = vsel %vm460_vm0, %v8377_v33, %v2566_v0  ;;  %v7073_v33 = vld [vmem:[%s12162_s3 + $0x98] sm:$0xff] }
 0x225   : > { %3464 = vmatpush.bf16.msrb.mxu3 %v7076_v29 }
 0x226   : > { %v2691_v63 = vpop.permute.xlu0 %2690  ;;  %v2667_v23 = vpop.permute.xlu2 %2666 }
 0x227   : > { %v2825_v52 = vsel %vm460_vm0, %v2645_v32, %v2667_v23  ;;  %v8570_v32 = vsel %vm460_vm0, %v8290_v35, %v2580_v56  ;;  %v2829_v23 = vsel %vm460_vm0, %v8399_v40, %v2669_v30  ;;  %v7074_v35 = vld [vmem:[%s12162_s3 + $0xa0] sm:$0xff]  ;;  %v2873_v29 = vsel %vm460_vm0, %v8393_v12, %v2691_v63 }
 0x228   : > { %3363 = vmatmul.bf16.gmra.mxu3 %v8550_v43  ;;  %3382 = vmatmul.bf16.vlgmr.msra.gmra.mxu2 %v2825_v52  ;;  %v7086_v40 = vld [vmem:[%s12162_s3 + $0x100] sm:$0xff] }
 0x229   : > { %3465 = vmatpush.bf16.msrb.mxu3 %v7075_v6  ;;  %3648 = vmatpush.bf16.msrb.mxu1 %v7086_v40  ;;  %v7072_v6 = vld [vmem:[%s12162_s3 + $0x90] sm:$0xff] }
 0x22d   : > { %3466 = vmatpush.bf16.msrb.mxu3 %v7074_v35  ;;  %v2877_v35 = vsel %vm460_vm0, %v8503_v22, %v8520_v47  ;;  %v7070_v47 = vld [vmem:[%s12162_s3 + $0x80] sm:$0xff] }
 0x22e   : > { %v2568_v18 = vpop.permute.xlu0 %2567 }
 0x22f   : > { %v2797_v30 = vsel %vm460_vm0, %v8487_v39, %v2568_v18  ;;  %v7071_v39 = vld [vmem:[%s12162_s3 + $0x88] sm:$0xff] }
 0x230   : > { %3328 = vmatmul.bf16.gmra.mxu1 %v2789_v57  ;;  %3585 = vmatmul.bf16.gmra.mxu0 %v2789_v57  ;;  %v8592_v57 = vpop.f32.mrf.mxu1 }
 0x231   : > { %3467 = vmatpush.bf16.msrb.mxu3 %v7073_v33 }
 0x235   : > { %3468 = vmatpush.bf16.msrb.mxu3 %v7072_v6  ;;  %v2805_v6 = vsel %vm460_vm0, %v8405_v14, %v8546_v44 }
 0x236   : > { %v2697_v41 = vpop.permute.xlu0 %2696 }
 0x238   : > { %3368 = vmatmul.bf16.gmra.mxu3 %v8570_v32  ;;  %3387 = vmatmul.bf16.gmra.mxu2 %v2829_v23  ;;  %v8606_v63 = vpop.f32.mrf.mxu1 }
 0x239   : > { %3469 = vmatpush.bf16.msrb.mxu3 %v7071_v39 }
 0x23d   : > { %3470 = vmatpush.bf16.msrb.mxu3 %v7070_v47  ;;  %v2889_v47 = vsel %vm460_vm0, %v7701_v48, %v8542_v51 }
 0x23e   : > { %v8580_v52 = vpop.permute.xlu0 %2710 }
 0x23f   : > { %v2893_v51 = vsel %vm460_vm0, %v7711_v60, %v8580_v52 }
 0x240   : > { %3333 = vmatmul.bf16.gmra.mxu1 %v2793_v46  ;;  %3590 = vmatmul.bf16.gmra.mxu0 %v2793_v46  ;;  %v8608_v46 = vpop.permute.xlu2 %2716  ;;  %v8616_v18 = vpop.f32.mrf.mxu1 }
 0x246   : > { %v8590_v56 = vpop.permute.xlu0 %2714 }
 0x248   : > { %3442 = vmatmul.bf16.vlgmr.msra.gmra.mxu3 %v2873_v29  ;;  %v2673_v40 = vpop.permute.xlu2 %2672  ;;  %v2801_v29 = vsel %vm460_vm0, %v8489_v19, %v8529_v27 }
 0x249   : > { %v2837_v33 = vsel %vm460_vm0, %v8307_v49, %v2673_v40 }
 0x24e   : > { %v2671_v0 = vpop.permute.xlu0 %2670 }
 0x24f   : > { %v2833_v23 = vsel %vm460_vm0, %v8409_v61, %v2671_v0  ;;  %v8626_v0 = vpop.permute.xlu1 %2718 }
 0x250   : > { %3338 = vmatmul.bf16.gmra.mxu1 %v2797_v30  ;;  %3392 = vmatmul.bf16.gmra.mxu2 %v2833_v23  ;;  %v2881_v23 = vsel %vm460_vm0, %v8501_v50, %v8535_v15  ;;  %v2885_v15 = vsel %vm460_vm0, %v8418_v4, %v2697_v41  ;;  %v8653_v44 = vpop.permute.xlu2 %2722 }
 0x251   : > { %3595 = vmatmul.bf16.gmra.mxu0 %v2797_v30  ;;  %v8628_v30 = vpop.f32.mrf.mxu1 }
 0x256   : > { %v8640_v39 = vpop.permute.xlu0 %2720 }
 0x257   : > { %v2675_v19 = vpop.permute.xlu1 %2674 }
 0x258   : > { %3447 = vmatmul.bf16.gmra.mxu3 %v2877_v35  ;;  %v2841_v35 = vsel %vm460_vm0, %v8424_v16, %v2675_v19  ;;  %v2679_v19 = vpop.permute.xlu2 %2678 }
 0x259   : > { %v8633_v27 = vpop.f32.mrf.mxu1 }
 0x260   : > { %3343 = vmatmul.bf16.gmra.mxu1 %v2801_v29  ;;  %3397 = vmatmul.bf16.gmra.mxu2 %v2837_v33 }
 0x261   : > { %3600 = vmatmul.bf16.gmra.mxu0 %v2801_v29  ;;  %v2677_v29 = vpop.permute.xlu0 %2676 }
 0x262   : > { %v2845_v33 = vsel %vm460_vm0, %v8422_v26, %v2677_v29 }
 0x268   : > { %3452 = vmatmul.bf16.gmra.mxu3 %v2881_v23 }
 0x270   : > { %3348 = vmatmul.bf16.gmra.mxu1 %v2805_v6  ;;  %3402 = vmatmul.bf16.gmra.mxu2 %v2841_v35 }
 0x271   : > { %3605 = vmatmul.bf16.gmra.mxu0 %v2805_v6  ;;  %v2849_v6 = vsel %vm460_vm0, %v8341_v59, %v2679_v19  ;;  %v8687_v19 = vpop.permute.xlu0 %2726 }
 0x273   : > { %v3354_v41 = vpop.f32.mrf.mxu3 }
 0x275   : > { %v8642_v40 = vpop.f32.mrf.mxu1 }
 0x278   : > { %3457 = vmatmul.bf16.gmra.mxu3 %v2885_v15 }
 0x27b   : > { %v8669_v35 = vpop.f32.mrf.mxu3 }
 0x27c   : > { %12245 = vst [vmem:[#allocation9_spill] sm:$0xff] %v8669_v35 }
 0x27d   : > { %v8650_v14 = vpop.f32.mrf.mxu1 }
 0x280   : > { %3407 = vmatmul.bf16.gmra.mxu2 %v2845_v33  ;;  %6946 = vmatmul.msk.bf16.vlgmr.msrb.gmra.mxu1 %vm460_vm0, %v8409_v61  ;;  %v8664_v61 = vpop.f32.mrf.mxu0 }
 0x281   : > { %3610 = vmatmul.bf16.gmra.mxu0 %v8468_v1  ;;  %v8667_v1 = vpop.permute.xlu1 %2724 }
 0x285   : > { %v8658_v23 = vpop.f32.mrf.mxu1 }
 0x286   : > { %12244 = vst [vmem:[#allocation8_spill] sm:$0xff] %v8658_v23 }
 0x288   : > { %3471 = vmatmul.bf16.vlgmr.msrb.gmra.mxu3 %v2889_v47  ;;  %v8676_v15 = vpop.f32.mrf.mxu0  ;;  %v8680_v47 = vpop.permute.xlu2 %2728 }
 0x289   : > { %v2681_v33 = vpop.permute.xlu1 %2680 }
 0x28d   : > { %v8671_v48 = vpop.f32.mrf.mxu1 }
 0x28e   : > { %12246 = vst [vmem:[#allocation10_spill] sm:$0xff] %v8671_v48 }
 0x290   : > { %3412 = vmatmul.bf16.gmra.mxu2 %v2849_v6  ;;  %6947 = vmatmul.msk.bf16.gmra.mxu1 %vm460_vm0, %v8307_v49  ;;  %v8689_v52 = vpop.f32.mrf.mxu0  ;;  %v2685_v35 = vpop.permute.xlu2 %2684 }
 0x291   : > { %3615 = vmatmul.bf16.gmra.mxu0 %v8533_v58  ;;  %v2853_v58 = vsel %vm460_vm0, %v8441_v11, %v2681_v33  ;;  %v8724_v23 = vpop.permute.xlu1 %2730 }
 0x298   : > { %3476 = vmatmul.bf16.gmra.mxu3 %v2893_v51  ;;  %v2897_v51 = vsel %vm460_vm0, %v7728_v10, %v8559_v31 }
 0x29b   : > { %v3359_v29 = vpop.f32.mrf.mxu3 }
 0x29d   : > { %v8678_v49 = vpop.f32.mrf.mxu1 }
 0x29e   : > { %12247 = vst [vmem:[#allocation11_spill] sm:$0xff] %v8678_v49 }
 0x2a0   : > { %3417 = vmatmul.bf16.gmra.mxu2 %v2853_v58  ;;  %6948 = vmatmul.msk.bf16.gmra.mxu1 %vm460_vm0, %v8424_v16  ;;  %v2683_v58 = vpop.permute.xlu0 %2682  ;;  %v8698_v16 = vpop.f32.mrf.mxu0 }
 0x2a1   : > { %3620 = vmatmul.bf16.gmra.mxu0 %v8550_v43  ;;  %v2857_v43 = vsel %vm460_vm0, %v8439_v34, %v2683_v58 }
 0x2a3   : > { %v3361_v60 = vpop.f32.mrf.mxu3 }
 0x2a5   : > { %v8691_v6 = vpop.f32.mrf.mxu1 }
 0x2a6   : > { %12248 = vst [vmem:[#allocation12_spill] sm:$0xff] %v8691_v6  ;;  %v8705_v6 = vpop.permute.xlu2 %2734 }
 0x2a8   : > { %3481 = vmatmul.bf16.gmra.mxu3 %v2897_v51  ;;  %v8709_v51 = vpop.f32.mrf.mxu0 }
 0x2ab   : > { %v3364_v33 = vpop.f32.mrf.mxu3 }
 0x2ad   : > { %v8696_v49 = vpop.f32.mrf.mxu1 }
 0x2ae   : > { %12249 = vst [vmem:[#allocation13_spill] sm:$0xff] %v8696_v49  ;;  %v2901_v49 = vsel %vm460_vm0, %v8339_v13, %v8590_v56  ;;  %v2751_v58 = vpop.permute.xlu2 %2750 }
 0x2b0   : > { %3422 = vmatmul.bf16.gmra.mxu2 %v2857_v43  ;;  %6949 = vmatmul.msk.bf16.gmra.mxu1 %vm460_vm0, %v8422_v26  ;;  %v2861_v26 = vsel %vm460_vm0, %v8364_v5, %v2685_v35  ;;  %v8734_v35 = vld [vmem:[%s12163_s4] ss:$0 sm:$0xff] }
 0x2b1   : > { %3625 = vmatmul.bf16.gmra.mxu0 %v8570_v32  ;;  %v2953_v32 = vsel %vm460_vm0, %v8395_v9, %v2751_v58  ;;  %v2687_v58 = vpop.permute.xlu1 %2686 }
 0x2b3   : > { %v3366_v10 = vpop.f32.mrf.mxu3 }
 0x2b5   : > { %v8707_v31 = vpop.f32.mrf.mxu1 }
 0x2b6   : > { %12250 = vst [vmem:[#allocation14_spill] sm:$0xff] %v8707_v31  ;;  %v8722_v31 = vpop.f32.mrf.mxu0 }
 0x2b8   : > { %3486 = vmatmul.bf16.gmra.mxu3 %v2901_v49  ;;  %v2905_v49 = vsel %vm460_vm0, %v7969_v36, %v8608_v46  ;;  %v8745_v36 = vpop.permute.xlu0 %2732 }
 0x2bb   : > { %v3369_v48 = vpop.f32.mrf.mxu3 }
 0x2bd   : > { %v8714_v43 = vpop.f32.mrf.mxu1 }
 0x2c0   : > { %3427 = vmatmul.bf16.gmra.mxu2 %v2861_v26  ;;  %6950 = vmatmul.msk.bf16.gmra.mxu1 %vm460_vm0, %v8341_v59  ;;  %v3355_v59 = vadd.f32 %v8734_v35, %v3354_v41  ;;  %v2909_v41 = vsel %vm460_vm0, %v8360_v8, %v8626_v0 }
 0x2c1   : > { %3630 = vmatmul.bf16.gmra.mxu0 %v2953_v32 }
 0x2c3   : > { %v3371_v13 = vpop.f32.mrf.mxu3 }
 0x2c5   : > { %v8726_v56 = vpop.f32.mrf.mxu1 }
 0x2c6   : > { %12251 = vst [vmem:[#allocation15_spill] sm:$0xff] %v8726_v56  ;;  %v2865_v56 = vsel %vm460_vm0, %v8473_v21, %v2687_v58 }
 0x2c8   : > { %3491 = vmatmul.bf16.gmra.mxu3 %v2905_v49 }
 0x2cb   : > { %v3443_v9 = vpop.f32.mrf.mxu3 }
 0x2cc   : > { %v8737_v26 = vadd.f32 %v3443_v9, %v3355_v59  ;;  %v3360_v59 = vadd.f32 %v8734_v35, %v3359_v29  ;;  %v2280_v29 = vld [vmem:[#allocation2 + $0x1a1] sm:$0xff] }
 0x2cd   : > { %v8739_v32 = vpop.f32.mrf.mxu1 }
 0x2ce   : > { %12252 = vst [vmem:[#allocation16_spill] sm:$0xff] %v8737_v26  ;;  %v2689_v26 = vpop.permute.xlu0 %2688 }
 0x2cf   : > { %12253 = vst [vmem:[#allocation17_spill] sm:$0xff] %v8739_v32  ;;  %v2316_v32 = vpack.c.bf16 %v2280_v29, %v2280_v29 }
 0x2d0   : > { %3432 = vmatmul.bf16.gmra.mxu2 %v2865_v56  ;;  %6951 = vmatmul.msk.bf16.gmra.mxu1 %vm460_vm0, %v8441_v11  ;;  %v2869_v11 = vsel %vm460_vm0, %v8471_v42, %v2689_v26  ;;  %v3362_v56 = vadd.f32 %v8734_v35, %v3361_v60 }
 0x2d3   : > { %v8747_v46 = vpop.f32.mrf.mxu3 }
 0x2d4   : > { %12254 = vst [vmem:[#allocation18_spill] sm:$0xff] %v8747_v46 }
 0x2d5   : > { %v8752_v49 = vpop.f32.mrf.mxu1 }
 0x2d6   : > { %12255 = vst [vmem:[#allocation19_spill] sm:$0xff] %v8752_v49 }
 0x2d8   : > { %3496 = vmatmul.bf16.gmra.mxu3 %v2909_v41  ;;  %v2279_v41 = vld [vmem:[#allocation2 + $0x199] sm:$0xff] }
 0x2d9   : > { %v2315_v49 = vpack.c.bf16 %v2279_v41, %v2279_v41 }
 0x2db   : > { %v3448_v9 = vpop.f32.mrf.mxu3  ;;  %v2747_v26 = vunpack.c.l.b16 %v2315_v49 }
 0x2dc   : > { %v8755_v58 = vadd.f32 %v3448_v9, %v3360_v59  ;;  %v2913_v59 = vsel %vm460_vm0, %v8362_v7, %v8640_v39  ;;  %v2748_v9 = vunpack.c.l.b16 %v2316_v32  ;;  %v3370_v32 = vadd.f32 %v8734_v35, %v3369_v48 }
 0x2dd   : > { %v8762_v46 = vpop.f32.mrf.mxu1 }
 0x2de   : > { %12256 = vst [vmem:[#allocation20_spill] sm:$0xff] %v8755_v58 }
 0x2e0   : > { %3437 = vmatmul.bf16.gmra.mxu2 %v2869_v11  ;;  %6952 = vmatmul.msk.bf16.gmra.mxu1 %vm460_vm0, %v8439_v34  ;;  %v2749_v11 = vpack.c.b16 %v2748_v9, %v2747_v26  ;;  %v3365_v34 = vadd.f32 %v8734_v35, %v3364_v33  ;;  %v2917_v33 = vsel %vm460_vm0, %v8280_v17, %v8653_v44 }
 0x2e1   : > { %v2921_v17 = vsel %vm460_vm0, %v8385_v20, %v8667_v1  ;;  %v3295_v44 = vadd.f32 %v8734_v35, %v8557_v37 }
 0x2e2   : > { %2752 = vrot.lane.b32.xlu1 %v2749_v11, %s7393_s27 }
 0x2e3   : > { %v3450_v8 = vpop.f32.mrf.mxu3 }
 0x2e4   : > { %v8764_v0 = vadd.f32 %v3450_v8, %v3362_v56  ;;  %v3367_v8 = vadd.f32 %v8734_v35, %v3366_v10  ;;  %v3372_v10 = vadd.f32 %v8734_v35, %v3371_v13  ;;  %v3297_v13 = vadd.f32 %v8734_v35, %v8566_v3 }
 0x2e5   : > { %v8773_v56 = vpop.f32.mrf.mxu1  ;;  %v2925_v3 = vsel %vm460_vm0, %v8387_v62, %v8687_v19  ;;  %v3302_v62 = vadd.f32 %v8734_v35, %v8592_v57 }
 0x2e8   : > { %3501 = vmatmul.bf16.gmra.mxu3 %v2913_v59  ;;  %v3383_v59 = vpop.f32.mrf.mxu2 }
 0x2e9   : > { %v3384_v48 = vadd.f32 %v3383_v59, %v3295_v44 }
 0x2eb   : > { %v3453_v60 = vpop.f32.mrf.mxu3 }
 0x2ec   : > { %v8771_v58 = vadd.f32 %v3453_v60, %v3365_v34 }
 0x2ed   : > { %v8780_v39 = vpop.f32.mrf.mxu1 }
 0x2f0   : > { %6953 = vmatmul.msk.bf16.gmra.mxu1 %vm460_vm0, %v8364_v5  ;;  %v3385_v11 = vpop.f32.mrf.mxu2 }
 0x2f3   : > { %v3455_v41 = vpop.f32.mrf.mxu3 }
 0x2f4   : > { %v8778_v7 = vadd.f32 %v3455_v41, %v3367_v8 }
 0x2f5   : > { %v8790_v5 = vpop.f32.mrf.mxu1 }
 0x2f8   : > { %3506 = vmatmul.bf16.gmra.mxu3 %v2917_v33  ;;  %v3386_v33 = vadd.f32 %v3385_v11, %v3297_v13 }
 0x2fb   : > { %v3458_v49 = vpop.f32.mrf.mxu3 }
 0x2fc   : > { %v8786_v29 = vadd.f32 %v3458_v49, %v3370_v32  ;;  %v3388_v49 = vpop.f32.mrf.mxu2 }
 0x2fd   : > { %v3650_v34 = vpop.f32.mrf.mxu1 }
 0x300   : > { %6954 = vmatmul.msk.bf16.gmra.mxu1 %vm460_vm0, %v8473_v21 }
 0x303   : > { %v3460_v26 = vpop.f32.mrf.mxu3 }
 0x304   : > { %v8793_v9 = vadd.f32 %v3460_v26, %v3372_v10 }
 0x305   : > { %v3652_v59 = vpop.f32.mrf.mxu1 }
 0x306   : > { %12257 = vst [vmem:[#allocation21_spill] sm:$0xff] %v8793_v9 }
 0x308   : > { %3511 = vmatmul.bf16.gmra.mxu3 %v2921_v17 }
 0x30b   : > { %v3472_v60 = vpop.f32.mrf.mxu3 }
 0x30c   : > { %v3473_v21 = vadd.f32 %v3472_v60, %v3384_v48 }
 0x30e   : > { %v3562_v8 = vadd.f32 %v8664_v61, %v3473_v21 }
 0x310   : > { %v3651_v41 = vadd.f32 %v3650_v34, %v3562_v8  ;;  %6955 = vmatmul.msk.bf16.gmra.mxu1 %vm460_vm0, %v8471_v42  ;;  %v3300_v42 = vadd.f32 %v8734_v35, %v8578_v54  ;;  %v3390_v34 = vpop.f32.mrf.mxu2 }
 0x311   : > { %v3391_v19 = vadd.f32 %v3390_v34, %v3302_v62 }
 0x312   : > { %v3730_v20 = vmax.f32 %v3651_v41, 0.0  ;;  %v3389_v26 = vadd.f32 %v3388_v49, %v3300_v42 }
 0x313   : > { %v3474_v1 = vpop.f32.mrf.mxu3 }
 0x314   : > { %v8805_v32 = vmin.f32 %v3730_v20, 6.0  ;;  %v3475_v37 = vadd.f32 %v3474_v1, %v3386_v33 }
 0x316   : > { %12258 = vst [vmem:[#allocation22_spill] sm:$0xff] %v8805_v32  ;;  %v3564_v61 = vadd.f32 %v8676_v15, %v3475_v37  ;;  %v3655_v15 = vpop.f32.mrf.mxu1  ;;  %v8837_v37 = vld [vmem:[%s12164_s5] sm:$0xff] }
 0x317   : > { %3932 = vst.msk [vmem:[#allocation2 + $0x19] sm:$0xff] %vm460_vm0, %v8805_v32  ;;  %v8849_v49 = vperm.slane %v8837_v37, 3  ;;  %v8858_v42 = vperm.slane %v8837_v37, 6 }
 0x318   : > { %v3653_v10 = vadd.f32 %v3652_v59, %v3564_v61  ;;  %3516 = vmatmul.bf16.gmra.mxu3 %v2925_v3  ;;  %v8855_v3 = vperm.slane %v8837_v37, 1 }
 0x31a   : > { %v3731_v17 = vmax.f32 %v3653_v10, 0.0  ;;  %v2933_v10 = vsel %vm460_vm0, %v8320_v28, %v8724_v23  ;;  %v8881_v23 = vperm.slane %v8837_v37, 7 }
 0x31b   : > { %v3477_v44 = vpop.f32.mrf.mxu3 }
 0x31c   : > { %v8815_v48 = vmin.f32 %v3731_v17, 6.0  ;;  %v3478_v11 = vadd.f32 %v3477_v44, %v3389_v26  ;;  %v7319_v26 = vld [vmem:[#allocation2 + $0x9] sm:$0xff] }
 0x31d   : > { %v4203_v17 = vmul.f32 %v7319_v26, %v8855_v3 }
 0x31e   : > { %12259 = vst [vmem:[#allocation23_spill] sm:$0xff] %v8815_v48  ;;  %v3567_v60 = vadd.f32 %v8689_v52, %v3478_v11  ;;  %v2929_v52 = vsel %vm460_vm0, %v8297_v53, %v8680_v47  ;;  %v3657_v57 = vpop.f32.mrf.mxu1  ;;  %v3967_v53 = vld [vmem:[#allocation2 + $0x8] sm:$0xff] }
 0x31f   : > { %3933 = vst.msk [vmem:[#allocation2 + $0x21] sm:$0xff] %vm460_vm0, %v8815_v48 }
 0x320   : > { %6956 = vmatmul.msk.bf16.gmra.mxu1 %vm460_vm0, %v8393_v12  ;;  %v3656_v54 = vadd.f32 %v3655_v15, %v3567_v60  ;;  %v8871_v15 = vperm.slane %v8837_v37, 4 }
 0x322   : > { %v3732_v21 = vmax.f32 %v3656_v54, 0.0  ;;  %v8876_v54 = vperm.slane %v8837_v37, 2 }
 0x323   : > { %v3479_v8 = vpop.f32.mrf.mxu3 }
 0x324   : > { %v3480_v13 = vadd.f32 %v3479_v8, %v3391_v19  ;;  %v8824_v41 = vmin.f32 %v3732_v21, 6.0  ;;  %v4434_v21 = vmul.f32 %v8876_v54, %v8538_v55  ;;  %v3795_v55 = vpack.c.bf16 %v8815_v48, %v8815_v48 }
 0x326   : > { %12260 = vst [vmem:[#allocation24_spill] sm:$0xff] %v8824_v41  ;;  %v3569_v33 = vadd.f32 %v8698_v16, %v3480_v13  ;;  %v8843_v47 = vld [vmem:[#allocation2 + $0x20] sm:$0xff]  ;;  %v8846_v16 = vperm.slane %v8837_v37, 0 }
 0x327   : > { %3934 = vst.msk [vmem:[#allocation2 + $0x31] sm:$0xff] %vm460_vm0, %v8824_v41  ;;  %v4037_v61 = vmul.f32 %v8849_v49, %v8843_v47  ;;  %v8868_v34 = vld [vmem:[#allocation2 + $0x21] sm:$0xff] }
 0x328   : > { %3521 = vmatmul.bf16.gmra.mxu3 %v2929_v52  ;;  %v3658_v20 = vadd.f32 %v3657_v57, %v3569_v33  ;;  %v4004_v59 = vmul.f32 %v8846_v16, %v3967_v53  ;;  %v4268_v28 = vmul.f32 %v8871_v15, %v8868_v34  ;;  %v3393_v52 = vpop.f32.mrf.mxu2  ;;  %v3794_v53 = vpack.c.bf16 %v8805_v32, %v8805_v32 }
 0x32a   : > { %v3733_v12 = vmax.f32 %v3658_v20, 0.0  ;;  %v4069_v44 = vadd.f32 %v4037_v61, %v4004_v59  ;;  %v3305_v20 = vadd.f32 %v8734_v35, %v8606_v63  ;;  %v6210_v61 = vunpack.c.l.b16 %v3794_v53 }
 0x32b   : > { %v3482_v59 = vpop.f32.mrf.mxu3  ;;  %v3310_v53 = vadd.f32 %v8734_v35, %v8628_v30  ;;  %v3312_v30 = vadd.f32 %v8734_v35, %v8633_v27 }
 0x32c   : > { %v8832_v1 = vmin.f32 %v3733_v12, 6.0  ;;  %v3394_v12 = vadd.f32 %v3393_v52, %v3305_v20 }
 0x32e   : > { %12261 = vst [vmem:[#allocation25_spill] sm:$0xff] %v8832_v1  ;;  %v3483_v26 = vadd.f32 %v3482_v59, %v3394_v12  ;;  %v3576_v59 = vpop.f32.mrf.mxu0 }
 0x32f   : > { %3935 = vst.msk [vmem:[#allocation2 + $0x39] sm:$0xff] %vm460_vm0, %v8832_v1 }
 0x330   : > { %6957 = vmatmul.msk.bf16.gmra.mxu1 %vm460_vm0, %v8503_v22  ;;  %v3572_v63 = vadd.f32 %v8709_v51, %v3483_v26 }
 0x336   : > { %v8860_v22 = vld [vmem:[#allocation2 + $0x38] sm:$0xff] }
 0x337   : > { %v4102_v11 = vmul.f32 %v8858_v42, %v8860_v22  ;;  %v8873_v62 = vld [vmem:[#allocation2 + $0x39] sm:$0xff] }
 0x338   : > { %3526 = vmatmul.bf16.gmra.mxu3 %v2933_v10  ;;  %v4333_v13 = vmul.f32 %v8881_v23, %v8873_v62  ;;  %v6211_v10 = vunpack.c.l.b16 %v3795_v55  ;;  %v3797_v55 = vpack.c.bf16 %v8832_v1, %v8832_v1 }
 0x339   : > { %v4134_v60 = vadd.f32 %v4102_v11, %v4069_v44  ;;  %v3395_v11 = vpop.f32.mrf.mxu2 }
 0x33a   : > { %v6242_v44 = vpack.c.b16 %v6211_v10, %v6210_v61 }
 0x33b   : > { %v4235_v19 = vadd.f32 %v4203_v17, %v4134_v60  ;;  %v3660_v17 = vpop.f32.mrf.mxu1  ;;  %v3307_v60 = vadd.f32 %v8734_v35, %v8616_v18 }
 0x33c   : > { %6258 = vrot.lane.b32.xlu0 %v6242_v44, %s7393_s27  ;;  %v2739_v44 = vpop.permute.xlu0 %2738 }
 0x33d   : > { %v4300_v8 = vadd.f32 %v4268_v28, %v4235_v19  ;;  %v3661_v28 = vadd.f32 %v3660_v17, %v3572_v63  ;;  %v3396_v19 = vadd.f32 %v3395_v11, %v3307_v60 }
 0x33f   : > { %v4365_v33 = vadd.f32 %v4333_v13, %v4300_v8  ;;  %v3484_v8 = vpop.f32.mrf.mxu3 }
 0x340   : > { %6958 = vmatmul.msk.bf16.gmra.mxu1 %vm460_vm0, %v8501_v50  ;;  %v2937_v50 = vsel %vm460_vm0, %v8349_v45, %v8745_v36  ;;  %v3485_v52 = vadd.f32 %v3484_v8, %v3396_v19 }
 0x341   : > { %v8889_v57 = vadd.f32 %v4434_v21, %v4365_v33  ;;  %v3734_v21 = vmax.f32 %v3661_v28, 0.0  ;;  %v2941_v33 = vsel %vm460_vm0, %v8347_v25, %v8705_v6  ;;  %v3398_v12 = vpop.f32.mrf.mxu2  ;;  %v3796_v25 = vpack.c.bf16 %v8824_v41, %v8824_v41 }
 0x342   : > { %v3574_v45 = vadd.f32 %v8722_v31, %v3485_v52  ;;  %v3399_v6 = vadd.f32 %v3398_v12, %v3310_v53  ;;  %v2949_v28 = vsel %vm460_vm0, %v8514_v38, %v2739_v44  ;;  %v3578_v52 = vpop.f32.mrf.mxu0 }
 0x343   : > { %v8904_v13 = vmin.f32 %v3734_v21, 6.0  ;;  %v3662_v51 = vpop.f32.mrf.mxu1  ;;  %v6212_v10 = vunpack.c.l.b16 %v3796_v25 }
 0x344   : > { %v3663_v36 = vadd.f32 %v3662_v51, %v3574_v45 }
 0x345   : > { %12262 = vst [vmem:[#allocation26_spill] sm:$0xff] %v8904_v13  ;;  %v3798_v38 = vpack.c.bf16 %v8904_v13, %v8904_v13 }
 0x346   : > { %3936 = vst.msk [vmem:[#allocation2 + $0x49] sm:$0xff] %vm460_vm0, %v8904_v13  ;;  %v3735_v18 = vmax.f32 %v3663_v36, 0.0 }
 0x347   : > { %v3487_v61 = vpop.f32.mrf.mxu3  ;;  %v6214_v12 = vunpack.c.l.b16 %v3798_v38 }
 0x348   : > { %3531 = vmatmul.bf16.gmra.mxu3 %v2937_v50  ;;  %v8914_v20 = vmin.f32 %v3735_v18, 6.0  ;;  %v3488_v26 = vadd.f32 %v3487_v61, %v3399_v6 }
 0x349   : > { %v3400_v63 = vpop.f32.mrf.mxu2 }
 0x34a   : > { %12263 = vst [vmem:[#allocation27_spill] sm:$0xff] %v8914_v20  ;;  %v3401_v60 = vadd.f32 %v3400_v63, %v3312_v30  ;;  %v3581_v25 = vpop.f32.mrf.mxu0  ;;  %v3317_v63 = vadd.f32 %v8734_v35, %v8650_v14  ;;  %v12267_v14 = vld [vmem:[#allocation8_spill] sm:$0xff] }
 0x34b   : > { %3937 = vst.msk [vmem:[#allocation2 + $0x51] sm:$0xff] %vm460_vm0, %v8914_v20  ;;  %v3665_v50 = vpop.f32.mrf.mxu1 }
 0x34f   : > { %v3489_v21 = vpop.f32.mrf.mxu3 }
 0x350   : > { %6959 = vmatmul.msk.bf16.gmra.mxu1 %vm460_vm0, %v8418_v4  ;;  %v2737_v4 = vpop.permute.xlu1 %2736  ;;  %v3490_v8 = vadd.f32 %v3489_v21, %v3401_v60 }
 0x351   : > { %v2945_v31 = vsel %vm460_vm0, %v8275_v2, %v2737_v4  ;;  %v3577_v2 = vadd.f32 %v3576_v59, %v3488_v26  ;;  %v3403_v4 = vpop.f32.mrf.mxu2  ;;  %v3315_v59 = vadd.f32 %v8734_v35, %v8642_v40 }
 0x352   : > { %v3579_v51 = vadd.f32 %v3578_v52, %v3490_v8 }
 0x353   : > { %v3666_v11 = vadd.f32 %v3665_v50, %v3577_v2  ;;  %v3667_v36 = vpop.f32.mrf.mxu1 }
 0x354   : > { %v3668_v27 = vadd.f32 %v3667_v36, %v3579_v51 }
 0x355   : > { %v3736_v19 = vmax.f32 %v3666_v11, 0.0 }
 0x356   : > { %v3737_v18 = vmax.f32 %v3668_v27, 0.0 }
 0x357   : > { %v8933_v45 = vmin.f32 %v3736_v19, 6.0 }
 0x358   : > { %3536 = vmatmul.bf16.gmra.mxu3 %v2941_v33  ;;  %v8937_v33 = vmin.f32 %v3737_v18, 6.0 }
 0x359   : > { %12264 = vst [vmem:[#allocation28_spill] sm:$0xff] %v8933_v45  ;;  %v3405_v61 = vpop.f32.mrf.mxu2  ;;  %v3800_v50 = vpack.c.bf16 %v8933_v45, %v8933_v45 }
 0x35a   : > { %3938 = vst.msk [vmem:[#allocation2 + $0x61] sm:$0xff] %vm460_vm0, %v8933_v45  ;;  %v3801_v44 = vpack.c.bf16 %v8937_v33, %v8937_v33  ;;  %v3406_v40 = vadd.f32 %v3405_v61, %v3317_v63 }
 0x35b   : > { %12265 = vst [vmem:[#allocation29_spill] sm:$0xff] %v8937_v33  ;;  %v6216_v11 = vunpack.c.l.b16 %v3800_v50 }
 0x35c   : > { %3939 = vst.msk [vmem:[#allocation2 + $0x69] sm:$0xff] %vm460_vm0, %v8937_v33  ;;  %v6217_v60 = vunpack.c.l.b16 %v3801_v44 }
 0x35e   : > { %v6245_v8 = vpack.c.b16 %v6217_v60, %v6216_v11 }
 0x360   : > { %6960 = vmatmul.msk.bf16.gmra.mxu1 %vm460_vm0, %v8522_v24  ;;  %v6213_v24 = vunpack.c.l.b16 %v3797_v55  ;;  %v3670_v55 = vpop.f32.mrf.mxu1 }
 0x361   : > { %v3408_v19 = vpop.f32.mrf.mxu2 }
 0x362   : > { %v6243_v17 = vpack.c.b16 %v6213_v24, %v6212_v10  ;;  %v3404_v10 = vadd.f32 %v3403_v4, %v3315_v59  ;;  %v3492_v24 = vpop.f32.mrf.mxu3  ;;  %v3320_v4 = vadd.f32 %v8734_v35, %v12267_v14 }
 0x364   : > { %6260 = vrot.lane.b32.xlu1 %v6243_v17, %s7393_s27  ;;  %v3493_v26 = vadd.f32 %v3492_v24, %v3404_v10  ;;  %v3583_v17 = vpop.f32.mrf.mxu0 }
 0x366   : > { %v3582_v2 = vadd.f32 %v3581_v25, %v3493_v26 }
 0x368   : > { %3541 = vmatmul.bf16.gmra.mxu3 %v2945_v31  ;;  %v3799_v31 = vpack.c.bf16 %v8914_v20, %v8914_v20  ;;  %v3671_v30 = vadd.f32 %v3670_v55, %v3582_v2 }
 0x36a   : > { %v6215_v53 = vunpack.c.l.b16 %v3799_v31  ;;  %v3738_v21 = vmax.f32 %v3671_v30, 0.0  ;;  %v3494_v52 = vpop.f32.mrf.mxu3  ;;  %v3409_v31 = vadd.f32 %v3408_v19, %v3320_v4  ;;  %v12269_v30 = vld [vmem:[#allocation10_spill] sm:$0xff]  ;;  %v12270_v19 = vld [vmem:[#allocation11_spill] sm:$0xff] }
 0x36b   : > { %v3495_v36 = vadd.f32 %v3494_v52, %v3406_v40  ;;  %v3322_v11 = vadd.f32 %v8734_v35, %v12269_v30 }
 0x36c   : > { %v6244_v6 = vpack.c.b16 %v6215_v53, %v6214_v12  ;;  %v8954_v51 = vmin.f32 %v3738_v21, 6.0  ;;  %6264 = vrot.lane.b32.xlu1 %v6245_v8, %s7393_s27  ;;  %v3586_v18 = vpop.f32.mrf.mxu0  ;;  %v3325_v21 = vadd.f32 %v8734_v35, %v12270_v19 }
 0x36d   : > { %v3584_v27 = vadd.f32 %v3583_v17, %v3495_v36 }
 0x36e   : > { %6262 = vrot.lane.b32.xlu0 %v6244_v6, %s7393_s27  ;;  %12266 = vst [vmem:[#allocation30_spill] sm:$0xff] %v8954_v51  ;;  %v3410_v6 = vpop.f32.mrf.mxu2  ;;  %v3802_v63 = vpack.c.bf16 %v8954_v51, %v8954_v51 }
 0x36f   : > { %3940 = vst.msk [vmem:[#allocation2 + $0x79] sm:$0xff] %vm460_vm0, %v8954_v51  ;;  %v3411_v8 = vadd.f32 %v3410_v6, %v3322_v11 }
 0x370   : > { %v6218_v36 = vunpack.c.l.b16 %v3802_v63 }
 0x372   : > { %v3497_v25 = vpop.f32.mrf.mxu3 }
 0x373   : > { %v3498_v59 = vadd.f32 %v3497_v25, %v3409_v31  ;;  %v2208_v25 = vld [vmem:[#allocation2 + $0x1a0] sm:$0xff] }
 0x374   : > { %v3588_v10 = vpop.f32.mrf.mxu0 }
 0x375   : > { %v3587_v61 = vadd.f32 %v3586_v18, %v3498_v59  ;;  %v12272_v59 = vld [vmem:[#allocation12_spill] sm:$0xff] }
 0x376   : > { %v3413_v17 = vpop.f32.mrf.mxu2  ;;  %v3327_v6 = vadd.f32 %v8734_v35, %v12272_v59 }
 0x378   : > { %3546 = vmatmul.bf16.gmra.mxu3 %v2949_v28  ;;  %v3672_v28 = vpop.f32.mrf.mxu1 }
 0x379   : > { %v3673_v38 = vadd.f32 %v3672_v28, %v3584_v27  ;;  %v3414_v27 = vadd.f32 %v3413_v17, %v3325_v21 }
 0x37a   : > { %v3499_v24 = vpop.f32.mrf.mxu3 }
 0x37b   : > { %v3739_v12 = vmax.f32 %v3673_v38, 0.0  ;;  %v3500_v18 = vadd.f32 %v3499_v24, %v3411_v8  ;;  %v2351_v8 = vld [vmem:[#allocation2 + $0x19a] sm:$0xff] }
 0x37c   : > { %v3591_v28 = vpop.f32.mrf.mxu0 }
 0x37d   : > { %v8961_v55 = vmin.f32 %v3739_v12, 6.0  ;;  %v3589_v31 = vadd.f32 %v3588_v10, %v3500_v18  ;;  %v2352_v18 = vld [vmem:[#allocation2 + $0x1a2] sm:$0xff] }
 0x37e   : > { %v3415_v38 = vpop.f32.mrf.mxu2 }
 0x37f   : > { %12268 = vst [vmem:[#allocation8_spill] sm:$0xff] %v8961_v55  ;;  %v3803_v2 = vpack.c.bf16 %v8961_v55, %v8961_v55 }
 0x380   : > { %v3675_v53 = vpop.f32.mrf.mxu1  ;;  %3941 = vst.msk [vmem:[#allocation2 + $0x81] sm:$0xff] %vm460_vm0, %v8961_v55  ;;  %v9098_v55 = vperm.slane %v8837_v37, 5 }
 0x381   : > { %v3676_v26 = vadd.f32 %v3675_v53, %v3587_v61  ;;  %v6219_v60 = vunpack.c.l.b16 %v3803_v2  ;;  %v2207_v53 = vld [vmem:[#allocation2 + $0x198] sm:$0xff] }
 0x382   : > { %v3502_v40 = vpop.f32.mrf.mxu3  ;;  %v2243_v61 = vpack.c.bf16 %v2207_v53, %v2207_v53 }
 0x383   : > { %v3740_v44 = vmax.f32 %v3676_v26, 0.0  ;;  %v6246_v14 = vpack.c.b16 %v6219_v60, %v6218_v36  ;;  %v3503_v12 = vadd.f32 %v3502_v40, %v3414_v27  ;;  %v2244_v26 = vpack.c.bf16 %v2208_v25, %v2208_v25  ;;  %v2753_v40 = vpop.permute.xlu1 %2752 }
 0x384   : > { %v2742_v30 = vunpack.c.l.b16 %v2243_v61  ;;  %v3593_v19 = vpop.f32.mrf.mxu0 }
 0x385   : > { %v8973_v52 = vmin.f32 %v3740_v44, 6.0  ;;  %6266 = vrot.lane.b32.xlu0 %v6246_v14, %s7393_s27  ;;  %v3592_v17 = vadd.f32 %v3591_v28, %v3503_v12  ;;  %v3416_v44 = vadd.f32 %v3415_v38, %v3327_v6  ;;  %v2743_v24 = vunpack.c.l.b16 %v2244_v26 }
 0x386   : > { %v2388_v12 = vpack.c.bf16 %v2352_v18, %v2352_v18 }
 0x387   : > { %12271 = vst [vmem:[#allocation10_spill] sm:$0xff] %v8973_v52  ;;  %v2744_v21 = vpack.c.b16 %v2743_v24, %v2742_v30  ;;  %v3804_v27 = vpack.c.bf16 %v8973_v52, %v8973_v52 }
 0x388   : > { %v3677_v50 = vpop.f32.mrf.mxu1  ;;  %3942 = vst.msk [vmem:[#allocation2 + $0x91] sm:$0xff] %vm460_vm0, %v8973_v52 }
 0x389   : > { %v3678_v2 = vadd.f32 %v3677_v50, %v3589_v31  ;;  %v2387_v50 = vpack.c.bf16 %v2351_v8, %v2351_v8  ;;  %v2957_v31 = vsel %vm460_vm0, %v2744_v21, %v2753_v40  ;;  %v6220_v59 = vunpack.c.l.b16 %v3804_v27  ;;  %v12276_v8 = vld [vmem:[#allocation13_spill] sm:$0xff] }
 0x38a   : > { %v3504_v63 = vpop.f32.mrf.mxu3  ;;  %3635 = vmatmul.bf16.gmra.mxu0 %v2957_v31  ;;  %v3330_v40 = vadd.f32 %v8734_v35, %v12276_v8 }
 0x38b   : > { %v3741_v11 = vmax.f32 %v3678_v2, 0.0  ;;  %v3505_v10 = vadd.f32 %v3504_v63, %v3416_v44  ;;  %v2756_v61 = vunpack.c.l.b16 %v2387_v50  ;;  %v2757_v44 = vunpack.c.l.b16 %v2388_v12  ;;  %v12277_v50 = vld [vmem:[#allocation14_spill] sm:$0xff] }
 0x38c   : > { %v3596_v63 = vpop.f32.mrf.mxu0 }
 0x38d   : > { %v8980_v36 = vmin.f32 %v3741_v11, 6.0  ;;  %v3594_v38 = vadd.f32 %v3593_v19, %v3505_v10  ;;  %v2758_v24 = vpack.c.b16 %v2757_v44, %v2756_v61 }
 0x38f   : > { %12273 = vst [vmem:[#allocation11_spill] sm:$0xff] %v8980_v36  ;;  %6961 = vmatmul.msk.bf16.gmra.mxu1 %vm460_vm0, %v2758_v24 }
 0x390   : > { %v3680_v4 = vpop.f32.mrf.mxu1  ;;  %3943 = vst.msk [vmem:[#allocation2 + $0x99] sm:$0xff] %vm460_vm0, %v8980_v36 }
 0x391   : > { %v3681_v60 = vadd.f32 %v3680_v4, %v3592_v17  ;;  %v3805_v4 = vpack.c.bf16 %v8980_v36, %v8980_v36  ;;  %v3418_v17 = vpop.f32.mrf.mxu2  ;;  %v9095_v36 = vld [vmem:[#allocation2 + $0x50] sm:$0xff] }
 0x392   : > { %v3507_v11 = vpop.f32.mrf.mxu3  ;;  %v3419_v18 = vadd.f32 %v3418_v17, %v3330_v40  ;;  %v4104_v37 = vmul.f32 %v8858_v42, %v9095_v36 }
 0x393   : > { %v3742_v14 = vmax.f32 %v3681_v60, 0.0  ;;  %v6221_v6 = vunpack.c.l.b16 %v3805_v4  ;;  %v3335_v4 = vadd.f32 %v8734_v35, %v8714_v43 }
 0x394   : > { %v3598_v10 = vpop.f32.mrf.mxu0 }
 0x395   : > { %v8989_v53 = vmin.f32 %v3742_v14, 6.0  ;;  %v6247_v2 = vpack.c.b16 %v6221_v6, %v6220_v59  ;;  %v3508_v14 = vadd.f32 %v3507_v11, %v3419_v18 }
 0x397   : > { %12274 = vst [vmem:[#allocation12_spill] sm:$0xff] %v8989_v53  ;;  %6268 = vrot.lane.b32.xlu1 %v6247_v2, %s7393_s27  ;;  %v3806_v59 = vpack.c.bf16 %v8989_v53, %v8989_v53 }
 0x398   : > { %v3682_v28 = vpop.f32.mrf.mxu1  ;;  %3944 = vst.msk [vmem:[#allocation2 + $0xa9] sm:$0xff] %vm460_vm0, %v8989_v53 }
 0x399   : > { %v3683_v25 = vadd.f32 %v3682_v28, %v3594_v38  ;;  %v3420_v19 = vpop.f32.mrf.mxu2  ;;  %v3332_v28 = vadd.f32 %v8734_v35, %v12277_v50  ;;  %v6222_v40 = vunpack.c.l.b16 %v3806_v59 }
 0x39a   : > { %v3509_v21 = vpop.f32.mrf.mxu3 }
 0x39b   : > { %v3743_v26 = vmax.f32 %v3683_v25, 0.0  ;;  %v3421_v12 = vadd.f32 %v3420_v19, %v3332_v28  ;;  %v3597_v25 = vadd.f32 %v3596_v63, %v3508_v14 }
 0x39c   : > { %v3601_v31 = vpop.f32.mrf.mxu0 }
 0x39d   : > { %v8993_v30 = vmin.f32 %v3743_v26, 6.0  ;;  %v3510_v26 = vadd.f32 %v3509_v21, %v3421_v12  ;;  %v12281_v12 = vld [vmem:[#allocation15_spill] sm:$0xff] }
 0x39f   : > { %12275 = vst [vmem:[#allocation31_spill] sm:$0xff] %v8993_v30  ;;  %v3807_v2 = vpack.c.bf16 %v8993_v30, %v8993_v30  ;;  %v3599_v24 = vadd.f32 %v3598_v10, %v3510_v26 }
 0x3a0   : > { %3945 = vst.msk [vmem:[#allocation2 + $0xb1] sm:$0xff] %vm460_vm0, %v8993_v30  ;;  %v3685_v60 = vpop.f32.mrf.mxu1 }
 0x3a1   : > { %v3423_v38 = vpop.f32.mrf.mxu2  ;;  %v3686_v17 = vadd.f32 %v3685_v60, %v3597_v25  ;;  %v6223_v11 = vunpack.c.l.b16 %v3807_v2  ;;  %v3337_v25 = vadd.f32 %v8734_v35, %v12281_v12 }
 0x3a2   : > { %v3512_v6 = vpop.f32.mrf.mxu3  ;;  %v3424_v61 = vadd.f32 %v3423_v38, %v3335_v4 }
 0x3a3   : > { %v3744_v18 = vmax.f32 %v3686_v17, 0.0  ;;  %v6248_v50 = vpack.c.b16 %v6223_v11, %v6222_v40 }
 0x3a4   : > { %v3513_v8 = vadd.f32 %v3512_v6, %v3424_v61  ;;  %v3603_v21 = vpop.f32.mrf.mxu0 }
 0x3a5   : > { %v9009_v63 = vmin.f32 %v3744_v18, 6.0  ;;  %6270 = vrot.lane.b32.xlu0 %v6248_v50, %s7393_s27 }
 0x3a6   : > { %v3602_v19 = vadd.f32 %v3601_v31, %v3513_v8 }
 0x3a7   : > { %12278 = vst [vmem:[#allocation13_spill] sm:$0xff] %v9009_v63 }
 0x3a8   : > { %v3687_v27 = vpop.f32.mrf.mxu1  ;;  %3946 = vst.msk [vmem:[#allocation2 + $0xc1] sm:$0xff] %vm460_vm0, %v9009_v63 }
 0x3a9   : > { %v3688_v43 = vadd.f32 %v3687_v27, %v3599_v24  ;;  %v3425_v38 = vpop.f32.mrf.mxu2 }
 0x3aa   : > { %v3514_v27 = vpop.f32.mrf.mxu3  ;;  %v3426_v59 = vadd.f32 %v3425_v38, %v3337_v25 }
 0x3ab   : > { %v3745_v14 = vmax.f32 %v3688_v43, 0.0  ;;  %v12282_v43 = vld [vmem:[#allocation17_spill] sm:$0xff] }
 0x3ac   : > { %v3606_v6 = vpop.f32.mrf.mxu0  ;;  %v3515_v26 = vadd.f32 %v3514_v27, %v3426_v59  ;;  %v3340_v50 = vadd.f32 %v8734_v35, %v12282_v43 }
 0x3ad   : > { %v9014_v60 = vmin.f32 %v3745_v14, 6.0 }
 0x3af   : > { %12279 = vst [vmem:[#allocation14_spill] sm:$0xff] %v9014_v60  ;;  %v3809_v14 = vpack.c.bf16 %v9014_v60, %v9014_v60 }
 0x3b0   : > { %v3690_v44 = vpop.f32.mrf.mxu1  ;;  %3947 = vst.msk [vmem:[#allocation2 + $0xc9] sm:$0xff] %vm460_vm0, %v9014_v60 }
 0x3b1   : > { %v3691_v28 = vadd.f32 %v3690_v44, %v3602_v19  ;;  %v3428_v61 = vpop.f32.mrf.mxu2  ;;  %v3604_v44 = vadd.f32 %v3603_v21, %v3515_v26  ;;  %v3808_v19 = vpack.c.bf16 %v9009_v63, %v9009_v63  ;;  %v6225_v25 = vunpack.c.l.b16 %v3809_v14 }
 0x3b2   : > { %v3517_v2 = vpop.f32.mrf.mxu3  ;;  %v3429_v27 = vadd.f32 %v3428_v61, %v3340_v50 }
 0x3b3   : > { %v3746_v10 = vmax.f32 %v3691_v28, 0.0  ;;  %v12283_v28 = vld [vmem:[#allocation19_spill] sm:$0xff]  ;;  %v6224_v12 = vunpack.c.l.b16 %v3808_v19 }
 0x3b4   : > { %v3608_v11 = vpop.f32.mrf.mxu0  ;;  %v3342_v38 = vadd.f32 %v8734_v35, %v12283_v28  ;;  %v3518_v59 = vadd.f32 %v3517_v2, %v3429_v27  ;;  %v3345_v28 = vadd.f32 %v8734_v35, %v8762_v46 }
 0x3b5   : > { %v9018_v31 = vmin.f32 %v3746_v10, 6.0 }
 0x3b6   : > { %v3607_v63 = vadd.f32 %v3606_v6, %v3518_v59 }
 0x3b7   : > { %12280 = vst [vmem:[#allocation32_spill] sm:$0xff] %v9018_v31 }
 0x3b8   : > { %v3692_v4 = vpop.f32.mrf.mxu1  ;;  %3948 = vst.msk [vmem:[#allocation2 + $0xd9] sm:$0xff] %vm460_vm0, %v9018_v31 }
 0x3b9   : > { %v3693_v24 = vadd.f32 %v3692_v4, %v3604_v44  ;;  %v3430_v8 = vpop.f32.mrf.mxu2  ;;  %v6249_v44 = vpack.c.b16 %v6225_v25, %v6224_v12 }
 0x3ba   : > { %v3519_v18 = vpop.f32.mrf.mxu3  ;;  %v3431_v21 = vadd.f32 %v3430_v8, %v3342_v38 }
 0x3bb   : > { %v3747_v40 = vmax.f32 %v3693_v24, 0.0  ;;  %6272 = vrot.lane.b32.xlu1 %v6249_v44, %s7393_s27 }
 0x3bc   : > { %v3520_v26 = vadd.f32 %v3519_v18, %v3431_v21  ;;  %v3611_v24 = vpop.f32.mrf.mxu0  ;;  %v3810_v18 = vpack.c.bf16 %v9018_v31, %v9018_v31 }
 0x3bd   : > { %v9032_v4 = vmin.f32 %v3747_v40, 6.0 }
 0x3be   : > { %v3609_v60 = vadd.f32 %v3608_v11, %v3520_v26  ;;  %v6226_v46 = vunpack.c.l.b16 %v3810_v18 }
 0x3bf   : > { %12284 = vst [vmem:[#allocation15_spill] sm:$0xff] %v9032_v4  ;;  %v3811_v2 = vpack.c.bf16 %v9032_v4, %v9032_v4 }
 0x3c0   : > { %v3695_v17 = vpop.f32.mrf.mxu1  ;;  %3949 = vst.msk [vmem:[#allocation2 + $0xe1] sm:$0xff] %vm460_vm0, %v9032_v4 }
 0x3c1   : > { %v3433_v43 = vpop.f32.mrf.mxu2  ;;  %v3696_v40 = vadd.f32 %v3695_v17, %v3607_v63  ;;  %v6227_v11 = vunpack.c.l.b16 %v3811_v2 }
 0x3c2   : > { %v3522_v61 = vpop.f32.mrf.mxu3  ;;  %v3434_v8 = vadd.f32 %v3433_v43, %v3345_v28  ;;  %v3347_v43 = vadd.f32 %v8734_v35, %v8773_v56 }
 0x3c3   : > { %v3748_v38 = vmax.f32 %v3696_v40, 0.0  ;;  %v6250_v63 = vpack.c.b16 %v6227_v11, %v6226_v46 }
 0x3c4   : > { %v3523_v14 = vadd.f32 %v3522_v61, %v3434_v8  ;;  %v3613_v21 = vpop.f32.mrf.mxu0  ;;  %v3966_v61 = vld [vmem:[#allocation2] sm:$0xff]  ;;  %v3968_v8 = vld [vmem:[#allocation2 + $0x18] sm:$0xff] }
 0x3c5   : > { %v9043_v12 = vmin.f32 %v3748_v38, 6.0  ;;  %6274 = vrot.lane.b32.xlu0 %v6250_v63, %s7393_s27  ;;  %v4036_v18 = vmul.f32 %v8849_v49, %v3968_v8  ;;  %v7320_v63 = vld [vmem:[#allocation2 + $0x1] sm:$0xff] }
 0x3c6   : > { %v3612_v27 = vadd.f32 %v3611_v24, %v3523_v14  ;;  %v4003_v14 = vmul.f32 %v8846_v16, %v3966_v61  ;;  %v3350_v61 = vadd.f32 %v8734_v35, %v8780_v39 }
 0x3c7   : > { %12285 = vst [vmem:[#allocation17_spill] sm:$0xff] %v9043_v12 }
 0x3c8   : > { %v3697_v10 = vpop.f32.mrf.mxu1  ;;  %3950 = vst.msk [vmem:[#allocation2 + $0xf1] sm:$0xff] %vm460_vm0, %v9043_v12  ;;  %v4068_v46 = vadd.f32 %v4036_v18, %v4003_v14  ;;  %v3812_v14 = vpack.c.bf16 %v9043_v12, %v9043_v12  ;;  %v9074_v18 = vld [vmem:[#allocation2 + $0x31] sm:$0xff] }
 0x3c9   : > { %v3698_v50 = vadd.f32 %v3697_v10, %v3609_v60  ;;  %v3435_v24 = vpop.f32.mrf.mxu2  ;;  %v12289_v12 = vld [vmem:[#allocation9_spill] sm:$0xff] }
 0x3ca   : > { %v3524_v60 = vpop.f32.mrf.mxu3  ;;  %v3436_v40 = vadd.f32 %v3435_v24, %v3347_v43  ;;  %v3357_v30 = vadd.f32 %v8734_v35, %v12289_v12 }
 0x3cb   : > { %v3749_v6 = vmax.f32 %v3698_v50, 0.0 }
 0x3cc   : > { %v3616_v44 = vpop.f32.mrf.mxu0  ;;  %v3525_v2 = vadd.f32 %v3524_v60, %v3436_v40  ;;  %v4167_v60 = vld [vmem:[#allocation2 + $0x19] sm:$0xff] }
 0x3cd   : > { %v9045_v25 = vmin.f32 %v3749_v6, 6.0 }
 0x3ce   : > { %v3614_v11 = vadd.f32 %v3613_v21, %v3525_v2  ;;  %v4267_v2 = vmul.f32 %v8871_v15, %v4167_v60 }
 0x3cf   : > { %12286 = vst [vmem:[#allocation19_spill] sm:$0xff] %v9045_v25  ;;  %v3813_v4 = vpack.c.bf16 %v9045_v25, %v9045_v25 }
 0x3d0   : > { %v3700_v19 = vpop.f32.mrf.mxu1  ;;  %3951 = vst.msk [vmem:[#allocation2 + $0xf9] sm:$0xff] %vm460_vm0, %v9045_v25 }
 0x3d1   : > { %v3701_v17 = vadd.f32 %v3700_v19, %v3612_v27  ;;  %v9058_v19 = vld [vmem:[#allocation2 + $0x30] sm:$0xff]  ;;  %v3438_v56 = vpop.f32.mrf.mxu2  ;;  %v6229_v25 = vunpack.c.l.b16 %v3813_v4 }
 0x3d2   : > { %v3527_v28 = vpop.f32.mrf.mxu3  ;;  %v4101_v38 = vmul.f32 %v8858_v42, %v9058_v19 }
 0x3d3   : > { %v3750_v59 = vmax.f32 %v3701_v17, 0.0  ;;  %v4202_v17 = vmul.f32 %v7320_v63, %v8855_v3  ;;  %v9078_v63 = vld [vmem:[#allocation2 + $0x48] sm:$0xff] }
 0x3d4   : > { %v3618_v6 = vpop.f32.mrf.mxu0 }
 0x3d5   : > { %v9052_v26 = vmin.f32 %v3750_v59, 6.0  ;;  %v4133_v59 = vadd.f32 %v4101_v38, %v4068_v46  ;;  %v3439_v38 = vadd.f32 %v3438_v56, %v3350_v61  ;;  %v4332_v56 = vmul.f32 %v8881_v23, %v9074_v18 }
 0x3d6   : > { %v6228_v61 = vunpack.c.l.b16 %v3812_v14 }
 0x3d7   : > { %12287 = vst [vmem:[#allocation33_spill] sm:$0xff] %v9052_v26  ;;  %v4234_v40 = vadd.f32 %v4202_v17, %v4133_v59  ;;  %v4396_v17 = vld [vmem:[#allocation2 + $0x2] sm:$0xff]  ;;  %v4038_v59 = vmul.f32 %v8849_v49, %v9058_v19  ;;  %v3528_v31 = vadd.f32 %v3527_v28, %v3439_v38 }
 0x3d8   : > { %v3702_v10 = vpop.f32.mrf.mxu1  ;;  %3952 = vst.msk [vmem:[#allocation2 + $0x109] sm:$0xff] %vm460_vm0, %v9052_v26  ;;  %v4433_v4 = vmul.f32 %v8876_v54, %v4396_v17  ;;  %v12290_v28 = vld [vmem:[#allocation18_spill] sm:$0xff] }
 0x3d9   : > { %v3703_v24 = vadd.f32 %v3702_v10, %v3614_v11  ;;  %v3352_v11 = vadd.f32 %v8734_v35, %v8790_v5  ;;  %v4299_v46 = vadd.f32 %v4267_v2, %v4234_v40  ;;  %v3440_v39 = vpop.f32.mrf.mxu2  ;;  %v4005_v5 = vmul.f32 %v8846_v16, %v3968_v8 }
 0x3da   : > { %v3529_v27 = vpop.f32.mrf.mxu3  ;;  %v4103_v40 = vmul.f32 %v8858_v42, %v9078_v63  ;;  %v3446_v38 = vadd.f32 %v12290_v28, %v3357_v30  ;;  %v6251_v35 = vpack.c.b16 %v6229_v25, %v6228_v61  ;;  %v3617_v14 = vadd.f32 %v3616_v44, %v3528_v31  ;;  %v4398_v30 = vld [vmem:[#allocation2 + $0x1a] sm:$0xff] }
 0x3db   : > { %v3751_v26 = vmax.f32 %v3703_v24, 0.0  ;;  %v3441_v2 = vadd.f32 %v3440_v39, %v3352_v11  ;;  %v4364_v53 = vadd.f32 %v4332_v56, %v4299_v46  ;;  %v4070_v12 = vadd.f32 %v4038_v59, %v4005_v5  ;;  %v12291_v39 = vld [vmem:[#allocation16_spill] sm:$0xff]  ;;  %v9104_v46 = vld [vmem:[#allocation2 + $0x22] sm:$0xff] }
 0x3dc   : > { %v3621_v10 = vpop.f32.mrf.mxu0  ;;  %v4039_v11 = vmul.f32 %v8849_v49, %v8860_v22  ;;  %6276 = vrot.lane.b32.xlu1 %v6251_v35, %s7393_s27  ;;  %v4006_v31 = vmul.f32 %v8846_v16, %v8843_v47  ;;  %v4204_v61 = vmul.f32 %v8855_v3, %v4167_v60  ;;  %v4269_v35 = vmul.f32 %v8871_v15, %v9074_v18 }
 0x3dd   : > { %v9082_v24 = vmin.f32 %v3751_v26, 6.0  ;;  %v3530_v52 = vadd.f32 %v3529_v27, %v3441_v2  ;;  %v4135_v25 = vadd.f32 %v4103_v40, %v4070_v12  ;;  %v4465_v44 = vadd.f32 %v4433_v4, %v4364_v53  ;;  %v9119_v53 = vld [vmem:[#allocation2 + $0x32] sm:$0xff] }
 0x3de   : > { %v4498_v40 = vmul.f32 %v9098_v55, %v4398_v30 }
 0x3df   : > { %12288 = vst [vmem:[#allocation34_spill] sm:$0xff] %v9082_v24  ;;  %v3619_v56 = vadd.f32 %v3618_v6, %v3530_v52  ;;  %v4499_v52 = vmul.f32 %v9098_v55, %v9104_v46  ;;  %v9121_v6 = vld [vmem:[#allocation2 + $0x3a] sm:$0xff] }
 0x3e0   : > { %v3705_v50 = vpop.f32.mrf.mxu1  ;;  %3953 = vst.msk [vmem:[#allocation2 + $0x111] sm:$0xff] %vm460_vm0, %v9082_v24  ;;  %v4530_v28 = vadd.f32 %v4498_v40, %v4465_v44 }
 0x3e1   : > { %v3706_v59 = vadd.f32 %v3705_v50, %v3617_v14  ;;  %v4071_v50 = vadd.f32 %v4039_v11, %v4006_v31  ;;  %v4531_v12 = vadd.f32 %v4499_v52, %v8889_v57  ;;  %v9140_v57 = vld [vmem:[%s12165_s6] ss:$0 sm:$0xff] }
 0x3e2   : > { %v3532_v21 = vpop.f32.mrf.mxu3  ;;  %v9152_v52 = vld [vmem:[#allocation2 + $0x51] sm:$0xff] }
 0x3e3   : > { %v3533_v17 = vadd.f32 %v3532_v21, %v12291_v39  ;;  %v9114_v21 = vld [vmem:[%s12164_s5 + $0x8] ss:$0 sm:$0xff]  ;;  %v3752_v2 = vmax.f32 %v3706_v59, 0.0  ;;  %v9133_v39 = vld [vmem:[#allocation2 + $0x49] sm:$0xff] }
 0x3e4   : > { %v3623_v5 = vpop.f32.mrf.mxu0  ;;  %v4564_v11 = vmul.f32 %v9114_v21, %v9121_v6  ;;  %v4334_v44 = vmul.f32 %v8881_v23, %v9133_v39 }
 0x3e5   : > { %v3622_v27 = vadd.f32 %v3621_v10, %v3533_v17  ;;  %v4236_v10 = vadd.f32 %v4204_v61, %v4135_v25  ;;  %v9135_v17 = vmin.f32 %v3752_v2, 6.0  ;;  %v4270_v61 = vmul.f32 %v8871_v15, %v8873_v62 }
 0x3e6   : > { %v4596_v31 = vadd.f32 %v4564_v11, %v4531_v12  ;;  %v4040_v12 = vmul.f32 %v8849_v49, %v9078_v63  ;;  %v4041_v11 = vmul.f32 %v8849_v49, %v9095_v36 }
 0x3e7   : > { %12292 = vst [vmem:[#allocation9_spill] sm:$0xff] %v9135_v17 }
 0x3e8   : > { %v9065_v43 = vpop.f32.mrf.mxu1  ;;  %3954 = vst.msk [vmem:[#allocation2 + $0x121] sm:$0xff] %vm460_vm0, %v9135_v17  ;;  %v4632_v2 = vadd.f32 %v9140_v57, %v4596_v31 }
 0x3e9   : > { %v3708_v60 = vadd.f32 %v9065_v43, %v3619_v56 }
 0x3ea   : > { %v3534_v8 = vpop.f32.mrf.mxu3 }
 0x3eb   : > { %v3535_v24 = vadd.f32 %v3534_v8, %v3446_v38  ;;  %v4136_v38 = vadd.f32 %v4104_v37, %v4071_v50  ;;  %v4563_v8 = vmul.f32 %v9114_v21, %v9119_v53  ;;  %v3753_v25 = vmax.f32 %v3708_v60, 0.0 }
 0x3ec   : > { %v4335_v60 = vmul.f32 %v8881_v23, %v9152_v52 }
 0x3ed   : > { %v3624_v47 = vadd.f32 %v3623_v5, %v3535_v24  ;;  %v4205_v24 = vmul.f32 %v8855_v3, %v8868_v34  ;;  %v4595_v56 = vadd.f32 %v4563_v8, %v4530_v28  ;;  %v9146_v37 = vmin.f32 %v3753_v25, 6.0  ;;  %v9181_v25 = vld [vmem:[#allocation2 + $0x4a] sm:$0xff] }
 0x3ee   : > { %v6964_v8 = vmul.f32 -1.442695, %v4632_v2  ;;  %v4206_v2 = vmul.f32 %v8855_v3, %v9074_v18  ;;  %v9208_v18 = vpop.f32.mrf.mxu0 }
 0x3ef   : > { %v4237_v34 = vadd.f32 %v4205_v24, %v4136_v38  ;;  %12293 = vst [vmem:[#allocation18_spill] sm:$0xff] %v9146_v37  ;;  %v4631_v50 = vadd.f32 %v9140_v57, %v4595_v56  ;;  %v9165_v38 = vld [vmem:[#allocation2 + $0x60] sm:$0xff]  ;;  %v9169_v24 = vld [vmem:[#allocation2 + $0x68] sm:$0xff]  ;;  %v4008_v56 = vmul.f32 %v8846_v16, %v8860_v22 }
 0x3f0   : > { %v3710_v26 = vpop.f32.mrf.mxu1  ;;  %3955 = vst.msk [vmem:[#allocation2 + $0x129] sm:$0xff] %vm460_vm0, %v9146_v37  ;;  %v4106_v31 = vmul.f32 %v8858_v42, %v9169_v24 }
 0x3f1   : > { %v3711_v4 = vadd.f32 %v3710_v26, %v3622_v27  ;;  %v4301_v26 = vadd.f32 %v4269_v35, %v4236_v10  ;;  %v4435_v10 = vmul.f32 %v8876_v54, %v4398_v30  ;;  %12296 = vst [vmem:[#allocation36_spill] sm:$0xff] %v9165_v38  ;;  %v6963_v35 = vmul.f32 -1.442695, %v4631_v50  ;;  %v9193_v50 = vld [vmem:[#allocation2 + $0x52] sm:$0xff] }
 0x3f2   : > { %v4500_v30 = vmul.f32 %v9098_v55, %v9119_v53 }
 0x3f3   : > { %v3754_v59 = vmax.f32 %v3711_v4, 0.0  ;;  %v4366_v40 = vadd.f32 %v4334_v44, %v4301_v26  ;;  %v4007_v26 = vmul.f32 %v8846_v16, %v9058_v19  ;;  %7187 = vpow2.f32 %v6963_v35 }
 0x3f4   : > { %7189 = vpow2.f32 %v6964_v8  ;;  %v4565_v19 = vmul.f32 %v9114_v21, %v9181_v25 }
 0x3f5   : > { %v9148_v27 = vmin.f32 %v3754_v59, 6.0  ;;  %v4467_v28 = vadd.f32 %v4435_v10, %v4366_v40  ;;  %v4105_v59 = vmul.f32 %v8858_v42, %v9165_v38  ;;  %v4072_v44 = vadd.f32 %v4040_v12, %v4007_v26  ;;  %v9195_v10 = vpop.f32.mrf.mxu3 }
 0x3f6   : > { %v4566_v12 = vmul.f32 %v9114_v21, %v9193_v50 }
 0x3f7   : > { %12294 = vst [vmem:[#allocation16_spill] sm:$0xff] %v9148_v27  ;;  %v4137_v40 = vadd.f32 %v4105_v59, %v4072_v44  ;;  %v9216_v44 = vld [vmem:[#allocation2 + $0x69] sm:$0xff] }
 0x3f8   : > { %v3712_v14 = vpop.f32.mrf.mxu1  ;;  %3956 = vst.msk [vmem:[#allocation2 + $0x139] sm:$0xff] %vm460_vm0, %v9148_v27 }
 0x3f9   : > { %v3713_v43 = vadd.f32 %v3712_v14, %v3624_v47  ;;  %v4302_v47 = vadd.f32 %v4270_v61, %v4237_v34  ;;  %v4532_v34 = vadd.f32 %v4500_v30, %v4467_v28  ;;  %v4207_v28 = vmul.f32 %v8855_v3, %v8873_v62  ;;  %v7188_v35 = vpop.eup %7187 }
 0x3fa   : > { %v7190_v30 = vpop.eup %7189  ;;  %v9206_v59 = vadd.f32 1.0, %v7188_v35  ;;  %v4272_v62 = vmul.f32 %v8871_v15, %v9152_v52  ;;  %v4437_v35 = vmul.f32 %v8876_v54, %v9119_v53 }
 0x3fb   : > { %v3755_v5 = vmax.f32 %v3713_v43, 0.0  ;;  %v4367_v14 = vadd.f32 %v4335_v60, %v4302_v47  ;;  %v4436_v43 = vmul.f32 %v8876_v54, %v9104_v46  ;;  %v4073_v46 = vadd.f32 %v4041_v11, %v4008_v56  ;;  %v9212_v56 = vld [vmem:[#allocation2 + $0x61] sm:$0xff] }
 0x3fc   : > { %v4597_v47 = vadd.f32 %v4565_v19, %v4532_v34  ;;  %v9214_v34 = vadd.f32 1.0, %v7190_v30  ;;  %7191 = vrcp.f32 %v9206_v59  ;;  %v3826_v30 = vsel %vm460_vm0, %v8805_v32, 0.0 }
 0x3fd   : > { %v9163_v4 = vmin.f32 %v3755_v5, 6.0  ;;  %v4468_v61 = vadd.f32 %v4436_v43, %v4367_v14  ;;  %v4501_v5 = vmul.f32 %v9098_v55, %v9121_v6  ;;  %v4138_v22 = vadd.f32 %v4106_v31, %v4073_v46  ;;  %v3539_v19 = vpop.f32.mrf.mxu3 }
 0x3fe   : > { %v4238_v14 = vadd.f32 %v4206_v2, %v4137_v40  ;;  %v4633_v8 = vadd.f32 %v9140_v57, %v4597_v47  ;;  %v4271_v43 = vmul.f32 %v8871_v15, %v9133_v39  ;;  %v4336_v40 = vmul.f32 %v8881_v23, %v9212_v56 }
 0x3ff   : > { %12295 = vst [vmem:[#allocation35_spill] sm:$0xff] %v9163_v4  ;;  %v4533_v60 = vadd.f32 %v4501_v5, %v4468_v61  ;;  %v4239_v11 = vadd.f32 %v4207_v28, %v4138_v22  ;;  %v4337_v22 = vmul.f32 %v8881_v23, %v9216_v44  ;;  %7193 = vrcp.f32 %v9214_v34 }
 0x400   : > { %3957 = vst.msk [vmem:[#allocation2 + $0x141] sm:$0xff] %vm460_vm0, %v9163_v4  ;;  %v4303_v31 = vadd.f32 %v4271_v43, %v4238_v14  ;;  %v6965_v61 = vmul.f32 -1.442695, %v4633_v8  ;;  %v9221_v47 = vpop.f32.mrf.mxu1  ;;  %v3827_v28 = vsel %vm460_vm0, %v8815_v48, 0.0  ;;  %v4438_v14 = vmul.f32 %v8876_v54, %v9121_v6 }
 0x401   : > { %v4598_v26 = vadd.f32 %v4566_v12, %v4533_v60  ;;  %v4304_v46 = vadd.f32 %v4272_v62, %v4239_v11  ;;  %v3829_v8 = vsel %vm460_vm0, %v8824_v41, 0.0  ;;  %v3828_v62 = vadd.f32 %v3827_v28, %v3826_v30 }
 0x402   : > { %v4368_v2 = vadd.f32 %v4336_v40, %v4303_v31  ;;  %7195 = vpow2.f32 %v6965_v61  ;;  %v9237_v43 = vpop.eup %7191  ;;  %v3831_v31 = vsel %vm460_vm0, %v8832_v1, 0.0  ;;  %v3628_v61 = vpop.f32.mrf.mxu0  ;;  %v4502_v6 = vmul.f32 %v9098_v55, %v9181_v25 }
 0x403   : > { %v4634_v5 = vadd.f32 %v9140_v57, %v4598_v26  ;;  %v4369_v60 = vadd.f32 %v4337_v22, %v4304_v46  ;;  %v4430_v26 = vld [vmem:[#allocation2 + $0x19a] sm:$0xff]  ;;  %v3817_v40 = vpack.c.bf16 %v9146_v37, %v9146_v37  ;;  %v4503_v28 = vmul.f32 %v9098_v55, %v9193_v50 }
 0x404   : > { %v4469_v11 = vadd.f32 %v4437_v35, %v4368_v2  ;;  %v3830_v2 = vadd.f32 %v3829_v8, %v3828_v62  ;;  %v9251_v35 = vld [vmem:[#allocation2 + $0x62] sm:$0xff]  ;;  %v4792_v48 = vmul.f32 %v9237_v43, %v9206_v59  ;;  %vm4796_vm5 = vweird.f32 %v9206_v59 }
 0x405   : > { %v6966_v12 = vmul.f32 -1.442695, %v4634_v5  ;;  %v4470_v53 = vadd.f32 %v4438_v14, %v4369_v60  ;;  %v9241_v46 = vpop.eup %7193  ;;  %v3816_v5 = vpack.c.bf16 %v9135_v17, %v9135_v17  ;;  %v9253_v60 = vpop.f32.mrf.mxu3  ;;  %v9256_v14 = vmul.f32 %v9114_v21, %v4430_v26  ;;  %v9270_v26 = vld [vmem:[#allocation2 + $0x78] sm:$0xff] }
 0x406   : > { %v4534_v30 = vadd.f32 %v4502_v6, %v4469_v11  ;;  %v9260_v41 = vadd.f32 %v3831_v31, %v3830_v2  ;;  %v4807_v8 = vmul.f32 %v9241_v46, %v9214_v34  ;;  %v4567_v37 = vmul.f32 %v9114_v21, %v9251_v35 }
 0x407   : > { %7197 = vpow2.f32 %v6966_v12  ;;  %12297 = vst [vmem:[#allocation37_spill] sm:$0xff] %v9256_v14  ;;  %v9258_v12 = vld [vmem:[#allocation2 + $0x6a] sm:$0xff]  ;;  %v4535_v62 = vadd.f32 %v4503_v28, %v4470_v53  ;;  %v6232_v11 = vunpack.c.l.b16 %v3816_v5  ;;  %v6233_v6 = vunpack.c.l.b16 %v3817_v40 }
 0x408   : > { %v7196_v22 = vpop.eup %7195  ;;  %12298 = vst [vmem:[#allocation38_spill] sm:$0xff] %v9258_v12  ;;  %v3717_v1 = vpop.f32.mrf.mxu1  ;;  %v4042_v31 = vmul.f32 %v8849_v49, %v9165_v38  ;;  %v4568_v2 = vmul.f32 %v9114_v21, %v9258_v12  ;;  %v12299_v14 = vld [vmem:[#allocation20_spill] sm:$0xff]  ;;  %v3540_v53 = vadd.f32 %v3539_v19, %v8764_v0  ;;  %v4802_v28 = vand.u32 2147483648, %v9206_v59 }
 0x409   : > { %v9266_v32 = vadd.f32 1.0, %v7196_v22  ;;  %v3538_v17 = vadd.f32 %v9195_v10, %v12299_v14  ;;  %v4599_v51 = vadd.f32 %v4567_v37, %v4534_v30  ;;  %v6253_v9 = vpack.c.b16 %v6233_v6, %v6232_v11 }
 0x40a   : > { %v3819_v5 = vpack.c.bf16 %v9163_v4, %v9163_v4  ;;  %v4009_v40 = vmul.f32 %v8846_v16, %v9078_v63  ;;  %v4600_v33 = vadd.f32 %v4568_v2, %v4535_v62  ;;  %v4107_v12 = vmul.f32 %v8858_v42, %v9270_v26  ;;  %v3631_v62 = vpop.f32.mrf.mxu0 }
 0x40b   : > { %v3627_v38 = vadd.f32 %v9208_v18, %v3538_v17  ;;  %v4793_v10 = vsub.f32 1.0, %v4792_v48  ;;  %v4800_v0 = vand.u32 2147483647, %v9206_v59  ;;  %6280 = vrot.lane.b32.xlu0 %v6253_v9, %s7393_s27  ;;  %v3629_v19 = vadd.f32 %v3628_v61, %v3540_v53 }
 0x40c   : > { %v3818_v37 = vpack.c.bf16 %v9148_v27, %v9148_v27  ;;  %v4808_v14 = vsub.f32 1.0, %v4807_v8  ;;  %7199 = vrcp.f32 %v9266_v32  ;;  %v4074_v63 = vadd.f32 %v4042_v31, %v4009_v40 }
 0x40d   : > { %v7198_v22 = vpop.eup %7197  ;;  %v9294_v11 = vor.u32 1.1754944e-38, %v4802_v28  ;;  %v4635_v17 = vadd.f32 %v9140_v57, %v4599_v51  ;;  %v3716_v48 = vadd.f32 %v9221_v47, %v3627_v38  ;;  %v6235_v18 = vunpack.c.l.b16 %v3819_v5  ;;  %v3544_v6 = vpop.f32.mrf.mxu3  ;;  %v9310_v5 = vld [vmem:[#allocation2 + $0x80] sm:$0xff] }
 0x40e   : > { %v9291_v30 = vadd.f32 1.0, %v7198_v22  ;;  %vm4797_vm6 = vweird.f32 %v9237_v43  ;;  %v3833_v9 = vsel %vm460_vm0, %v8904_v13, 0.0  ;;  %v4636_v61 = vadd.f32 %v9140_v57, %v4600_v33 }
 0x40f   : > { %v4139_v8 = vadd.f32 %v4107_v12, %v4074_v63  ;;  %v4794_v31 = vmul.f32 %v9237_v43, %v4793_v10  ;;  %v3756_v2 = vmax.f32 %v3716_v48, 0.0  ;;  %v3718_v22 = vadd.f32 %v3717_v1, %v3629_v19  ;;  %vm9352_vm9 = vmor %vm4796_vm5, %vm4797_vm6 }
 0x410   : > { %v3720_v53 = vpop.f32.mrf.mxu1  ;;  %v6234_v51 = vunpack.c.l.b16 %v3818_v37  ;;  %v4809_v38 = vmul.f32 %v9241_v46, %v4808_v14  ;;  %v4208_v47 = vmul.f32 %v8855_v3, %v9133_v39  ;;  %7201 = vrcp.f32 %v9291_v30 }
 0x411   : > { %v4043_v28 = vmul.f32 %v8849_v49, %v9169_v24  ;;  %v6967_v33 = vmul.f32 -1.442695, %v4635_v17  ;;  %v9312_v12 = vmin.f32 %v3756_v2, 6.0  ;;  %v3757_v40 = vmax.f32 %v3718_v22, 0.0  ;;  %v9341_v22 = vld [vmem:[#allocation2 + $0x79] sm:$0xff] }
 0x412   : > { %v6254_v10 = vpack.c.b16 %v6235_v18, %v6234_v51  ;;  %v9314_v63 = vpop.eup %7199  ;;  %vm9316_vm7 = vcmp.eq.f32.partialorder %v4800_v0, 8.507059e+37  ;;  %v4815_v39 = vand.u32 2147483647, %v9214_v34  ;;  %v6968_v19 = vmul.f32 -1.442695, %v4636_v61 }
 0x413   : > { %12300 = vst [vmem:[#allocation20_spill] sm:$0xff] %v9312_v12  ;;  %v4240_v37 = vadd.f32 %v4208_v47, %v4139_v8  ;;  %v3543_v14 = vadd.f32 %v9253_v60, %v8771_v58  ;;  %v4817_v48 = vand.u32 2147483648, %v9214_v34  ;;  %v4010_v17 = vmul.f32 %v8846_v16, %v9095_v36 }
 0x414   : > { %v4108_v18 = vmul.f32 %v8858_v42, %v9310_v5  ;;  %3958 = vst.msk [vmem:[#allocation2 + $0x151] sm:$0xff] %vm460_vm0, %v9312_v12  ;;  %6282 = vrot.lane.b32.xlu1 %v6254_v10, %s7393_s27  ;;  %v3545_v0 = vadd.f32 %v3544_v6, %v8778_v7  ;;  %v4795_v61 = vadd.f32 %v9237_v43, %v4794_v31  ;;  %vm4812_vm8 = vweird.f32 %v9241_v46  ;;  %v3633_v6 = vpop.f32.mrf.mxu0 }
 0x415   : > { %v4273_v58 = vmul.f32 %v8871_v15, %v9212_v56  ;;  %v9336_v60 = vmin.f32 %v3757_v40, 6.0  ;;  %v4810_v36 = vadd.f32 %v9241_v46, %v4809_v38  ;;  %v4822_v8 = vmul.f32 %v9314_v63, %v9266_v32  ;;  %v3547_v10 = vpop.f32.mrf.mxu3 }
 0x416   : > { %v4075_v2 = vadd.f32 %v4043_v28, %v4010_v17  ;;  %7203 = vpow2.f32 %v6967_v33  ;;  %v9343_v51 = vpop.eup %7201  ;;  %v3834_v7 = vadd.f32 %v3833_v9, %v9260_v41  ;;  %v3632_v47 = vadd.f32 %v3631_v62, %v3543_v14 }
 0x417   : > { %12303 = vst [vmem:[#allocation39_spill] sm:$0xff] %v9336_v60  ;;  %7205 = vpow2.f32 %v6968_v19  ;;  %v4305_v31 = vadd.f32 %v4273_v58, %v4240_v37  ;;  %vm4811_vm10 = vweird.f32 %v9214_v34  ;;  %v3835_v41 = vsel %vm460_vm0, %v8914_v20, 0.0 }
 0x418   : > { %3959 = vst.msk [vmem:[#allocation2 + $0x159] sm:$0xff] %vm460_vm0, %v9336_v60  ;;  %v4140_v9 = vadd.f32 %v4108_v18, %v4075_v2  ;;  %v3634_v28 = vadd.f32 %v3633_v6, %v3545_v0  ;;  %v4799_v33 = vsel %vm9352_vm9, %v9237_v43, %v4795_v61  ;;  %vm9364_vm11 = vmor %vm4811_vm10, %vm4812_vm8  ;;  %vm9368_vm12 = vcmp.eq.f32.partialorder %v4815_v39, 8.507059e+37  ;;  %v3722_v17 = vpop.f32.mrf.mxu1 }
 0x419   : > { %v4818_v34 = vor.u32 1.1754944e-38, %v4817_v48  ;;  %v4338_v40 = vmul.f32 %v8881_v23, %v9341_v22  ;;  %v4814_v19 = vsel %vm9364_vm11, %v9241_v46, %v4810_v36  ;;  %v4209_v43 = vmul.f32 %v8855_v3, %v9152_v52 }
 0x41a   : > { %v4823_v37 = vsub.f32 1.0, %v4822_v8  ;;  %v4832_v14 = vand.u32 2147483648, %v9266_v32  ;;  %v3836_v39 = vadd.f32 %v3835_v41, %v3834_v7  ;;  %v4837_v18 = vmul.f32 %v9343_v51, %v9291_v30  ;;  %v9406_v41 = vld [vmem:[#allocation2 + $0x81] sm:$0xff] }
 0x41b   : > { %v4370_v48 = vadd.f32 %v4338_v40, %v4305_v31  ;;  %v3721_v0 = vadd.f32 %v3720_v53, %v3632_v47  ;;  %v9385_v58 = vsel %vm9316_vm7, %v9294_v11, %v4799_v33  ;;  %v4439_v46 = vmul.f32 %v8876_v54, %v9181_v25 }
 0x41c   : > { %v7204_v61 = vpop.eup %7203  ;;  %12310 = vst [vmem:[#allocation40_spill] sm:$0xff] %v9385_v58  ;;  %v4241_v52 = vadd.f32 %v4209_v43, %v4140_v9  ;;  %v3723_v36 = vadd.f32 %v3722_v17, %v3634_v28  ;;  %v9391_v2 = vsel %vm9368_vm12, %v4818_v34, %v4814_v19  ;;  %v4440_v7 = vmul.f32 %v8876_v54, %v9193_v50  ;;  %v3636_v9 = vpop.f32.mrf.mxu0 }
 0x41d   : > { %v7206_v8 = vpop.eup %7205  ;;  %12311 = vst [vmem:[#allocation41_spill] sm:$0xff] %v9391_v2  ;;  %vm4826_vm13 = vweird.f32 %v9266_v32  ;;  %v4830_v53 = vand.u32 2147483647, %v9266_v32  ;;  %v4824_v11 = vmul.f32 %v9314_v63, %v4823_v37  ;;  %v9398_v1 = vor.u32 1.1754944e-38, %v4832_v14 }
 0x41e   : > { %v3837_v25 = vsel %vm460_vm0, %v8933_v45, 0.0  ;;  %v4274_v6 = vmul.f32 %v8871_v15, %v9216_v44  ;;  %v4838_v31 = vsub.f32 1.0, %v4837_v18  ;;  %v9404_v47 = vadd.f32 1.0, %v7204_v61 }
 0x41f   : > { %v4471_v38 = vadd.f32 %v4439_v46, %v4370_v48  ;;  %v3758_v50 = vmax.f32 %v3721_v0, 0.0  ;;  %vm4827_vm14 = vweird.f32 %v9314_v63  ;;  %v9409_v28 = vadd.f32 1.0, %v7206_v8  ;;  %v9427_v48 = vld [vmem:[#allocation2 + $0x7a] sm:$0xff]  ;;  %v3549_v46 = vpop.f32.mrf.mxu3  ;;  %v9436_v8 = vld [vmem:[#allocation2 + $0x90] sm:$0xff] }
 0x420   : > { %v4306_v33 = vadd.f32 %v4274_v6, %v4241_v52  ;;  %v3759_v62 = vmax.f32 %v3723_v36, 0.0  ;;  %v4504_v59 = vmul.f32 %v9098_v55, %v9251_v35  ;;  %v3820_v34 = vpack.c.bf16 %v9312_v12, %v9312_v12  ;;  %v3725_v0 = vpop.f32.mrf.mxu1  ;;  %vm9448_vm1 = vmor %vm4826_vm13, %vm4827_vm14 }
 0x421   : > { %v3821_v40 = vpack.c.bf16 %v9336_v60, %v9336_v60  ;;  %v3548_v19 = vadd.f32 %v3547_v10, %v8786_v29  ;;  %v4825_v43 = vadd.f32 %v9314_v63, %v4824_v11  ;;  %vm9419_vm15 = vcmp.eq.f32.partialorder %v4830_v53, 8.507059e+37 }
 0x422   : > { %v4845_v14 = vand.u32 2147483647, %v9291_v30  ;;  %v4847_v17 = vand.u32 2147483648, %v9291_v30  ;;  %v4339_v18 = vmul.f32 %v8881_v23, %v9406_v41  ;;  %v4839_v61 = vmul.f32 %v9343_v51, %v4838_v31 }
 0x423   : > { %7207 = vrcp.f32 %v9404_v47  ;;  %v4536_v29 = vadd.f32 %v4504_v59, %v4471_v38  ;;  %v9431_v10 = vmin.f32 %v3758_v50, 6.0  ;;  %v4044_v52 = vmul.f32 %v8849_v49, %v9270_v26 }
 0x424   : > { %7209 = vrcp.f32 %v9409_v28  ;;  %v4371_v36 = vadd.f32 %v4339_v18, %v4306_v33  ;;  %v9438_v53 = vmin.f32 %v3759_v62, 6.0  ;;  %v4569_v11 = vmul.f32 %v9114_v21, %v9427_v48  ;;  %v12318_v62 = vld [vmem:[#allocation36_spill] sm:$0xff]  ;;  %v12319_v18 = vld [vmem:[#allocation29_spill] sm:$0xff] }
 0x425   : > { %12314 = vst [vmem:[#allocation42_spill] sm:$0xff] %v9431_v10  ;;  %v6236_v6 = vunpack.c.l.b16 %v3820_v34  ;;  %v6237_v31 = vunpack.c.l.b16 %v3821_v40  ;;  %v3637_v38 = vadd.f32 %v3636_v9, %v3548_v19  ;;  %v3838_v33 = vadd.f32 %v3837_v25, %v3836_v39  ;;  %v12320_v34 = vld [vmem:[#allocation21_spill] sm:$0xff] }
 0x426   : > { %12315 = vst [vmem:[#allocation43_spill] sm:$0xff] %v9438_v53  ;;  %v4011_v59 = vmul.f32 %v8846_v16, %v12318_v62  ;;  %v3839_v45 = vsel %vm460_vm0, %v12319_v18, 0.0  ;;  %v3550_v9 = vadd.f32 %v3549_v46, %v12320_v34  ;;  %v4829_v32 = vsel %vm9448_vm1, %v9314_v63, %v4825_v43  ;;  %v12330_v46 = vld [vmem:[#allocation8_spill] sm:$0xff] }
 0x427   : > { %3960 = vst.msk [vmem:[#allocation2 + $0x169] sm:$0xff] %vm460_vm0, %v9431_v10  ;;  %v4601_v40 = vadd.f32 %v4569_v11, %v4536_v29  ;;  %v4109_v19 = vmul.f32 %v8858_v42, %v9436_v8  ;;  %v6255_v39 = vpack.c.b16 %v6237_v31, %v6236_v6  ;;  %v4840_v25 = vadd.f32 %v9343_v51, %v4839_v61  ;;  %v3638_v29 = vpop.f32.mrf.mxu0 }
 0x428   : > { %3961 = vst.msk [vmem:[#allocation2 + $0x171] sm:$0xff] %vm460_vm0, %v9438_v53  ;;  %vm4842_vm2 = vweird.f32 %v9343_v51  ;;  %v4472_v62 = vadd.f32 %v4440_v7, %v4371_v36  ;;  %v3726_v18 = vadd.f32 %v3725_v0, %v3637_v38  ;;  %vm4841_vm3 = vweird.f32 %v9291_v30  ;;  %v12323_v7 = vld [vmem:[#allocation38_spill] sm:$0xff] }
 0x429   : > { %v9466_v20 = vpop.eup %7207  ;;  %vm9469_vm4 = vcmp.eq.f32.partialorder %v4845_v14, 8.507059e+37  ;;  %v4848_v63 = vor.u32 1.1754944e-38, %v4847_v17  ;;  %v4076_v43 = vadd.f32 %v4044_v52, %v4011_v59  ;;  %6284 = vrot.lane.b32.xlu0 %v6255_v39, %s7393_s27  ;;  %v4210_v61 = vmul.f32 %v8855_v3, %v9212_v56  ;;  %vm9487_vm5 = vmor %vm4841_vm3, %vm4842_vm2  ;;  %v9491_v52 = vld [vmem:[#allocation2 + $0x82] sm:$0xff]  ;;  %v3727_v59 = vpop.f32.mrf.mxu1 }
 0x42a   : > { %v9474_v11 = vpop.eup %7209  ;;  %v4505_v0 = vmul.f32 %v9098_v55, %v12323_v7  ;;  %v3760_v36 = vmax.f32 %v3726_v18, 0.0  ;;  %v3639_v6 = vadd.f32 %v3638_v29, %v3550_v9  ;;  %v9483_v30 = vsel %vm9419_vm15, %v9398_v1, %v4829_v32 }
 0x42b   : > { %12324 = vst [vmem:[#allocation36_spill] sm:$0xff] %v9483_v30  ;;  %v3840_v17 = vadd.f32 %v3839_v45, %v3838_v33  ;;  %v4637_v56 = vadd.f32 %v9140_v57, %v4601_v40  ;;  %v4141_v31 = vadd.f32 %v4109_v19, %v4076_v43  ;;  %v4844_v38 = vsel %vm9487_vm5, %v9343_v51, %v4840_v25  ;;  %v12328_v33 = vld [vmem:[#allocation30_spill] sm:$0xff] }
 0x42c   : > { %v4012_v1 = vmul.f32 %v8846_v16, %v9169_v24  ;;  %v4537_v37 = vadd.f32 %v4505_v0, %v4472_v62  ;;  %v9499_v50 = vmin.f32 %v3760_v36, 6.0  ;;  %v9503_v18 = vmul.f32 %v8855_v3, %v9216_v44 }
 0x42d   : > { %v4852_v45 = vmul.f32 %v9466_v20, %v9404_v47  ;;  %v3841_v34 = vsel %vm460_vm0, %v12328_v33, 0.0  ;;  %v3728_v9 = vadd.f32 %v3727_v59, %v3639_v6  ;;  %v9511_v51 = vmul.f32 %v8876_v54, %v9251_v35 }
 0x42e   : > { %12327 = vst [vmem:[#allocation21_spill] sm:$0xff] %v9499_v50  ;;  %v4862_v24 = vand.u32 2147483648, %v9404_v47  ;;  %v4867_v32 = vmul.f32 %v9474_v11, %v9409_v28  ;;  %v4570_v44 = vmul.f32 %v9114_v21, %v9491_v52  ;;  %v9522_v40 = vsel %vm9469_vm4, %v4848_v63, %v4844_v38 }
 0x42f   : > { %3962 = vst.msk [vmem:[#allocation2 + $0x181] sm:$0xff] %vm460_vm0, %v9499_v50  ;;  %v9526_v19 = vmul.f32 %v8876_v54, %v12323_v7  ;;  %v6969_v35 = vmul.f32 -1.442695, %v4637_v56  ;;  %v4242_v39 = vadd.f32 %v4210_v61, %v4141_v31  ;;  %v4860_v25 = vand.u32 2147483647, %v9404_v47  ;;  %v9545_v56 = vld [vmem:[#allocation2 + $0x98] sm:$0xff] }
 0x430   : > { %12329 = vst [vmem:[#allocation38_spill] sm:$0xff] %v9522_v40  ;;  %v3842_v62 = vadd.f32 %v3841_v34, %v3840_v17  ;;  %v4013_v43 = vmul.f32 %v8846_v16, %v9270_v26  ;;  %v4602_v29 = vadd.f32 %v4570_v44, %v4537_v37  ;;  %v4853_v0 = vsub.f32 1.0, %v4852_v45  ;;  %v9543_v26 = vld [vmem:[#allocation2 + $0x91] sm:$0xff]  ;;  %v12331_v31 = vld [vmem:[#allocation10_spill] sm:$0xff] }
 0x431   : > { %v4275_v36 = vmul.f32 %v8871_v15, %v9341_v22  ;;  %v3843_v63 = vsel %vm460_vm0, %v12330_v46, 0.0  ;;  %v3761_v6 = vmax.f32 %v3728_v9, 0.0  ;;  %v9535_v14 = vor.u32 1.1754944e-38, %v4862_v24  ;;  %v9573_v46 = vld [vmem:[#allocation2 + $0xb0] sm:$0xff] }
 0x432   : > { %v4868_v7 = vsub.f32 1.0, %v4867_v32  ;;  %v9539_v61 = vmul.f32 %v8855_v3, %v9341_v22  ;;  %v4045_v17 = vmul.f32 %v8849_v49, %v9310_v5  ;;  %7211 = vpow2.f32 %v6969_v35  ;;  %v12333_v32 = vld [vmem:[#allocation11_spill] sm:$0xff] }
 0x433   : > { %v3845_v38 = vsel %vm460_vm0, %v12331_v31, 0.0  ;;  %v4307_v37 = vadd.f32 %v4275_v36, %v4242_v39  ;;  %v9549_v59 = vmin.f32 %v3761_v6, 6.0  ;;  %vm4857_vm6 = vweird.f32 %v9466_v20  ;;  %v12334_v6 = vld [vmem:[#allocation12_spill] sm:$0xff]  ;;  %v9571_v31 = vld [vmem:[#allocation2 + $0xa8] sm:$0xff] }
 0x434   : > { %v4877_v45 = vand.u32 2147483648, %v9409_v28  ;;  %v3844_v22 = vadd.f32 %v3843_v63, %v3842_v62  ;;  %v4638_v34 = vadd.f32 %v9140_v57, %v4602_v29  ;;  %v4854_v9 = vmul.f32 %v9466_v20, %v4853_v0 }
 0x435   : > { %12332 = vst [vmem:[#allocation44_spill] sm:$0xff] %v9549_v59  ;;  %vm4856_vm7 = vweird.f32 %v9404_v47  ;;  %v4340_v24 = vmul.f32 %v8881_v23, %v9543_v26  ;;  %v3847_v44 = vsel %vm460_vm0, %v12333_v32, 0.0  ;;  %v4110_v35 = vmul.f32 %v8858_v42, %v9545_v56 }
 0x436   : > { %3963 = vst.msk [vmem:[#allocation2 + $0x189] sm:$0xff] %vm460_vm0, %v9549_v59  ;;  %vm4871_vm8 = vweird.f32 %v9409_v28  ;;  %v4875_v39 = vand.u32 2147483647, %v9409_v28  ;;  %v4077_v62 = vadd.f32 %v4045_v17, %v4012_v1  ;;  %v3846_v29 = vadd.f32 %v3845_v38, %v3844_v22  ;;  %vm9612_vm12 = vmor %vm4856_vm7, %vm4857_vm6  ;;  %v9645_v28 = vld [vmem:[#allocation2 + $0x99] sm:$0xff] }
 0x437   : > { %v4869_v0 = vmul.f32 %v9474_v11, %v4868_v7  ;;  %v4046_v36 = vmul.f32 %v8849_v49, %v9436_v8  ;;  %v4372_v63 = vadd.f32 %v4340_v24, %v4307_v37  ;;  %v3849_v32 = vsel %vm460_vm0, %v12334_v6, 0.0  ;;  %v12337_v24 = vld [vmem:[#allocation31_spill] sm:$0xff] }
 0x438   : > { %v4014_v33 = vmul.f32 %v8846_v16, %v9310_v5  ;;  %v6970_v13 = vmul.f32 -1.442695, %v4638_v34  ;;  %v3848_v40 = vadd.f32 %v3847_v44, %v3846_v29  ;;  %v4047_v1 = vmul.f32 %v8849_v49, %v9545_v56  ;;  %v7212_v7 = vpop.eup %7211 }
 0x439   : > { %v4855_v17 = vadd.f32 %v9466_v20, %v4854_v9  ;;  %vm9580_vm9 = vcmp.eq.f32.partialorder %v4860_v25, 8.507059e+37  ;;  %v4878_v37 = vor.u32 1.1754944e-38, %v4877_v45  ;;  %v4142_v22 = vadd.f32 %v4110_v35, %v4077_v62  ;;  %v12340_v62 = vld [vmem:[#allocation13_spill] sm:$0xff] }
 0x43a   : > { %v3851_v6 = vsel %vm460_vm0, %v12337_v24, 0.0  ;;  %vm4872_vm10 = vweird.f32 %v9474_v11  ;;  %vm9587_vm11 = vcmp.eq.f32.partialorder %v4875_v39, 8.507059e+37  ;;  %v3850_v34 = vadd.f32 %v3849_v32, %v3848_v40 }
 0x43b   : > { %v4111_v44 = vmul.f32 %v8858_v42, %v9571_v31  ;;  %v4112_v25 = vmul.f32 %v8858_v42, %v9573_v46  ;;  %v4870_v9 = vadd.f32 %v9474_v11, %v4869_v0  ;;  %v4078_v45 = vadd.f32 %v4046_v36, %v4013_v43  ;;  %v12341_v0 = vld [vmem:[#allocation14_spill] sm:$0xff]  ;;  %vm9627_vm13 = vmor %vm4871_vm8, %vm4872_vm10 }
 0x43c   : > { %v4473_v35 = vadd.f32 %v9511_v51, %v4372_v63  ;;  %v3853_v29 = vsel %vm460_vm0, %v12340_v62, 0.0  ;;  %7213 = vpow2.f32 %v6970_v13  ;;  %v9599_v39 = vadd.f32 1.0, %v7212_v7  ;;  %v9618_v51 = vld [vmem:[#allocation2 + $0x92] sm:$0xff] }
 0x43d   : > { %v4079_v24 = vadd.f32 %v4047_v1, %v4014_v33  ;;  %v3852_v30 = vadd.f32 %v3851_v6, %v3850_v34  ;;  %v4213_v40 = vmul.f32 %v8855_v3, %v9406_v41  ;;  %v4506_v32 = vmul.f32 %v9098_v55, %v9427_v48  ;;  %v12346_v7 = vld [vmem:[#allocation32_spill] sm:$0xff] }
 0x43e   : > { %v4243_v2 = vadd.f32 %v9503_v18, %v4142_v22  ;;  %v3855_v43 = vsel %vm460_vm0, %v12341_v0, 0.0  ;;  %v4276_v33 = vmul.f32 %v8871_v15, %v9406_v41  ;;  %v4143_v36 = vadd.f32 %v4111_v44, %v4078_v45  ;;  %v12347_v44 = vld [vmem:[#allocation15_spill] sm:$0xff] }
 0x43f   : > { %v4144_v63 = vadd.f32 %v4112_v25, %v4079_v24  ;;  %v3854_v6 = vadd.f32 %v3853_v29, %v3852_v30  ;;  %v4859_v18 = vsel %vm9612_vm12, %v9466_v20, %v4855_v17  ;;  %v9633_v41 = vmul.f32 %v8876_v54, %v9427_v48 }
 0x440   : > { %v4538_v1 = vadd.f32 %v4506_v32, %v4473_v35  ;;  %v3857_v30 = vsel %vm460_vm0, %v12346_v7, 0.0  ;;  %v4874_v20 = vsel %vm9627_vm13, %v9474_v11, %v4870_v9  ;;  %v9642_v17 = vmul.f32 %v8876_v54, %v9491_v52 }
 0x441   : > { %7215 = vrcp.f32 %v9599_v39  ;;  %v3856_v22 = vadd.f32 %v3855_v43, %v3854_v6  ;;  %v4507_v48 = vmul.f32 %v9098_v55, %v9491_v52  ;;  %v4308_v24 = vadd.f32 %v4276_v33, %v4243_v2  ;;  %v12350_v43 = vld [vmem:[#allocation17_spill] sm:$0xff]  ;;  %v9681_v6 = vld [vmem:[#allocation2 + $0xc0] sm:$0xff] }
 0x442   : > { %v4571_v34 = vmul.f32 %v9114_v21, %v9618_v51  ;;  %v3859_v25 = vsel %vm460_vm0, %v12347_v44, 0.0  ;;  %v7214_v11 = vpop.eup %7213  ;;  %v9656_v9 = vsel %vm9580_vm9, %v9535_v14, %v4859_v18  ;;  %v4244_v45 = vadd.f32 %v9539_v61, %v4143_v36  ;;  %v9677_v36 = vld [vmem:[#allocation2 + $0xa9] sm:$0xff] }
 0x443   : > { %12348 = vst [vmem:[#allocation45_spill] sm:$0xff] %v9656_v9  ;;  %v4245_v35 = vadd.f32 %v4213_v40, %v4144_v63  ;;  %v3858_v29 = vadd.f32 %v3857_v30, %v3856_v22  ;;  %v9661_v52 = vsel %vm9587_vm11, %v4878_v37, %v4874_v20  ;;  %v4341_v2 = vmul.f32 %v8881_v23, %v9645_v28  ;;  %v9679_v63 = vld [vmem:[#allocation2 + $0xb1] sm:$0xff] }
 0x444   : > { %12349 = vst [vmem:[#allocation46_spill] sm:$0xff] %v9661_v52  ;;  %v4603_v32 = vadd.f32 %v4571_v34, %v4538_v1  ;;  %v3861_v13 = vsel %vm460_vm0, %v12350_v43, 0.0  ;;  %v4015_v38 = vmul.f32 %v8846_v16, %v9436_v8  ;;  %v4277_v14 = vmul.f32 %v8871_v15, %v9543_v26  ;;  %v12351_v8 = vld [vmem:[#allocation19_spill] sm:$0xff]  ;;  %v9747_v9 = vld [vmem:[#allocation2 + $0xb2] sm:$0xff] }
 0x445   : > { %v4278_v61 = vmul.f32 %v8871_v15, %v9645_v28  ;;  %v3860_v40 = vadd.f32 %v3859_v25, %v3858_v29  ;;  %v9673_v5 = vadd.f32 1.0, %v7214_v11  ;;  %v4214_v37 = vmul.f32 %v8855_v3, %v9543_v26  ;;  %v12352_v25 = vld [vmem:[#allocation33_spill] sm:$0xff] }
 0x446   : > { %v4373_v33 = vadd.f32 %v4341_v2, %v4308_v24  ;;  %v3863_v18 = vsel %vm460_vm0, %v12351_v8, 0.0  ;;  %v4048_v1 = vmul.f32 %v8849_v49, %v9571_v31  ;;  %v4309_v30 = vadd.f32 %v4277_v14, %v4244_v45  ;;  %v9695_v29 = vld [vmem:[#allocation2 + $0x9a] sm:$0xff] }
 0x447   : > { %v9685_v47 = vpop.eup %7215  ;;  %v4310_v20 = vadd.f32 %v4278_v61, %v4245_v35  ;;  %v3862_v22 = vadd.f32 %v3861_v13, %v3860_v40  ;;  %v4016_v24 = vmul.f32 %v8846_v16, %v9545_v56  ;;  %v4639_v34 = vadd.f32 %v9140_v57, %v4603_v32  ;;  %v12353_v14 = vld [vmem:[#allocation34_spill] sm:$0xff] }
 0x448   : > { %v3865_v11 = vsel %vm460_vm0, %v12352_v25, 0.0  ;;  %v4342_v2 = vmul.f32 %v8881_v23, %v9677_v36  ;;  %v4343_v45 = vmul.f32 %v8881_v23, %v9679_v63  ;;  %v4113_v35 = vmul.f32 %v8858_v42, %v9681_v6 }
 0x449   : > { %v3864_v13 = vadd.f32 %v3863_v18, %v3862_v22  ;;  %v9705_v56 = vmul.f32 %v9685_v47, %v9599_v39  ;;  %7217 = vrcp.f32 %v9673_v5  ;;  %v4474_v32 = vadd.f32 %v9526_v19, %v4373_v33  ;;  %v12354_v22 = vld [vmem:[#allocation9_spill] sm:$0xff] }
 0x44a   : > { %v3867_v61 = vsel %vm460_vm0, %v12353_v14, 0.0  ;;  %v4080_v40 = vadd.f32 %v4048_v1, %v4015_v38  ;;  %v4374_v26 = vadd.f32 %v4342_v2, %v4309_v30  ;;  %v4375_v8 = vadd.f32 %v4343_v45, %v4310_v20  ;;  %v12355_v2 = vld [vmem:[#allocation18_spill] sm:$0xff] }
 0x44b   : > { %v3866_v43 = vadd.f32 %v3865_v11, %v3864_v13  ;;  %v4508_v44 = vmul.f32 %v9098_v55, %v9618_v51  ;;  %v4509_v18 = vmul.f32 %v9098_v55, %v9695_v29  ;;  %v3869_v7 = vsel %vm460_vm0, %v12354_v22, 0.0  ;;  %v9723_v11 = vld [vmem:[#allocation2 + $0xc8] sm:$0xff] }
 0x44c   : > { %v3822_v0 = vpack.c.bf16 %v9431_v10, %v9431_v10  ;;  %v4572_v19 = vmul.f32 %v9114_v21, %v9695_v29  ;;  %v6971_v33 = vmul.f32 -1.442695, %v4639_v34  ;;  %v4145_v38 = vadd.f32 %v4113_v35, %v4080_v40 }
 0x44d   : > { %v3868_v1 = vadd.f32 %v3867_v61, %v3866_v43  ;;  %v4539_v30 = vadd.f32 %v4507_v48, %v4474_v32  ;;  %v4049_v20 = vmul.f32 %v8849_v49, %v9573_v46  ;;  %v3871_v45 = vsel %vm460_vm0, %v12355_v2, 0.0 }
 0x44e   : > { %v3823_v13 = vpack.c.bf16 %v9438_v53, %v9438_v53  ;;  %v4475_v22 = vadd.f32 %v9633_v41, %v4374_v26  ;;  %v4476_v62 = vadd.f32 %v9642_v17, %v4375_v8  ;;  %v3873_v43 = vsel %vm460_vm0, %v9148_v27, 0.0  ;;  %v9743_v8 = vld [vmem:[#allocation2 + $0xaa] sm:$0xff] }
 0x44f   : > { %v3870_v52 = vadd.f32 %v3869_v7, %v3868_v1  ;;  %v9733_v48 = vpop.eup %7217  ;;  %v6238_v34 = vunpack.c.l.b16 %v3822_v0  ;;  %v3824_v32 = vpack.c.bf16 %v9499_v50, %v9499_v50  ;;  %v3825_v61 = vpack.c.bf16 %v9549_v59, %v9549_v59 }
 0x450   : > { %v6239_v35 = vunpack.c.l.b16 %v3823_v13  ;;  %v4279_v40 = vmul.f32 %v8871_v15, %v9677_v36  ;;  %v4246_v41 = vadd.f32 %v4214_v37, %v4145_v38  ;;  %v4114_v7 = vmul.f32 %v8858_v42, %v9723_v11  ;;  %v9749_v38 = vld [vmem:[#allocation2 + $0xc1] sm:$0xff] }
 0x451   : > { %v3872_v17 = vadd.f32 %v3871_v45, %v3870_v52  ;;  %v3875_v0 = vsel %vm460_vm0, %v9163_v4, 0.0  ;;  %v6240_v1 = vunpack.c.l.b16 %v3824_v32  ;;  %v6241_v13 = vunpack.c.l.b16 %v3825_v61 }
 0x452   : > { %v6256_v26 = vpack.c.b16 %v6239_v35, %v6238_v34  ;;  %7219 = vpow2.f32 %v6971_v33  ;;  %v4540_v27 = vadd.f32 %v4508_v44, %v4475_v22  ;;  %v4081_v2 = vadd.f32 %v4049_v20, %v4016_v24 }
 0x453   : > { %v3874_v58 = vadd.f32 %v3873_v43, %v3872_v17  ;;  %v4604_v25 = vadd.f32 %v4572_v19, %v4539_v30  ;;  %v4541_v37 = vadd.f32 %v4509_v18, %v4476_v62  ;;  %v3877_v52 = vsel %vm460_vm0, %v9312_v12, 0.0 }
 0x454   : > { %6286 = vrot.lane.b32.xlu1 %v6256_v26, %s7393_s27  ;;  %v6257_v45 = vpack.c.b16 %v6241_v13, %v6240_v1  ;;  %v4573_v34 = vmul.f32 %v9114_v21, %v9743_v8  ;;  %v4311_v35 = vadd.f32 %v4279_v40, %v4246_v41  ;;  %v4146_v33 = vadd.f32 %v4114_v7, %v4081_v2 }
 0x455   : > { %v3876_v44 = vadd.f32 %v3875_v0, %v3874_v58  ;;  %v4883_v24 = vsub.f32 1.0, %v9705_v56  ;;  %v4215_v22 = vmul.f32 %v8855_v3, %v9645_v28  ;;  %v4574_v62 = vmul.f32 %v9114_v21, %v9747_v9  ;;  %v9771_v21 = vld [vmem:[#allocation2 + $0xd8] sm:$0xff] }
 0x456   : > { %v3879_v18 = vsel %vm460_vm0, %v9336_v60, 0.0  ;;  %6288 = vrot.lane.b32.xlu0 %v6257_v45, %s7393_s27  ;;  %v4445_v19 = vmul.f32 %v8876_v54, %v9618_v51  ;;  %v4605_v30 = vadd.f32 %v4573_v34, %v4540_v27  ;;  %v4344_v58 = vmul.f32 %v8881_v23, %v9749_v38  ;;  %v7097_v51 = vld [vmem:[%s12170_s11 + $0x38] sm:$0xff] }
 0x457   : > { %v3878_v20 = vadd.f32 %v3877_v52, %v3876_v44  ;;  %v4640_v56 = vadd.f32 %v9140_v57, %v4604_v25  ;;  %v4017_v28 = vmul.f32 %v8846_v16, %v9571_v31  ;;  %v4606_v2 = vadd.f32 %v4574_v62, %v4541_v37  ;;  %v9780_v25 = vld [vmem:[#allocation2 + $0xe0] sm:$0xff]  ;;  %6422 = vmatpush.bf16.msrb.mxu2 %v7097_v51  ;;  %v9801_v34 = vld [vmem:[#allocation2 + $0xc9] sm:$0xff] }
 0x458   : > { %v3881_v43 = vsel %vm460_vm0, %v9431_v10, 0.0  ;;  %v7220_v27 = vpop.eup %7219  ;;  %v4050_v32 = vmul.f32 %v8849_v49, %v9681_v6  ;;  %v4376_v61 = vadd.f32 %v4344_v58, %v4311_v35  ;;  %v4247_v40 = vadd.f32 %v4215_v22, %v4146_v33 }
 0x459   : > { %v3880_v41 = vadd.f32 %v3879_v18, %v3878_v20  ;;  %v4897_v31 = vmul.f32 %v9733_v48, %v9673_v5  ;;  %v4018_v7 = vmul.f32 %v8846_v16, %v9573_v46  ;;  %v4051_v17 = vmul.f32 %v8849_v49, %v9723_v11  ;;  %v9798_v46 = vld [vmem:[%s12165_s6] ss:$0 sm:$0xff] }
 0x45a   : > { %v3883_v0 = vsel %vm460_vm0, %v9438_v53, 0.0  ;;  %v4280_v26 = vmul.f32 %v8871_v15, %v9679_v63  ;;  %v4641_v1 = vadd.f32 %v9140_v57, %v4605_v30  ;;  %v4115_v13 = vmul.f32 %v8858_v42, %v9771_v21 }
 0x45b   : > { %v3882_v37 = vadd.f32 %v3881_v43, %v3880_v41  ;;  %v6972_v52 = vmul.f32 -1.442695, %v4640_v56  ;;  %v4642_v45 = vadd.f32 %v9798_v46, %v4606_v2  ;;  %v4116_v35 = vmul.f32 %v8858_v42, %v9780_v25 }
 0x45c   : > { %v3885_v57 = vsel %vm460_vm0, %v9499_v50, 0.0  ;;  %v4082_v33 = vadd.f32 %v4050_v32, %v4017_v28  ;;  %v4477_v44 = vadd.f32 %v4445_v19, %v4376_v61  ;;  %v4312_v22 = vadd.f32 %v4280_v26, %v4247_v40  ;;  %v9819_v32 = vld [vmem:[#allocation2 + $0xc2] sm:$0xff] }
 0x45d   : > { %v3884_v62 = vadd.f32 %v3883_v0, %v3882_v37  ;;  %v9807_v18 = vadd.f32 1.0, %v7220_v27  ;;  %v4510_v30 = vmul.f32 %v9098_v55, %v9743_v8  ;;  %v4083_v58 = vadd.f32 %v4051_v17, %v4018_v7 }
 0x45e   : > { %v3887_v20 = vsel %vm460_vm0, %v9549_v59, 0.0  ;;  %v6973_v56 = vmul.f32 -1.442695, %v4641_v1  ;;  %v4345_v2 = vmul.f32 %v8881_v23, %v9801_v34  ;;  %v4147_v43 = vadd.f32 %v4115_v13, %v4082_v33 }
 0x45f   : > { %v3886_v51 = vadd.f32 %v3885_v57, %v3884_v62  ;;  %vm4886_vm14 = vweird.f32 %v9599_v39  ;;  %v4892_v19 = vand.u32 2147483648, %v9599_v39  ;;  %v4216_v28 = vmul.f32 %v8855_v3, %v9677_v36  ;;  %v9830_v36 = vld [vmem:[%s12164_s5 + $0x8] ss:$0 sm:$0xff] }
 0x460   : > { %v6974_v27 = vmul.f32 -1.442695, %v4642_v45  ;;  %v4148_v61 = vadd.f32 %v4116_v35, %v4083_v58  ;;  %7221 = vpow2.f32 %v6972_v52  ;;  %v4542_v40 = vadd.f32 %v4510_v30, %v4477_v44 }
 0x461   : > { %v4377_v41 = vadd.f32 %v4345_v2, %v4312_v22  ;;  %v3888_v7 = vadd.f32 %v3887_v20, %v3886_v51  ;;  %v4884_v17 = vmul.f32 %v9685_v47, %v4883_v24  ;;  %v4898_v0 = vsub.f32 1.0, %v4897_v31  ;;  %v9843_v22 = vld [vmem:[#allocation2 + $0xd9] sm:$0xff] }
 0x462   : > { %7223 = vrcp.f32 %v9807_v18  ;;  %v4217_v26 = vmul.f32 %v8855_v3, %v9679_v63  ;;  %v4446_v1 = vmul.f32 %v8876_v54, %v9695_v29  ;;  %v4575_v13 = vmul.f32 %v9830_v36, %v9819_v32 }
 0x463   : > { %7225 = vpow2.f32 %v6973_v56  ;;  %v4248_v37 = vadd.f32 %v4216_v28, %v4147_v43  ;;  %vm4887_vm15 = vweird.f32 %v9685_v47  ;;  %v4907_v24 = vand.u32 2147483648, %v9673_v5  ;;  %v9853_v43 = vld [vmem:[#allocation2 + $0xe1] sm:$0xff] }
 0x464   : > { %7227 = vpow2.f32 %v6974_v27  ;;  %v4249_v31 = vadd.f32 %v4217_v26, %v4148_v61  ;;  %v4281_v63 = vmul.f32 %v8871_v15, %v9749_v38  ;;  %v4478_v29 = vadd.f32 %v4446_v1, %v4377_v41  ;;  %v9859_v27 = vld [vmem:[#allocation2 + $0xca] sm:$0xff]  ;;  %vm9865_vm4 = vmor %vm4886_vm14, %vm4887_vm15 }
 0x465   : > { %v4607_v52 = vadd.f32 %v4575_v13, %v4542_v40  ;;  %v3889_v45 = vrot.slane %v3888_v7, 4  ;;  %v4885_v35 = vadd.f32 %v9685_v47, %v4884_v17  ;;  %v4899_v57 = vmul.f32 %v9733_v48, %v4898_v0 }
 0x466   : > { %v4905_v33 = vand.u32 2147483647, %v9673_v5  ;;  %v4282_v44 = vmul.f32 %v8871_v15, %v9801_v34  ;;  %v7222_v62 = vpop.eup %7221  ;;  %v12356_v30 = vand.u32 2147483647, %v9599_v39  ;;  %v4893_v20 = vor.u32 1.1754944e-38, %v4892_v19 }
 0x467   : > { %v4511_v56 = vmul.f32 %v9098_v55, %v9747_v9  ;;  %v4313_v2 = vadd.f32 %v4281_v63, %v4248_v37  ;;  %vm4901_vm2 = vweird.f32 %v9673_v5  ;;  %vm4902_vm3 = vweird.f32 %v9733_v48  ;;  %v9884_v63 = vld [vmem:[#allocation2 + $0xf0] sm:$0xff]  ;;  %v7096_v5 = vld [vmem:[%s12170_s11 + $0x30] sm:$0xff] }
 0x468   : > { %vm9847_vm1 = vcmp.eq.f32.partialorder %v12356_v30, 8.507059e+37  ;;  %v9855_v51 = vpop.eup %7223  ;;  %v4908_v28 = vor.u32 1.1754944e-38, %v4907_v24  ;;  %v4314_v61 = vadd.f32 %v4282_v44, %v4249_v31  ;;  %v4643_v17 = vadd.f32 %v9798_v46, %v4607_v52  ;;  %vm9912_vm6 = vmor %vm4901_vm2, %vm4902_vm3  ;;  %6423 = vmatpush.bf16.msrb.mxu2 %v7096_v5 }
 0x469   : > { %v7226_v40 = vpop.eup %7225  ;;  %v4543_v41 = vadd.f32 %v4511_v56, %v4478_v29  ;;  %v4346_v0 = vmul.f32 %v8881_v23, %v9843_v22  ;;  %v3890_v26 = vadd.f32 %v3889_v45, %v3888_v7  ;;  %v4889_v13 = vsel %vm9865_vm4, %v9685_v47, %v4885_v35 }
 0x46a   : > { %v7228_v1 = vpop.eup %7227  ;;  %v4900_v37 = vadd.f32 %v9733_v48, %v4899_v57  ;;  %vm9876_vm5 = vcmp.eq.f32.partialorder %v4905_v33, 8.507059e+37  ;;  %v9880_v24 = vadd.f32 1.0, %v7222_v62  ;;  %v4347_v31 = vmul.f32 %v8881_v23, %v9853_v43 }
 0x46b   : > { %v4576_v7 = vmul.f32 %v9830_v36, %v9859_v27  ;;  %v4052_v29 = vmul.f32 %v8849_v49, %v9771_v21  ;;  %v4378_v47 = vadd.f32 %v4346_v0, %v4313_v2  ;;  %v3891_v52 = vrot.slane %v3890_v26, 2 }
 0x46c   : > { %v4447_v45 = vmul.f32 %v8876_v54, %v9743_v8  ;;  %v9892_v35 = vadd.f32 1.0, %v7226_v40  ;;  %v4019_v57 = vmul.f32 %v8846_v16, %v9681_v6  ;;  %v4379_v33 = vadd.f32 %v4347_v31, %v4314_v61 }
 0x46d   : > { %v4608_v44 = vadd.f32 %v4576_v7, %v4543_v41  ;;  %v6975_v62 = vmul.f32 -1.442695, %v4643_v17  ;;  %v4117_v30 = vmul.f32 %v8858_v42, %v9884_v63  ;;  %v3892_v56 = vadd.f32 %v3891_v52, %v3890_v26  ;;  %v9934_v7 = vld [vmem:[#allocation2 + $0xda] sm:$0xff] }
 0x46e   : > { %v9900_v19 = vsel %vm9847_vm1, %v4893_v20, %v4889_v13  ;;  %v4912_v2 = vmul.f32 %v9855_v51, %v9807_v18  ;;  %v4448_v8 = vmul.f32 %v8876_v54, %v9747_v9  ;;  %v9906_v40 = vadd.f32 1.0, %v7228_v1  ;;  %v9927_v1 = vld [vmem:[#allocation2 + $0xf8] sm:$0xff] }
 0x46f   : > { %12363 = vst [vmem:[#allocation47_spill] sm:$0xff] %v9900_v19  ;;  %7229 = vrcp.f32 %v9880_v24  ;;  %v4084_v58 = vadd.f32 %v4052_v29, %v4019_v57  ;;  %v4479_v20 = vadd.f32 %v4447_v45, %v4378_v47  ;;  %v3893_v61 = vrot.slane %v3892_v56, 1  ;;  %v3896_v29 = vld [vmem:[%s12166_s7] sm:$0xf]  ;;  %v7095_v47 = vld [vmem:[%s12170_s11 + $0x28] sm:$0xff] }
 0x470   : > { %v4904_v41 = vsel %vm9912_vm6, %v9733_v48, %v4900_v37  ;;  %7231 = vrcp.f32 %v9892_v35  ;;  %v4512_v9 = vmul.f32 %v9098_v55, %v9819_v32  ;;  %v4480_v17 = vadd.f32 %v4448_v8, %v4379_v33  ;;  %v9948_v33 = vld [vmem:[#allocation2 + $0xe2] sm:$0xff]  ;;  %6424 = vmatpush.bf16.msrb.mxu2 %v7095_v47 }
 0x471   : > { %v4644_v0 = vadd.f32 %v9798_v46, %v4608_v44  ;;  %7233 = vpow2.f32 %v6975_v62  ;;  %v4149_v26 = vadd.f32 %v4117_v30, %v4084_v58  ;;  %v3894_v13 = vadd.f32 %v3893_v61, %v3892_v56 }
 0x472   : > { %v4913_v31 = vsub.f32 1.0, %v4912_v2  ;;  %7235 = vrcp.f32 %v9906_v40  ;;  %v4513_v48 = vmul.f32 %v9098_v55, %v9859_v27  ;;  %v4053_v37 = vmul.f32 %v8849_v49, %v9780_v25 }
 0x473   : > { %v9944_v52 = vsel %vm9876_vm5, %v4908_v28, %v4904_v41  ;;  %v4218_v45 = vmul.f32 %v8855_v3, %v9749_v38  ;;  %v4544_v57 = vadd.f32 %v4512_v9, %v4479_v20  ;;  %v3895_v44 = vmul.f32 0.00390625, %v3894_v13 }
 0x474   : > { %12366 = vst [vmem:[#allocation48_spill] sm:$0xff] %v9944_v52  ;;  %v4020_v62 = vmul.f32 %v8846_v16, %v9723_v11  ;;  %v4545_v30 = vadd.f32 %v4513_v48, %v4480_v17  ;;  %v4118_v56 = vmul.f32 %v8858_v42, %v9927_v1  ;;  %vm3898_vm7 = vcmask 519168   ;;  %v9973_v48 = vld [vmem:[#allocation2 + $0xf1] sm:$0xff] }
 0x475   : > { %v9954_v2 = vpop.eup %7229  ;;  %v6976_v39 = vmul.f32 -1.442695, %v4644_v0  ;;  %v4577_v28 = vmul.f32 %v9830_v36, %v9934_v7  ;;  %v4250_v8 = vadd.f32 %v4218_v45, %v4149_v26  ;;  %v3897_v38 = vmul.f32 %v3896_v29, %v3895_v44 }
 0x476   : > { %v9958_v6 = vpop.eup %7231  ;;  %v4914_v58 = vmul.f32 %v9855_v51, %v4913_v31  ;;  %vm4916_vm8 = vweird.f32 %v9807_v18  ;;  %v4085_v11 = vadd.f32 %v4053_v37, %v4020_v62  ;;  %v4578_v20 = vmul.f32 %v9830_v36, %v9948_v33 }
 0x477   : > { %v7234_v61 = vpop.eup %7233  ;;  %v4920_v41 = vand.u32 2147483647, %v9807_v18  ;;  %v4283_v9 = vmul.f32 %v8871_v15, %v9843_v22  ;;  %v4609_v17 = vadd.f32 %v4577_v28, %v4544_v57  ;;  %v3899_v5 = vsel %vm3898_vm7, %v3897_v38, 0.0 }
 0x478   : > { %v9968_v0 = vpop.eup %7235  ;;  %v4922_v26 = vand.u32 2147483648, %v9807_v18  ;;  %v4927_v13 = vmul.f32 %v9954_v2, %v9880_v24  ;;  %v4610_v31 = vadd.f32 %v4578_v20, %v4545_v30  ;;  %v4150_v37 = vadd.f32 %v4118_v56, %v4085_v11  ;;  %3900 = vadd.xlane.f32.xlu2 %v3899_v5 }
 0x479   : > { %vm4917_vm9 = vweird.f32 %v9855_v51  ;;  %v4942_v29 = vmul.f32 %v9958_v6, %v9892_v35  ;;  %7237 = vpow2.f32 %v6976_v39  ;;  %v4315_v47 = vadd.f32 %v4283_v9, %v4250_v8 }
 0x47a   : > { %v4915_v45 = vadd.f32 %v9855_v51, %v4914_v58  ;;  %v4937_v57 = vand.u32 2147483648, %v9880_v24  ;;  %v4219_v44 = vmul.f32 %v8855_v3, %v9801_v34  ;;  %v9982_v62 = vadd.f32 1.0, %v7234_v61  ;;  %v7094_v34 = vld [vmem:[%s12170_s11 + $0x20] sm:$0xff]  ;;  %vm10001_vm11 = vmor %vm4916_vm8, %vm4917_vm9 }
 0x47b   : > { %vm9984_vm10 = vcmp.eq.f32.partialorder %v4920_v41, 8.507059e+37  ;;  %v4957_v56 = vmul.f32 %v9968_v0, %v9906_v40  ;;  %v4645_v28 = vadd.f32 %v9798_v46, %v4609_v17  ;;  %v4348_v39 = vmul.f32 %v8881_v23, %v9973_v48  ;;  %6425 = vmatpush.bf16.msrb.mxu2 %v7094_v34 }
 0x47c   : > { %v4923_v8 = vor.u32 1.1754944e-38, %v4922_v26  ;;  %v4928_v38 = vsub.f32 1.0, %v4927_v13  ;;  %v4646_v58 = vadd.f32 %v9798_v46, %v4610_v31  ;;  %v4251_v11 = vadd.f32 %v4219_v44, %v4150_v37 }
 0x47d   : > { %v4935_v61 = vand.u32 2147483647, %v9880_v24  ;;  %v4943_v41 = vsub.f32 1.0, %v4942_v29  ;;  %v4952_v9 = vand.u32 2147483648, %v9892_v35  ;;  %v4380_v17 = vadd.f32 %v4348_v39, %v4315_v47  ;;  %v10020_v47 = vld [vmem:[#allocation2 + $0xf9] sm:$0xff] }
 0x47e   : > { %v4919_v5 = vsel %vm10001_vm11, %v9855_v51, %v4915_v45  ;;  %vm4931_vm12 = vweird.f32 %v9880_v24  ;;  %v10011_v26 = vor.u32 1.1754944e-38, %v4937_v57  ;;  %7239 = vrcp.f32 %v9982_v62 }
 0x47f   : > { %v4284_v18 = vmul.f32 %v8871_v15, %v9853_v43  ;;  %v7238_v13 = vpop.eup %7237  ;;  %vm4946_vm13 = vweird.f32 %v9892_v35  ;;  %v4950_v31 = vand.u32 2147483647, %v9892_v35  ;;  %v4958_v37 = vsub.f32 1.0, %v4957_v56 }
 0x480   : > { %v4449_v29 = vmul.f32 %v8876_v54, %v9819_v32  ;;  %v6977_v51 = vmul.f32 -1.442695, %v4645_v28  ;;  %v4929_v45 = vmul.f32 %v9954_v2, %v4928_v38  ;;  %vm4932_vm14 = vweird.f32 %v9954_v2 }
 0x481   : > { %v6978_v57 = vmul.f32 -1.442695, %v4646_v58  ;;  %v4316_v44 = vadd.f32 %v4284_v18, %v4251_v11  ;;  %v10026_v39 = vsel %vm9984_vm10, %v4923_v8, %v4919_v5  ;;  %v4944_v34 = vmul.f32 %v9958_v6, %v4943_v41  ;;  %v10039_v8 = vld [vmem:[#allocation2 + $0x108] sm:$0xff]  ;;  %vm10071_vm4 = vmor %vm4931_vm12, %vm4932_vm14 }
 0x482   : > { %12371 = vst [vmem:[#allocation49_spill] sm:$0xff] %v10026_v39  ;;  %v4953_v20 = vor.u32 1.1754944e-38, %v4952_v9  ;;  %v4481_v56 = vadd.f32 %v4449_v29, %v4380_v17  ;;  %vm4961_vm15 = vweird.f32 %v9906_v40  ;;  %v4965_v32 = vand.u32 2147483647, %v9906_v40 }
 0x483   : > { %v10031_v28 = vadd.f32 1.0, %v7238_v13  ;;  %v4349_v38 = vmul.f32 %v8881_v23, %v10020_v47  ;;  %v4959_v58 = vmul.f32 %v9968_v0, %v4958_v37  ;;  %v4967_v11 = vand.u32 2147483648, %v9906_v40  ;;  %v10054_v37 = vld [vmem:[#allocation2 + $0xf2] sm:$0xff] }
 0x484   : > { %v4514_v30 = vmul.f32 %v9098_v55, %v9934_v7  ;;  %7241 = vpow2.f32 %v6977_v51  ;;  %v10041_v41 = vpop.eup %7239  ;;  %v4930_v9 = vadd.f32 %v9954_v2, %v4929_v45  ;;  %vm10044_vm1 = vcmp.eq.f32.partialorder %v4935_v61, 8.507059e+37 }
 0x485   : > { %vm10048_vm2 = vcmp.eq.f32.partialorder %v4950_v31, 8.507059e+37  ;;  %7243 = vpow2.f32 %v6978_v57  ;;  %v4054_v18 = vmul.f32 %v8849_v49, %v9884_v63  ;;  %v4381_v13 = vadd.f32 %v4349_v38, %v4316_v44 }
 0x486   : > { %v4945_v29 = vadd.f32 %v9958_v6, %v4944_v34  ;;  %vm4947_vm3 = vweird.f32 %v9958_v6  ;;  %v4450_v61 = vmul.f32 %v8876_v54, %v9859_v27  ;;  %v4546_v51 = vadd.f32 %v4514_v30, %v4481_v56  ;;  %v12382_v30 = vld [vmem:[#allocation33_spill] sm:$0xff] }
 0x487   : > { %7245 = vrcp.f32 %v10031_v28  ;;  %v4021_v31 = vmul.f32 %v8846_v16, %v9771_v21  ;;  %v4119_v45 = vmul.f32 %v8858_v42, %v10039_v8  ;;  %v3815_v57 = vpack.c.bf16 %v12353_v14, %v12353_v14  ;;  %vm10083_vm6 = vmor %vm4946_vm13, %vm4947_vm3 }
 0x488   : > { %v4960_v27 = vadd.f32 %v9968_v0, %v4959_v58  ;;  %vm4962_vm5 = vweird.f32 %v9968_v0  ;;  %v4972_v21 = vmul.f32 %v10041_v41, %v9982_v62  ;;  %v4579_v34 = vmul.f32 %v9830_v36, %v10054_v37 }
 0x489   : > { %vm10087_vm8 = vcmp.eq.f32.partialorder %v4965_v32, 8.507059e+37  ;;  %v4086_v38 = vadd.f32 %v4054_v18, %v4021_v31  ;;  %v4482_v58 = vadd.f32 %v4450_v61, %v4381_v13  ;;  %v3814_v59 = vpack.c.bf16 %v12382_v30, %v12382_v30  ;;  %v10099_v32 = vld [vmem:[#allocation2 + $0x110] sm:$0xff]  ;;  %vm10105_vm9 = vmor %vm4961_vm15, %vm4962_vm5 }
 0x48a   : > { %v7242_v50 = vpop.eup %7241  ;;  %v4934_v53 = vsel %vm10071_vm4, %v9954_v2, %v4930_v9  ;;  %v4949_v35 = vsel %vm10083_vm6, %v9958_v6, %v4945_v29  ;;  %v4968_v10 = vor.u32 1.1754944e-38, %v4967_v11  ;;  %v4611_v60 = vadd.f32 %v4579_v34, %v4546_v51  ;;  %v10120_v51 = vld [vmem:[#allocation2 + $0xfa] sm:$0xff] }
 0x48b   : > { %v7244_v12 = vpop.eup %7243  ;;  %v4515_v2 = vmul.f32 %v9098_v55, %v9948_v33  ;;  %v4055_v9 = vmul.f32 %v8849_v49, %v9927_v1  ;;  %v4151_v6 = vadd.f32 %v4119_v45, %v4086_v38  ;;  %v6231_v11 = vunpack.c.l.b16 %v3815_v57 }
 0x48c   : > { %v4964_v13 = vsel %vm10105_vm9, %v9968_v0, %v4960_v27  ;;  %v4973_v29 = vsub.f32 1.0, %v4972_v21  ;;  %v4220_v40 = vmul.f32 %v8855_v3, %v9843_v22  ;;  %v4022_v61 = vmul.f32 %v8846_v16, %v9780_v25 }
 0x48d   : > { %v10122_v31 = vpop.eup %7245  ;;  %v10124_v44 = vadd.f32 1.0, %v7242_v50  ;;  %v4547_v34 = vadd.f32 %v4515_v2, %v4482_v58  ;;  %v4120_v45 = vmul.f32 %v8858_v42, %v10099_v32  ;;  %v6230_v57 = vunpack.c.l.b16 %v3814_v59  ;;  %v10163_v58 = vld [vmem:[#allocation2 + $0x109] sm:$0xff] }
 0x48e   : > { %v10131_v0 = vsel %vm10044_vm1, %v10011_v26, %v4934_v53  ;;  %v10135_v22 = vsel %vm10048_vm2, %v4953_v20, %v4949_v35  ;;  %v10137_v25 = vadd.f32 1.0, %v7244_v12  ;;  %v4647_v27 = vadd.f32 %v9798_v46, %v4611_v60  ;;  %v10155_v60 = vld [vmem:[%s12168_s9] sm:$0xff] }
 0x48f   : > { %12385 = vst [vmem:[#allocation50_spill] sm:$0xff] %v10131_v0  ;;  %v4087_v50 = vadd.f32 %v4055_v9, %v4022_v61  ;;  %v4580_v21 = vmul.f32 %v9830_v36, %v10120_v51  ;;  %v4252_v56 = vadd.f32 %v4220_v40, %v4151_v6  ;;  %v6252_v38 = vpack.c.b16 %v6231_v11, %v6230_v57  ;;  %v10542_v0 = vld [vmem:[#allocation2 + $0x142] sm:$0xff] }
 0x490   : > { %12386 = vst [vmem:[#allocation51_spill] sm:$0xff] %v10135_v22  ;;  %v10144_v59 = vsel %vm10087_vm8, %v4968_v10, %v4964_v13  ;;  %v4974_v53 = vmul.f32 %v10041_v41, %v4973_v29  ;;  %v4987_v26 = vmul.f32 %v10122_v31, %v10031_v28  ;;  %v4221_v12 = vmul.f32 %v8855_v3, %v9853_v43  ;;  %v5369_v29 = vld [vmem:[#allocation2] sm:$0xff] }
 0x491   : > { %12387 = vst [vmem:[#allocation52_spill] sm:$0xff] %v10144_v59  ;;  %7247 = vrcp.f32 %v10124_v44  ;;  %v4285_v20 = vmul.f32 %v8871_v15, %v9973_v48  ;;  %v4612_v10 = vadd.f32 %v4580_v21, %v4547_v34  ;;  %v4152_v17 = vadd.f32 %v4120_v45, %v4087_v50  ;;  %6278 = vrot.lane.b32.xlu2 %v6252_v38, %s7393_s27  ;;  %v5370_v50 = vld [vmem:[#allocation2 + $0x8] sm:$0xff]  ;;  %s6619_s27 = scalar_lea.hbm %s12172_s13, %s7098_s21 }
 0x492   : > { %v4980_v5 = vand.u32 2147483647, %v9982_v62  ;;  %v4982_v24 = vand.u32 2147483648, %v9982_v62  ;;  %7249 = vrcp.f32 %v10137_v25  ;;  %v6979_v43 = vmul.f32 -1.442695, %v4647_v27  ;;  %v5568_v21 = vld [vmem:[#allocation2 + $0x1] sm:$0xff] }
 0x493   : > { %v4997_v35 = vand.u32 2147483648, %v10031_v28  ;;  %v4451_v18 = vmul.f32 %v8876_v54, %v9934_v7  ;;  %v10170_v2 = vmul.f32 %v8876_v54, %v9948_v33  ;;  %v4317_v9 = vadd.f32 %v4285_v20, %v4252_v56  ;;  %s6622_s16 = sshll.u32 %s6619_s27, 4  ;;  %s6623_s16 = int_to_ptr.hbm [resolvable:$true] %s6622_s16 }
 0x494   : > { %v4975_v6 = vadd.f32 %v10041_v41, %v4974_v53  ;;  %vm4976_vm10 = vweird.f32 %v9982_v62  ;;  %vm4977_vm11 = vweird.f32 %v10041_v41  ;;  %v10176_v11 = vperm.slane %v10155_v60, 0  ;;  %s7342_s24 = sshra.s32 %s6623_s16, 4  ;;  %s7343_s24 = int_to_ptr.hbm [resolvable:$true] %s7342_s24 }
 0x495   : > { %v4988_v13 = vsub.f32 1.0, %v4987_v26  ;;  %v4648_v40 = vadd.f32 %v9798_v46, %v4612_v10  ;;  %v4350_v7 = vmul.f32 %v8881_v23, %v10163_v58  ;;  %v4253_v61 = vadd.f32 %v4221_v12, %v4152_v17  ;;  %vm10200_vm15 = vmor %vm4976_vm10, %vm4977_vm11  ;;  %v5569_v17 = vld [vmem:[#allocation2 + $0x9] sm:$0xff]  ;;  %s7344_s20 = scalar_lea.hbm %s7343_s24, 256  ;;  %p7349_p0 = scmp.lt.s32.totalorder %s7343_s24, %s12172_s13 }
 0x496   : > { %12388 = vst [vmem:[#allocation53_spill] sm:$0xff] %v10176_v11  ;;  %vm10181_vm12 = vcmp.eq.f32.partialorder %v4980_v5, 8.507059e+37  ;;  %v4983_v34 = vor.u32 1.1754944e-38, %v4982_v24  ;;  %v4995_v45 = vand.u32 2147483647, %v10031_v28  ;;  %7251 = vpow2.f32 %v6979_v43  ;;  %v10216_v24 = vld [vmem:[#allocation2 + $0x111] sm:$0xff]  ;;  %p7345_p11 = scmp.ne.s32.totalorder %s7343_s24, %s7344_s20  ;;  %p7350_p1 = scmp.lt.s32.totalorder %s7348_s23, %s7344_s20 }
 0x497   : > { %v10186_v57 = vpop.eup %7247  ;;  %vm4991_vm13 = vweird.f32 %v10031_v28  ;;  %vm4992_vm14 = vweird.f32 %v10122_v31  ;;  %v10190_v27 = vor.u32 1.1754944e-38, %v4997_v35  ;;  %v4286_v56 = vmul.f32 %v8871_v15, %v10020_v47 }
 0x498   : > { %v4382_v38 = vadd.f32 %v4350_v7, %v4317_v9  ;;  %v10194_v53 = vpop.eup %7249  ;;  %v10205_v12 = vmul.f32 %v10176_v11, %v5369_v29  ;;  %v10208_v20 = vperm.slane %v10155_v60, 3  ;;  %v10211_v10 = vperm.slane %v10155_v60, 6  ;;  %v10222_v29 = vld [vmem:[#allocation2 + $0x120] sm:$0xff]  ;;  %vm10276_vm2 = vmor %vm4991_vm13, %vm4992_vm14  ;;  %p7346_p12 = pnand %p7345_p11, %p7504_p5  ;;  %p7351_p2 = por %p7350_p1, %p7349_p0 }
 0x499   : > { %v10214_v5 = vperm.slane %v10155_v60, 1  ;;  %v4979_v62 = vsel %vm10200_vm15, %v10041_v41, %v4975_v6  ;;  %v4989_v43 = vmul.f32 %v10122_v31, %v4988_v13  ;;  %v6980_v35 = vmul.f32 -1.442695, %v4648_v40 }
 0x49a   : > { %12393 = vst [vmem:[#allocation54_spill] sm:$0xff] %v10205_v12  ;;  %v4318_v9 = vadd.f32 %v4286_v56, %v4253_v61  ;;  %v5002_v7 = vmul.f32 %v10186_v57, %v10124_v44  ;;  %vm10234_vm1 = vcmp.eq.f32.partialorder %v4995_v45, 8.507059e+37  ;;  %v5017_v6 = vmul.f32 %v10194_v53, %v10137_v25  ;;  %p7347_p13 = pneg %p7346_p12 }
 0x49b   : > { %12394 = vst [vmem:[#allocation55_spill] sm:$0xff] %v10208_v20  ;;  %v10230_v12 = vmul.f32 %v10214_v5, %v5568_v21  ;;  %v4056_v20 = vmul.f32 %v8849_v49, %v10039_v8  ;;  %v10241_v13 = vmul.f32 %v10214_v5, %v5569_v17  ;;  %v4483_v40 = vadd.f32 %v4451_v18, %v4382_v38 }
 0x49c   : > { %12395 = vst [vmem:[#allocation56_spill] sm:$0xff] %v10211_v10  ;;  %v10227_v10 = vmul.f32 %v10176_v11, %v5370_v50  ;;  %v4351_v61 = vmul.f32 %v8881_v23, %v10216_v24  ;;  %v7252_v50 = vpop.eup %7251  ;;  %v10247_v21 = vsel %vm10181_vm12, %v4983_v34, %v4979_v62  ;;  %v10250_v45 = vperm.slane %v10155_v60, 4  ;;  %v5799_v34 = vld [vmem:[#allocation2 + $0x2] sm:$0xff]  ;;  %p7352_p3 = pnand %p7351_p2, %p7347_p13 }
 0x49d   : > { %12396 = vst [vmem:[#allocation57_spill] sm:$0xff] %v10214_v5  ;;  %v4023_v56 = vmul.f32 %v8846_v16, %v9884_v63  ;;  %v4121_v26 = vmul.f32 %v8858_v42, %v10222_v29  ;;  %v4990_v17 = vadd.f32 %v10122_v31, %v4989_v43  ;;  %v4516_v18 = vmul.f32 %v9098_v55, %v10054_v37  ;;  %v10265_v63 = vld [vmem:[#allocation2 + $0x10a] sm:$0xff] }
 0x49e   : > { %12397 = vst [vmem:[#allocation58_spill] sm:$0xff] %v10227_v10  ;;  %7253 = vpow2.f32 %v6980_v35  ;;  %v4383_v38 = vadd.f32 %v4351_v61, %v4318_v9  ;;  %v10260_v33 = vperm.slane %v10155_v60, 7  ;;  %v10263_v62 = vperm.slane %v10155_v60, 2  ;;  %v5800_v5 = vld [vmem:[#allocation2 + $0xa] sm:$0xff] }
 0x49f   : > { %12398 = vst [vmem:[#allocation59_spill] sm:$0xff] %v10230_v12  ;;  %v4088_v12 = vadd.f32 %v4056_v20, %v4023_v56  ;;  %v5018_v10 = vsub.f32 1.0, %v5017_v6  ;;  %v10268_v43 = vperm.slane %v10155_v60, 5  ;;  %v10270_v11 = vadd.f32 1.0, %v7252_v50  ;;  %v10292_v50 = vld [vmem:[#allocation2 + $0x128] sm:$0xff] }
 0x4a0   : > { %12401 = vst [vmem:[#allocation60_spill] sm:$0xff] %v10241_v13  ;;  %v5003_v13 = vsub.f32 1.0, %v5002_v7  ;;  %v4548_v35 = vadd.f32 %v4516_v18, %v4483_v40  ;;  %vm5006_vm3 = vweird.f32 %v10124_v44  ;;  %v5010_v20 = vand.u32 2147483647, %v10124_v44  ;;  %v4190_v9 = vld [vmem:[#allocation2 + $0x129] sm:$0xff] }
 0x4a1   : > { %12402 = vst [vmem:[#allocation61_spill] sm:$0xff] %v10247_v21  ;;  %v5012_v7 = vand.u32 2147483648, %v10124_v44  ;;  %v4153_v6 = vadd.f32 %v4121_v26, %v4088_v12  ;;  %v4994_v60 = vsel %vm10276_vm2, %v10122_v31, %v4990_v17  ;;  %v10287_v40 = vmul.f32 %v10263_v62, %v5799_v34  ;;  %v4000_v21 = vld [vmem:[#allocation2 + $0x198] sm:$0xff] }
 0x4a2   : > { %12403 = vst [vmem:[#allocation62_spill] sm:$0xff] %v10250_v45  ;;  %v4484_v28 = vadd.f32 %v10170_v2, %v4383_v38  ;;  %v4581_v61 = vmul.f32 %v9830_v36, %v10265_v63  ;;  %v5004_v56 = vmul.f32 %v10186_v57, %v5003_v13  ;;  %v10296_v18 = vmul.f32 %v10263_v62, %v5800_v5  ;;  %v10313_v13 = vld [vmem:[#allocation2 + $0x112] sm:$0xff] }
 0x4a3   : > { %12404 = vst [vmem:[#allocation63_spill] sm:$0xff] %v10260_v33  ;;  %v4222_v12 = vmul.f32 %v8855_v3, %v9973_v48  ;;  %v4057_v31 = vmul.f32 %v8849_v49, %v10099_v32  ;;  %v5019_v17 = vmul.f32 %v10194_v53, %v5018_v10  ;;  %v4517_v2 = vmul.f32 %v9098_v55, %v10120_v51 }
 0x4a4   : > { %12405 = vst [vmem:[#allocation64_spill] sm:$0xff] %v10263_v62  ;;  %v7254_v26 = vpop.eup %7253  ;;  %7255 = vrcp.f32 %v10270_v11  ;;  %v4613_v38 = vadd.f32 %v4581_v61, %v4548_v35  ;;  %v10309_v5 = vsel %vm10234_vm1, %v10190_v27, %v4994_v60  ;;  %v4024_v48 = vmul.f32 %v8846_v16, %v9927_v1 }
 0x4a5   : > { %12406 = vst [vmem:[#allocation65_spill] sm:$0xff] %v10268_v43  ;;  %v4254_v34 = vadd.f32 %v4222_v12, %v4153_v6  ;;  %v4122_v10 = vmul.f32 %v8858_v42, %v10292_v50  ;;  %vm5007_vm4 = vweird.f32 %v10186_v57  ;;  %vm10318_vm5 = vcmp.eq.f32.partialorder %v5010_v20, 8.507059e+37 }
 0x4a6   : > { %12409 = vst [vmem:[#allocation66_spill] sm:$0xff] %v10287_v40  ;;  %v5013_v35 = vor.u32 1.1754944e-38, %v5012_v7  ;;  %v4549_v61 = vadd.f32 %v4517_v2, %v4484_v28  ;;  %v5005_v27 = vadd.f32 %v10186_v57, %v5004_v56  ;;  %v10323_v41 = vadd.f32 1.0, %v7254_v26  ;;  %v10334_v7 = vld [vmem:[#allocation2 + $0x138] sm:$0xff]  ;;  %vm10346_vm8 = vmor %vm5006_vm3, %vm5007_vm4 }
 0x4a7   : > { %12410 = vst [vmem:[#allocation67_spill] sm:$0xff] %v10296_v18  ;;  %v4287_v1 = vmul.f32 %v8871_v15, %v10163_v58  ;;  %v4089_v60 = vadd.f32 %v4057_v31, %v4024_v48  ;;  %v5020_v6 = vadd.f32 %v10194_v53, %v5019_v17  ;;  %vm5022_vm6 = vweird.f32 %v10194_v53  ;;  %v10332_v18 = vld [vmem:[#allocation2 + $0x121] sm:$0xff] }
 0x4a8   : > { %12411 = vst [vmem:[#allocation68_spill] sm:$0xff] %v10309_v5  ;;  %v4582_v20 = vmul.f32 %v9830_v36, %v10313_v13  ;;  %v4649_v12 = vadd.f32 %v9798_v46, %v4613_v38  ;;  %v4223_v28 = vmul.f32 %v8855_v3, %v10020_v47  ;;  %v4058_v56 = vmul.f32 %v8849_v49, %v10222_v29 }
 0x4a9   : > { %v4319_v31 = vadd.f32 %v4287_v1, %v4254_v34  ;;  %v4154_v26 = vadd.f32 %v4122_v10, %v4089_v60  ;;  %vm5021_vm9 = vweird.f32 %v10137_v25  ;;  %v5025_v38 = vand.u32 2147483647, %v10137_v25  ;;  %v7093_v34 = vld [vmem:[%s12170_s11 + $0x18] sm:$0xff] }
 0x4aa   : > { %v10340_v17 = vpop.eup %7255  ;;  %v5027_v47 = vand.u32 2147483648, %v10137_v25  ;;  %v4614_v48 = vadd.f32 %v4582_v20, %v4549_v61  ;;  %vm10358_vm10 = vmor %vm5021_vm9, %vm5022_vm6  ;;  %7257 = vrcp.f32 %v10323_v41  ;;  %v4025_v44 = vmul.f32 %v8846_v16, %v10039_v8  ;;  %6426 = vmatpush.bf16.msrb.mxu2 %v7093_v34 }
 0x4ab   : > { %v4352_v1 = vmul.f32 %v8881_v23, %v10332_v18  ;;  %v4123_v25 = vmul.f32 %v8858_v42, %v10334_v7  ;;  %v5009_v61 = vsel %vm10346_vm8, %v10186_v57, %v5005_v27  ;;  %v5024_v60 = vsel %vm10358_vm10, %v10194_v53, %v5020_v6 }
 0x4ac   : > { %v4453_v20 = vmul.f32 %v8876_v54, %v10054_v37  ;;  %v6981_v40 = vmul.f32 -1.442695, %v4649_v12  ;;  %v5032_v8 = vmul.f32 %v10340_v17, %v10270_v11  ;;  %v4090_v62 = vadd.f32 %v4058_v56, %v4025_v44  ;;  %v4420_v44 = vld [vmem:[#allocation2 + $0x122] sm:$0xff] }
 0x4ad   : > { %v4384_v33 = vadd.f32 %v4352_v1, %v4319_v31  ;;  %v4255_v43 = vadd.f32 %v4223_v28, %v4154_v26  ;;  %vm5026_vm11 = vcmp.eq.f32.partialorder %v5025_v38, 8.507059e+37  ;;  %v5028_v45 = vor.u32 1.1754944e-38, %v5027_v47  ;;  %v10399_v38 = vld [vmem:[#allocation2 + $0x140] sm:$0xff] }
 0x4ae   : > { %v4454_v57 = vmul.f32 %v8876_v54, %v10120_v51  ;;  %v4650_v27 = vadd.f32 %v9798_v46, %v4614_v48  ;;  %v10384_v53 = vsel %vm10318_vm5, %v5013_v35, %v5009_v61  ;;  %v4224_v37 = vmul.f32 %v8855_v3, %v10163_v58 }
 0x4af   : > { %12418 = vst [vmem:[#allocation69_spill] sm:$0xff] %v10384_v53  ;;  %v4288_v6 = vmul.f32 %v8871_v15, %v10216_v24  ;;  %v4155_v12 = vadd.f32 %v4123_v25, %v4090_v62  ;;  %v10390_v56 = vsel %vm5026_vm11, %v5028_v45, %v5024_v60  ;;  %v5042_v28 = vand.u32 2147483648, %v10270_v11  ;;  %v10427_v60 = vld [vmem:[#allocation2 + $0x150] sm:$0xff] }
 0x4b0   : > { %12419 = vst [vmem:[#allocation70_spill] sm:$0xff] %v10390_v56  ;;  %v4026_v51 = vmul.f32 %v8846_v16, %v10099_v32  ;;  %v4225_v31 = vmul.f32 %v8855_v3, %v10216_v24  ;;  %v10397_v35 = vpop.eup %7257  ;;  %v5033_v26 = vsub.f32 1.0, %v5032_v8  ;;  %7259 = vpow2.f32 %v6981_v40  ;;  %v3998_v56 = vld [vmem:[#allocation2 + $0x180] sm:$0xff] }
 0x4b1   : > { %v4485_v58 = vadd.f32 %v4453_v20, %v4384_v33  ;;  %v4320_v2 = vadd.f32 %v4288_v6, %v4255_v43  ;;  %v10403_v45 = vmul.f32 %v8876_v54, %v10265_v63  ;;  %v10407_v62 = vmul.f32 %v8876_v54, %v10313_v13 }
 0x4b2   : > { %v6982_v32 = vmul.f32 -1.442695, %v4650_v27  ;;  %v4059_v24 = vmul.f32 %v8849_v49, %v10292_v50  ;;  %v4518_v47 = vmul.f32 %v9098_v55, %v10265_v63  ;;  %v4519_v33 = vmul.f32 %v9098_v55, %v10313_v13 }
 0x4b3   : > { %v4353_v43 = vmul.f32 %v8881_v23, %v4190_v9  ;;  %v4256_v40 = vadd.f32 %v4224_v37, %v4155_v12  ;;  %vm5036_vm12 = vweird.f32 %v10270_v11  ;;  %v10418_v34 = vor.u32 1.1754944e-38, %v5042_v28  ;;  %v4191_v37 = vld [vmem:[#allocation2 + $0x139] sm:$0xff] }
 0x4b4   : > { %v5047_v10 = vmul.f32 %v10397_v35, %v10323_v41  ;;  %v4124_v1 = vmul.f32 %v8858_v42, %v10399_v38  ;;  %v5034_v63 = vmul.f32 %v10340_v17, %v5033_v26  ;;  %v4289_v13 = vmul.f32 %v8871_v15, %v10332_v18 }
 0x4b5   : > { %12420 = vst [vmem:[#allocation71_spill] sm:$0xff] %v10418_v34  ;;  %v4550_v25 = vadd.f32 %v4518_v47, %v4485_v58  ;;  %v4385_v61 = vadd.f32 %v4353_v43, %v4320_v2  ;;  %v5057_v20 = vand.u32 2147483648, %v10323_v41  ;;  %7261 = vpow2.f32 %v6982_v32  ;;  %v10436_v58 = vld [vmem:[#allocation2 + $0x168] sm:$0xff] }
 0x4b6   : > { %v4091_v8 = vadd.f32 %v4059_v24, %v4026_v51  ;;  %v4060_v27 = vmul.f32 %v8849_v49, %v10334_v7  ;;  %v7260_v6 = vpop.eup %7259  ;;  %vm5037_vm13 = vweird.f32 %v10340_v17  ;;  %v4027_v12 = vmul.f32 %v8846_v16, %v10222_v29 }
 0x4b7   : > { %v4583_v28 = vmul.f32 %v9830_v36, %v4420_v44  ;;  %v4321_v26 = vadd.f32 %v4289_v13, %v4256_v40  ;;  %v5048_v2 = vsub.f32 1.0, %v5047_v10  ;;  %v4062_v51 = vmul.f32 %v8849_v49, %v10427_v60  ;;  %vm10463_vm14 = vmor %vm5036_vm12, %vm5037_vm13  ;;  %v4422_v13 = vld [vmem:[#allocation2 + $0x13a] sm:$0xff] }
 0x4b8   : > { %v4156_v47 = vadd.f32 %v4124_v1, %v4091_v8  ;;  %v4125_v32 = vmul.f32 %v8858_v42, %v10427_v60  ;;  %v10443_v24 = vadd.f32 %v10340_v17, %v5034_v63  ;;  %v4486_v43 = vadd.f32 %v4454_v57, %v4385_v61 }
 0x4b9   : > { %v4615_v48 = vadd.f32 %v4583_v28, %v4550_v25  ;;  %v4354_v29 = vmul.f32 %v8881_v23, %v4191_v37  ;;  %v10446_v4 = vadd.f32 1.0, %v7260_v6  ;;  %v4029_v40 = vmul.f32 %v8846_v16, %v10334_v7  ;;  %v4421_v6 = vld [vmem:[#allocation2 + $0x12a] sm:$0xff] }
 0x4ba   : > { %v4092_v10 = vadd.f32 %v4060_v27, %v4027_v12  ;;  %v4127_v1 = vmul.f32 %v8858_v42, %v10436_v58  ;;  %v10453_v8 = vor.u32 1.1754944e-38, %v5057_v20  ;;  %v4226_v63 = vmul.f32 %v8855_v3, %v10332_v18 }
 0x4bb   : > { %v4386_v57 = vadd.f32 %v4354_v29, %v4321_v26  ;;  %v7262_v25 = vpop.eup %7261  ;;  %v4028_v61 = vmul.f32 %v8846_v16, %v10292_v50  ;;  %v4257_v28 = vadd.f32 %v4225_v31, %v4156_v47  ;;  %v4094_v14 = vadd.f32 %v4062_v51, %v4029_v40 }
 0x4bc   : > { %12421 = vst [vmem:[#allocation72_spill] sm:$0xff] %v10453_v8  ;;  %v4157_v7 = vadd.f32 %v4125_v32, %v4092_v10  ;;  %v10468_v20 = vmul.f32 %v8855_v3, %v4190_v9  ;;  %v4290_v18 = vmul.f32 %v8871_v15, %v4190_v9  ;;  %v4551_v12 = vadd.f32 %v4519_v33, %v4486_v43  ;;  %v10492_v32 = vld [vmem:[#allocation2 + $0x151] sm:$0xff] }
 0x4bd   : > { %v4651_v50 = vadd.f32 %v9798_v46, %v4615_v48  ;;  %v10477_v26 = vmul.f32 %v10397_v35, %v5048_v2  ;;  %7263 = vrcp.f32 %v10446_v4  ;;  %v4159_v47 = vadd.f32 %v4127_v1, %v4094_v14  ;;  %v10485_v48 = vld [vmem:[#allocation2 + $0x141] sm:$0xff] }
 0x4be   : > { %v10480_v51 = vadd.f32 1.0, %v7262_v25  ;;  %v4584_v9 = vmul.f32 %v9830_v36, %v4421_v6  ;;  %v4487_v33 = vadd.f32 %v10403_v45, %v4386_v57  ;;  %v4228_v43 = vmul.f32 %v8855_v3, %v4191_v37 }
 0x4bf   : > { %v4061_v29 = vmul.f32 %v8849_v49, %v10399_v38  ;;  %v4322_v2 = vadd.f32 %v4290_v18, %v4257_v28  ;;  %v4258_v40 = vadd.f32 %v4226_v63, %v4157_v7  ;;  %v4457_v10 = vmul.f32 %v8876_v54, %v4420_v44  ;;  %v3995_v7 = vld [vmem:[#allocation2 + $0x158] sm:$0xff] }
 0x4c0   : > { %v4520_v14 = vmul.f32 %v9098_v55, %v4420_v44  ;;  %v4616_v1 = vadd.f32 %v4584_v9, %v4551_v12  ;;  %v6983_v25 = vmul.f32 -1.442695, %v4651_v50  ;;  %v10495_v31 = vmul.f32 %v8876_v54, %v4421_v6 }
 0x4c1   : > { %v4291_v45 = vmul.f32 %v8871_v15, %v4191_v37  ;;  %v4355_v57 = vmul.f32 %v8881_v23, %v10485_v48  ;;  %v4260_v30 = vadd.f32 %v4228_v43, %v4159_v47  ;;  %7265 = vrcp.f32 %v10480_v51 }
 0x4c2   : > { %v4521_v63 = vmul.f32 %v9098_v55, %v4421_v6  ;;  %v4552_v28 = vadd.f32 %v4520_v14, %v4487_v33  ;;  %v4030_v44 = vmul.f32 %v8846_v16, %v10399_v38  ;;  %v4093_v12 = vadd.f32 %v4061_v29, %v4028_v61  ;;  %v10516_v33 = vld [vmem:[#allocation2 + $0x169] sm:$0xff] }
 0x4c3   : > { %v10504_v18 = vpop.eup %7263  ;;  %v4387_v50 = vadd.f32 %v4355_v57, %v4322_v2  ;;  %v4293_v37 = vmul.f32 %v8871_v15, %v10492_v32  ;;  %v4323_v9 = vadd.f32 %v4291_v45, %v4258_v40  ;;  %v10509_v47 = vadd.f32 %v9798_v46, %v4616_v1  ;;  %v3997_v40 = vld [vmem:[#allocation2 + $0x170] sm:$0xff]  ;;  %v3999_v46 = vld [vmem:[#allocation2 + $0x188] sm:$0xff] }
 0x4c4   : > { %7267 = vpow2.f32 %v6983_v25  ;;  %v10513_v6 = vmul.f32 %v8871_v15, %v10485_v48  ;;  %v4585_v38 = vmul.f32 %v9830_v36, %v4422_v13  ;;  %v4459_v61 = vmul.f32 %v8876_v54, %v4422_v13 }
 0x4c5   : > { %v4356_v43 = vmul.f32 %v8881_v23, %v10492_v32  ;;  %v4126_v29 = vmul.f32 %v8858_v42, %v3995_v7  ;;  %v4325_v2 = vadd.f32 %v4293_v37, %v4260_v30  ;;  %v4522_v14 = vmul.f32 %v9098_v55, %v4422_v13 }
 0x4c6   : > { %v4617_v1 = vadd.f32 %v4585_v38, %v4552_v28  ;;  %v4063_v25 = vmul.f32 %v8849_v49, %v3995_v7  ;;  %v4066_v45 = vmul.f32 %v8849_v49, %v3998_v56  ;;  %v4488_v36 = vadd.f32 %v10407_v62, %v4387_v50 }
 0x4c7   : > { %v4388_v57 = vadd.f32 %v4356_v43, %v4323_v9  ;;  %v4064_v53 = vmul.f32 %v8849_v49, %v10436_v58  ;;  %v4358_v5 = vmul.f32 %v8881_v23, %v10516_v33  ;;  %v10530_v30 = vpop.eup %7265  ;;  %v4031_v13 = vmul.f32 %v8846_v16, %v10427_v60  ;;  %v4001_v43 = vld [vmem:[#allocation2 + $0x1a0] sm:$0xff] }
 0x4c8   : > { %v4033_v28 = vmul.f32 %v8846_v16, %v10436_v58  ;;  %v4067_v37 = vmul.f32 %v8849_v49, %v3999_v46  ;;  %v4128_v62 = vmul.f32 %v8858_v42, %v3997_v40  ;;  %v4158_v50 = vadd.f32 %v4126_v29, %v4093_v12  ;;  %v10548_v29 = vld [vmem:[#allocation2 + $0x152] sm:$0xff] }
 0x4c9   : > { %v4390_v9 = vadd.f32 %v4358_v5, %v4325_v2  ;;  %v4129_v38 = vmul.f32 %v8858_v42, %v3998_v56  ;;  %v4065_v59 = vmul.f32 %v8849_v49, %v3997_v40  ;;  %v4131_v60 = vmul.f32 %v8858_v42, %v4000_v21  ;;  %v10554_v21 = vld [vmem:[%s12164_s5 + $0x8] ss:$0 sm:$0xff] }
 0x4ca   : > { %v10540_v22 = vpop.eup %7267  ;;  %v4098_v39 = vadd.f32 %v4066_v45, %v4033_v28  ;;  %v4034_v58 = vmul.f32 %v8846_v16, %v3997_v40  ;;  %v4095_v52 = vadd.f32 %v4063_v25, %v4030_v44  ;;  %v4489_v19 = vadd.f32 %v4457_v10, %v4388_v57  ;;  %v4196_v45 = vld [vmem:[#allocation2 + $0x171] sm:$0xff]  ;;  %v4197_v28 = vld [vmem:[#allocation2 + $0x181] sm:$0xff] }
 0x4cb   : > { %v4096_v8 = vadd.f32 %v4064_v53, %v4031_v13  ;;  %v4032_v12 = vmul.f32 %v8846_v16, %v3995_v7  ;;  %v4130_v5 = vmul.f32 %v8858_v42, %v3999_v46  ;;  %v4553_v56 = vadd.f32 %v4521_v63, %v4488_v36  ;;  %v10561_v63 = vld [vmem:[%s12165_s6] ss:$0 sm:$0xff]  ;;  %v10573_v57 = vld [vmem:[#allocation2 + $0x16a] sm:$0xff] }
 0x4cc   : > { %v4099_v49 = vadd.f32 %v4067_v37, %v4034_v58  ;;  %v4132_v2 = vmul.f32 %v8858_v42, %v4001_v43  ;;  %v4160_v34 = vadd.f32 %v4128_v62, %v4095_v52  ;;  %v4586_v10 = vmul.f32 %v10554_v21, %v10542_v0  ;;  %v4194_v42 = vld [vmem:[#allocation2 + $0x159] sm:$0xff]  ;;  %v4198_v43 = vld [vmem:[#allocation2 + $0x189] sm:$0xff] }
 0x4cd   : > { %v4491_v53 = vadd.f32 %v4459_v61, %v4390_v9  ;;  %v4161_v44 = vadd.f32 %v4129_v38, %v4096_v8  ;;  %v4097_v16 = vadd.f32 %v4065_v59, %v4032_v12  ;;  %v4653_v7 = vadd.f32 %v10561_v63, %v4617_v1 }
 0x4ce   : > { %v4259_v52 = vadd.f32 %v10468_v20, %v4158_v50  ;;  %v4163_v40 = vadd.f32 %v4131_v60, %v4098_v39  ;;  %v4229_v46 = vmul.f32 %v8855_v3, %v10485_v48  ;;  %v4230_v25 = vmul.f32 %v8855_v3, %v10492_v32 }
 0x4cf   : > { %v4554_v61 = vadd.f32 %v4522_v14, %v4489_v19  ;;  %v4524_v59 = vmul.f32 %v9098_v55, %v10548_v29  ;;  %v4162_v8 = vadd.f32 %v4130_v5, %v4097_v16  ;;  %v4618_v36 = vadd.f32 %v4586_v10, %v4553_v56 }
 0x4d0   : > { %v4232_v1 = vmul.f32 %v8855_v3, %v10516_v33  ;;  %v4164_v20 = vadd.f32 %v4132_v2, %v4099_v49  ;;  %v4261_v39 = vadd.f32 %v4229_v46, %v4160_v34  ;;  %v4587_v48 = vmul.f32 %v10554_v21, %v10548_v29  ;;  %v4200_v2 = vld [vmem:[#allocation2 + $0x1a1] sm:$0xff] }
 0x4d1   : > { %v4556_v13 = vadd.f32 %v4524_v59, %v4491_v53  ;;  %v4262_v32 = vadd.f32 %v4230_v25, %v4161_v44  ;;  %v4231_v19 = vmul.f32 %v8855_v3, %v4194_v42  ;;  %v4324_v14 = vadd.f32 %v10513_v6, %v4259_v52 }
 0x4d2   : > { %v4264_v37 = vadd.f32 %v4232_v1, %v4163_v40  ;;  %v4233_v62 = vmul.f32 %v8855_v3, %v4196_v45  ;;  %v4294_v50 = vmul.f32 %v8871_v15, %v4194_v42  ;;  %v4619_v9 = vadd.f32 %v4587_v48, %v4554_v61 }
 0x4d3   : > { %v4295_v38 = vmul.f32 %v8871_v15, %v10516_v33  ;;  %v4589_v34 = vmul.f32 %v10554_v21, %v10573_v57  ;;  %v4263_v60 = vadd.f32 %v4231_v19, %v4162_v8  ;;  %v4654_v58 = vadd.f32 %v10561_v63, %v4618_v36  ;;  %v7325_v33 = vld [vmem:[#allocation2 + $0x199] sm:$0xff] }
 0x4d4   : > { %v4297_v12 = vmul.f32 %v8871_v15, %v4197_v28  ;;  %v4265_v5 = vadd.f32 %v4233_v62, %v4164_v20  ;;  %v4326_v6 = vadd.f32 %v4294_v50, %v4261_v39  ;;  %v4357_v56 = vmul.f32 %v8881_v23, %v4194_v42 }
 0x4d5   : > { %v4621_v3 = vadd.f32 %v4589_v34, %v4556_v13  ;;  %v4327_v49 = vadd.f32 %v4295_v38, %v4262_v32  ;;  %v4296_v10 = vmul.f32 %v8871_v15, %v4196_v45  ;;  %v4362_v44 = vmul.f32 %v7325_v33, %v8881_v23  ;;  %v4425_v32 = vld [vmem:[#allocation2 + $0x15a] sm:$0xff]  ;;  %v4428_v34 = vld [vmem:[#allocation2 + $0x182] sm:$0xff] }
 0x4d6   : > { %v4329_v53 = vadd.f32 %v4297_v12, %v4264_v37  ;;  %v4298_v16 = vmul.f32 %v8871_v15, %v4198_v43  ;;  %v4359_v52 = vmul.f32 %v8881_v23, %v4196_v45  ;;  %v4389_v40 = vadd.f32 %v4357_v56, %v4324_v14  ;;  %v4429_v12 = vld [vmem:[#allocation2 + $0x18a] sm:$0xff] }
 0x4d7   : > { %v4655_v46 = vadd.f32 %v10561_v63, %v4619_v9  ;;  %v4360_v25 = vmul.f32 %v8881_v23, %v4197_v28  ;;  %v4328_v61 = vadd.f32 %v4296_v10, %v4263_v60  ;;  %v6984_v42 = vmul.f32 -1.442695, %v10509_v47 }
 0x4d8   : > { %v4330_v59 = vadd.f32 %v4298_v16, %v4265_v5  ;;  %v4363_v8 = vmul.f32 %v8881_v23, %v4200_v2  ;;  %v4391_v36 = vadd.f32 %v4359_v52, %v4326_v6  ;;  %v6985_v1 = vmul.f32 -1.442695, %v4653_v7  ;;  %v4427_v7 = vld [vmem:[#allocation2 + $0x172] sm:$0xff] }
 0x4d9   : > { %v4657_v20 = vadd.f32 %v10561_v63, %v4621_v3  ;;  %v4392_v39 = vadd.f32 %v4360_v25, %v4327_v49  ;;  %v4361_v15 = vmul.f32 %v8881_v23, %v4198_v43  ;;  %v4523_v45 = vmul.f32 %v9098_v55, %v10542_v0 }
 0x4da   : > { %v6986_v48 = vmul.f32 -1.442695, %v4654_v58  ;;  %v4394_v13 = vadd.f32 %v4362_v44, %v4329_v53  ;;  %v4460_v28 = vmul.f32 %v8876_v54, %v10542_v0  ;;  %v4461_v47 = vmul.f32 %v8876_v54, %v10548_v29 }
 0x4db   : > { %v6987_v19 = vmul.f32 -1.442695, %v4655_v46  ;;  %v4393_v14 = vadd.f32 %v4361_v15, %v4328_v61  ;;  %v4490_v37 = vadd.f32 %v10495_v31, %v4389_v40  ;;  %7269 = vpow2.f32 %v6984_v42 }
 0x4dc   : > { %v4463_v23 = vmul.f32 %v8876_v54, %v10573_v57  ;;  %v4395_v62 = vadd.f32 %v4363_v8, %v4330_v59  ;;  %v4492_v50 = vadd.f32 %v4460_v28, %v4391_v36  ;;  %v12424_v9 = vand.u32 2147483647, %v10270_v11 }
 0x4dd   : > { %vm5052_vm1 = vweird.f32 %v10397_v35  ;;  %7271 = vpow2.f32 %v6985_v1  ;;  %v6989_v0 = vmul.f32 -1.442695, %v4657_v20  ;;  %v4493_v29 = vadd.f32 %v4461_v47, %v4392_v39  ;;  %v12431_v47 = vld [vmem:[#allocation71_spill] sm:$0xff] }
 0x4de   : > { %vm10609_vm15 = vcmp.eq.f32.partialorder %v12424_v9, 8.507059e+37  ;;  %v4462_v31 = vmul.f32 %v8876_v54, %v4425_v32  ;;  %7273 = vpow2.f32 %v6986_v48  ;;  %v4464_v43 = vmul.f32 %v8876_v54, %v4427_v7  ;;  %v4431_v54 = vld [vmem:[#allocation2 + $0x1a2] sm:$0xff] }
 0x4df   : > { %v4495_v60 = vadd.f32 %v4463_v23, %v4394_v13  ;;  %v4525_v58 = vmul.f32 %v9098_v55, %v4425_v32  ;;  %vm5051_vm2 = vweird.f32 %v10323_v41  ;;  %7275 = vpow2.f32 %v6987_v19 }
 0x4e0   : > { %v4526_v11 = vmul.f32 %v9098_v55, %v10573_v57  ;;  %v4494_v5 = vadd.f32 %v4462_v31, %v4393_v14  ;;  %v4555_v6 = vadd.f32 %v4523_v45, %v4490_v37  ;;  %v5062_v56 = vmul.f32 %v10504_v18, %v10446_v4  ;;  %vm10667_vm5 = vmor %vm5051_vm2, %vm5052_vm1 }
 0x4e1   : > { %v4496_v3 = vadd.f32 %v4464_v43, %v4395_v62  ;;  %v4528_v49 = vmul.f32 %v9098_v55, %v4428_v34  ;;  %v4557_v2 = vadd.f32 %v4525_v58, %v4492_v50  ;;  %7277 = vpow2.f32 %v6989_v0  ;;  %v7270_v44 = vpop.eup %7269 }
 0x4e2   : > { %v4527_v10 = vmul.f32 %v9098_v55, %v4427_v7  ;;  %v4558_v53 = vadd.f32 %v4526_v11, %v4493_v29  ;;  %v4588_v33 = vmul.f32 %v10554_v21, %v4425_v32  ;;  %v5077_v57 = vmul.f32 %v10530_v30, %v10480_v51  ;;  %v12435_v11 = vld [vmem:[#allocation72_spill] sm:$0xff] }
 0x4e3   : > { %v4529_v16 = vmul.f32 %v9098_v55, %v4429_v12  ;;  %v4560_v52 = vadd.f32 %v4528_v49, %v4495_v60  ;;  %v4590_v40 = vmul.f32 %v10554_v21, %v4427_v7  ;;  %v7272_v46 = vpop.eup %7271  ;;  %v5050_v25 = vadd.f32 %v10397_v35, %v10477_v26  ;;  %v12432_v7 = vld [vmem:[#allocation37_spill] sm:$0xff] }
 0x4e4   : > { %v12427_v61 = vand.u32 2147483647, %v10323_v41  ;;  %v4559_v59 = vadd.f32 %v4527_v10, %v4494_v5  ;;  %v4591_v8 = vmul.f32 %v10554_v21, %v4428_v34  ;;  %v4620_v36 = vadd.f32 %v4588_v33, %v4555_v6  ;;  %v7274_v1 = vpop.eup %7273 }
 0x4e5   : > { %v10639_v55 = vadd.f32 1.0, %v10540_v22  ;;  %v4561_v20 = vadd.f32 %v4529_v16, %v4496_v3  ;;  %v4594_v39 = vmul.f32 %v10554_v21, %v4431_v54  ;;  %v4622_v15 = vadd.f32 %v4590_v40, %v4557_v2  ;;  %v7276_v45 = vpop.eup %7275 }
 0x4e6   : > { %vm10633_vm3 = vcmp.eq.f32.partialorder %v12427_v61, 8.507059e+37  ;;  %v5063_v26 = vsub.f32 1.0, %v5062_v56  ;;  %v10642_v48 = vadd.f32 1.0, %v7270_v44  ;;  %v4592_v13 = vmul.f32 %v10554_v21, %v4429_v12 }
 0x4e7   : > { %v4623_v32 = vadd.f32 %v4591_v8, %v4558_v53  ;;  %v12430_v28 = vsel %vm10463_vm14, %v10340_v17, %v10443_v24  ;;  %v5078_v19 = vsub.f32 1.0, %v5077_v57  ;;  %v10655_v14 = vadd.f32 1.0, %v7272_v46  ;;  %v7278_v23 = vpop.eup %7277 }
 0x4e8   : > { %v10653_v22 = vsel %vm10609_vm15, %v12431_v47, %v12430_v28  ;;  %v4625_v37 = vadd.f32 %v12432_v7, %v4560_v52  ;;  %vm5066_vm4 = vweird.f32 %v10446_v4  ;;  %v5072_v21 = vand.u32 2147483648, %v10446_v4 }
 0x4e9   : > { %v10660_v62 = vadd.f32 1.0, %v7274_v1  ;;  %v4624_v27 = vadd.f32 %v4592_v13, %v4559_v59  ;;  %v4656_v17 = vadd.f32 %v10561_v63, %v4620_v36  ;;  %7279 = vrcp.f32 %v10639_v55 }
 0x4ea   : > { %v10672_v50 = vadd.f32 1.0, %v7276_v45  ;;  %v4626_v9 = vadd.f32 %v4594_v39, %v4561_v20  ;;  %v4658_v38 = vadd.f32 %v10561_v63, %v4622_v15  ;;  %v5054_v0 = vsel %vm10667_vm5, %v10397_v35, %v5050_v25 }
 0x4eb   : > { %v5064_v29 = vmul.f32 %v10504_v18, %v5063_v26  ;;  %7281 = vrcp.f32 %v10642_v48  ;;  %v4659_v41 = vadd.f32 %v10561_v63, %v4623_v32  ;;  %v5079_v34 = vmul.f32 %v10530_v30, %v5078_v19  ;;  %v3901_v49 = vpop.xlane.xlu2 %3900 }
 0x4ec   : > { %7283 = vrcp.f32 %v10655_v14  ;;  %v10683_v31 = vadd.f32 1.0, %v7278_v23  ;;  %v4661_v43 = vadd.f32 %v10561_v63, %v4625_v37  ;;  %v5073_v60 = vor.u32 1.1754944e-38, %v5072_v21 }
 0x4ed   : > { %7285 = vrcp.f32 %v10660_v62  ;;  %v4660_v58 = vadd.f32 %v10561_v63, %v4624_v27  ;;  %v6988_v35 = vmul.f32 -1.442695, %v4656_v17  ;;  %v10691_v12 = vsel %vm10633_vm3, %v12435_v11, %v5054_v0 }
 0x4ee   : > { %v12436_v5 = vand.u32 2147483647, %v10446_v4  ;;  %7287 = vrcp.f32 %v10672_v50  ;;  %v4662_v56 = vadd.f32 %v10561_v63, %v4626_v9  ;;  %v6990_v3 = vmul.f32 -1.442695, %v4658_v38  ;;  %v3904_v63 = vld [vmem:[%s12167_s8] sm:$0xf] }
 0x4ef   : > { %v5065_v2 = vadd.f32 %v10504_v18, %v5064_v29  ;;  %vm5067_vm8 = vweird.f32 %v10504_v18  ;;  %v6991_v54 = vmul.f32 -1.442695, %v4659_v41  ;;  %v3902_v10 = vmax.f32 %v3901_v49, 0.0  ;;  %v10703_v53 = vpop.eup %7279 }
 0x4f0   : > { %vm10695_vm6 = vcmp.eq.f32.partialorder %v12436_v5, 8.507059e+37  ;;  %v5080_v33 = vadd.f32 %v10530_v30, %v5079_v34  ;;  %vm5082_vm9 = vweird.f32 %v10530_v30  ;;  %7289 = vrcp.f32 %v10683_v31  ;;  %vm10720_vm11 = vmor %vm5066_vm4, %vm5067_vm8 }
 0x4f1   : > { %v6993_v44 = vmul.f32 -1.442695, %v4661_v43  ;;  %v10711_v57 = vpop.eup %7281  ;;  %vm5081_vm10 = vweird.f32 %v10480_v51  ;;  %7291 = vpow2.f32 %v6988_v35  ;;  %v6992_v16 = vmul.f32 -1.442695, %v4660_v58 }
 0x4f2   : > { %v3903_v52 = vmin.f32 %v3902_v10, 6.0  ;;  %v10714_v40 = vpop.eup %7283  ;;  %v5085_v25 = vand.u32 2147483647, %v10480_v51  ;;  %v5087_v61 = vand.u32 2147483648, %v10480_v51  ;;  %7293 = vpow2.f32 %v6990_v3  ;;  %vm10733_vm12 = vmor %vm5081_vm10, %vm5082_vm9 }
 0x4f3   : > { %v6994_v42 = vmul.f32 -1.442695, %v4662_v56  ;;  %v10726_v59 = vpop.eup %7285  ;;  %v5069_v8 = vsel %vm10720_vm11, %v10504_v18, %v5065_v2  ;;  %v5092_v36 = vmul.f32 %v10703_v53, %v10639_v55  ;;  %7295 = vpow2.f32 %v6991_v54 }
 0x4f4   : > { %v3905_v1 = vmul.f32 %v3904_v63, %v3903_v52  ;;  %v10739_v51 = vpop.eup %7287  ;;  %v5084_v20 = vsel %vm10733_vm12, %v10530_v30, %v5080_v33  ;;  %v5102_v39 = vand.u32 2147483648, %v10639_v55  ;;  %v5107_v18 = vmul.f32 %v10711_v57, %v10642_v48 }
 0x4f5   : > { %7297 = vpow2.f32 %v6993_v44  ;;  %v5117_v15 = vand.u32 2147483648, %v10642_v48  ;;  %v5122_v45 = vmul.f32 %v10714_v40, %v10655_v14  ;;  %v5088_v32 = vor.u32 1.1754944e-38, %v5087_v61 }
 0x4f6   : > { %7299 = vpow2.f32 %v6992_v16  ;;  %v3906_v26 = vsel %vm3898_vm7, %v3905_v1, 0.0  ;;  %v10751_v13 = vpop.eup %7289  ;;  %v5137_v30 = vmul.f32 %v10726_v59, %v10660_v62  ;;  %v10757_v19 = vsel %vm10695_vm6, %v5073_v60, %v5069_v8 }
 0x4f7   : > { %7301 = vpow2.f32 %v6994_v42  ;;  %v3907_v28 = vrot.slane %v3906_v26, 4  ;;  %v7292_v47 = vpop.eup %7291  ;;  %vm5086_vm13 = vcmp.eq.f32.partialorder %v5085_v25, 8.507059e+37  ;;  %v5093_v7 = vsub.f32 1.0, %v5092_v36  ;;  %v12498_v36 = vld [vmem:[#allocation70_spill] sm:$0xff] }
 0x4f8   : > { %v5152_v37 = vmul.f32 %v10739_v51, %v10672_v50  ;;  %v7294_v23 = vpop.eup %7293  ;;  %v10761_v21 = vsel %vm5086_vm13, %v5088_v32, %v5084_v20  ;;  %v5100_v27 = vand.u32 2147483647, %v10639_v55  ;;  %v5108_v17 = vsub.f32 1.0, %v5107_v18 }
 0x4f9   : > { %v3908_v24 = vadd.f32 %v3907_v28, %v3906_v26  ;;  %v7296_v9 = vpop.eup %7295  ;;  %vm5096_vm7 = vweird.f32 %v10639_v55  ;;  %v10765_v38 = vor.u32 1.1754944e-38, %v5102_v39  ;;  %v5115_v0 = vand.u32 2147483647, %v10642_v48 }
 0x4fa   : > { %v10768_v29 = vor.u32 1.1754944e-38, %v5117_v15  ;;  %v5123_v41 = vsub.f32 1.0, %v5122_v45  ;;  %vm5097_vm14 = vweird.f32 %v10703_v53  ;;  %vm5111_vm15 = vweird.f32 %v10642_v48 }
 0x4fb   : > { %v7298_v34 = vpop.eup %7297  ;;  %v5138_v43 = vsub.f32 1.0, %v5137_v30  ;;  %v10772_v60 = vadd.f32 1.0, %v7292_v47  ;;  %v3909_v58 = vrot.slane %v3908_v24, 2  ;;  %v5094_v11 = vmul.f32 %v10703_v53, %v5093_v7  ;;  %vm10816_vm6 = vmor %vm5096_vm7, %vm5097_vm14 }
 0x4fc   : > { %v7300_v35 = vpop.eup %7299  ;;  %vm5112_vm1 = vweird.f32 %v10711_v57  ;;  %v5153_v5 = vsub.f32 1.0, %v5152_v37  ;;  %v10776_v6 = vadd.f32 1.0, %v7294_v23  ;;  %v5109_v3 = vmul.f32 %v10711_v57, %v5108_v17 }
 0x4fd   : > { %v7302_v56 = vpop.eup %7301  ;;  %vm5126_vm2 = vweird.f32 %v10655_v14  ;;  %v10780_v49 = vadd.f32 1.0, %v7296_v9  ;;  %v3910_v2 = vadd.f32 %v3909_v58, %v3908_v24  ;;  %v5124_v54 = vmul.f32 %v10714_v40, %v5123_v41  ;;  %vm10827_vm9 = vmor %vm5111_vm15, %vm5112_vm1 }
 0x4fe   : > { %v5130_v10 = vand.u32 2147483647, %v10655_v14  ;;  %v5132_v33 = vand.u32 2147483648, %v10655_v14  ;;  %v10785_v44 = vadd.f32 1.0, %v7298_v34  ;;  %v5139_v63 = vmul.f32 %v10726_v59, %v5138_v43 }
 0x4ff   : > { %v10788_v16 = vadd.f32 1.0, %v7300_v35  ;;  %7303 = vrcp.f32 %v10772_v60  ;;  %v3911_v52 = vrot.slane %v3910_v2, 1  ;;  %vm10791_vm3 = vcmp.eq.f32.partialorder %v5100_v27, 8.507059e+37 }
 0x500   : > { %v5154_v25 = vmul.f32 %v10739_v51, %v5153_v5  ;;  %v5182_v61 = vmul.f32 %v10751_v13, %v10683_v31  ;;  %v10798_v42 = vadd.f32 1.0, %v7302_v56  ;;  %7305 = vrcp.f32 %v10776_v6 }
 0x501   : > { %v5095_v8 = vadd.f32 %v10703_v53, %v5094_v11  ;;  %v5110_v4 = vadd.f32 %v10711_v57, %v5109_v3  ;;  %vm10803_vm4 = vcmp.eq.f32.partialorder %v5115_v0, 8.507059e+37  ;;  %7307 = vrcp.f32 %v10780_v49 }
 0x502   : > { %v3912_v1 = vadd.f32 %v3911_v52, %v3910_v2  ;;  %v5125_v20 = vadd.f32 %v10714_v40, %v5124_v54  ;;  %vm5127_vm5 = vweird.f32 %v10714_v40  ;;  %v5147_v39 = vand.u32 2147483648, %v10660_v62 }
 0x503   : > { %7309 = vrcp.f32 %v10785_v44  ;;  %v5140_v15 = vadd.f32 %v10726_v59, %v5139_v63  ;;  %vm5142_vm8 = vweird.f32 %v10726_v59  ;;  %v5155_v55 = vadd.f32 %v10739_v51, %v5154_v25  ;;  %vm10838_vm11 = vmor %vm5126_vm2, %vm5127_vm5 }
 0x504   : > { %7311 = vrcp.f32 %v10788_v16  ;;  %v6962_v45 = vmul.f32 -1.442695, %v3912_v1  ;;  %vm5157_vm10 = vweird.f32 %v10739_v51  ;;  %v5183_v32 = vsub.f32 1.0, %v5182_v61 }
 0x505   : > { %7313 = vrcp.f32 %v10798_v42  ;;  %v10834_v30 = vpop.eup %7303  ;;  %vm5141_vm12 = vweird.f32 %v10660_v62  ;;  %v5145_v48 = vand.u32 2147483647, %v10660_v62  ;;  %v5162_v47 = vand.u32 2147483648, %v10672_v50 }
 0x506   : > { %7315 = vpow2.f32 %v6962_v45  ;;  %v10845_v7 = vpop.eup %7305  ;;  %v5099_v37 = vsel %vm10816_vm6, %v10703_v53, %v5095_v8  ;;  %vm10850_vm13 = vcmp.eq.f32.partialorder %v5130_v10, 8.507059e+37  ;;  %vm10856_vm7 = vmor %vm5141_vm12, %vm5142_vm8  ;;  %vm5156_vm14 = vweird.f32 %v10672_v50 }
 0x507   : > { %v5160_v62 = vand.u32 2147483647, %v10672_v50  ;;  %v10862_v27 = vpop.eup %7307  ;;  %v5114_v53 = vsel %vm10827_vm9, %v10711_v57, %v5110_v4  ;;  %v5129_v17 = vsel %vm10838_vm11, %v10714_v40, %v5125_v20  ;;  %v5144_v24 = vsel %vm10856_vm7, %v10726_v59, %v5140_v15  ;;  %vm10875_vm15 = vmor %vm5156_vm14, %vm5157_vm10 }
 0x508   : > { %v5190_v50 = vand.u32 2147483647, %v10683_v31  ;;  %v5133_v41 = vor.u32 1.1754944e-38, %v5132_v33  ;;  %v5148_v57 = vor.u32 1.1754944e-38, %v5147_v39  ;;  %v5159_v40 = vsel %vm10875_vm15, %v10739_v51, %v5155_v55 }
 0x509   : > { %v10880_v0 = vpop.eup %7309  ;;  %v5184_v34 = vmul.f32 %v10751_v13, %v5183_v32  ;;  %v10891_v59 = vsel %vm10791_vm3, %v10765_v38, %v5099_v37  ;;  %vm5146_vm1 = vcmp.eq.f32.partialorder %v5145_v48, 8.507059e+37  ;;  %v5163_v58 = vor.u32 1.1754944e-38, %v5162_v47 }
 0x50a   : > { %v10886_v43 = vpop.eup %7311  ;;  %v5192_v35 = vand.u32 2147483648, %v10683_v31  ;;  %v10899_v5 = vsel %vm10803_vm4, %v10768_v29, %v5114_v53  ;;  %v10903_v51 = vsel %vm10850_vm13, %v5133_v41, %v5129_v17  ;;  %v10905_v56 = vsel %vm5146_vm1, %v5148_v57, %v5144_v24 }
 0x50b   : > { %v10894_v11 = vpop.eup %7313  ;;  %vm5161_vm2 = vcmp.eq.f32.partialorder %v5160_v62, 8.507059e+37  ;;  %vm5186_vm3 = vweird.f32 %v10683_v31  ;;  %vm5187_vm5 = vweird.f32 %v10751_v13  ;;  %vm10911_vm6 = vcmp.eq.f32.partialorder %v5190_v50, 8.507059e+37 }
 0x50c   : > { %v7316_v38 = vpop.eup %7315  ;;  %v10907_v3 = vsel %vm5161_vm2, %v5163_v58, %v5159_v40  ;;  %v5185_v29 = vadd.f32 %v10751_v13, %v5184_v34  ;;  %v5167_v54 = vmul.f32 %v10834_v30, %v10772_v60  ;;  %v5197_v10 = vmul.f32 %v10845_v7, %v10776_v6  ;;  %vm10935_vm4 = vmor %vm5186_vm3, %vm5187_vm5  ;;  %v12488_v40 = vld [vmem:[#allocation46_spill] sm:$0xff]  ;;  %v12489_v58 = vld [vmem:[#allocation47_spill] sm:$0xff] }
 0x50d   : > { %v10920_v33 = vadd.f32 1.0, %v7316_v38  ;;  %v5193_v63 = vor.u32 1.1754944e-38, %v5192_v35  ;;  %v5177_v52 = vand.u32 2147483648, %v10772_v60  ;;  %v5207_v46 = vand.u32 2147483648, %v10776_v6  ;;  %v12490_v35 = vld [vmem:[#allocation48_spill] sm:$0xff] }
 0x50e   : > { %v5212_v25 = vmul.f32 %v10862_v27, %v10780_v49  ;;  %v5227_v61 = vmul.f32 %v10886_v43, %v10788_v16  ;;  %v5242_v8 = vmul.f32 %v10880_v0, %v10785_v44  ;;  %v5257_v4 = vmul.f32 %v10894_v11, %v10798_v42 }
 0x50f   : > { %7317 = vrcp.f32 %v10920_v33  ;;  %vm5171_vm8 = vweird.f32 %v10772_v60  ;;  %v5175_v1 = vand.u32 2147483647, %v10772_v60  ;;  %vm5201_vm9 = vweird.f32 %v10776_v6 }
 0x510   : > { %v5222_v20 = vand.u32 2147483648, %v10780_v49  ;;  %v5189_v39 = vsel %vm10935_vm4, %v10751_v13, %v5185_v29  ;;  %v5168_v18 = vsub.f32 1.0, %v5167_v54  ;;  %v5198_v15 = vsub.f32 1.0, %v5197_v10  ;;  %v12493_v10 = vld [vmem:[#allocation51_spill] sm:$0xff] }
 0x511   : > { %v5205_v31 = vand.u32 2147483647, %v10776_v6  ;;  %v10947_v45 = vor.u32 1.1754944e-38, %v5177_v52  ;;  %v10949_v26 = vor.u32 1.1754944e-38, %v5207_v46  ;;  %v5213_v55 = vsub.f32 1.0, %v5212_v25 }
 0x512   : > { %vm5216_vm10 = vweird.f32 %v10780_v49  ;;  %v5220_v32 = vand.u32 2147483647, %v10780_v49  ;;  %v5228_v28 = vsub.f32 1.0, %v5227_v61  ;;  %v5243_v48 = vsub.f32 1.0, %v5242_v8 }
 0x513   : > { %v5258_v47 = vsub.f32 1.0, %v5257_v4  ;;  %v10955_v37 = vsel %vm10911_vm6, %v5193_v63, %v5189_v39  ;;  %vm5172_vm11 = vweird.f32 %v10834_v30  ;;  %v10958_v13 = vor.u32 1.1754944e-38, %v5222_v20  ;;  %v12497_v4 = vld [vmem:[#allocation69_spill] sm:$0xff] }
 0x514   : > { %vm5246_vm12 = vweird.f32 %v10785_v44  ;;  %v5169_v14 = vmul.f32 %v10834_v30, %v5168_v18  ;;  %v5199_v62 = vmul.f32 %v10845_v7, %v5198_v15  ;;  %vm5202_vm13 = vweird.f32 %v10845_v7  ;;  %vm10977_vm15 = vmor %vm5171_vm8, %vm5172_vm11 }
 0x515   : > { %v7318_v23 = vpop.eup %7317  ;;  %vm5231_vm7 = vweird.f32 %v10788_v16  ;;  %v5214_v53 = vmul.f32 %v10862_v27, %v5213_v55  ;;  %v5235_v17 = vand.u32 2147483647, %v10788_v16  ;;  %v5237_v24 = vand.u32 2147483648, %v10788_v16  ;;  %vm11002_vm6 = vmor %vm5201_vm9, %vm5202_vm13 }
 0x516   : > { %v3918_v9 = vmul.f32 %v7318_v23, %v10920_v33  ;;  %vm5217_vm14 = vweird.f32 %v10862_v27  ;;  %v5229_v50 = vmul.f32 %v10886_v43, %v5228_v28  ;;  %v5244_v41 = vmul.f32 %v10880_v0, %v5243_v48 }
 0x517   : > { %v5259_v57 = vmul.f32 %v10894_v11, %v5258_v47  ;;  %vm10981_vm1 = vcmp.eq.f32.partialorder %v5175_v1, 8.507059e+37  ;;  %vm10985_vm2 = vcmp.eq.f32.partialorder %v5205_v31, 8.507059e+37  ;;  %vm10989_vm3 = vcmp.eq.f32.partialorder %v5220_v32, 8.507059e+37  ;;  %vm11013_vm8 = vmor %vm5216_vm10, %vm5217_vm14 }
 0x518   : > { %vm5247_vm5 = vweird.f32 %v10880_v0  ;;  %v5250_v60 = vand.u32 2147483647, %v10785_v44  ;;  %v5252_v38 = vand.u32 2147483648, %v10785_v44  ;;  %v3919_v2 = vsub.f32 1.0, %v3918_v9  ;;  %v12485_v9 = vld [vmem:[#allocation36_spill] sm:$0xff] }
 0x519   : > { %v5170_v29 = vadd.f32 %v10834_v30, %v5169_v14  ;;  %v5200_v54 = vadd.f32 %v10845_v7, %v5199_v62  ;;  %vm5232_vm4 = vweird.f32 %v10886_v43  ;;  %v3928_v63 = vand.u32 2147483648, %v10920_v33  ;;  %vm11024_vm9 = vmor %vm5246_vm12, %vm5247_vm5  ;;  %v12483_v62 = vld [vmem:[#allocation40_spill] sm:$0xff] }
 0x51a   : > { %v5215_v52 = vadd.f32 %v10862_v27, %v5214_v53  ;;  %v3920_v25 = vmul.f32 %v7318_v23, %v3919_v2  ;;  %vm3923_vm11 = vweird.f32 %v7318_v23  ;;  %v3926_v6 = vand.u32 2147483647, %v10920_v33  ;;  %vm11032_vm13 = vmor %vm5231_vm7, %vm5232_vm4 }
 0x51b   : > { %v5230_v61 = vadd.f32 %v10886_v43, %v5229_v50  ;;  %v5245_v8 = vadd.f32 %v10880_v0, %v5244_v41  ;;  %v5260_v49 = vadd.f32 %v10894_v11, %v5259_v57  ;;  %vm5262_vm10 = vweird.f32 %v10894_v11  ;;  %v12486_v50 = vld [vmem:[#allocation38_spill] sm:$0xff]  ;;  %v12487_v57 = vld [vmem:[#allocation45_spill] sm:$0xff] }
 0x51c   : > { %vm11036_vm14 = vcmp.eq.f32.partialorder %v5235_v17, 8.507059e+37  ;;  %v5267_v44 = vand.u32 2147483648, %v10798_v42  ;;  %v3921_v20 = vadd.f32 %v7318_v23, %v3920_v25  ;;  %vm3922_vm12 = vweird.f32 %v10920_v33  ;;  %v12484_v17 = vld [vmem:[#allocation41_spill] sm:$0xff] }
 0x51d   : > { %v5174_v39 = vsel %vm10977_vm15, %v10834_v30, %v5170_v29  ;;  %vm5261_vm5 = vweird.f32 %v10798_v42  ;;  %v5265_v16 = vand.u32 2147483647, %v10798_v42  ;;  %vm3924_vm7 = vmor %vm3922_vm12, %vm3923_vm11  ;;  %v3929_v18 = vor.u32 1.1754944e-38, %v3928_v63  ;;  %v12492_v29 = vld [vmem:[#allocation50_spill] sm:$0xff]  ;;  %v12495_v25 = vld [vmem:[#allocation61_spill] sm:$0xff] }
 0x51e   : > { %v5204_v15 = vsel %vm11002_vm6, %v10845_v7, %v5200_v54  ;;  %v5219_v31 = vsel %vm11013_vm8, %v10862_v27, %v5215_v52  ;;  %vm11054_vm4 = vmor %vm5261_vm5, %vm5262_vm10  ;;  %v3925_v30 = vsel %vm3924_vm7, %v7318_v23, %v3921_v20  ;;  %vm3927_vm15 = vcmp.eq.f32.partialorder %v3926_v6, 8.507059e+37  ;;  %v12494_v52 = vld [vmem:[#allocation52_spill] sm:$0xff] }
 0x51f   : > { %v5234_v42 = vsel %vm11032_vm13, %v10886_v43, %v5230_v61  ;;  %v5249_v55 = vsel %vm11024_vm9, %v10880_v0, %v5245_v8  ;;  %v5264_v7 = vsel %vm11054_vm4, %v10894_v11, %v5260_v49  ;;  %v3930_v32 = vsel %vm3927_vm15, %v3929_v18, %v3925_v30  ;;  %v12496_v61 = vld [vmem:[#allocation68_spill] sm:$0xff]  ;;  %v12500_v30 = vld [vmem:[#allocation23_spill] sm:$0xff] }
 0x520   : > { %v5238_v27 = vor.u32 1.1754944e-38, %v5237_v24  ;;  %vm5251_vm6 = vcmp.eq.f32.partialorder %v5250_v60, 8.507059e+37  ;;  %v5253_v28 = vor.u32 1.1754944e-38, %v5252_v38  ;;  %v5268_v48 = vor.u32 1.1754944e-38, %v5267_v44  ;;  %v12491_v38 = vld [vmem:[#allocation49_spill] sm:$0xff] }
 0x521   : > { %v5179_v47 = vsel %vm10981_vm1, %v10947_v45, %v5174_v39  ;;  %v5209_v43 = vsel %vm10985_vm2, %v10949_v26, %v5204_v15  ;;  %v5224_v0 = vsel %vm10989_vm3, %v10958_v13, %v5219_v31  ;;  %vm5266_vm8 = vcmp.eq.f32.partialorder %v5265_v16, 8.507059e+37  ;;  %v12499_v31 = vld [vmem:[#allocation22_spill] sm:$0xff] }
 0x522   : > { %v5239_v11 = vsel %vm11036_vm14, %v5238_v27, %v5234_v42  ;;  %v5254_v23 = vsel %vm5251_vm6, %v5253_v28, %v5249_v55  ;;  %v5269_v14 = vsel %vm5266_vm8, %v5268_v48, %v5264_v7  ;;  %v5271_v53 = vadd.f32 %v12483_v62, %v3930_v32  ;;  %v12501_v55 = vld [vmem:[#allocation24_spill] sm:$0xff]  ;;  %v12502_v28 = vld [vmem:[#allocation25_spill] sm:$0xff]  ;;  %v12503_v62 = vld [vmem:[#allocation26_spill] sm:$0xff] }
 0x523   : > { %v5272_v24 = vadd.f32 %v12484_v17, %v3930_v32  ;;  %v5273_v45 = vadd.f32 %v12485_v9, %v3930_v32  ;;  %v5274_v41 = vadd.f32 %v12486_v50, %v3930_v32  ;;  %v5275_v26 = vadd.f32 %v12487_v57, %v3930_v32  ;;  %v12506_v50 = vld [vmem:[#allocation29_spill] sm:$0xff] }
 0x524   : > { %v5276_v34 = vadd.f32 %v12488_v40, %v3930_v32  ;;  %v5277_v13 = vadd.f32 %v12489_v58, %v3930_v32  ;;  %v5278_v60 = vadd.f32 %v12490_v35, %v3930_v32  ;;  %v5279_v2 = vadd.f32 %v12491_v38, %v3930_v32  ;;  %v7092_v40 = vld [vmem:[%s12170_s11 + $0x10] sm:$0xff] }
 0x525   : > { %v5280_v54 = vadd.f32 %v12492_v29, %v3930_v32  ;;  %v5281_v63 = vadd.f32 %v12493_v10, %v3930_v32  ;;  %v5282_v46 = vadd.f32 %v12494_v52, %v3930_v32  ;;  %v5283_v6 = vadd.f32 %v12495_v25, %v3930_v32  ;;  %6427 = vmatpush.bf16.msrb.mxu2 %v7092_v40 }
 0x526   : > { %v5284_v8 = vadd.f32 %v12496_v61, %v3930_v32  ;;  %v5285_v49 = vadd.f32 %v12497_v4, %v3930_v32  ;;  %v5286_v1 = vadd.f32 %v12498_v36, %v3930_v32  ;;  %v5287_v44 = vadd.f32 %v10653_v22, %v3930_v32  ;;  %v12520_v4 = vld [vmem:[#allocation34_spill] sm:$0xff]  ;;  %v12521_v36 = vld [vmem:[#allocation9_spill] sm:$0xff] }
 0x527   : > { %v5288_v20 = vadd.f32 %v10691_v12, %v3930_v32  ;;  %v5289_v39 = vadd.f32 %v10757_v19, %v3930_v32  ;;  %v5290_v16 = vadd.f32 %v10761_v21, %v3930_v32  ;;  %v5291_v18 = vadd.f32 %v10891_v59, %v3930_v32 }
 0x528   : > { %v5292_v15 = vadd.f32 %v10899_v5, %v3930_v32  ;;  %v5303_v33 = vmul.f32 %v5271_v53, %v12499_v31  ;;  %v5304_v42 = vmul.f32 %v5272_v24, %v12500_v30  ;;  %v5305_v7 = vmul.f32 %v5273_v45, %v12501_v55  ;;  %v12524_v31 = vld [vmem:[#allocation35_spill] sm:$0xff] }
 0x529   : > { %v5293_v27 = vadd.f32 %v10903_v51, %v3930_v32  ;;  %v5294_v22 = vadd.f32 %v10905_v56, %v3930_v32  ;;  %v5295_v12 = vadd.f32 %v10907_v3, %v3930_v32  ;;  %v5306_v19 = vmul.f32 %v5274_v41, %v12502_v28  ;;  %v12504_v51 = vld [vmem:[#allocation27_spill] sm:$0xff]  ;;  %v12505_v3 = vld [vmem:[#allocation28_spill] sm:$0xff]  ;;  %v12507_v41 = vld [vmem:[#allocation30_spill] sm:$0xff] }
 0x52a   : > { %v5296_v48 = vadd.f32 %v5179_v47, %v3930_v32  ;;  %v5297_v21 = vadd.f32 %v10955_v37, %v3930_v32  ;;  %v5298_v59 = vadd.f32 %v5209_v43, %v3930_v32  ;;  %v5307_v5 = vmul.f32 %v5275_v26, %v12503_v62  ;;  %5335 = vst.msk [vmem:[#allocation2 + $0x19] sm:$0xff] %vm460_vm0, %v5303_v33  ;;  %v12508_v43 = vld [vmem:[#allocation8_spill] sm:$0xff]  ;;  %v12509_v26 = vld [vmem:[#allocation10_spill] sm:$0xff]  ;;  %v7090_v28 = vld [vmem:[%s12170_s11] sm:$0xff] }
 0x52b   : > { %v5299_v53 = vadd.f32 %v5224_v0, %v3930_v32  ;;  %v5300_v17 = vadd.f32 %v5239_v11, %v3930_v32  ;;  %v5301_v24 = vadd.f32 %v5254_v23, %v3930_v32  ;;  %v11110_v9 = vadd.f32 %v5269_v14, %v3930_v32  ;;  %5336 = vst.msk [vmem:[#allocation2 + $0x21] sm:$0xff] %vm460_vm0, %v5304_v42  ;;  %v12510_v11 = vld [vmem:[#allocation11_spill] sm:$0xff]  ;;  %v12511_v32 = vld [vmem:[#allocation12_spill] sm:$0xff]  ;;  %v12529_v62 = vld [vmem:[#allocation21_spill] sm:$0xff] }
 0x52c   : > { %v5308_v56 = vmul.f32 %v5276_v34, %v12504_v51  ;;  %v5309_v45 = vmul.f32 %v5277_v13, %v12505_v3  ;;  %v5310_v47 = vmul.f32 %v5278_v60, %v12506_v50  ;;  %v5311_v37 = vmul.f32 %v5279_v2, %v12507_v41  ;;  %5337 = vst.msk [vmem:[#allocation2 + $0x31] sm:$0xff] %vm460_vm0, %v5305_v7  ;;  %v12512_v34 = vld [vmem:[#allocation31_spill] sm:$0xff]  ;;  %v12513_v13 = vld [vmem:[#allocation13_spill] sm:$0xff]  ;;  %v12514_v60 = vld [vmem:[#allocation14_spill] sm:$0xff] }
 0x52d   : > { %v5312_v57 = vmul.f32 %v5280_v54, %v12508_v43  ;;  %v5313_v0 = vmul.f32 %v5281_v63, %v12509_v26  ;;  %v5314_v23 = vmul.f32 %v5282_v46, %v12510_v11  ;;  %v11122_v14 = vmul.f32 %v5283_v6, %v12511_v32  ;;  %5338 = vst.msk [vmem:[#allocation2 + $0x39] sm:$0xff] %vm460_vm0, %v5306_v19  ;;  %v12515_v2 = vld [vmem:[#allocation32_spill] sm:$0xff]  ;;  %v12516_v54 = vld [vmem:[#allocation15_spill] sm:$0xff]  ;;  %v12517_v63 = vld [vmem:[#allocation17_spill] sm:$0xff] }
 0x52e   : > { %v11129_v58 = vmul.f32 %v5284_v8, %v12512_v34  ;;  %v11132_v35 = vmul.f32 %v5285_v49, %v12513_v13  ;;  %v11135_v38 = vmul.f32 %v5286_v1, %v12514_v60  ;;  %v11138_v29 = vmul.f32 %v5287_v44, %v12515_v2  ;;  %5339 = vst.msk [vmem:[#allocation2 + $0x49] sm:$0xff] %vm460_vm0, %v5307_v5  ;;  %v12518_v46 = vld [vmem:[#allocation19_spill] sm:$0xff]  ;;  %v12519_v6 = vld [vmem:[#allocation33_spill] sm:$0xff]  ;;  %v7091_v8 = vld [vmem:[%s12170_s11 + $0x8] sm:$0xff] }
 0x52f   : > { %v11142_v10 = vmul.f32 %v5288_v20, %v12516_v54  ;;  %v11145_v52 = vmul.f32 %v5289_v39, %v12517_v63  ;;  %v11148_v25 = vmul.f32 %v5290_v16, %v12518_v46  ;;  %v11151_v61 = vmul.f32 %v5291_v18, %v12519_v6  ;;  %v12522_v44 = vld [vmem:[#allocation18_spill] sm:$0xff]  ;;  %v12523_v39 = vld [vmem:[#allocation16_spill] sm:$0xff]  ;;  %5340 = vst.msk [vmem:[#allocation2 + $0x51] sm:$0xff] %vm460_vm0, %v5308_v56  ;;  %v12526_v42 = vld [vmem:[#allocation39_spill] sm:$0xff] }
 0x530   : > { %v11157_v49 = vmul.f32 %v5292_v15, %v12520_v4  ;;  %v11160_v1 = vmul.f32 %v5293_v27, %v12521_v36  ;;  %v11163_v20 = vmul.f32 %v5294_v22, %v12522_v44  ;;  %v11166_v16 = vmul.f32 %v5295_v12, %v12523_v39  ;;  %v11172_v18 = vld [vmem:[%s12168_s9 + $0x8] ss:$0 sm:$0xff]  ;;  %v12525_v15 = vld [vmem:[#allocation20_spill] sm:$0xff]  ;;  %5341 = vst.msk [vmem:[#allocation2 + $0x61] sm:$0xff] %vm460_vm0, %v5309_v45  ;;  %v12528_v19 = vld [vmem:[#allocation43_spill] sm:$0xff] }
 0x531   : > { %v11175_v33 = vmul.f32 %v5296_v48, %v12524_v31  ;;  %v11178_v30 = vmul.f32 %v5297_v21, %v12525_v15  ;;  %v11181_v55 = vmul.f32 %v5298_v59, %v12526_v42  ;;  %v12527_v7 = vld [vmem:[#allocation42_spill] sm:$0xff]  ;;  %v5371_v22 = vld [vmem:[#allocation2 + $0x18] sm:$0xff]  ;;  %v11191_v48 = vmul.f32 %v5300_v17, %v12528_v19  ;;  %v12530_v59 = vld [vmem:[#allocation55_spill] sm:$0xff]  ;;  %5342 = vst.msk [vmem:[#allocation2 + $0x69] sm:$0xff] %vm460_vm0, %v5310_v47 }
 0x532   : > { %v11184_v27 = vmul.f32 %v5299_v53, %v12527_v7  ;;  %v5570_v12 = vld [vmem:[#allocation2 + $0x19] sm:$0xff]  ;;  %v11194_v21 = vmul.f32 %v5301_v24, %v12529_v62  ;;  %v5439_v51 = vmul.f32 %v12530_v59, %v5371_v22  ;;  %v5571_v56 = vld [vmem:[#allocation2 + $0x21] sm:$0xff]  ;;  %5343 = vst.msk [vmem:[#allocation2 + $0x79] sm:$0xff] %vm460_vm0, %v5311_v37  ;;  %6428 = vmatpush.bf16.msrb.mxu2 %v7091_v8  ;;  %v12535_v47 = vld [vmem:[#allocation56_spill] sm:$0xff] }
 0x533   : > { %v5372_v5 = vld [vmem:[#allocation2 + $0x20] sm:$0xff]  ;;  %v11199_v45 = vld [vmem:[#allocation2 + $0x30] sm:$0xff]  ;;  %v12532_v24 = vld [vmem:[#allocation53_spill] sm:$0xff]  ;;  %5344 = vst.msk [vmem:[#allocation2 + $0x81] sm:$0xff] %vm460_vm0, %v5312_v57 }
 0x534   : > { %v12531_v53 = vld [vmem:[#allocation62_spill] sm:$0xff]  ;;  %v5440_v41 = vmul.f32 %v12530_v59, %v5372_v5  ;;  %v11202_v43 = vld [vmem:[#allocation2 + $0x31] sm:$0xff]  ;;  %v5408_v26 = vmul.f32 %v12532_v24, %v5371_v22  ;;  %v5504_v60 = vmul.f32 %v12535_v47, %v11199_v45  ;;  %v12538_v36 = vld [vmem:[#allocation63_spill] sm:$0xff]  ;;  %5345 = vst.msk [vmem:[#allocation2 + $0x91] sm:$0xff] %vm460_vm0, %v5313_v0  ;;  %v5409_v7 = vmul.f32 %v12532_v24, %v5372_v5 }
 0x535   : > { %v5670_v3 = vmul.f32 %v12531_v53, %v5570_v12  ;;  %v5801_v50 = vld [vmem:[#allocation2 + $0x1a] sm:$0xff]  ;;  %v5802_v17 = vld [vmem:[#allocation2 + $0x22] sm:$0xff]  ;;  %v5671_v54 = vmul.f32 %v12531_v53, %v5571_v56  ;;  %v11215_v63 = vld [vmem:[#allocation2 + $0x32] sm:$0xff]  ;;  %v5735_v44 = vmul.f32 %v12538_v36, %v11202_v43  ;;  %5346 = vst.msk [vmem:[#allocation2 + $0x99] sm:$0xff] %vm460_vm0, %v5314_v23  ;;  %v5441_v22 = vmul.f32 %v12530_v59, %v11199_v45 }
 0x536   : > { %v12533_v11 = vld [vmem:[#allocation57_spill] sm:$0xff]  ;;  %v12534_v34 = vld [vmem:[#allocation54_spill] sm:$0xff]  ;;  %v11232_v15 = vld [vmem:[#allocation2 + $0x48] sm:$0xff]  ;;  %v5966_v19 = vmul.f32 %v11172_v18, %v11215_v63  ;;  %5347 = vst.msk [vmem:[#allocation2 + $0xa9] sm:$0xff] %vm460_vm0, %v11122_v14  ;;  %6429 = vmatpush.bf16.msrb.mxu2 %v7090_v28 }
 0x537   : > { %v5607_v32 = vmul.f32 %v12533_v11, %v5570_v12  ;;  %v11207_v40 = vld [vmem:[#allocation2 + $0x38] sm:$0xff]  ;;  %v5471_v13 = vadd.f32 %v5439_v51, %v12534_v34  ;;  %v12537_v6 = vld [vmem:[#allocation58_spill] sm:$0xff]  ;;  %v11244_v0 = vld [vmem:[#allocation2 + $0x50] sm:$0xff]  ;;  %5348 = vst.msk [vmem:[#allocation2 + $0xb1] sm:$0xff] %vm460_vm0, %v11129_v58  ;;  %v5506_v34 = vmul.f32 %v12535_v47, %v11232_v15 }
 0x538   : > { %v11212_v2 = vld [vmem:[#allocation2 + $0x39] sm:$0xff]  ;;  %v5472_v8 = vadd.f32 %v5440_v41, %v12537_v6  ;;  %v5505_v4 = vmul.f32 %v12535_v47, %v11207_v40  ;;  %v5442_v62 = vmul.f32 %v12530_v59, %v11207_v40  ;;  %v12539_v51 = vld [vmem:[#allocation59_spill] sm:$0xff]  ;;  %v5473_v41 = vadd.f32 %v5441_v22, %v5408_v26  ;;  %v11257_v14 = vld [vmem:[#allocation2 + $0x51] sm:$0xff]  ;;  %5349 = vst.msk [vmem:[#allocation2 + $0xc1] sm:$0xff] %vm460_vm0, %v11132_v35 }
 0x539   : > { %v12536_v46 = vld [vmem:[#allocation65_spill] sm:$0xff]  ;;  %v5536_v42 = vadd.f32 %v5504_v60, %v5471_v13  ;;  %v5736_v57 = vmul.f32 %v12538_v36, %v11212_v2  ;;  %v11255_v13 = vld [vmem:[#allocation2 + $0x49] sm:$0xff]  ;;  %5350 = vst.msk [vmem:[#allocation2 + $0xc9] sm:$0xff] %vm460_vm0, %v11135_v38  ;;  %v5673_v22 = vmul.f32 %v12531_v53, %v11212_v2 }
 0x53a   : > { %v11218_v37 = vmul.f32 %v12536_v46, %v5801_v50  ;;  %v11226_v39 = vld [vmem:[#allocation2 + $0x3a] sm:$0xff]  ;;  %v11229_v31 = vmul.f32 %v12536_v46, %v5802_v17  ;;  %v5537_v12 = vadd.f32 %v5505_v4, %v5472_v8  ;;  %v12540_v28 = vld [vmem:[#allocation60_spill] sm:$0xff]  ;;  %v5474_v6 = vadd.f32 %v5442_v62, %v5409_v7  ;;  %5351 = vst.msk [vmem:[#allocation2 + $0xd9] sm:$0xff] %vm460_vm0, %v11138_v29 }
 0x53b   : > { %v5637_v23 = vadd.f32 %v12539_v51, %v5536_v42  ;;  %v5967_v5 = vmul.f32 %v11172_v18, %v11226_v39  ;;  %v5507_v8 = vmul.f32 %v12535_v47, %v11244_v0  ;;  %v5608_v4 = vmul.f32 %v12533_v11, %v5571_v56  ;;  %5352 = vst.msk [vmem:[#allocation2 + $0xe1] sm:$0xff] %vm460_vm0, %v11142_v10  ;;  %v12541_v62 = vld [vmem:[#allocation64_spill] sm:$0xff] }
 0x53c   : > { %v5638_v60 = vadd.f32 %v12540_v28, %v5537_v12  ;;  %v5538_v26 = vadd.f32 %v5506_v34, %v5473_v41  ;;  %v5672_v42 = vmul.f32 %v12531_v53, %v11202_v43  ;;  %v5737_v7 = vmul.f32 %v12538_v36, %v11255_v13  ;;  %5353 = vst.msk [vmem:[#allocation2 + $0xf1] sm:$0xff] %vm460_vm0, %v11145_v52 }
 0x53d   : > { %v5702_v58 = vadd.f32 %v5670_v3, %v5637_v23  ;;  %v5539_v35 = vadd.f32 %v5507_v8, %v5474_v6  ;;  %v5738_v56 = vmul.f32 %v12538_v36, %v11257_v14  ;;  %v5838_v51 = vmul.f32 %v12541_v62, %v5801_v50  ;;  %5354 = vst.msk [vmem:[#allocation2 + $0xf9] sm:$0xff] %vm460_vm0, %v11148_v25  ;;  %v11290_v50 = vld [vmem:[#allocation2 + $0x60] sm:$0xff] }
 0x53e   : > { %v5703_v12 = vadd.f32 %v5671_v54, %v5638_v60  ;;  %v5639_v38 = vadd.f32 %v5607_v32, %v5538_v26  ;;  %v5839_v23 = vmul.f32 %v12541_v62, %v5802_v17  ;;  %v5903_v41 = vmul.f32 %v12536_v46, %v11215_v63  ;;  %v11292_v17 = vld [vmem:[#allocation2 + $0x68] sm:$0xff]  ;;  %5355 = vst.msk [vmem:[#allocation2 + $0x109] sm:$0xff] %vm460_vm0, %v11151_v61 }
 0x53f   : > { %v5767_v3 = vadd.f32 %v5735_v44, %v5702_v58  ;;  %v5640_v29 = vadd.f32 %v5608_v4, %v5539_v35  ;;  %v5904_v34 = vmul.f32 %v12536_v46, %v11226_v39  ;;  %v12542_v44 = vld [vmem:[#allocation66_spill] sm:$0xff]  ;;  %v5410_v52 = vmul.f32 %v12532_v24, %v11199_v45  ;;  %v11308_v4 = vld [vmem:[%s12169_s10] ss:$0 sm:$0xff]  ;;  %5356 = vst.msk [vmem:[#allocation2 + $0x111] sm:$0xff] %vm460_vm0, %v11157_v49 }
 0x540   : > { %v5768_v54 = vadd.f32 %v5736_v57, %v5703_v12  ;;  %v5704_v10 = vadd.f32 %v5672_v42, %v5639_v38  ;;  %v5411_v32 = vmul.f32 %v12532_v24, %v11207_v40  ;;  %v12543_v57 = vld [vmem:[#allocation67_spill] sm:$0xff]  ;;  %v5443_v25 = vmul.f32 %v12530_v59, %v11232_v15  ;;  %5357 = vst.msk [vmem:[#allocation2 + $0x121] sm:$0xff] %vm460_vm0, %v11160_v1 }
 0x541   : > { %v5868_v28 = vadd.f32 %v12542_v44, %v5767_v3  ;;  %v5705_v6 = vadd.f32 %v5673_v22, %v5640_v29  ;;  %v5444_v8 = vmul.f32 %v12530_v59, %v11244_v0  ;;  %v5508_v61 = vmul.f32 %v12535_v47, %v11290_v50  ;;  %5358 = vst.msk [vmem:[#allocation2 + $0x129] sm:$0xff] %vm460_vm0, %v11163_v20  ;;  %v11333_v20 = vld [vmem:[#allocation2 + $0x52] sm:$0xff] }
 0x542   : > { %v5869_v60 = vadd.f32 %v12543_v57, %v5768_v54  ;;  %v5769_v40 = vadd.f32 %v5737_v7, %v5704_v10  ;;  %v5509_v58 = vmul.f32 %v12535_v47, %v11292_v17  ;;  %v5475_v22 = vadd.f32 %v5443_v25, %v5410_v52  ;;  %5359 = vst.msk [vmem:[#allocation2 + $0x139] sm:$0xff] %vm460_vm0, %v11166_v16  ;;  %v12544_v29 = vld [vmem:[#allocation44_spill] sm:$0xff] }
 0x543   : > { %v5933_v45 = vadd.f32 %v11218_v37, %v5868_v28  ;;  %v5770_v42 = vadd.f32 %v5738_v56, %v5705_v6  ;;  %v5476_v12 = vadd.f32 %v5444_v8, %v5411_v32  ;;  %v5609_v37 = vmul.f32 %v12533_v11, %v11202_v43  ;;  %5360 = vst.msk [vmem:[#allocation2 + $0x141] sm:$0xff] %vm460_vm0, %v11175_v33  ;;  %v11348_v28 = vld [vmem:[#allocation2 + $0x61] sm:$0xff]  ;;  %v11350_v10 = vld [vmem:[#allocation2 + $0x69] sm:$0xff] }
 0x544   : > { %v5934_v26 = vadd.f32 %v11229_v31, %v5869_v60  ;;  %v5870_v49 = vadd.f32 %v5838_v51, %v5769_v40  ;;  %v5610_v7 = vmul.f32 %v12533_v11, %v11212_v2  ;;  %v11328_v31 = vld [vmem:[#allocation2 + $0x4a] sm:$0xff]  ;;  %v5540_v56 = vadd.f32 %v5508_v61, %v5475_v22  ;;  %5361 = vst.msk [vmem:[#allocation2 + $0x151] sm:$0xff] %vm460_vm0, %v11178_v30  ;;  %v6259_v40 = vpop.permute.xlu0 %6258  ;;  %v11374_v22 = vld [vmem:[#allocation2 + $0x80] sm:$0xff] }
 0x545   : > { %v5998_v35 = vadd.f32 %v5966_v19, %v5933_v45  ;;  %v5871_v1 = vadd.f32 %v5839_v23, %v5770_v42  ;;  %v5541_v38 = vadd.f32 %v5509_v58, %v5476_v12  ;;  %v5674_v2 = vmul.f32 %v12531_v53, %v11255_v13  ;;  %5362 = vst.msk [vmem:[#allocation2 + $0x159] sm:$0xff] %vm460_vm0, %v11181_v55  ;;  %v11372_v42 = vld [vmem:[#allocation2 + $0x78] sm:$0xff] }
 0x546   : > { %v5999_v3 = vadd.f32 %v5967_v5, %v5934_v26  ;;  %v5935_v43 = vadd.f32 %v5903_v41, %v5870_v49  ;;  %v5675_v5 = vmul.f32 %v12531_v53, %v11257_v14  ;;  %v5641_v23 = vadd.f32 %v5609_v37, %v5540_v56  ;;  %5363 = vst.msk [vmem:[#allocation2 + $0x169] sm:$0xff] %vm460_vm0, %v11184_v27 }
 0x547   : > { %v6034_v19 = vadd.f32 %v11308_v4, %v5998_v35  ;;  %v5936_v51 = vadd.f32 %v5904_v34, %v5871_v1  ;;  %v5642_v54 = vadd.f32 %v5610_v7, %v5541_v38  ;;  %v5334_v33 = vmul.f32 %v11110_v9, %v12544_v29  ;;  %5364 = vst.msk [vmem:[#allocation2 + $0x171] sm:$0xff] %vm460_vm0, %v11191_v48 }
 0x548   : > { %v6035_v16 = vadd.f32 %v11308_v4, %v5999_v3  ;;  %v5968_v41 = vmul.f32 %v11172_v18, %v11328_v31  ;;  %v5969_v30 = vmul.f32 %v11172_v18, %v11333_v20  ;;  %v5706_v34 = vadd.f32 %v5674_v2, %v5641_v23  ;;  %5365 = vst.msk [vmem:[#allocation2 + $0x181] sm:$0xff] %vm460_vm0, %v11194_v21  ;;  %v11398_v23 = vld [vmem:[#allocation2 + $0x6a] sm:$0xff] }
 0x549   : > { %v6066_v44 = vpack.c.bf16 %v6034_v19, %v6034_v19  ;;  %v5707_v9 = vadd.f32 %v5675_v5, %v5642_v54  ;;  %v5739_v6 = vmul.f32 %v12538_v36, %v11348_v28  ;;  %v5740_v27 = vmul.f32 %v12538_v36, %v11350_v10  ;;  %5366 = vst.msk [vmem:[#allocation2 + $0x189] sm:$0xff] %vm460_vm0, %v5334_v33 }
 0x54a   : > { %v6067_v52 = vpack.c.bf16 %v6035_v16, %v6035_v16  ;;  %v6000_v55 = vadd.f32 %v5968_v41, %v5935_v43  ;;  %v6001_v60 = vadd.f32 %v5969_v30, %v5936_v51  ;;  %v5840_v21 = vmul.f32 %v12541_v62, %v11215_v63  ;;  %v11396_v51 = vld [vmem:[#allocation2 + $0x62] sm:$0xff] }
 0x54b   : > { %v6130_v32 = vunpack.c.l.b16 %v6066_v44  ;;  %v5771_v8 = vadd.f32 %v5739_v6, %v5706_v34  ;;  %v5772_v45 = vadd.f32 %v5740_v27, %v5707_v9  ;;  %v5841_v26 = vmul.f32 %v12541_v62, %v11226_v39  ;;  %v11402_v34 = vld [vmem:[#allocation2 + $0x79] sm:$0xff] }
 0x54c   : > { %v6131_v57 = vunpack.c.l.b16 %v6067_v52  ;;  %v6036_v48 = vadd.f32 %v11308_v4, %v6000_v55  ;;  %v6037_v58 = vadd.f32 %v11308_v4, %v6001_v60  ;;  %v5412_v12 = vmul.f32 %v12532_v24, %v11232_v15  ;;  %v11410_v55 = vld [vmem:[#allocation2 + $0x81] sm:$0xff] }
 0x54d   : > { %v5413_v35 = vmul.f32 %v12532_v24, %v11244_v0  ;;  %v5445_v49 = vmul.f32 %v12530_v59, %v11290_v50  ;;  %v5446_v63 = vmul.f32 %v12530_v59, %v11292_v17  ;;  %v5872_v37 = vadd.f32 %v5840_v21, %v5771_v8 }
 0x54e   : > { %v6162_v25 = vpack.c.b16 %v6131_v57, %v6130_v32  ;;  %v5873_v7 = vadd.f32 %v5841_v26, %v5772_v45  ;;  %v5510_v1 = vmul.f32 %v12535_v47, %v11372_v42  ;;  %v5511_v56 = vmul.f32 %v12535_v47, %v11374_v22 }
 0x54f   : > { %v5477_v39 = vadd.f32 %v5445_v49, %v5412_v12  ;;  %v5478_v3 = vadd.f32 %v5446_v63, %v5413_v35  ;;  %v6068_v15 = vpack.c.bf16 %v6036_v48, %v6036_v48  ;;  %v6069_v38 = vpack.c.bf16 %v6037_v58, %v6037_v58  ;;  %v11423_v49 = vld [vmem:[#allocation2 + $0x90] sm:$0xff]  ;;  %v11425_v63 = vld [vmem:[#allocation2 + $0x98] sm:$0xff] }
 0x550   : > { %v6292_v61 = vsel %vm460_vm0, %v6162_v25, %v6259_v40  ;;  %v5905_v0 = vmul.f32 %v12536_v46, %v11328_v31  ;;  %v5906_v19 = vmul.f32 %v12536_v46, %v11333_v20  ;;  %v5611_v5 = vmul.f32 %v12533_v11, %v11255_v13  ;;  %v6261_v40 = vpop.permute.xlu1 %6260 }
 0x551   : > { %6430 = vmatmul.bf16.vlgmr.msrb.gmra.mxu2 %v6292_v61  ;;  %v5542_v43 = vadd.f32 %v5510_v1, %v5477_v39  ;;  %v5543_v2 = vadd.f32 %v5511_v56, %v5478_v3  ;;  %v5612_v16 = vmul.f32 %v12533_v11, %v11257_v14  ;;  %v5676_v41 = vmul.f32 %v12531_v53, %v11348_v28 }
 0x552   : > { %v5937_v54 = vadd.f32 %v5905_v0, %v5872_v37  ;;  %v5938_v29 = vadd.f32 %v5906_v19, %v5873_v7  ;;  %v6132_v52 = vunpack.c.l.b16 %v6068_v15  ;;  %v6133_v30 = vunpack.c.l.b16 %v6069_v38  ;;  %v11437_v15 = vld [vmem:[#allocation2 + $0x7a] sm:$0xff] }
 0x553   : > { %v5643_v33 = vadd.f32 %v5611_v5, %v5542_v43  ;;  %v5644_v44 = vadd.f32 %v5612_v16, %v5543_v2  ;;  %v5970_v13 = vmul.f32 %v11172_v18, %v11396_v51  ;;  %v5971_v14 = vmul.f32 %v11172_v18, %v11398_v23  ;;  %v11445_v2 = vld [vmem:[#allocation2 + $0x82] sm:$0xff] }
 0x554   : > { %v5677_v9 = vmul.f32 %v12531_v53, %v11350_v10  ;;  %v5741_v27 = vmul.f32 %v12538_v36, %v11402_v34  ;;  %v6163_v25 = vpack.c.b16 %v6133_v30, %v6132_v52  ;;  %v5742_v8 = vmul.f32 %v12538_v36, %v11410_v55 }
 0x555   : > { %v5708_v32 = vadd.f32 %v5676_v41, %v5643_v33  ;;  %v6002_v57 = vadd.f32 %v5970_v13, %v5937_v54  ;;  %v6003_v60 = vadd.f32 %v5971_v14, %v5938_v29  ;;  %v5842_v21 = vmul.f32 %v12541_v62, %v11328_v31 }
 0x556   : > { %v5709_v6 = vadd.f32 %v5677_v9, %v5644_v44  ;;  %v6296_v26 = vsel %vm460_vm0, %v6163_v25, %v6261_v40  ;;  %v5843_v12 = vmul.f32 %v12541_v62, %v11333_v20  ;;  %v5414_v37 = vmul.f32 %v12532_v24, %v11290_v50 }
 0x557   : > { %v5773_v45 = vadd.f32 %v5741_v27, %v5708_v32  ;;  %v6038_v48 = vadd.f32 %v11308_v4, %v6002_v57  ;;  %v6039_v61 = vadd.f32 %v11308_v4, %v6003_v60  ;;  %v5415_v7 = vmul.f32 %v12532_v24, %v11292_v17  ;;  %v11459_v32 = vld [vmem:[#allocation2 + $0x91] sm:$0xff] }
 0x558   : > { %v5774_v58 = vadd.f32 %v5742_v8, %v5709_v6  ;;  %v5447_v31 = vmul.f32 %v12530_v59, %v11372_v42  ;;  %v5448_v39 = vmul.f32 %v12530_v59, %v11374_v22  ;;  %v5907_v56 = vmul.f32 %v12536_v46, %v11396_v51 }
 0x559   : > { %v5874_v35 = vadd.f32 %v5842_v21, %v5773_v45  ;;  %v6070_v3 = vpack.c.bf16 %v6038_v48, %v6038_v48  ;;  %v6071_v1 = vpack.c.bf16 %v6039_v61, %v6039_v61  ;;  %v5512_v50 = vmul.f32 %v12535_v47, %v11423_v49 }
 0x55a   : > { %v5875_v20 = vadd.f32 %v5843_v12, %v5774_v58  ;;  %v5479_v38 = vadd.f32 %v5447_v31, %v5414_v37  ;;  %v5480_v0 = vadd.f32 %v5448_v39, %v5415_v7  ;;  %v5513_v17 = vmul.f32 %v12535_v47, %v11425_v63  ;;  %v11475_v12 = vld [vmem:[#allocation2 + $0xa8] sm:$0xff] }
 0x55b   : > { %v5908_v19 = vmul.f32 %v12536_v46, %v11398_v23  ;;  %v5939_v43 = vadd.f32 %v5907_v56, %v5874_v35  ;;  %v5613_v54 = vmul.f32 %v12533_v11, %v11348_v28  ;;  %v5614_v29 = vmul.f32 %v12533_v11, %v11350_v10  ;;  %v11461_v10 = vld [vmem:[#allocation2 + $0x99] sm:$0xff] }
 0x55c   : > { %v5544_v5 = vadd.f32 %v5512_v50, %v5479_v38  ;;  %v5545_v16 = vadd.f32 %v5513_v17, %v5480_v0  ;;  %v6134_v33 = vunpack.c.l.b16 %v6070_v3  ;;  %v6135_v44 = vunpack.c.l.b16 %v6071_v1 }
 0x55d   : > { %v5940_v41 = vadd.f32 %v5908_v19, %v5875_v20  ;;  %v5972_v52 = vmul.f32 %v11172_v18, %v11437_v15  ;;  %v5678_v14 = vmul.f32 %v12531_v53, %v11402_v34  ;;  %v5679_v9 = vmul.f32 %v12531_v53, %v11410_v55 }
 0x55e   : > { %v5645_v30 = vadd.f32 %v5613_v54, %v5544_v5  ;;  %v5646_v13 = vadd.f32 %v5614_v29, %v5545_v16  ;;  %v5973_v28 = vmul.f32 %v11172_v18, %v11445_v2  ;;  %v5416_v25 = vmul.f32 %v12532_v24, %v11372_v42  ;;  %v11477_v42 = vld [vmem:[#allocation2 + $0xb0] sm:$0xff]  ;;  %v11496_v16 = vld [vmem:[#allocation2 + $0x9a] sm:$0xff] }
 0x55f   : > { %v6004_v57 = vadd.f32 %v5972_v52, %v5939_v43  ;;  %v5417_v8 = vmul.f32 %v12532_v24, %v11374_v22  ;;  %v5449_v45 = vmul.f32 %v12530_v59, %v11423_v49  ;;  %v6164_v40 = vpack.c.b16 %v6135_v44, %v6134_v33  ;;  %v6263_v22 = vpop.permute.xlu0 %6262 }
 0x560   : > { %v5710_v60 = vadd.f32 %v5678_v14, %v5645_v30  ;;  %v5711_v6 = vadd.f32 %v5679_v9, %v5646_v13  ;;  %v6005_v27 = vadd.f32 %v5973_v28, %v5940_v41  ;;  %v5743_v48 = vmul.f32 %v12538_v36, %v11459_v32 }
 0x561   : > { %6435 = vmatmul.bf16.gmra.mxu2 %v6296_v26  ;;  %v5744_v61 = vmul.f32 %v12538_v36, %v11461_v10  ;;  %v5450_v58 = vmul.f32 %v12530_v59, %v11425_v63  ;;  %v6040_v35 = vadd.f32 %v11308_v4, %v6004_v57  ;;  %v5481_v7 = vadd.f32 %v5449_v45, %v5416_v25  ;;  %v11520_v45 = vld [vmem:[#allocation2 + $0xb1] sm:$0xff] }
 0x562   : > { %v5775_v21 = vadd.f32 %v5743_v48, %v5710_v60  ;;  %v6041_v37 = vadd.f32 %v11308_v4, %v6005_v27  ;;  %v6300_v39 = vsel %vm460_vm0, %v6164_v40, %v6263_v22  ;;  %v5844_v3 = vmul.f32 %v12541_v62, %v11396_v51 }
 0x563   : > { %v5776_v26 = vadd.f32 %v5744_v61, %v5711_v6  ;;  %v5482_v31 = vadd.f32 %v5450_v58, %v5417_v8  ;;  %v5845_v1 = vmul.f32 %v12541_v62, %v11398_v23  ;;  %v5514_v20 = vmul.f32 %v12535_v47, %v11475_v12  ;;  %v11494_v23 = vld [vmem:[#allocation2 + $0x92] sm:$0xff]  ;;  %v11518_v8 = vld [vmem:[#allocation2 + $0xa9] sm:$0xff]  ;;  %v11522_v58 = vld [vmem:[#allocation2 + $0xc0] sm:$0xff] }
 0x564   : > { %v5515_v56 = vmul.f32 %v12535_v47, %v11477_v42  ;;  %v5876_v38 = vadd.f32 %v5844_v3, %v5775_v21  ;;  %v6072_v50 = vpack.c.bf16 %v6040_v35, %v6040_v35  ;;  %v6073_v17 = vpack.c.bf16 %v6041_v37, %v6041_v37 }
 0x565   : > { %v5877_v0 = vadd.f32 %v5845_v1, %v5776_v26  ;;  %v5546_v19 = vadd.f32 %v5514_v20, %v5481_v7  ;;  %v5909_v5 = vmul.f32 %v12536_v46, %v11437_v15  ;;  %v5910_v51 = vmul.f32 %v12536_v46, %v11445_v2  ;;  %v6265_v7 = vpop.permute.xlu1 %6264 }
 0x566   : > { %v5547_v43 = vadd.f32 %v5515_v56, %v5482_v31  ;;  %v5615_v54 = vmul.f32 %v12533_v11, %v11402_v34  ;;  %v5616_v29 = vmul.f32 %v12533_v11, %v11410_v55  ;;  %v6136_v41 = vunpack.c.l.b16 %v6072_v50 }
 0x567   : > { %v5941_v33 = vadd.f32 %v5909_v5, %v5876_v38  ;;  %v5942_v44 = vadd.f32 %v5910_v51, %v5877_v0  ;;  %v6137_v52 = vunpack.c.l.b16 %v6073_v17  ;;  %v5974_v14 = vmul.f32 %v11172_v18, %v11494_v23 }
 0x568   : > { %v5647_v30 = vadd.f32 %v5615_v54, %v5546_v19  ;;  %v5648_v13 = vadd.f32 %v5616_v29, %v5547_v43  ;;  %v5975_v9 = vmul.f32 %v11172_v18, %v11496_v16  ;;  %v5680_v28 = vmul.f32 %v12531_v53, %v11459_v32 }
 0x569   : > { %v5681_v34 = vmul.f32 %v12531_v53, %v11461_v10  ;;  %v5418_v55 = vmul.f32 %v12532_v24, %v11423_v49  ;;  %v5419_v57 = vmul.f32 %v12532_v24, %v11425_v63  ;;  %v5451_v60 = vmul.f32 %v12530_v59, %v11475_v12  ;;  %v11524_v49 = vld [vmem:[#allocation2 + $0xc8] sm:$0xff] }
 0x56a   : > { %v5452_v6 = vmul.f32 %v12530_v59, %v11477_v42  ;;  %v6006_v27 = vadd.f32 %v5974_v14, %v5941_v33  ;;  %v6007_v25 = vadd.f32 %v5975_v9, %v5942_v44  ;;  %v5712_v40 = vadd.f32 %v5680_v28, %v5647_v30  ;;  %v11551_v30 = vld [vmem:[#allocation2 + $0xb2] sm:$0xff]  ;;  %v11557_v9 = vld [vmem:[#allocation2 + $0xc1] sm:$0xff]  ;;  %v11559_v28 = vld [vmem:[#allocation2 + $0xc9] sm:$0xff] }
 0x56b   : > { %v5713_v48 = vadd.f32 %v5681_v34, %v5648_v13  ;;  %v6165_v61 = vpack.c.b16 %v6137_v52, %v6136_v41  ;;  %v5745_v63 = vmul.f32 %v12538_v36, %v11518_v8  ;;  %v5746_v21 = vmul.f32 %v12538_v36, %v11520_v45  ;;  %v11549_v52 = vld [vmem:[#allocation2 + $0xaa] sm:$0xff] }
 0x56c   : > { %v5483_v26 = vadd.f32 %v5451_v60, %v5418_v55  ;;  %v5484_v22 = vadd.f32 %v5452_v6, %v5419_v57  ;;  %v6042_v35 = vadd.f32 %v11308_v4, %v6006_v27  ;;  %v6043_v37 = vadd.f32 %v11308_v4, %v6007_v25 }
 0x56d   : > { %v5777_v31 = vadd.f32 %v5745_v63, %v5712_v40  ;;  %v5516_v3 = vmul.f32 %v12535_v47, %v11522_v58  ;;  %v5517_v1 = vmul.f32 %v12535_v47, %v11524_v49  ;;  %v6304_v20 = vsel %vm460_vm0, %v6165_v61, %v6265_v7 }
 0x56e   : > { %v5846_v56 = vmul.f32 %v12541_v62, %v11437_v15  ;;  %v5847_v38 = vmul.f32 %v12541_v62, %v11445_v2  ;;  %v6074_v17 = vpack.c.bf16 %v6042_v35, %v6042_v35  ;;  %v6075_v19 = vpack.c.bf16 %v6043_v37, %v6043_v37  ;;  %v6267_v37 = vpop.permute.xlu0 %6266 }
 0x56f   : > { %v5548_v0 = vadd.f32 %v5516_v3, %v5483_v26  ;;  %v5549_v50 = vadd.f32 %v5517_v1, %v5484_v22  ;;  %v5617_v51 = vmul.f32 %v12533_v11, %v11459_v32  ;;  %v5618_v54 = vmul.f32 %v12533_v11, %v11461_v10  ;;  %v11585_v3 = vld [vmem:[#allocation2 + $0xe0] sm:$0xff] }
 0x570   : > { %v5878_v43 = vadd.f32 %v5846_v56, %v5777_v31  ;;  %v5911_v29 = vmul.f32 %v12536_v46, %v11494_v23  ;;  %v5912_v15 = vmul.f32 %v12536_v46, %v11496_v16  ;;  %v6138_v44 = vunpack.c.l.b16 %v6074_v17 }
 0x571   : > { %6440 = vmatmul.bf16.gmra.mxu2 %v6300_v39  ;;  %v5778_v39 = vadd.f32 %v5746_v21, %v5713_v48  ;;  %v5649_v33 = vadd.f32 %v5617_v51, %v5548_v0  ;;  %v5650_v2 = vadd.f32 %v5618_v54, %v5549_v50  ;;  %v6139_v41 = vunpack.c.l.b16 %v6075_v19  ;;  %v11598_v51 = vld [vmem:[#allocation2 + $0xca] sm:$0xff] }
 0x572   : > { %v5943_v13 = vadd.f32 %v5911_v29, %v5878_v43  ;;  %v5682_v32 = vmul.f32 %v12531_v53, %v11518_v8  ;;  %v5683_v10 = vmul.f32 %v12531_v53, %v11520_v45  ;;  %v5976_v34 = vmul.f32 %v11172_v18, %v11549_v52 }
 0x573   : > { %v5879_v5 = vadd.f32 %v5847_v38, %v5778_v39  ;;  %v5977_v55 = vmul.f32 %v11172_v18, %v11551_v30  ;;  %v6166_v6 = vpack.c.b16 %v6139_v41, %v6138_v44  ;;  %v5747_v40 = vmul.f32 %v12538_v36, %v11557_v9 }
 0x574   : > { %v5714_v57 = vadd.f32 %v5682_v32, %v5649_v33  ;;  %v5715_v60 = vadd.f32 %v5683_v10, %v5650_v2  ;;  %v6008_v27 = vadd.f32 %v5976_v34, %v5943_v13  ;;  %v5748_v48 = vmul.f32 %v12538_v36, %v11559_v28 }
 0x575   : > { %v5944_v14 = vadd.f32 %v5912_v15, %v5879_v5  ;;  %v5420_v61 = vmul.f32 %v12532_v24, %v11475_v12  ;;  %v5421_v63 = vmul.f32 %v12532_v24, %v11477_v42  ;;  %v5453_v21 = vmul.f32 %v12530_v59, %v11522_v58  ;;  %v11583_v42 = vld [vmem:[#allocation2 + $0xd8] sm:$0xff]  ;;  %v11596_v5 = vld [vmem:[#allocation2 + $0xc2] sm:$0xff] }
 0x576   : > { %v5454_v26 = vmul.f32 %v12530_v59, %v11524_v49  ;;  %v5779_v22 = vadd.f32 %v5747_v40, %v5714_v57  ;;  %v5780_v35 = vadd.f32 %v5748_v48, %v5715_v60  ;;  %v6044_v7 = vadd.f32 %v11308_v4, %v6008_v27 }
 0x577   : > { %v6009_v25 = vadd.f32 %v5977_v55, %v5944_v14  ;;  %v5848_v39 = vmul.f32 %v12541_v62, %v11494_v23  ;;  %v5849_v12 = vmul.f32 %v12541_v62, %v11496_v16  ;;  %v6308_v1 = vsel %vm460_vm0, %v6166_v6, %v6267_v37  ;;  %v11612_v6 = vld [vmem:[#allocation2 + $0xd9] sm:$0xff] }
 0x578   : > { %v5486_v56 = vadd.f32 %v5454_v26, %v5421_v63  ;;  %v5518_v50 = vmul.f32 %v12535_v47, %v11583_v42  ;;  %v5519_v23 = vmul.f32 %v12535_v47, %v11585_v3  ;;  %v6076_v17 = vpack.c.bf16 %v6044_v7, %v6044_v7 }
 0x579   : > { %v6045_v31 = vadd.f32 %v11308_v4, %v6009_v25  ;;  %v5880_v38 = vadd.f32 %v5848_v39, %v5779_v22  ;;  %v5881_v0 = vadd.f32 %v5849_v12, %v5780_v35  ;;  %v5913_v16 = vmul.f32 %v12536_v46, %v11549_v52  ;;  %v11628_v35 = vld [vmem:[#allocation2 + $0xf0] sm:$0xff] }
 0x57a   : > { %v5914_v43 = vmul.f32 %v12536_v46, %v11551_v30  ;;  %v5551_v29 = vadd.f32 %v5519_v23, %v5486_v56  ;;  %v5619_v2 = vmul.f32 %v12533_v11, %v11518_v8  ;;  %v5620_v44 = vmul.f32 %v12533_v11, %v11520_v45  ;;  %v11614_v45 = vld [vmem:[#allocation2 + $0xe1] sm:$0xff] }
 0x57b   : > { %v6077_v19 = vpack.c.bf16 %v6045_v31, %v6045_v31  ;;  %v5945_v15 = vadd.f32 %v5913_v16, %v5880_v38  ;;  %v6140_v41 = vunpack.c.l.b16 %v6076_v17  ;;  %v5978_v14 = vmul.f32 %v11172_v18, %v11596_v5 }
 0x57c   : > { %v5946_v33 = vadd.f32 %v5914_v43, %v5881_v0  ;;  %v5979_v32 = vmul.f32 %v11172_v18, %v11598_v51  ;;  %v5652_v34 = vadd.f32 %v5620_v44, %v5551_v29  ;;  %v5684_v60 = vmul.f32 %v12531_v53, %v11557_v9  ;;  %v11651_v44 = vld [vmem:[#allocation2 + $0xda] sm:$0xff] }
 0x57d   : > { %v6141_v13 = vunpack.c.l.b16 %v6077_v19  ;;  %v6010_v55 = vadd.f32 %v5978_v14, %v5945_v15  ;;  %v5685_v8 = vmul.f32 %v12531_v53, %v11559_v28  ;;  %v5422_v27 = vmul.f32 %v12532_v24, %v11522_v58  ;;  %v11630_v58 = vld [vmem:[#allocation2 + $0xf8] sm:$0xff]  ;;  %v11653_v14 = vld [vmem:[#allocation2 + $0xe2] sm:$0xff] }
 0x57e   : > { %v6011_v57 = vadd.f32 %v5979_v32, %v5946_v33  ;;  %v5423_v25 = vmul.f32 %v12532_v24, %v11524_v49  ;;  %v5455_v40 = vmul.f32 %v12530_v59, %v11583_v42  ;;  %v5456_v48 = vmul.f32 %v12530_v59, %v11585_v3  ;;  %v6269_v49 = vpop.permute.xlu1 %6268 }
 0x57f   : > { %v5749_v26 = vmul.f32 %v12538_v36, %v11612_v6  ;;  %v5750_v22 = vmul.f32 %v12538_v36, %v11614_v45  ;;  %v6046_v37 = vadd.f32 %v11308_v4, %v6010_v55  ;;  %v5520_v56 = vmul.f32 %v12535_v47, %v11628_v35  ;;  %v11661_v55 = vld [vmem:[#allocation2 + $0xf1] sm:$0xff] }
 0x580   : > { %v6047_v7 = vadd.f32 %v11308_v4, %v6011_v57  ;;  %v5487_v31 = vadd.f32 %v5455_v40, %v5422_v27  ;;  %v5488_v39 = vadd.f32 %v5456_v48, %v5423_v25  ;;  %v5521_v38 = vmul.f32 %v12535_v47, %v11630_v58  ;;  %v11663_v57 = vld [vmem:[#allocation2 + $0xf9] sm:$0xff] }
 0x581   : > { %6445 = vmatmul.bf16.gmra.mxu2 %v6304_v20  ;;  %v5485_v20 = vadd.f32 %v5453_v21, %v5420_v61  ;;  %v6167_v61 = vpack.c.b16 %v6141_v13, %v6140_v41  ;;  %v5717_v21 = vadd.f32 %v5685_v8, %v5652_v34  ;;  %v5850_v0 = vmul.f32 %v12541_v62, %v11549_v52 }
 0x582   : > { %v6078_v23 = vpack.c.bf16 %v6046_v37, %v6046_v37  ;;  %v6079_v17 = vpack.c.bf16 %v6047_v7, %v6047_v7  ;;  %v5552_v19 = vadd.f32 %v5520_v56, %v5487_v31  ;;  %v5553_v16 = vadd.f32 %v5521_v38, %v5488_v39  ;;  %v6271_v37 = vpop.permute.xlu0 %6270  ;;  %v11679_v31 = vld [vmem:[#allocation2 + $0x108] sm:$0xff] }
 0x583   : > { %v5550_v54 = vadd.f32 %v5518_v50, %v5485_v20  ;;  %v6312_v12 = vsel %vm460_vm0, %v6167_v61, %v6269_v49  ;;  %v5782_v20 = vadd.f32 %v5750_v22, %v5717_v21  ;;  %v5851_v50 = vmul.f32 %v12541_v62, %v11551_v30 }
 0x584   : > { %v5621_v29 = vmul.f32 %v12533_v11, %v11557_v9  ;;  %v5622_v15 = vmul.f32 %v12533_v11, %v11559_v28  ;;  %v5915_v33 = vmul.f32 %v12536_v46, %v11596_v5  ;;  %v5916_v52 = vmul.f32 %v12536_v46, %v11598_v51 }
 0x585   : > { %v5651_v10 = vadd.f32 %v5619_v2, %v5550_v54  ;;  %v5883_v54 = vadd.f32 %v5851_v50, %v5782_v20  ;;  %v6142_v2 = vunpack.c.l.b16 %v6078_v23  ;;  %v6143_v30 = vunpack.c.l.b16 %v6079_v17 }
 0x586   : > { %v5653_v41 = vadd.f32 %v5621_v29, %v5552_v19  ;;  %v5654_v13 = vadd.f32 %v5622_v15, %v5553_v16  ;;  %v5686_v9 = vmul.f32 %v12531_v53, %v11612_v6  ;;  %v5687_v28 = vmul.f32 %v12531_v53, %v11614_v45 }
 0x587   : > { %v5716_v63 = vadd.f32 %v5684_v60, %v5651_v10  ;;  %v5948_v10 = vadd.f32 %v5916_v52, %v5883_v54  ;;  %v5980_v34 = vmul.f32 %v11172_v18, %v11651_v44  ;;  %v6168_v60 = vpack.c.b16 %v6143_v30, %v6142_v2 }
 0x588   : > { %v5981_v8 = vmul.f32 %v11172_v18, %v11653_v14  ;;  %v5718_v27 = vadd.f32 %v5686_v9, %v5653_v41  ;;  %v5719_v25 = vadd.f32 %v5687_v28, %v5654_v13  ;;  %v5424_v40 = vmul.f32 %v12532_v24, %v11583_v42 }
 0x589   : > { %v5425_v48 = vmul.f32 %v12532_v24, %v11585_v3  ;;  %v5457_v61 = vmul.f32 %v12530_v59, %v11628_v35  ;;  %v5751_v22 = vmul.f32 %v12538_v36, %v11661_v55  ;;  %v5752_v49 = vmul.f32 %v12538_v36, %v11663_v57  ;;  %v11681_v3 = vld [vmem:[#allocation2 + $0x110] sm:$0xff] }
 0x58a   : > { %v6316_v39 = vsel %vm460_vm0, %v6168_v60, %v6271_v37  ;;  %v5852_v38 = vmul.f32 %v12541_v62, %v11596_v5  ;;  %v5522_v50 = vmul.f32 %v12535_v47, %v11679_v31  ;;  %v5523_v23 = vmul.f32 %v12535_v47, %v11681_v3  ;;  %v11730_v37 = vld [vmem:[#allocation2 + $0x120] sm:$0xff] }
 0x58b   : > { %v5783_v7 = vadd.f32 %v5751_v22, %v5718_v27  ;;  %v5784_v42 = vadd.f32 %v5752_v49, %v5719_v25  ;;  %v5917_v15 = vmul.f32 %v12536_v46, %v11651_v44  ;;  %v5918_v5 = vmul.f32 %v12536_v46, %v11653_v14  ;;  %v11714_v27 = vld [vmem:[#allocation2 + $0x109] sm:$0xff]  ;;  %v11716_v25 = vld [vmem:[#allocation2 + $0x111] sm:$0xff] }
 0x58c   : > { %v5623_v52 = vmul.f32 %v12533_v11, %v11612_v6  ;;  %v5624_v2 = vmul.f32 %v12533_v11, %v11614_v45  ;;  %v5688_v60 = vmul.f32 %v12531_v53, %v11661_v55  ;;  %v5689_v6 = vmul.f32 %v12531_v53, %v11663_v57 }
 0x58d   : > { %v5884_v17 = vadd.f32 %v5852_v38, %v5783_v7  ;;  %v5753_v22 = vmul.f32 %v12538_v36, %v11714_v27  ;;  %v5754_v49 = vmul.f32 %v12538_v36, %v11716_v25  ;;  %v5524_v38 = vmul.f32 %v12535_v47, %v11730_v37 }
 0x58f   : > { %v5949_v30 = vadd.f32 %v5917_v15, %v5884_v17  ;;  %v5625_v15 = vmul.f32 %v12533_v11, %v11661_v55  ;;  %v11757_v55 = vld [vmem:[#allocation2 + $0x121] sm:$0xff] }
 0x591   : > { %6450 = vmatmul.bf16.gmra.mxu2 %v6308_v1  ;;  %v5781_v1 = vadd.f32 %v5749_v26, %v5716_v63  ;;  %v5458_v63 = vmul.f32 %v12530_v59, %v11630_v58  ;;  %v6013_v26 = vadd.f32 %v5981_v8, %v5948_v10 }
 0x593   : > { %v5882_v43 = vadd.f32 %v5850_v0, %v5781_v1  ;;  %v5490_v1 = vadd.f32 %v5458_v63, %v5425_v48  ;;  %v6049_v56 = vadd.f32 %v11308_v4, %v6013_v26  ;;  %v5853_v0 = vmul.f32 %v12541_v62, %v11598_v51  ;;  %v11698_v51 = vld [vmem:[#allocation2 + $0xf2] sm:$0xff] }
 0x594   : > { %v5982_v28 = vmul.f32 %v11172_v18, %v11698_v51  ;;  %v5459_v48 = vmul.f32 %v12530_v59, %v11679_v31  ;;  %v5427_v63 = vmul.f32 %v12532_v24, %v11630_v58  ;;  %v6273_v58 = vpop.permute.xlu1 %6272 }
 0x595   : > { %v5947_v32 = vadd.f32 %v5915_v33, %v5882_v43  ;;  %v5885_v19 = vadd.f32 %v5853_v0, %v5784_v42  ;;  %v5555_v43 = vadd.f32 %v5523_v23, %v5490_v1  ;;  %v6081_v29 = vpack.c.bf16 %v6049_v56, %v6049_v56  ;;  %v11700_v33 = vld [vmem:[#allocation2 + $0xfa] sm:$0xff]  ;;  %v11734_v42 = vld [vmem:[#allocation2 + $0x128] sm:$0xff] }
 0x596   : > { %v6014_v8 = vadd.f32 %v5982_v28, %v5949_v30  ;;  %v5854_v0 = vmul.f32 %v12541_v62, %v11651_v44  ;;  %v5525_v23 = vmul.f32 %v12535_v47, %v11734_v42  ;;  %v5920_v44 = vmul.f32 %v12536_v46, %v11700_v33  ;;  %v11753_v30 = vld [vmem:[#allocation2 + $0x10a] sm:$0xff] }
 0x597   : > { %v6012_v21 = vadd.f32 %v5980_v34, %v5947_v32  ;;  %v5950_v41 = vadd.f32 %v5918_v5, %v5885_v19  ;;  %v5656_v32 = vadd.f32 %v5624_v2, %v5555_v43  ;;  %v6145_v9 = vunpack.c.l.b16 %v6081_v29 }
 0x598   : > { %v5983_v34 = vmul.f32 %v11172_v18, %v11700_v33  ;;  %v5919_v5 = vmul.f32 %v12536_v46, %v11698_v51  ;;  %v5690_v28 = vmul.f32 %v12531_v53, %v11714_v27 }
 0x599   : > { %v6048_v20 = vadd.f32 %v11308_v4, %v6012_v21  ;;  %v5721_v18 = vadd.f32 %v5689_v6, %v5656_v32  ;;  %v5460_v21 = vmul.f32 %v12530_v59, %v11681_v3  ;;  %v5691_v6 = vmul.f32 %v12531_v53, %v11716_v25 }
 0x59a   : > { %v6015_v45 = vadd.f32 %v5983_v34, %v5950_v41  ;;  %v11755_v41 = vld [vmem:[#allocation2 + $0x112] sm:$0xff]  ;;  %v11764_v34 = vld [vmem:[%s12168_s9 + $0x8] ss:$0 sm:$0xff] }
 0x59b   : > { %v6080_v54 = vpack.c.bf16 %v6048_v20, %v6048_v20  ;;  %v5786_v1 = vadd.f32 %v5754_v49, %v5721_v18  ;;  %v5492_v20 = vadd.f32 %v5460_v21, %v5427_v63  ;;  %v5755_v63 = vmul.f32 %v12538_v36, %v11757_v55 }
 0x59c   : > { %v6051_v7 = vadd.f32 %v11308_v4, %v6015_v45  ;;  %v11772_v45 = vld [vmem:[#allocation2 + $0x129] sm:$0xff]  ;;  %v5428_v21 = vmul.f32 %v12532_v24, %v11679_v31  ;;  %v5462_v49 = vmul.f32 %v12530_v59, %v11734_v42 }
 0x59d   : > { %v6144_v10 = vunpack.c.l.b16 %v6080_v54  ;;  %v5557_v29 = vadd.f32 %v5525_v23, %v5492_v20  ;;  %v5857_v23 = vmul.f32 %v12541_v62, %v11700_v33 }
 0x59e   : > { %v6083_v19 = vpack.c.bf16 %v6051_v7, %v6051_v7  ;;  %v6275_v7 = vpop.permute.xlu0 %6274 }
 0x59f   : > { %v6169_v26 = vpack.c.b16 %v6145_v9, %v6144_v10 }
 0x5a0   : > { %v6147_v2 = vunpack.c.l.b16 %v6083_v19 }
 0x5a1   : > { %6455 = vmatmul.bf16.gmra.mxu2 %v6312_v12  ;;  %v5489_v12 = vadd.f32 %v5457_v61, %v5424_v40  ;;  %v5426_v40 = vmul.f32 %v12532_v24, %v11628_v35  ;;  %v6050_v35 = vadd.f32 %v11308_v4, %v6014_v8  ;;  %v6320_v56 = vsel %vm460_vm0, %v6169_v26, %v6273_v58 }
 0x5a2   : > { %v5429_v26 = vmul.f32 %v12532_v24, %v11681_v3  ;;  %v11790_v3 = vld [vmem:[#allocation2 + $0x140] sm:$0xff] }
 0x5a3   : > { %v5554_v16 = vadd.f32 %v5522_v50, %v5489_v12  ;;  %v5855_v50 = vmul.f32 %v12541_v62, %v11653_v14  ;;  %v6082_v17 = vpack.c.bf16 %v6050_v35, %v6050_v35  ;;  %v5626_v14 = vmul.f32 %v12533_v11, %v11663_v57 }
 0x5a4   : > { %v5984_v57 = vmul.f32 %v11764_v34, %v11753_v30  ;;  %v5756_v35 = vmul.f32 %v12538_v36, %v11772_v45 }
 0x5a5   : > { %v5655_v13 = vadd.f32 %v5623_v52, %v5554_v16  ;;  %v5887_v54 = vadd.f32 %v5855_v50, %v5786_v1  ;;  %v6146_v52 = vunpack.c.l.b16 %v6082_v17  ;;  %v5658_v9 = vadd.f32 %v5626_v14, %v5557_v29  ;;  %v11788_v1 = vld [vmem:[#allocation2 + $0x138] sm:$0xff] }
 0x5a6   : > { %v11798_v50 = vld [vmem:[%s12171_s12] ss:$0 sm:$0xff] }
 0x5a7   : > { %v5720_v61 = vadd.f32 %v5688_v60, %v5655_v13  ;;  %v5952_v10 = vadd.f32 %v5920_v44, %v5887_v54  ;;  %v5985_v60 = vmul.f32 %v11764_v34, %v11755_v41  ;;  %v6170_v8 = vpack.c.b16 %v6147_v2, %v6146_v52 }
 0x5a8   : > { %v5723_v18 = vadd.f32 %v5691_v6, %v5658_v9  ;;  %v5922_v52 = vmul.f32 %v12536_v46, %v11755_v41 }
 0x5a9   : > { %v5785_v12 = vadd.f32 %v5753_v22, %v5720_v61  ;;  %v6017_v61 = vadd.f32 %v5985_v60, %v5952_v10  ;;  %v5461_v22 = vmul.f32 %v12530_v59, %v11730_v37  ;;  %v6324_v58 = vsel %vm460_vm0, %v6170_v8, %v6275_v7 }
 0x5aa   : > { %v5788_v31 = vadd.f32 %v5756_v35, %v5723_v18  ;;  %v5628_v10 = vmul.f32 %v12533_v11, %v11716_v25  ;;  %v5431_v18 = vmul.f32 %v12532_v24, %v11734_v42  ;;  %v5464_v25 = vmul.f32 %v12530_v59, %v11790_v3  ;;  %v11842_v42 = vld [vmem:[#allocation2 + $0x139] sm:$0xff] }
 0x5ab   : > { %v5886_v43 = vadd.f32 %v5854_v0, %v5785_v12  ;;  %v6053_v20 = vadd.f32 %v11308_v4, %v6017_v61  ;;  %v5494_v0 = vadd.f32 %v5462_v49, %v5429_v26  ;;  %v5693_v26 = vmul.f32 %v12531_v53, %v11772_v45 }
 0x5ad   : > { %v5951_v32 = vadd.f32 %v5919_v5, %v5886_v43  ;;  %v5889_v43 = vadd.f32 %v5857_v23, %v5788_v31  ;;  %v6085_v29 = vpack.c.bf16 %v6053_v20, %v6053_v20  ;;  %v5921_v5 = vmul.f32 %v12536_v46, %v11753_v30 }
 0x5ae   : > { %v5757_v23 = vmul.f32 %v12538_v36, %v11842_v42 }
 0x5af   : > { %v6149_v6 = vunpack.c.l.b16 %v6085_v29 }
 0x5b1   : > { %6460 = vmatmul.bf16.gmra.mxu2 %v6316_v39  ;;  %v5491_v39 = vadd.f32 %v5459_v48, %v5426_v40  ;;  %v6016_v48 = vadd.f32 %v5984_v57, %v5951_v32  ;;  %v5627_v32 = vmul.f32 %v12533_v11, %v11714_v27  ;;  %v5954_v57 = vadd.f32 %v5922_v52, %v5889_v43 }
 0x5b2   : > { %v5463_v27 = vmul.f32 %v12530_v59, %v11788_v1 }
 0x5b3   : > { %v5556_v16 = vadd.f32 %v5524_v38, %v5491_v39  ;;  %v6052_v12 = vadd.f32 %v11308_v4, %v6016_v48  ;;  %v5493_v38 = vadd.f32 %v5461_v22, %v5428_v21  ;;  %v5526_v4 = vmul.f32 %v12535_v47, %v11788_v1  ;;  %v11844_v22 = vld [vmem:[#allocation2 + $0x141] sm:$0xff] }
 0x5b4   : > { %v5430_v48 = vmul.f32 %v12532_v24, %v11730_v37  ;;  %v5692_v21 = vmul.f32 %v12531_v53, %v11757_v55 }
 0x5b5   : > { %v5657_v13 = vadd.f32 %v5625_v15, %v5556_v16  ;;  %v6084_v19 = vpack.c.bf16 %v6052_v12, %v6052_v12  ;;  %v11807_v16 = vld [vmem:[#allocation2 + $0x122] sm:$0xff]  ;;  %v11809_v15 = vld [vmem:[#allocation2 + $0x12a] sm:$0xff]  ;;  %v5558_v33 = vadd.f32 %v5526_v4, %v5493_v38  ;;  %v11848_v12 = vld [vmem:[#allocation2 + $0x158] sm:$0xff]  ;;  %v6277_v4 = vpop.permute.xlu1 %6276 }
 0x5b6   : > { %v5987_v60 = vmul.f32 %v11764_v34, %v11809_v15  ;;  %v5495_v20 = vadd.f32 %v5463_v27, %v5430_v48  ;;  %v11854_v38 = vld [vmem:[%s12169_s10] ss:$0 sm:$0xff] }
 0x5b7   : > { %v5722_v40 = vadd.f32 %v5690_v28, %v5657_v13  ;;  %v5986_v13 = vmul.f32 %v11764_v34, %v11807_v16  ;;  %v6148_v28 = vunpack.c.l.b16 %v6084_v19  ;;  %v5659_v8 = vadd.f32 %v5627_v32, %v5558_v33 }
 0x5b8   : > { %v6019_v37 = vadd.f32 %v5987_v60, %v5954_v57  ;;  %v5859_v32 = vmul.f32 %v12541_v62, %v11755_v41  ;;  %v11880_v41 = vld [vmem:[#allocation2 + $0x142] sm:$0xff] }
 0x5b9   : > { %v5787_v39 = vadd.f32 %v5755_v63, %v5722_v40  ;;  %v6171_v35 = vpack.c.b16 %v6149_v6, %v6148_v28  ;;  %v5724_v7 = vadd.f32 %v5692_v21, %v5659_v8  ;;  %v5630_v28 = vmul.f32 %v12533_v11, %v11772_v45 }
 0x5ba   : > { %v6055_v19 = vadd.f32 %v11854_v38, %v6019_v37 }
 0x5bb   : > { %v6328_v29 = vsel %vm460_vm0, %v6171_v35, %v6277_v4  ;;  %v5989_v35 = vmul.f32 %v11764_v34, %v11880_v41 }
 0x5c1   : > { %6465 = vmatmul.bf16.gmra.mxu2 %v6320_v56  ;;  %v5856_v56 = vmul.f32 %v12541_v62, %v11698_v51  ;;  %v5527_v51 = vmul.f32 %v12535_v47, %v11790_v3 }
 0x5c3   : > { %v5888_v17 = vadd.f32 %v5856_v56, %v5787_v39  ;;  %v5559_v44 = vadd.f32 %v5527_v51, %v5494_v0  ;;  %v5496_v56 = vadd.f32 %v5464_v25, %v5431_v18  ;;  %v5923_v18 = vmul.f32 %v12536_v46, %v11807_v16 }
 0x5c4   : > { %v5694_v25 = vmul.f32 %v12531_v53, %v11842_v42 }
 0x5c5   : > { %v5953_v2 = vadd.f32 %v5921_v5, %v5888_v17  ;;  %v5660_v40 = vadd.f32 %v5628_v10, %v5559_v44  ;;  %v5758_v17 = vmul.f32 %v12538_v36, %v11844_v22  ;;  %v5789_v5 = vadd.f32 %v5757_v23, %v5724_v7  ;;  %v11894_v7 = vld [vmem:[#allocation2 + $0x151] sm:$0xff] }
 0x5c6   : > { %v6087_v10 = vpack.c.bf16 %v6055_v19, %v6055_v19 }
 0x5c7   : > { %v6018_v63 = vadd.f32 %v5986_v13, %v5953_v2  ;;  %v5725_v39 = vadd.f32 %v5693_v26, %v5660_v40  ;;  %v5858_v13 = vmul.f32 %v12541_v62, %v11753_v30  ;;  %v11878_v40 = vld [vmem:[#allocation2 + $0x13a] sm:$0xff] }
 0x5c8   : > { %v6151_v45 = vunpack.c.l.b16 %v6087_v10  ;;  %v5988_v37 = vmul.f32 %v11764_v34, %v11878_v40  ;;  %v5860_v10 = vmul.f32 %v12541_v62, %v11807_v16  ;;  %v5925_v16 = vmul.f32 %v12536_v46, %v11878_v40 }
 0x5c9   : > { %v6054_v0 = vadd.f32 %v11854_v38, %v6018_v63  ;;  %v5790_v33 = vadd.f32 %v5758_v17, %v5725_v39  ;;  %v5890_v60 = vadd.f32 %v5858_v13, %v5789_v5  ;;  %v5695_v63 = vmul.f32 %v12531_v53, %v11844_v22  ;;  %v11896_v39 = vld [vmem:[#allocation2 + $0x159] sm:$0xff]  ;;  %v11915_v5 = vld [vmem:[#allocation2 + $0x170] sm:$0xff] }
 0x5ca   : > { %v5466_v17 = vmul.f32 %v12530_v59, %v11848_v12 }
 0x5cb   : > { %v6086_v2 = vpack.c.bf16 %v6054_v0, %v6054_v0  ;;  %v5891_v6 = vadd.f32 %v5859_v32, %v5790_v33  ;;  %v5955_v21 = vadd.f32 %v5923_v18, %v5890_v60  ;;  %v5433_v0 = vmul.f32 %v12532_v24, %v11790_v3  ;;  %v6279_v33 = vpop.permute.xlu2 %6278 }
 0x5cd   : > { %v6020_v19 = vadd.f32 %v5988_v37, %v5955_v21  ;;  %v5631_v21 = vmul.f32 %v12533_v11, %v11842_v42  ;;  %v5696_v42 = vmul.f32 %v12531_v53, %v11894_v7 }
 0x5d1   : > { %6470 = vmatmul.bf16.gmra.mxu2 %v6324_v58  ;;  %v11846_v58 = vld [vmem:[#allocation2 + $0x150] sm:$0xff] }
 0x5d2   : > { %v5528_v43 = vmul.f32 %v12535_v47, %v11846_v58  ;;  %v5465_v23 = vmul.f32 %v12530_v59, %v11846_v58 }
 0x5d4   : > { %v6431_v54 = vpop.f32.mrf.mxu2 }
 0x5d5   : > { %v6432_v14 = vadd.f32 %v11798_v50, %v6431_v54  ;;  %v5529_v54 = vmul.f32 %v12535_v47, %v11848_v12 }
 0x5d7   : > { %v6511_v9 = vmax.f32 %v6432_v14, 0.0  ;;  %v5560_v14 = vadd.f32 %v5528_v43, %v5495_v20  ;;  %v5561_v52 = vadd.f32 %v5529_v54, %v5496_v56  ;;  %v5432_v56 = vmul.f32 %v12532_v24, %v11788_v1 }
 0x5d8   : > { %v5759_v54 = vmul.f32 %v12538_v36, %v11894_v7  ;;  %v5760_v1 = vmul.f32 %v12538_v36, %v11896_v39 }
 0x5d9   : > { %v6543_v61 = vmin.f32 %v6511_v9, 6.0  ;;  %v5629_v9 = vmul.f32 %v12533_v11, %v11757_v55  ;;  %v5662_v48 = vadd.f32 %v5630_v28, %v5561_v52  ;;  %v5924_v55 = vmul.f32 %v12536_v46, %v11809_v15 }
 0x5da   : > { %v5497_v52 = vadd.f32 %v5465_v23, %v5432_v56  ;;  %v6056_v28 = vadd.f32 %v11854_v38, %v6020_v19  ;;  %v11951_v19 = vld [vmem:[#allocation2 + $0x169] sm:$0xff] }
 0x5db   : > { %6575 = vst.msk [vmem:[%s11838_s17] sm:$0xff] %vm460_vm0, %v6543_v61  ;;  %v5661_v30 = vadd.f32 %v5629_v9, %v5560_v14  ;;  %v6150_v61 = vunpack.c.l.b16 %v6086_v2  ;;  %v5956_v26 = vadd.f32 %v5924_v55, %v5891_v6  ;;  %v5727_v20 = vadd.f32 %v5695_v63, %v5662_v48  ;;  %v11936_v63 = vld [vmem:[#allocation2 + $0x15a] sm:$0xff] }
 0x5dc   : > { %v6433_v49 = vpop.f32.mrf.mxu2  ;;  %v5498_v2 = vadd.f32 %v5466_v17, %v5433_v0  ;;  %v5861_v9 = vmul.f32 %v12541_v62, %v11809_v15  ;;  %v5531_v6 = vmul.f32 %v12535_v47, %v11915_v5  ;;  %v5926_v15 = vmul.f32 %v12536_v46, %v11880_v41 }
 0x5dd   : > { %v6434_v31 = vadd.f32 %v11798_v50, %v6433_v49  ;;  %v6172_v4 = vpack.c.b16 %v6151_v45, %v6150_v61  ;;  %v6021_v43 = vadd.f32 %v5989_v35, %v5956_v26  ;;  %v5792_v14 = vadd.f32 %v5760_v1, %v5727_v20  ;;  %v11953_v1 = vld [vmem:[#allocation2 + $0x171] sm:$0xff] }
 0x5de   : > { %v5563_v18 = vadd.f32 %v5531_v6, %v5498_v2  ;;  %v5632_v26 = vmul.f32 %v12533_v11, %v11844_v22  ;;  %v5991_v23 = vmul.f32 %v11764_v34, %v11936_v63  ;;  %v5697_v22 = vmul.f32 %v12531_v53, %v11896_v39  ;;  %v5402_v6 = vld [vmem:[#allocation2 + $0x188] sm:$0xff] }
 0x5df   : > { %v6512_v51 = vmax.f32 %v6434_v31, 0.0  ;;  %v5726_v31 = vadd.f32 %v5694_v25, %v5661_v30  ;;  %v6332_v32 = vsel %vm460_vm0, %v6172_v4, %v6279_v33  ;;  %v5893_v48 = vadd.f32 %v5861_v9, %v5792_v14  ;;  %v11934_v25 = vld [vmem:[#allocation2 + $0x152] sm:$0xff] }
 0x5e0   : > { %v5664_v20 = vadd.f32 %v5632_v26, %v5563_v18  ;;  %v5990_v0 = vmul.f32 %v11764_v34, %v11934_v25  ;;  %v5435_v14 = vmul.f32 %v12532_v24, %v11848_v12  ;;  %v5468_v2 = vmul.f32 %v12530_v59, %v11915_v5 }
 0x5e1   : > { %v6544_v44 = vmin.f32 %v6512_v51, 6.0  ;;  %6475 = vmatmul.bf16.gmra.mxu2 %v6328_v29  ;;  %v11913_v29 = vld [vmem:[#allocation2 + $0x168] sm:$0xff]  ;;  %v5958_v35 = vadd.f32 %v5926_v15, %v5893_v48  ;;  %v5862_v15 = vmul.f32 %v12541_v62, %v11878_v40  ;;  %v5927_v40 = vmul.f32 %v12536_v46, %v11934_v25 }
 0x5e2   : > { %v5530_v60 = vmul.f32 %v12535_v47, %v11913_v29  ;;  %v5729_v33 = vadd.f32 %v5697_v22, %v5664_v20  ;;  %v5500_v18 = vadd.f32 %v5468_v2, %v5435_v14  ;;  %v5699_v2 = vmul.f32 %v12531_v53, %v11953_v1 }
 0x5e3   : > { %6576 = vst.msk [vmem:[%s11838_s17 + $0x8] sm:$0xff] %vm460_vm0, %v6544_v44  ;;  %v5791_v44 = vadd.f32 %v5759_v54, %v5726_v31  ;;  %v6023_v54 = vadd.f32 %v5991_v23, %v5958_v35  ;;  %v11984_v23 = vld [vmem:[#allocation2 + $0x16a] sm:$0xff] }
 0x5e4   : > { %v6436_v57 = vpop.f32.mrf.mxu2  ;;  %v5562_v61 = vadd.f32 %v5530_v60, %v5497_v52  ;;  %v5467_v52 = vmul.f32 %v12530_v59, %v11913_v29  ;;  %v5401_v60 = vld [vmem:[#allocation2 + $0x180] sm:$0xff]  ;;  %v5992_v14 = vmul.f32 %v11764_v34, %v11984_v23 }
 0x5e5   : > { %v6437_v8 = vadd.f32 %v11798_v50, %v6436_v57  ;;  %v6057_v57 = vadd.f32 %v11854_v38, %v6021_v43  ;;  %v5892_v30 = vadd.f32 %v5860_v10, %v5791_v44  ;;  %v5434_v44 = vmul.f32 %v12532_v24, %v11846_v58 }
 0x5e6   : > { %v5663_v31 = vadd.f32 %v5631_v21, %v5562_v61  ;;  %v5761_v10 = vmul.f32 %v12538_v36, %v11951_v19  ;;  %v6059_v12 = vadd.f32 %v11854_v38, %v6023_v54  ;;  %v5533_v21 = vmul.f32 %v12535_v47, %v5402_v6 }
 0x5e7   : > { %v6513_v27 = vmax.f32 %v6437_v8, 0.0  ;;  %v6089_v45 = vpack.c.bf16 %v6057_v57, %v6057_v57  ;;  %v5499_v61 = vadd.f32 %v5467_v52, %v5434_v44 }
 0x5e8   : > { %v5565_v20 = vadd.f32 %v5533_v21, %v5500_v18  ;;  %v6283_v18 = vpop.permute.xlu1 %6282 }
 0x5e9   : > { %v6545_v49 = vmin.f32 %v6513_v27, 6.0  ;;  %v6088_v27 = vpack.c.bf16 %v6056_v28, %v6056_v28  ;;  %v6153_v4 = vunpack.c.l.b16 %v6089_v45  ;;  %v5762_v28 = vmul.f32 %v12538_v36, %v11953_v1 }
 0x5ea   : > { %v5532_v45 = vmul.f32 %v12535_v47, %v5401_v60 }
 0x5eb   : > { %6577 = vst.msk [vmem:[%s11838_s17 + $0x10] sm:$0xff] %vm460_vm0, %v6545_v49  ;;  %v5957_v49 = vadd.f32 %v5925_v16, %v5892_v30  ;;  %v6152_v17 = vunpack.c.l.b16 %v6088_v27  ;;  %v5794_v48 = vadd.f32 %v5762_v28, %v5729_v33  ;;  %v5863_v27 = vmul.f32 %v12541_v62, %v11880_v41 }
 0x5ec   : > { %v6438_v51 = vpop.f32.mrf.mxu2  ;;  %v5928_v41 = vmul.f32 %v12536_v46, %v11936_v63 }
 0x5ed   : > { %v6439_v3 = vadd.f32 %v11798_v50, %v6438_v51  ;;  %v6022_v43 = vadd.f32 %v5990_v0, %v5957_v49  ;;  %v5895_v35 = vadd.f32 %v5863_v27, %v5794_v48  ;;  %v5469_v48 = vmul.f32 %v12530_v59, %v5401_v60  ;;  %v5403_v27 = vld [vmem:[#allocation2 + $0x198] sm:$0xff] }
 0x5ef   : > { %v6514_v13 = vmax.f32 %v6439_v3, 0.0  ;;  %v5728_v3 = vadd.f32 %v5696_v42, %v5663_v31  ;;  %v6058_v58 = vadd.f32 %v11854_v38, %v6022_v43  ;;  %v5564_v31 = vadd.f32 %v5532_v45, %v5499_v61  ;;  %v5404_v45 = vld [vmem:[#allocation2 + $0x1a0] sm:$0xff] }
 0x5f0   : > { %v5470_v61 = vmul.f32 %v12530_v59, %v5402_v6 }
 0x5f1   : > { %v6546_v8 = vmin.f32 %v6514_v13, 6.0  ;;  %6480 = vmatmul.bf16.gmra.mxu2 %v6332_v32  ;;  %v6173_v32 = vpack.c.b16 %v6153_v4, %v6152_v17  ;;  %v5793_v57 = vadd.f32 %v5761_v10, %v5728_v3  ;;  %v6090_v26 = vpack.c.bf16 %v6058_v58, %v6058_v58  ;;  %v5600_v10 = vld [vmem:[#allocation2 + $0x181] sm:$0xff] }
 0x5f2   : > { %v5633_v17 = vmul.f32 %v12533_v11, %v11894_v7  ;;  %v5634_v4 = vmul.f32 %v12533_v11, %v11896_v39  ;;  %v5960_v3 = vadd.f32 %v5928_v41, %v5895_v35  ;;  %v5698_v39 = vmul.f32 %v12531_v53, %v11951_v19 }
 0x5f3   : > { %6578 = vst.msk [vmem:[%s11838_s17 + $0x18] sm:$0xff] %vm460_vm0, %v6546_v8  ;;  %v6281_v8 = vpop.permute.xlu0 %6280  ;;  %v5894_v49 = vadd.f32 %v5862_v15, %v5793_v57  ;;  %v6154_v42 = vunpack.c.l.b16 %v6090_v26  ;;  %v5763_v15 = vmul.f32 %v12538_v36, %v5600_v10 }
 0x5f4   : > { %v6441_v55 = vpop.f32.mrf.mxu2  ;;  %v6336_v16 = vsel %vm460_vm0, %v6173_v32, %v6281_v8  ;;  %v5665_v33 = vadd.f32 %v5633_v17, %v5564_v31  ;;  %v5666_v44 = vadd.f32 %v5634_v4, %v5565_v20  ;;  %v5436_v8 = vmul.f32 %v12532_v24, %v11913_v29 }
 0x5f5   : > { %v6442_v37 = vadd.f32 %v11798_v50, %v6441_v55  ;;  %v5959_v43 = vadd.f32 %v5927_v40, %v5894_v49  ;;  %v5535_v49 = vmul.f32 %v12535_v47, %v5404_v45  ;;  %v5864_v31 = vmul.f32 %v12541_v62, %v11934_v25 }
 0x5f6   : > { %v5730_v58 = vadd.f32 %v5698_v39, %v5665_v33  ;;  %v5501_v59 = vadd.f32 %v5469_v48, %v5436_v8  ;;  %v5865_v20 = vmul.f32 %v12541_v62, %v11936_v63  ;;  %v5832_v63 = vld [vmem:[#allocation2 + $0x18a] sm:$0xff]  ;;  %v5636_v33 = vmul.f32 %v12533_v11, %v11953_v1 }
 0x5f7   : > { %v6515_v56 = vmax.f32 %v6442_v37, 0.0  ;;  %v6091_v37 = vpack.c.bf16 %v6059_v12, %v6059_v12  ;;  %v6024_v32 = vadd.f32 %v5992_v14, %v5959_v43  ;;  %v5731_v12 = vadd.f32 %v5699_v2, %v5666_v44 }
 0x5f9   : > { %v6547_v51 = vmin.f32 %v6515_v56, 6.0  ;;  %v6155_v22 = vunpack.c.l.b16 %v6091_v37  ;;  %v6060_v29 = vadd.f32 %v11854_v38, %v6024_v32  ;;  %v5534_v37 = vmul.f32 %v12535_v47, %v5403_v27 }
 0x5fa   : > { %v5929_v47 = vmul.f32 %v12536_v46, %v11984_v23 }
 0x5fb   : > { %6579 = vst.msk [vmem:[%s11838_s17 + $0x20] sm:$0xff] %vm460_vm0, %v6547_v51  ;;  %v11992_v51 = vld [vmem:[#allocation2 + $0x172] sm:$0xff]  ;;  %v5566_v4 = vadd.f32 %v5534_v37, %v5501_v59  ;;  %v5833_v59 = vld [vmem:[#allocation2 + $0x19a] sm:$0xff] }
 0x5fc   : > { %v6443_v13 = vpop.f32.mrf.mxu2  ;;  %v5993_v7 = vmul.f32 %v11764_v34, %v11992_v51  ;;  %v5930_v25 = vmul.f32 %v12536_v46, %v11992_v51 }
 0x5fd   : > { %v6444_v9 = vadd.f32 %v11798_v50, %v6443_v13  ;;  %v6174_v13 = vpack.c.b16 %v6155_v22, %v6154_v42 }
 0x5fe   : > { %v6025_v28 = vadd.f32 %v5993_v7, %v5960_v3  ;;  %v5635_v3 = vmul.f32 %v12533_v11, %v11951_v19 }
 0x5ff   : > { %v6516_v30 = vmax.f32 %v6444_v9, 0.0  ;;  %v5601_v9 = vld [vmem:[#allocation2 + $0x189] sm:$0xff]  ;;  %v6340_v21 = vsel %vm460_vm0, %v6174_v13, %v6283_v18 }
 0x600   : > { %v5667_v39 = vadd.f32 %v5635_v3, %v5566_v4  ;;  %v5701_v19 = vmul.f32 %v12531_v53, %v5601_v9 }
 0x601   : > { %v6548_v55 = vmin.f32 %v6516_v30, 6.0  ;;  %6485 = vmatmul.bf16.gmra.mxu2 %v6336_v16  ;;  %v5437_v30 = vmul.f32 %v12532_v24, %v11915_v5  ;;  %v6061_v24 = vadd.f32 %v11854_v38, %v6025_v28  ;;  %v5795_v5 = vadd.f32 %v5763_v15, %v5730_v58  ;;  %v5602_v58 = vld [vmem:[#allocation2 + $0x199] sm:$0xff] }
 0x602   : > { %v5995_v28 = vmul.f32 %v11764_v34, %v5832_v63  ;;  %v5765_v18 = vmul.f32 %v12538_v36, %v5602_v58 }
 0x603   : > { %6580 = vst.msk [vmem:[%s11838_s17 + $0x28] sm:$0xff] %vm460_vm0, %v6548_v55  ;;  %v5764_v55 = vmul.f32 %v12538_v36, %v5601_v9  ;;  %v5502_v6 = vadd.f32 %v5470_v61, %v5437_v30  ;;  %v6093_v40 = vpack.c.bf16 %v6061_v24, %v6061_v24 }
 0x604   : > { %v6446_v56 = vpop.f32.mrf.mxu2 }
 0x605   : > { %v6447_v0 = vadd.f32 %v11798_v50, %v6446_v56  ;;  %v5796_v60 = vadd.f32 %v5764_v55, %v5731_v12  ;;  %v6092_v56 = vpack.c.bf16 %v6060_v29, %v6060_v29  ;;  %v5567_v42 = vadd.f32 %v5535_v49, %v5502_v6  ;;  %v5603_v12 = vld [vmem:[#allocation2 + $0x1a1] sm:$0xff]  ;;  %v6285_v55 = vpop.permute.xlu0 %6284 }
 0x606   : > { %v6157_v14 = vunpack.c.l.b16 %v6093_v40 }
 0x607   : > { %v6517_v54 = vmax.f32 %v6447_v0, 0.0  ;;  %v5896_v0 = vadd.f32 %v5864_v31, %v5795_v5  ;;  %v5897_v41 = vadd.f32 %v5865_v20, %v5796_v60  ;;  %v6156_v43 = vunpack.c.l.b16 %v6092_v56 }
 0x608   : > { %v5668_v2 = vadd.f32 %v5636_v33, %v5567_v42  ;;  %v5932_v20 = vmul.f32 %v12536_v46, %v5832_v63 }
 0x609   : > { %v6549_v52 = vmin.f32 %v6517_v54, 6.0  ;;  %v5831_v54 = vld [vmem:[#allocation2 + $0x182] sm:$0xff]  ;;  %v5962_v7 = vadd.f32 %v5930_v25, %v5897_v41  ;;  %v6175_v11 = vpack.c.b16 %v6157_v14, %v6156_v43 }
 0x60a   : > { %v5994_v32 = vmul.f32 %v11764_v34, %v5831_v54  ;;  %v5733_v61 = vadd.f32 %v5701_v19, %v5668_v2  ;;  %v5931_v31 = vmul.f32 %v12536_v46, %v5831_v54  ;;  %v6287_v46 = vpop.permute.xlu1 %6286 }
 0x60b   : > { %6581 = vst.msk [vmem:[%s11838_s17 + $0x30] sm:$0xff] %vm460_vm0, %v6549_v52  ;;  %v5961_v52 = vadd.f32 %v5929_v47, %v5896_v0  ;;  %v6027_v8 = vadd.f32 %v5995_v28, %v5962_v7 }
 0x60c   : > { %v6448_v57 = vpop.f32.mrf.mxu2 }
 0x60d   : > { %v6449_v16 = vadd.f32 %v11798_v50, %v6448_v57  ;;  %v5700_v57 = vmul.f32 %v12531_v53, %v5600_v10  ;;  %v6026_v1 = vadd.f32 %v5994_v32, %v5961_v52  ;;  %v6344_v53 = vsel %vm460_vm0, %v6175_v11, %v6285_v55  ;;  %v6289_v58 = vpop.permute.xlu0 %6288 }
 0x60e   : > { %v6063_v9 = vadd.f32 %v11854_v38, %v6027_v8 }
 0x60f   : > { %v6518_v26 = vmax.f32 %v6449_v16, 0.0  ;;  %v5732_v48 = vadd.f32 %v5700_v57, %v5667_v39  ;;  %v5766_v16 = vmul.f32 %v12538_v36, %v5603_v12  ;;  %v6062_v10 = vadd.f32 %v11854_v38, %v6026_v1 }
 0x610   : > { %v5867_v36 = vmul.f32 %v12541_v62, %v11992_v51  ;;  %v6095_v60 = vpack.c.bf16 %v6063_v9, %v6063_v9 }
 0x611   : > { %v6550_v35 = vmin.f32 %v6518_v26, 6.0  ;;  %6490 = vmatmul.bf16.gmra.mxu2 %v6340_v21  ;;  %v5797_v45 = vadd.f32 %v5765_v18, %v5732_v48  ;;  %v5798_v21 = vadd.f32 %v5766_v16, %v5733_v61  ;;  %v5866_v26 = vmul.f32 %v12541_v62, %v11984_v23 }
 0x612   : > { %v6094_v24 = vpack.c.bf16 %v6062_v10, %v6062_v10  ;;  %v5996_v62 = vmul.f32 %v11764_v34, %v5833_v59  ;;  %v6159_v51 = vunpack.c.l.b16 %v6095_v60 }
 0x613   : > { %6582 = vst.msk [vmem:[%s11838_s17 + $0x38] sm:$0xff] %vm460_vm0, %v6550_v35  ;;  %v5898_v6 = vadd.f32 %v5866_v26, %v5797_v45  ;;  %v5899_v37 = vadd.f32 %v5867_v36, %v5798_v21  ;;  %v5834_v35 = vld [vmem:[#allocation2 + $0x1a2] sm:$0xff] }
 0x614   : > { %v6451_v17 = vpop.f32.mrf.mxu2  ;;  %v6158_v56 = vunpack.c.l.b16 %v6094_v24  ;;  %v5997_v41 = vmul.f32 %v11764_v34, %v5834_v35 }
 0x615   : > { %v6452_v22 = vadd.f32 %v11798_v50, %v6451_v17  ;;  %v5963_v40 = vadd.f32 %v5931_v31, %v5898_v6  ;;  %v5964_v0 = vadd.f32 %v5932_v20, %v5899_v37 }
 0x616   : > { %v6176_v42 = vpack.c.b16 %v6159_v51, %v6158_v56 }
 0x617   : > { %v6519_v44 = vmax.f32 %v6452_v22, 0.0  ;;  %v6028_v22 = vadd.f32 %v5996_v62, %v5963_v40  ;;  %v6029_v47 = vadd.f32 %v5997_v41, %v5964_v0 }
 0x618   : > { %v6348_v54 = vsel %vm460_vm0, %v6176_v42, %v6287_v46 }
 0x619   : > { %v6551_v13 = vmin.f32 %v6519_v44, 6.0  ;;  %v6064_v63 = vadd.f32 %v11854_v38, %v6028_v22  ;;  %v6065_v3 = vadd.f32 %v11854_v38, %v6029_v47 }
 0x61b   : > { %6583 = vst.msk [vmem:[%s11838_s17 + $0x40] sm:$0xff] %vm460_vm0, %v6551_v13  ;;  %v6096_v44 = vpack.c.bf16 %v6064_v63, %v6064_v63  ;;  %v6097_v14 = vpack.c.bf16 %v6065_v3, %v6065_v3 }
 0x61c   : > { %v6453_v30 = vpop.f32.mrf.mxu2 }
 0x61d   : > { %v6454_v15 = vadd.f32 %v11798_v50, %v6453_v30  ;;  %v6160_v39 = vunpack.c.l.b16 %v6096_v44  ;;  %v6161_v2 = vunpack.c.l.b16 %v6097_v14 }
 0x61f   : > { %v6520_v27 = vmax.f32 %v6454_v15, 0.0  ;;  %v6177_v28 = vpack.c.b16 %v6161_v2, %v6160_v39 }
 0x621   : > { %v6552_v29 = vmin.f32 %v6520_v27, 6.0  ;;  %6495 = vmatmul.bf16.gmra.mxu2 %v6344_v53  ;;  %v6352_v57 = vsel %vm460_vm0, %v6177_v28, %v6289_v58 }
 0x623   : > { %6584 = vst.msk [vmem:[%s11838_s17 + $0x48] sm:$0xff] %vm460_vm0, %v6552_v29 }
 0x624   : > { %v6456_v5 = vpop.f32.mrf.mxu2 }
 0x625   : > { %v6457_v49 = vadd.f32 %v11798_v50, %v6456_v5 }
 0x627   : > { %v6521_v23 = vmax.f32 %v6457_v49, 0.0 }
 0x629   : > { %v6553_v17 = vmin.f32 %v6521_v23, 6.0 }
 0x62b   : > { %6585 = vst.msk [vmem:[%s11838_s17 + $0x50] sm:$0xff] %vm460_vm0, %v6553_v17 }
 0x62c   : > { %v6458_v4 = vpop.f32.mrf.mxu2 }
 0x62d   : > { %v6459_v25 = vadd.f32 %v11798_v50, %v6458_v4 }
 0x62f   : > { %v6522_v43 = vmax.f32 %v6459_v25, 0.0 }
 0x631   : > { %v6554_v33 = vmin.f32 %v6522_v43, 6.0  ;;  %6500 = vmatmul.bf16.gmra.mxu2 %v6348_v54 }
 0x633   : > { %6586 = vst.msk [vmem:[%s11838_s17 + $0x58] sm:$0xff] %vm460_vm0, %v6554_v33 }
 0x634   : > { %v6461_v34 = vpop.f32.mrf.mxu2 }
 0x635   : > { %v6462_v52 = vadd.f32 %v11798_v50, %v6461_v34 }
 0x637   : > { %v6523_v7 = vmax.f32 %v6462_v52, 0.0 }
 0x639   : > { %v6555_v13 = vmin.f32 %v6523_v7, 6.0 }
 0x63b   : > { %6587 = vst.msk [vmem:[%s11838_s17 + $0x60] sm:$0xff] %vm460_vm0, %v6555_v13 }
 0x63c   : > { %v6463_v32 = vpop.f32.mrf.mxu2 }
 0x63d   : > { %v6464_v38 = vadd.f32 %v11798_v50, %v6463_v32 }
 0x63f   : > { %v6524_v12 = vmax.f32 %v6464_v38, 0.0 }
 0x641   : > { %v6556_v19 = vmin.f32 %v6524_v12, 6.0  ;;  %6505 = vmatmul.bf16.gmra.mxu2 %v6352_v57 }
 0x643   : > { %6588 = vst.msk [vmem:[%s11838_s17 + $0x68] sm:$0xff] %vm460_vm0, %v6556_v19 }
 0x644   : > { %v6466_v11 = vpop.f32.mrf.mxu2 }
 0x645   : > { %v6467_v1 = vadd.f32 %v11798_v50, %v6466_v11 }
 0x647   : > { %v6525_v8 = vmax.f32 %v6467_v1, 0.0 }
 0x649   : > { %v6557_v30 = vmin.f32 %v6525_v8, 6.0 }
 0x64b   : > { %6589 = vst.msk [vmem:[%s11838_s17 + $0x70] sm:$0xff] %vm460_vm0, %v6557_v30 }
 0x64c   : > { %v6468_v48 = vpop.f32.mrf.mxu2 }
 0x64d   : > { %v6469_v61 = vadd.f32 %v11798_v50, %v6468_v48 }
 0x64f   : > { %v6526_v18 = vmax.f32 %v6469_v61, 0.0 }
 0x651   : > { %v6558_v16 = vmin.f32 %v6526_v18, 6.0 }
 0x653   : > { %6590 = vst.msk [vmem:[%s11838_s17 + $0x78] sm:$0xff] %vm460_vm0, %v6558_v16 }
 0x654   : > { %v6471_v15 = vpop.f32.mrf.mxu2 }
 0x655   : > { %v6472_v55 = vadd.f32 %v11798_v50, %v6471_v15 }
 0x657   : > { %v6527_v27 = vmax.f32 %v6472_v55, 0.0 }
 0x659   : > { %v6559_v10 = vmin.f32 %v6527_v27, 6.0 }
 0x65b   : > { %6591 = vst.msk [vmem:[%s11838_s17 + $0x80] sm:$0xff] %vm460_vm0, %v6559_v10 }
 0x65c   : > { %v6473_v53 = vpop.f32.mrf.mxu2 }
 0x65d   : > { %v6474_v9 = vadd.f32 %v11798_v50, %v6473_v53 }
 0x65f   : > { %v6528_v45 = vmax.f32 %v6474_v9, 0.0 }
 0x661   : > { %v6560_v21 = vmin.f32 %v6528_v45, 6.0 }
 0x663   : > { %6592 = vst.msk [vmem:[%s11838_s17 + $0x88] sm:$0xff] %vm460_vm0, %v6560_v21 }
 0x664   : > { %v6476_v29 = vpop.f32.mrf.mxu2 }
 0x665   : > { %v6477_v26 = vadd.f32 %v11798_v50, %v6476_v29 }
 0x667   : > { %v6529_v36 = vmax.f32 %v6477_v26, 0.0 }
 0x669   : > { %v6561_v24 = vmin.f32 %v6529_v36, 6.0 }
 0x66b   : > { %6593 = vst.msk [vmem:[%s11838_s17 + $0x90] sm:$0xff] %vm460_vm0, %v6561_v24 }
 0x66c   : > { %v6478_v5 = vpop.f32.mrf.mxu2 }
 0x66d   : > { %v6479_v60 = vadd.f32 %v11798_v50, %v6478_v5 }
 0x66f   : > { %v6530_v59 = vmax.f32 %v6479_v60, 0.0 }
 0x671   : > { %v6562_v6 = vmin.f32 %v6530_v59, 6.0 }
 0x673   : > { %6594 = vst.msk [vmem:[%s11838_s17 + $0x98] sm:$0xff] %vm460_vm0, %v6562_v6 }
 0x674   : > { %v6481_v37 = vpop.f32.mrf.mxu2 }
 0x675   : > { %v6482_v49 = vadd.f32 %v11798_v50, %v6481_v37 }
 0x677   : > { %v6531_v35 = vmax.f32 %v6482_v49, 0.0 }
 0x679   : > { %v6563_v31 = vmin.f32 %v6531_v35, 6.0 }
 0x67b   : > { %6595 = vst.msk [vmem:[%s11838_s17 + $0xa0] sm:$0xff] %vm460_vm0, %v6563_v31 }
 0x67c   : > { %v6483_v20 = vpop.f32.mrf.mxu2 }
 0x67d   : > { %v6484_v23 = vadd.f32 %v11798_v50, %v6483_v20 }
 0x67f   : > { %v6532_v56 = vmax.f32 %v6484_v23, 0.0 }
 0x681   : > { %v6564_v62 = vmin.f32 %v6532_v56, 6.0 }
 0x683   : > { %6596 = vst.msk [vmem:[%s11838_s17 + $0xa8] sm:$0xff] %vm460_vm0, %v6564_v62 }
 0x684   : > { %v6486_v51 = vpop.f32.mrf.mxu2 }
 0x685   : > { %v6487_v40 = vadd.f32 %v11798_v50, %v6486_v51 }
 0x687   : > { %v6533_v0 = vmax.f32 %v6487_v40, 0.0 }
 0x689   : > { %v6565_v41 = vmin.f32 %v6533_v0, 6.0 }
 0x68b   : > { %6597 = vst.msk [vmem:[%s11838_s17 + $0xb0] sm:$0xff] %vm460_vm0, %v6565_v41 }
 0x68c   : > { %v6488_v17 = vpop.f32.mrf.mxu2 }
 0x68d   : > { %v6489_v4 = vadd.f32 %v11798_v50, %v6488_v17 }
 0x68f   : > { %v6534_v42 = vmax.f32 %v6489_v4, 0.0 }
 0x691   : > { %v6566_v22 = vmin.f32 %v6534_v42, 6.0 }
 0x693   : > { %6598 = vst.msk [vmem:[%s11838_s17 + $0xb8] sm:$0xff] %vm460_vm0, %v6566_v22 }
 0x694   : > { %v6491_v47 = vpop.f32.mrf.mxu2 }
 0x695   : > { %v6492_v25 = vadd.f32 %v11798_v50, %v6491_v47 }
 0x697   : > { %v6535_v46 = vmax.f32 %v6492_v25, 0.0 }
 0x699   : > { %v6567_v43 = vmin.f32 %v6535_v46, 6.0 }
 0x69b   : > { %6599 = vst.msk [vmem:[%s11838_s17 + $0xc0] sm:$0xff] %vm460_vm0, %v6567_v43 }
 0x69c   : > { %v6493_v54 = vpop.f32.mrf.mxu2 }
 0x69d   : > { %v6494_v63 = vadd.f32 %v11798_v50, %v6493_v54 }
 0x69f   : > { %v6536_v3 = vmax.f32 %v6494_v63, 0.0 }
 0x6a1   : > { %v6568_v33 = vmin.f32 %v6536_v3, 6.0 }
 0x6a3   : > { %6600 = vst.msk [vmem:[%s11838_s17 + $0xc8] sm:$0xff] %vm460_vm0, %v6568_v33 }
 0x6a4   : > { %v6496_v34 = vpop.f32.mrf.mxu2 }
 0x6a5   : > { %v6497_v44 = vadd.f32 %v11798_v50, %v6496_v34 }
 0x6a7   : > { %v6537_v14 = vmax.f32 %v6497_v44, 0.0 }
 0x6a9   : > { %v6569_v52 = vmin.f32 %v6537_v14, 6.0 }
 0x6ab   : > { %6601 = vst.msk [vmem:[%s11838_s17 + $0xd0] sm:$0xff] %vm460_vm0, %v6569_v52 }
 0x6ac   : > { %v6498_v7 = vpop.f32.mrf.mxu2 }
 0x6ad   : > { %v6499_v39 = vadd.f32 %v11798_v50, %v6498_v7 }
 0x6af   : > { %v6538_v2 = vmax.f32 %v6499_v39, 0.0 }
 0x6b1   : > { %v6570_v13 = vmin.f32 %v6538_v2, 6.0 }
 0x6b3   : > { %6602 = vst.msk [vmem:[%s11838_s17 + $0xd8] sm:$0xff] %vm460_vm0, %v6570_v13 }
 0x6b4   : > { %v6501_v32 = vpop.f32.mrf.mxu2 }
 0x6b5   : > { %v6502_v28 = vadd.f32 %v11798_v50, %v6501_v32 }
 0x6b7   : > { %v6539_v38 = vmax.f32 %v6502_v28, 0.0 }
 0x6b9   : > { %v6571_v58 = vmin.f32 %v6539_v38, 6.0 }
 0x6bb   : > { %6603 = vst.msk [vmem:[%s11838_s17 + $0xe0] sm:$0xff] %vm460_vm0, %v6571_v58 }
 0x6bc   : > { %v6503_v12 = vpop.f32.mrf.mxu2 }
 0x6bd   : > { %v6504_v57 = vadd.f32 %v11798_v50, %v6503_v12 }
 0x6bf   : > { %v6540_v19 = vmax.f32 %v6504_v57, 0.0 }
 0x6c1   : > { %v6572_v11 = vmin.f32 %v6540_v19, 6.0 }
 0x6c3   : > { %6604 = vst.msk [vmem:[%s11838_s17 + $0xe8] sm:$0xff] %vm460_vm0, %v6572_v11 }
 0x6c4   : > { %v6506_v1 = vpop.f32.mrf.mxu2 }
 0x6c5   : > { %v6507_v8 = vadd.f32 %v11798_v50, %v6506_v1 }
 0x6c7   : > { %v6541_v30 = vmax.f32 %v6507_v8, 0.0 }
 0x6c9   : > { %v6573_v48 = vmin.f32 %v6541_v30, 6.0 }
 0x6cb   : > { %6605 = vst.msk [vmem:[%s11838_s17 + $0xf0] sm:$0xff] %vm460_vm0, %v6573_v48 }
 0x6cc   : > { %v6508_v61 = vpop.f32.mrf.mxu2 }
 0x6cd   : > { %v6509_v18 = vadd.f32 %v11798_v50, %v6508_v61 }
 0x6cf   : > { %v6542_v16 = vmax.f32 %v6509_v18, 0.0 }
 0x6d1   : > { %v6574_v15 = vmin.f32 %v6542_v16, 6.0 }
 0x6d3   : > { %6606 = vst.msk [vmem:[%s11838_s17 + $0xf8] sm:$0xff] %vm460_vm0, %v6574_v15 }
 0x6d4   : > { %7355 = shalt.err (!%p7352_p3)
}
 0x6d5   : > { %s7394_s30 = smov 128   ;;  %s7395_s17 = smov 8  }
 0x6d6   : > { %7138 = dma.vmem_to_hbm [thread:$0]  (%p7504_p5), %s6621_s15, 4096, %s6623_s16, %s6608_s29, %s7394_s30, %s7394_s30, %s7395_s17  }
 0x6d7 PF: > { %p7144_p4 = scmp.ge.s32.totalorder %s7390_s28, 2  ;;  %s6637_s21 = sand.u32 1, %s7378_s25  }
 0x6d8   : > { %s6638_s0 = scalar_lea.sflag [#allocation4], %s6637_s21 }
 0x6d9   : > { %p7141_p7 = pnand %p7144_p4, %p7508_p6 }
 0x6db   : > { %p7142_p8 = pneg %p7141_p7 }
 0x6dd   : > { %7373 = dma.done.wait (%p7142_p8), %s6638_s0, 4096  }
 0x6de   : > { %7375 = vsyncadd (%p7142_p8), %s6638_s0, 4294963200  ;;  %s12545_s24 = sld [smem:[#allocation6_spill]]  ;;  %p23_p9 = scmp.ge.s32.totalorder %s7491_s14, 4  }
 0x6df   : > { %s12546_s27 = sld [smem:[#allocation7_spill]]  ;;  %s12547_s25 = smov %s7382_s26 }
 0x6e0   : > { %s12549_s28 = smov %s7491_s14  ;;  %25 = sbr.rel (!%p23_p9) target bundleno = 5 (0x5), region = 119 }
 0x6e4   : > { %s12548_s26 = smov %s12545_s24 }
 0x6e5   :  { %6644 = vsyncpa [#allocation4], 1 }
 0x6e6   :  { %6646 = vsyncpa [#allocation4 + $0x1], 1 }

</bundles_post_ra>
